<compile_context>
chip_gen: v6e
topology: v6e:2x2x1
jax: 0.10.0
libtpu: 0.0.40
codegen_flags: <defaults>
</compile_context>

<pallas_src>
import jax
import jax.numpy as jnp
from jax.experimental import pallas as pl
from jax.experimental.pallas import tpu as pltpu

NEG_SLOPE = 0.3
C = 12            # ECG leads / conv channels
GRU_H = 25        # gru_hidden_size
G3 = 3 * GRU_H    # gate-stacked [r|z|n]
ATTN_H = 10       # attn_hidden_size
OUT_H = 25        # out_hidden_size
N_CLASSES = 9
N_BLOCKS = 5


def _leaky(x):
    # leaky_relu(negative_slope=0.3); slope < 1 so the max form is exact.
    return jnp.maximum(x, NEG_SLOPE * x)


def chen_fused_kernel(
    x_ref,                                           # (B*L, 12) batch-major, channels-last
    cw1_ref, cb1_ref, cw2_ref, cb2_ref,              # (5,12,36), (5,1,12), ...
    wi_f_ref, wh_f_ref, bi_f_ref, bh_f_ref,          # GRU fwd, gate-stacked [r|z|n]
    wi_b_ref, wh_b_ref, bi_b_ref, bh_b_ref,          # GRU bwd
    w1f_ref, w1b_ref, b1_ref, w2_ref, b2_ref,        # attention head
    wo1f_ref, wo1b_ref, bo1_ref, wo2_ref, bo2_ref,   # output layers
    o_ref,                                           # (B, 9)
    pool_ref,                                        # (B*L, 12) reused maxpool scratch
    gif_ref, gib_ref,                                # (B*T, 75) GRU input projections
    gof_ref, gob_ref,                                # (T*B, 25) GRU outputs (time-major)
):
    B = o_ref.shape[0]
    L = x_ref.shape[0] // B
    T = L >> N_BLOCKS
    H = GRU_H
    f32 = jnp.float32

    # ------------------------- CNN stage (batch-folded) ----------------------
    v = x_ref[...]                                           # (B*L, 12)
    for i in range(N_BLOCKS):
        seg = L >> i                       # per-sequence length at this block
        n = B * seg
        row = jax.lax.broadcasted_iota(jnp.int32, (n, C), 0)
        first = row == 0                   # first row of each batch segment
        last = row == seg - 1              # last row of each batch segment
        for b in range(1, B):
            first = jnp.logical_or(first, row == b * seg)
            last = jnp.logical_or(last, row == b * seg + seg - 1)
        zrow = jnp.zeros((1, C), f32)

        def conv(u, w_ref, b_ref, blk=i, first=first, last=last, n=n, zrow=zrow):
            # One matmul against [W_{k=0}|W_{k=1}|W_{k=2}] (12,36).  The k=0/k=2
            # tap offsets are realized by shifting the *products* by +-1 row and
            # zero-masking segment-boundary rows ('same' zero padding per batch).
            p = jnp.dot(u, w_ref[blk], preferred_element_type=f32)   # (n, 36)
            p0 = p[:, 0:C]                 # x[t]@W0  -> contributes to y[t+1]
            p1 = p[:, C:2 * C]             # x[t]@W1  -> contributes to y[t]
            p2 = p[:, 2 * C:3 * C]         # x[t]@W2  -> contributes to y[t-1]
            down = jnp.concatenate([zrow, p0[:n - 1, :]], axis=0)    # P0[t-1]
            up = jnp.concatenate([p2[1:, :], zrow], axis=0)          # P2[t+1]
            return (jnp.where(first, 0.0, down) + p1
                    + jnp.where(last, 0.0, up) + b_ref[blk])

        h1 = _leaky(conv(v, cw1_ref, cb1_ref))
        h2 = _leaky(conv(h1, cw2_ref, cb2_ref))
        # MaxPool1d(kernel=2, stride=2): stage through the single shared VMEM
        # scratch, read back with stride-2 pl.ds slices (proven-safe path).
        pool_ref[pl.ds(0, n), :] = h2
        even = pool_ref[pl.ds(0, n // 2, stride=2), :]
        odd = pool_ref[pl.ds(1, n // 2, stride=2), :]
        v = _leaky(jnp.maximum(even, odd))
        # TODO(synk): dropout(p=0.2) between blocks omitted (inference mode).

    # ----------------- GRU input projections (2 matmuls total) ---------------
    # v is now the (B*T, 12) GRU input, batch-major (row = b*T + t), which is
    # exactly the gi scratch layout; the recurrence reads (B,75) slices with a
    # stride-T pl.ds per step.
    gif_ref[...] = (jnp.dot(v, wi_f_ref[...], preferred_element_type=f32)
                    + bi_f_ref[...])
    gib_ref[...] = (jnp.dot(v, wi_b_ref[...], preferred_element_type=f32)
                    + bi_b_ref[...])

    # --------------- bidirectional GRU recurrence (interleaved) --------------
    whf = wh_f_ref[...]; bhf = bh_f_ref[...]
    whb = wh_b_ref[...]; bhb = bh_b_ref[...]
    hf = jnp.zeros((B, H), f32)
    hb = jnp.zeros((B, H), f32)
    for s in range(T):
        tf = s
        tb = T - 1 - s
        gf = gif_ref[pl.ds(tf, B, stride=T), :]                     # (B, 75)
        gb = gib_ref[pl.ds(tb, B, stride=T), :]
        hhf = jnp.dot(hf, whf, preferred_element_type=f32) + bhf    # (B, 75)
        hhb = jnp.dot(hb, whb, preferred_element_type=f32) + bhb
        af = gf + hhf
        ab = gb + hhb
        rf = jax.nn.sigmoid(af[:, 0:H])
        rb = jax.nn.sigmoid(ab[:, 0:H])
        zf = jax.nn.sigmoid(af[:, H:2 * H])
        zb = jax.nn.sigmoid(ab[:, H:2 * H])
        nf = jnp.tanh(gf[:, 2 * H:] + rf * hhf[:, 2 * H:])
        nb = jnp.tanh(gb[:, 2 * H:] + rb * hhb[:, 2 * H:])
        hf = nf + zf * (hf - nf)           # == (1-z)*n + z*h
        hb = nb + zb * (hb - nb)
        gof_ref[pl.ds(tf * B, B), :] = hf  # contiguous slab store (time-major)
        gob_ref[pl.ds(tb * B, B), :] = hb

    # ------------------- attention + output head (per batch) -----------------
    w1f = w1f_ref[...]; w1b = w1b_ref[...]; b1 = b1_ref[...]
    w2 = w2_ref[...]; b2 = b2_ref[...]
    wo1f = wo1f_ref[...]; wo1b = wo1b_ref[...]; bo1 = bo1_ref[...]
    wo2 = wo2_ref[...]; bo2 = bo2_ref[...]
    for b in range(B):
        xf = _leaky(gof_ref[pl.ds(b, T, stride=B), :])       # (T, 25) leaky(gru fwd)
        xb = _leaky(gob_ref[pl.ds(b, T, stride=B), :])       # (T, 25) leaky(gru bwd)
        # TODO(synk): dropout after the GRU / inside the head omitted (inference).
        a1 = _leaky(jnp.dot(xf, w1f, preferred_element_type=f32)
                    + jnp.dot(xb, w1b, preferred_element_type=f32) + b1)   # (T, 10)
        raw = jnp.sum(a1 * w2, axis=1, keepdims=True) + b2                  # (T, 1)
        sig = jax.nn.sigmoid(raw)
        attn = sig / jnp.sum(sig, axis=0, keepdims=True)     # logistic_norm over T
        pf = _leaky(jnp.sum(xf * attn, axis=0, keepdims=True))              # (1, 25)
        pb = _leaky(jnp.sum(xb * attn, axis=0, keepdims=True))
        o1 = _leaky(jnp.dot(pf, wo1f, preferred_element_type=f32)
                    + jnp.dot(pb, wo1b, preferred_element_type=f32) + bo1)  # (1, 25)
        o_ref[pl.ds(b, 1), :] = (jnp.dot(o1, wo2, preferred_element_type=f32) + bo2)


# --------------------------------------------------------------------------
# Wrapper: one pallas_call for the whole forward pass.
# NOTE: single-program call (no grid).  On v7x a batch-parallel grid
# (grid=(B//tile,), dimension_semantics=("parallel",)) would engage the second
# TensorCore; skipped here to keep the batch folded into the matmul M dim,
# which is the better trade on v5e/v6e and at small B.
# --------------------------------------------------------------------------
def chen_model_forward(x_ncl, params):
    """x_ncl: (B, 12, L) float32 in the PyTorch NCL layout."""
    B, _, L = x_ncl.shape
    assert L % (1 << N_BLOCKS) == 0, "L must be divisible by 2**5"
    T = L >> N_BLOCKS
    x = jnp.transpose(x_ncl, (0, 2, 1)).astype(jnp.float32).reshape(B * L, C)
    g, hd = params['gru'], params['head']
    return pl.pallas_call(
        chen_fused_kernel,
        out_shape=jax.ShapeDtypeStruct((B, N_CLASSES), jnp.float32),
        scratch_shapes=[
            pltpu.VMEM((B * L, C), jnp.float32),        # shared maxpool scratch
            pltpu.VMEM((B * T, G3), jnp.float32),       # gi fwd (batch-major)
            pltpu.VMEM((B * T, G3), jnp.float32),       # gi bwd (batch-major)
            pltpu.VMEM((T * B, GRU_H), jnp.float32),    # gru fwd out (time-major)
            pltpu.VMEM((T * B, GRU_H), jnp.float32),    # gru bwd out (time-major)
        ],
    )(x,
      params['cw1'], params['cb1'], params['cw2'], params['cb2'],
      g['wi_f'], g['wh_f'], g['bi_f'], g['bh_f'],
      g['wi_b'], g['wh_b'], g['bi_b'], g['bh_b'],
      hd['w1f'], hd['w1b'], hd['b1'], hd['w2'], hd['b2'],
      hd['wo1f'], hd['wo1b'], hd['bo1'], hd['wo2'], hd['bo2'])


# --------------------------------------------------------------------------
# Deterministic parameter init (shapes mirror the PyTorch __init__, stored in
# kernel-friendly layout: conv weights tap-fused (blk, 12, 36) with taps
# [k=0|k=1|k=2] along the last axis, GRU weights gate-stacked [r|z|n] along a
# 75-wide axis, head weights pre-split into forward/backward halves).
# --------------------------------------------------------------------------
def init_params(key):
    keys = iter(jax.random.split(key, 64))

    def u(shape, scale):
        return jax.random.uniform(next(keys), shape, jnp.float32, -scale, scale)

    sc = 1.0 / (C * 3) ** 0.5
    params = dict(
        cw1=u((N_BLOCKS, C, 3 * C), sc), cb1=u((N_BLOCKS, 1, C), sc),
        cw2=u((N_BLOCKS, C, 3 * C), sc), cb2=u((N_BLOCKS, 1, C), sc))

    sg = 1.0 / GRU_H ** 0.5
    params['gru'] = dict(
        wi_f=u((C, G3), sg), wh_f=u((GRU_H, G3), sg),
        bi_f=u((1, G3), sg), bh_f=u((1, G3), sg),
        wi_b=u((C, G3), sg), wh_b=u((GRU_H, G3), sg),
        bi_b=u((1, G3), sg), bh_b=u((1, G3), sg))

    d = 2 * GRU_H
    sd = 1.0 / d ** 0.5
    params['head'] = dict(
        w1f=u((GRU_H, ATTN_H), sd), w1b=u((GRU_H, ATTN_H), sd), b1=u((1, ATTN_H), sd),
        w2=u((1, ATTN_H), 1 / ATTN_H ** 0.5), b2=u((1, 1), 1 / ATTN_H ** 0.5),
        wo1f=u((GRU_H, OUT_H), sd), wo1b=u((GRU_H, OUT_H), sd), bo1=u((1, OUT_H), sd),
        wo2=u((OUT_H, N_CLASSES), 1 / OUT_H ** 0.5),
        bo2=u((1, N_CLASSES), 1 / OUT_H ** 0.5))
    return params


if __name__ == "__main__":
    B, L = 2, 256                       # L must be divisible by 2**5 = 32
    kx, kp = jax.random.split(jax.random.PRNGKey(0))
    x = jax.random.normal(kx, (B, C, L), jnp.float32)
    params = init_params(kp)

    y = jax.jit(chen_model_forward)(x, params)
    y = jax.block_until_ready(y)
    assert y.shape == (B, N_CLASSES) and y.dtype == jnp.float32
    print("KERNEL_OK")
</pallas_src>

<mosaic_0001>
module attributes {stable_mosaic.version = 11 : i64} {
  func.func @chen_fused_kernel(%arg0: memref<512x12xf32, #tpu.memory_space<vmem>>, %arg1: memref<5x12x36xf32, #tpu.memory_space<vmem>>, %arg2: memref<5x1x12xf32, #tpu.memory_space<vmem>>, %arg3: memref<5x12x36xf32, #tpu.memory_space<vmem>>, %arg4: memref<5x1x12xf32, #tpu.memory_space<vmem>>, %arg5: memref<12x75xf32, #tpu.memory_space<vmem>>, %arg6: memref<25x75xf32, #tpu.memory_space<vmem>>, %arg7: memref<1x75xf32, #tpu.memory_space<vmem>>, %arg8: memref<1x75xf32, #tpu.memory_space<vmem>>, %arg9: memref<12x75xf32, #tpu.memory_space<vmem>>, %arg10: memref<25x75xf32, #tpu.memory_space<vmem>>, %arg11: memref<1x75xf32, #tpu.memory_space<vmem>>, %arg12: memref<1x75xf32, #tpu.memory_space<vmem>>, %arg13: memref<25x10xf32, #tpu.memory_space<vmem>>, %arg14: memref<25x10xf32, #tpu.memory_space<vmem>>, %arg15: memref<1x10xf32, #tpu.memory_space<vmem>>, %arg16: memref<1x10xf32, #tpu.memory_space<vmem>>, %arg17: memref<1x1xf32, #tpu.memory_space<vmem>>, %arg18: memref<25x25xf32, #tpu.memory_space<vmem>>, %arg19: memref<25x25xf32, #tpu.memory_space<vmem>>, %arg20: memref<1x25xf32, #tpu.memory_space<vmem>>, %arg21: memref<25x9xf32, #tpu.memory_space<vmem>>, %arg22: memref<1x9xf32, #tpu.memory_space<vmem>>, %arg23: memref<2x9xf32, #tpu.memory_space<vmem>>, %arg24: memref<512x12xf32, #tpu.memory_space<vmem>>, %arg25: memref<16x75xf32, #tpu.memory_space<vmem>>, %arg26: memref<16x75xf32, #tpu.memory_space<vmem>>, %arg27: memref<16x25xf32, #tpu.memory_space<vmem>>, %arg28: memref<16x25xf32, #tpu.memory_space<vmem>>) attributes {dimension_semantics = [], scalar_prefetch = 0 : i64, scratch_operands = 5 : i64, tpu.core_type = #tpu.core_type<tc>} {
    %c0 = arith.constant 0 : index
    %c0_0 = arith.constant 0 : index
    %0 = vector.load %arg0[%c0, %c0_0] : memref<512x12xf32, #tpu.memory_space<vmem>>, vector<512x12xf32>
    %1 = tpu.iota {dimensions = array<i32: 0>} : vector<512x12xi32>
    %c0_i32 = arith.constant 0 : i32
    %2 = vector.broadcast %c0_i32 : i32 to vector<512x12xi32>
    %3 = arith.cmpi eq, %1, %2 : vector<512x12xi32>
    %c255_i32 = arith.constant 255 : i32
    %4 = vector.broadcast %c255_i32 : i32 to vector<512x12xi32>
    %5 = arith.cmpi eq, %1, %4 : vector<512x12xi32>
    %c256_i32 = arith.constant 256 : i32
    %6 = vector.broadcast %c256_i32 : i32 to vector<512x12xi32>
    %7 = arith.cmpi eq, %1, %6 : vector<512x12xi32>
    %8 = arith.ori %3, %7 : vector<512x12xi1>
    %c511_i32 = arith.constant 511 : i32
    %9 = vector.broadcast %c511_i32 : i32 to vector<512x12xi32>
    %10 = arith.cmpi eq, %1, %9 : vector<512x12xi32>
    %11 = arith.ori %5, %10 : vector<512x12xi1>
    %cst = arith.constant 0.000000e+00 : f32
    %12 = vector.broadcast %cst : f32 to vector<1x12xf32>
    %c0_1 = arith.constant 0 : index
    %c0_2 = arith.constant 0 : index
    %c0_3 = arith.constant 0 : index
    %13 = vector.load %arg1[%c0_1, %c0_2, %c0_3] : memref<5x12x36xf32, #tpu.memory_space<vmem>>, vector<1x12x36xf32>
    %14 = vector.shape_cast %13 : vector<1x12x36xf32> to vector<12x36xf32>
    %cst_4 = arith.constant dense<0.000000e+00> : vector<512x36xf32>
    %15 = tpu.matmul %0, %14, %cst_4 {dimension_numbers = #tpu.dot_dimension_numbers<[1], [0], [0], [1], [0, 0, 1, 1], [], []>} : vector<512x12xf32>, vector<12x36xf32>, vector<512x36xf32> -> vector<512x36xf32>
    %16 = vector.extract_strided_slice %15 {offsets = [0, 0], sizes = [512, 12], strides = [1, 1]} : vector<512x36xf32> to vector<512x12xf32>
    %17 = vector.extract_strided_slice %15 {offsets = [0, 12], sizes = [512, 12], strides = [1, 1]} : vector<512x36xf32> to vector<512x12xf32>
    %18 = vector.extract_strided_slice %15 {offsets = [0, 24], sizes = [512, 12], strides = [1, 1]} : vector<512x36xf32> to vector<512x12xf32>
    %19 = vector.extract_strided_slice %16 {offsets = [0, 0], sizes = [511, 12], strides = [1, 1]} : vector<512x12xf32> to vector<511x12xf32>
    %20 = tpu.concatenate %12, %19 in 0 : vector<1x12xf32>, vector<511x12xf32> -> vector<512x12xf32>
    %21 = vector.extract_strided_slice %18 {offsets = [1, 0], sizes = [511, 12], strides = [1, 1]} : vector<512x12xf32> to vector<511x12xf32>
    %22 = tpu.concatenate %21, %12 in 0 : vector<511x12xf32>, vector<1x12xf32> -> vector<512x12xf32>
    %cst_5 = arith.constant 0.000000e+00 : f32
    %23 = vector.broadcast %cst_5 : f32 to vector<512x12xf32>
    %24 = arith.select %8, %23, %20 : vector<512x12xi1>, vector<512x12xf32>
    %25 = arith.addf %24, %17 : vector<512x12xf32>
    %cst_6 = arith.constant 0.000000e+00 : f32
    %26 = vector.broadcast %cst_6 : f32 to vector<512x12xf32>
    %27 = arith.select %11, %26, %22 : vector<512x12xi1>, vector<512x12xf32>
    %28 = arith.addf %25, %27 : vector<512x12xf32>
    %c0_7 = arith.constant 0 : index
    %c0_8 = arith.constant 0 : index
    %c0_9 = arith.constant 0 : index
    %29 = vector.load %arg2[%c0_7, %c0_8, %c0_9] : memref<5x1x12xf32, #tpu.memory_space<vmem>>, vector<1x1x12xf32>
    %30 = vector.shape_cast %29 : vector<1x1x12xf32> to vector<1x12xf32>
    %31 = vector.broadcast %30 : vector<1x12xf32> to vector<512x12xf32>
    %32 = arith.addf %28, %31 : vector<512x12xf32>
    %cst_10 = arith.constant 3.000000e-01 : f32
    %33 = vector.broadcast %cst_10 : f32 to vector<512x12xf32>
    %34 = arith.mulf %33, %32 : vector<512x12xf32>
    %35 = arith.maximumf %32, %34 : vector<512x12xf32>
    %c0_11 = arith.constant 0 : index
    %c0_12 = arith.constant 0 : index
    %c0_13 = arith.constant 0 : index
    %36 = vector.load %arg3[%c0_11, %c0_12, %c0_13] : memref<5x12x36xf32, #tpu.memory_space<vmem>>, vector<1x12x36xf32>
    %37 = vector.shape_cast %36 : vector<1x12x36xf32> to vector<12x36xf32>
    %cst_14 = arith.constant dense<0.000000e+00> : vector<512x36xf32>
    %38 = tpu.matmul %35, %37, %cst_14 {dimension_numbers = #tpu.dot_dimension_numbers<[1], [0], [0], [1], [0, 0, 1, 1], [], []>} : vector<512x12xf32>, vector<12x36xf32>, vector<512x36xf32> -> vector<512x36xf32>
    %39 = vector.extract_strided_slice %38 {offsets = [0, 0], sizes = [512, 12], strides = [1, 1]} : vector<512x36xf32> to vector<512x12xf32>
    %40 = vector.extract_strided_slice %38 {offsets = [0, 12], sizes = [512, 12], strides = [1, 1]} : vector<512x36xf32> to vector<512x12xf32>
    %41 = vector.extract_strided_slice %38 {offsets = [0, 24], sizes = [512, 12], strides = [1, 1]} : vector<512x36xf32> to vector<512x12xf32>
    %42 = vector.extract_strided_slice %39 {offsets = [0, 0], sizes = [511, 12], strides = [1, 1]} : vector<512x12xf32> to vector<511x12xf32>
    %43 = tpu.concatenate %12, %42 in 0 : vector<1x12xf32>, vector<511x12xf32> -> vector<512x12xf32>
    %44 = vector.extract_strided_slice %41 {offsets = [1, 0], sizes = [511, 12], strides = [1, 1]} : vector<512x12xf32> to vector<511x12xf32>
    %45 = tpu.concatenate %44, %12 in 0 : vector<511x12xf32>, vector<1x12xf32> -> vector<512x12xf32>
    %cst_15 = arith.constant 0.000000e+00 : f32
    %46 = vector.broadcast %cst_15 : f32 to vector<512x12xf32>
    %47 = arith.select %8, %46, %43 : vector<512x12xi1>, vector<512x12xf32>
    %48 = arith.addf %47, %40 : vector<512x12xf32>
    %cst_16 = arith.constant 0.000000e+00 : f32
    %49 = vector.broadcast %cst_16 : f32 to vector<512x12xf32>
    %50 = arith.select %11, %49, %45 : vector<512x12xi1>, vector<512x12xf32>
    %51 = arith.addf %48, %50 : vector<512x12xf32>
    %c0_17 = arith.constant 0 : index
    %c0_18 = arith.constant 0 : index
    %c0_19 = arith.constant 0 : index
    %52 = vector.load %arg4[%c0_17, %c0_18, %c0_19] : memref<5x1x12xf32, #tpu.memory_space<vmem>>, vector<1x1x12xf32>
    %53 = vector.shape_cast %52 : vector<1x1x12xf32> to vector<1x12xf32>
    %54 = vector.broadcast %53 : vector<1x12xf32> to vector<512x12xf32>
    %55 = arith.addf %51, %54 : vector<512x12xf32>
    %cst_20 = arith.constant 3.000000e-01 : f32
    %56 = vector.broadcast %cst_20 : f32 to vector<512x12xf32>
    %57 = arith.mulf %56, %55 : vector<512x12xf32>
    %58 = arith.maximumf %55, %57 : vector<512x12xf32>
    %c0_21 = arith.constant 0 : index
    %c0_22 = arith.constant 0 : index
    %59 = vector.load %arg24[%c0_21, %c0_22] : memref<512x12xf32, #tpu.memory_space<vmem>>, vector<512x12xf32>
    tpu.vector_store %arg24[%c0_21, %c0_22], %58 {strides = array<i32>} : memref<512x12xf32, #tpu.memory_space<vmem>>, vector<512x12xf32>,
    %c0_23 = arith.constant 0 : index
    %c0_24 = arith.constant 0 : index
    %60 = tpu.strided_load %arg24[%c0_23, %c0_24] {strides = array<i32: 2, 1>} : memref<512x12xf32, #tpu.memory_space<vmem>>, vector<256x12xf32>
    %c1 = arith.constant 1 : index
    %c0_25 = arith.constant 0 : index
    %61 = tpu.strided_load %arg24[%c1, %c0_25] {strides = array<i32: 2, 1>} : memref<512x12xf32, #tpu.memory_space<vmem>>, vector<256x12xf32>
    %62 = arith.maximumf %60, %61 : vector<256x12xf32>
    %cst_26 = arith.constant 3.000000e-01 : f32
    %63 = vector.broadcast %cst_26 : f32 to vector<256x12xf32>
    %64 = arith.mulf %63, %62 : vector<256x12xf32>
    %65 = arith.maximumf %62, %64 : vector<256x12xf32>
    %66 = tpu.iota {dimensions = array<i32: 0>} : vector<256x12xi32>
    %c0_i32_27 = arith.constant 0 : i32
    %67 = vector.broadcast %c0_i32_27 : i32 to vector<256x12xi32>
    %68 = arith.cmpi eq, %66, %67 : vector<256x12xi32>
    %c127_i32 = arith.constant 127 : i32
    %69 = vector.broadcast %c127_i32 : i32 to vector<256x12xi32>
    %70 = arith.cmpi eq, %66, %69 : vector<256x12xi32>
    %c128_i32 = arith.constant 128 : i32
    %71 = vector.broadcast %c128_i32 : i32 to vector<256x12xi32>
    %72 = arith.cmpi eq, %66, %71 : vector<256x12xi32>
    %73 = arith.ori %68, %72 : vector<256x12xi1>
    %c255_i32_28 = arith.constant 255 : i32
    %74 = vector.broadcast %c255_i32_28 : i32 to vector<256x12xi32>
    %75 = arith.cmpi eq, %66, %74 : vector<256x12xi32>
    %76 = arith.ori %70, %75 : vector<256x12xi1>
    %cst_29 = arith.constant 0.000000e+00 : f32
    %77 = vector.broadcast %cst_29 : f32 to vector<1x12xf32>
    %c1_30 = arith.constant 1 : index
    %c0_31 = arith.constant 0 : index
    %c0_32 = arith.constant 0 : index
    %78 = vector.load %arg1[%c1_30, %c0_31, %c0_32] : memref<5x12x36xf32, #tpu.memory_space<vmem>>, vector<1x12x36xf32>
    %79 = vector.shape_cast %78 : vector<1x12x36xf32> to vector<12x36xf32>
    %cst_33 = arith.constant dense<0.000000e+00> : vector<256x36xf32>
    %80 = tpu.matmul %65, %79, %cst_33 {dimension_numbers = #tpu.dot_dimension_numbers<[1], [0], [0], [1], [0, 0, 1, 1], [], []>} : vector<256x12xf32>, vector<12x36xf32>, vector<256x36xf32> -> vector<256x36xf32>
    %81 = vector.extract_strided_slice %80 {offsets = [0, 0], sizes = [256, 12], strides = [1, 1]} : vector<256x36xf32> to vector<256x12xf32>
    %82 = vector.extract_strided_slice %80 {offsets = [0, 12], sizes = [256, 12], strides = [1, 1]} : vector<256x36xf32> to vector<256x12xf32>
    %83 = vector.extract_strided_slice %80 {offsets = [0, 24], sizes = [256, 12], strides = [1, 1]} : vector<256x36xf32> to vector<256x12xf32>
    %84 = vector.extract_strided_slice %81 {offsets = [0, 0], sizes = [255, 12], strides = [1, 1]} : vector<256x12xf32> to vector<255x12xf32>
    %85 = tpu.concatenate %77, %84 in 0 : vector<1x12xf32>, vector<255x12xf32> -> vector<256x12xf32>
    %86 = vector.extract_strided_slice %83 {offsets = [1, 0], sizes = [255, 12], strides = [1, 1]} : vector<256x12xf32> to vector<255x12xf32>
    %87 = tpu.concatenate %86, %77 in 0 : vector<255x12xf32>, vector<1x12xf32> -> vector<256x12xf32>
    %cst_34 = arith.constant 0.000000e+00 : f32
    %88 = vector.broadcast %cst_34 : f32 to vector<256x12xf32>
    %89 = arith.select %73, %88, %85 : vector<256x12xi1>, vector<256x12xf32>
    %90 = arith.addf %89, %82 : vector<256x12xf32>
    %cst_35 = arith.constant 0.000000e+00 : f32
    %91 = vector.broadcast %cst_35 : f32 to vector<256x12xf32>
    %92 = arith.select %76, %91, %87 : vector<256x12xi1>, vector<256x12xf32>
    %93 = arith.addf %90, %92 : vector<256x12xf32>
    %c1_36 = arith.constant 1 : index
    %c0_37 = arith.constant 0 : index
    %c0_38 = arith.constant 0 : index
    %94 = vector.load %arg2[%c1_36, %c0_37, %c0_38] : memref<5x1x12xf32, #tpu.memory_space<vmem>>, vector<1x1x12xf32>
    %95 = vector.shape_cast %94 : vector<1x1x12xf32> to vector<1x12xf32>
    %96 = vector.broadcast %95 : vector<1x12xf32> to vector<256x12xf32>
    %97 = arith.addf %93, %96 : vector<256x12xf32>
    %cst_39 = arith.constant 3.000000e-01 : f32
    %98 = vector.broadcast %cst_39 : f32 to vector<256x12xf32>
    %99 = arith.mulf %98, %97 : vector<256x12xf32>
    %100 = arith.maximumf %97, %99 : vector<256x12xf32>
    %c1_40 = arith.constant 1 : index
    %c0_41 = arith.constant 0 : index
    %c0_42 = arith.constant 0 : index
    %101 = vector.load %arg3[%c1_40, %c0_41, %c0_42] : memref<5x12x36xf32, #tpu.memory_space<vmem>>, vector<1x12x36xf32>
    %102 = vector.shape_cast %101 : vector<1x12x36xf32> to vector<12x36xf32>
    %cst_43 = arith.constant dense<0.000000e+00> : vector<256x36xf32>
    %103 = tpu.matmul %100, %102, %cst_43 {dimension_numbers = #tpu.dot_dimension_numbers<[1], [0], [0], [1], [0, 0, 1, 1], [], []>} : vector<256x12xf32>, vector<12x36xf32>, vector<256x36xf32> -> vector<256x36xf32>
    %104 = vector.extract_strided_slice %103 {offsets = [0, 0], sizes = [256, 12], strides = [1, 1]} : vector<256x36xf32> to vector<256x12xf32>
    %105 = vector.extract_strided_slice %103 {offsets = [0, 12], sizes = [256, 12], strides = [1, 1]} : vector<256x36xf32> to vector<256x12xf32>
    %106 = vector.extract_strided_slice %103 {offsets = [0, 24], sizes = [256, 12], strides = [1, 1]} : vector<256x36xf32> to vector<256x12xf32>
    %107 = vector.extract_strided_slice %104 {offsets = [0, 0], sizes = [255, 12], strides = [1, 1]} : vector<256x12xf32> to vector<255x12xf32>
    %108 = tpu.concatenate %77, %107 in 0 : vector<1x12xf32>, vector<255x12xf32> -> vector<256x12xf32>
    %109 = vector.extract_strided_slice %106 {offsets = [1, 0], sizes = [255, 12], strides = [1, 1]} : vector<256x12xf32> to vector<255x12xf32>
    %110 = tpu.concatenate %109, %77 in 0 : vector<255x12xf32>, vector<1x12xf32> -> vector<256x12xf32>
    %cst_44 = arith.constant 0.000000e+00 : f32
    %111 = vector.broadcast %cst_44 : f32 to vector<256x12xf32>
    %112 = arith.select %73, %111, %108 : vector<256x12xi1>, vector<256x12xf32>
    %113 = arith.addf %112, %105 : vector<256x12xf32>
    %cst_45 = arith.constant 0.000000e+00 : f32
    %114 = vector.broadcast %cst_45 : f32 to vector<256x12xf32>
    %115 = arith.select %76, %114, %110 : vector<256x12xi1>, vector<256x12xf32>
    %116 = arith.addf %113, %115 : vector<256x12xf32>
    %c1_46 = arith.constant 1 : index
    %c0_47 = arith.constant 0 : index
    %c0_48 = arith.constant 0 : index
    %117 = vector.load %arg4[%c1_46, %c0_47, %c0_48] : memref<5x1x12xf32, #tpu.memory_space<vmem>>, vector<1x1x12xf32>
    %118 = vector.shape_cast %117 : vector<1x1x12xf32> to vector<1x12xf32>
    %119 = vector.broadcast %118 : vector<1x12xf32> to vector<256x12xf32>
    %120 = arith.addf %116, %119 : vector<256x12xf32>
    %cst_49 = arith.constant 3.000000e-01 : f32
    %121 = vector.broadcast %cst_49 : f32 to vector<256x12xf32>
    %122 = arith.mulf %121, %120 : vector<256x12xf32>
    %123 = arith.maximumf %120, %122 : vector<256x12xf32>
    %c0_50 = arith.constant 0 : index
    %c0_51 = arith.constant 0 : index
    %124 = vector.load %arg24[%c0_50, %c0_51] : memref<512x12xf32, #tpu.memory_space<vmem>>, vector<256x12xf32>
    tpu.vector_store %arg24[%c0_50, %c0_51], %123 {strides = array<i32>} : memref<512x12xf32, #tpu.memory_space<vmem>>, vector<256x12xf32>,
    %c0_52 = arith.constant 0 : index
    %c0_53 = arith.constant 0 : index
    %125 = tpu.strided_load %arg24[%c0_52, %c0_53] {strides = array<i32: 2, 1>} : memref<512x12xf32, #tpu.memory_space<vmem>>, vector<128x12xf32>
    %c1_54 = arith.constant 1 : index
    %c0_55 = arith.constant 0 : index
    %126 = tpu.strided_load %arg24[%c1_54, %c0_55] {strides = array<i32: 2, 1>} : memref<512x12xf32, #tpu.memory_space<vmem>>, vector<128x12xf32>
    %127 = arith.maximumf %125, %126 : vector<128x12xf32>
    %cst_56 = arith.constant 3.000000e-01 : f32
    %128 = vector.broadcast %cst_56 : f32 to vector<128x12xf32>
    %129 = arith.mulf %128, %127 : vector<128x12xf32>
    %130 = arith.maximumf %127, %129 : vector<128x12xf32>
    %131 = tpu.iota {dimensions = array<i32: 0>} : vector<128x12xi32>
    %c0_i32_57 = arith.constant 0 : i32
    %132 = vector.broadcast %c0_i32_57 : i32 to vector<128x12xi32>
    %133 = arith.cmpi eq, %131, %132 : vector<128x12xi32>
    %c63_i32 = arith.constant 63 : i32
    %134 = vector.broadcast %c63_i32 : i32 to vector<128x12xi32>
    %135 = arith.cmpi eq, %131, %134 : vector<128x12xi32>
    %c64_i32 = arith.constant 64 : i32
    %136 = vector.broadcast %c64_i32 : i32 to vector<128x12xi32>
    %137 = arith.cmpi eq, %131, %136 : vector<128x12xi32>
    %138 = arith.ori %133, %137 : vector<128x12xi1>
    %c127_i32_58 = arith.constant 127 : i32
    %139 = vector.broadcast %c127_i32_58 : i32 to vector<128x12xi32>
    %140 = arith.cmpi eq, %131, %139 : vector<128x12xi32>
    %141 = arith.ori %135, %140 : vector<128x12xi1>
    %cst_59 = arith.constant 0.000000e+00 : f32
    %142 = vector.broadcast %cst_59 : f32 to vector<1x12xf32>
    %c2 = arith.constant 2 : index
    %c0_60 = arith.constant 0 : index
    %c0_61 = arith.constant 0 : index
    %143 = vector.load %arg1[%c2, %c0_60, %c0_61] : memref<5x12x36xf32, #tpu.memory_space<vmem>>, vector<1x12x36xf32>
    %144 = vector.shape_cast %143 : vector<1x12x36xf32> to vector<12x36xf32>
    %cst_62 = arith.constant dense<0.000000e+00> : vector<128x36xf32>
    %145 = tpu.matmul %130, %144, %cst_62 {dimension_numbers = #tpu.dot_dimension_numbers<[1], [0], [0], [1], [0, 0, 1, 1], [], []>} : vector<128x12xf32>, vector<12x36xf32>, vector<128x36xf32> -> vector<128x36xf32>
    %146 = vector.extract_strided_slice %145 {offsets = [0, 0], sizes = [128, 12], strides = [1, 1]} : vector<128x36xf32> to vector<128x12xf32>
    %147 = vector.extract_strided_slice %145 {offsets = [0, 12], sizes = [128, 12], strides = [1, 1]} : vector<128x36xf32> to vector<128x12xf32>
    %148 = vector.extract_strided_slice %145 {offsets = [0, 24], sizes = [128, 12], strides = [1, 1]} : vector<128x36xf32> to vector<128x12xf32>
    %149 = vector.extract_strided_slice %146 {offsets = [0, 0], sizes = [127, 12], strides = [1, 1]} : vector<128x12xf32> to vector<127x12xf32>
    %150 = tpu.concatenate %142, %149 in 0 : vector<1x12xf32>, vector<127x12xf32> -> vector<128x12xf32>
    %151 = vector.extract_strided_slice %148 {offsets = [1, 0], sizes = [127, 12], strides = [1, 1]} : vector<128x12xf32> to vector<127x12xf32>
    %152 = tpu.concatenate %151, %142 in 0 : vector<127x12xf32>, vector<1x12xf32> -> vector<128x12xf32>
    %cst_63 = arith.constant 0.000000e+00 : f32
    %153 = vector.broadcast %cst_63 : f32 to vector<128x12xf32>
    %154 = arith.select %138, %153, %150 : vector<128x12xi1>, vector<128x12xf32>
    %155 = arith.addf %154, %147 : vector<128x12xf32>
    %cst_64 = arith.constant 0.000000e+00 : f32
    %156 = vector.broadcast %cst_64 : f32 to vector<128x12xf32>
    %157 = arith.select %141, %156, %152 : vector<128x12xi1>, vector<128x12xf32>
    %158 = arith.addf %155, %157 : vector<128x12xf32>
    %c2_65 = arith.constant 2 : index
    %c0_66 = arith.constant 0 : index
    %c0_67 = arith.constant 0 : index
    %159 = vector.load %arg2[%c2_65, %c0_66, %c0_67] : memref<5x1x12xf32, #tpu.memory_space<vmem>>, vector<1x1x12xf32>
    %160 = vector.shape_cast %159 : vector<1x1x12xf32> to vector<1x12xf32>
    %161 = vector.broadcast %160 : vector<1x12xf32> to vector<128x12xf32>
    %162 = arith.addf %158, %161 : vector<128x12xf32>
    %cst_68 = arith.constant 3.000000e-01 : f32
    %163 = vector.broadcast %cst_68 : f32 to vector<128x12xf32>
    %164 = arith.mulf %163, %162 : vector<128x12xf32>
    %165 = arith.maximumf %162, %164 : vector<128x12xf32>
    %c2_69 = arith.constant 2 : index
    %c0_70 = arith.constant 0 : index
    %c0_71 = arith.constant 0 : index
    %166 = vector.load %arg3[%c2_69, %c0_70, %c0_71] : memref<5x12x36xf32, #tpu.memory_space<vmem>>, vector<1x12x36xf32>
    %167 = vector.shape_cast %166 : vector<1x12x36xf32> to vector<12x36xf32>
    %cst_72 = arith.constant dense<0.000000e+00> : vector<128x36xf32>
    %168 = tpu.matmul %165, %167, %cst_72 {dimension_numbers = #tpu.dot_dimension_numbers<[1], [0], [0], [1], [0, 0, 1, 1], [], []>} : vector<128x12xf32>, vector<12x36xf32>, vector<128x36xf32> -> vector<128x36xf32>
    %169 = vector.extract_strided_slice %168 {offsets = [0, 0], sizes = [128, 12], strides = [1, 1]} : vector<128x36xf32> to vector<128x12xf32>
    %170 = vector.extract_strided_slice %168 {offsets = [0, 12], sizes = [128, 12], strides = [1, 1]} : vector<128x36xf32> to vector<128x12xf32>
    %171 = vector.extract_strided_slice %168 {offsets = [0, 24], sizes = [128, 12], strides = [1, 1]} : vector<128x36xf32> to vector<128x12xf32>
    %172 = vector.extract_strided_slice %169 {offsets = [0, 0], sizes = [127, 12], strides = [1, 1]} : vector<128x12xf32> to vector<127x12xf32>
    %173 = tpu.concatenate %142, %172 in 0 : vector<1x12xf32>, vector<127x12xf32> -> vector<128x12xf32>
    %174 = vector.extract_strided_slice %171 {offsets = [1, 0], sizes = [127, 12], strides = [1, 1]} : vector<128x12xf32> to vector<127x12xf32>
    %175 = tpu.concatenate %174, %142 in 0 : vector<127x12xf32>, vector<1x12xf32> -> vector<128x12xf32>
    %cst_73 = arith.constant 0.000000e+00 : f32
    %176 = vector.broadcast %cst_73 : f32 to vector<128x12xf32>
    %177 = arith.select %138, %176, %173 : vector<128x12xi1>, vector<128x12xf32>
    %178 = arith.addf %177, %170 : vector<128x12xf32>
    %cst_74 = arith.constant 0.000000e+00 : f32
    %179 = vector.broadcast %cst_74 : f32 to vector<128x12xf32>
    %180 = arith.select %141, %179, %175 : vector<128x12xi1>, vector<128x12xf32>
    %181 = arith.addf %178, %180 : vector<128x12xf32>
    %c2_75 = arith.constant 2 : index
    %c0_76 = arith.constant 0 : index
    %c0_77 = arith.constant 0 : index
    %182 = vector.load %arg4[%c2_75, %c0_76, %c0_77] : memref<5x1x12xf32, #tpu.memory_space<vmem>>, vector<1x1x12xf32>
    %183 = vector.shape_cast %182 : vector<1x1x12xf32> to vector<1x12xf32>
    %184 = vector.broadcast %183 : vector<1x12xf32> to vector<128x12xf32>
    %185 = arith.addf %181, %184 : vector<128x12xf32>
    %cst_78 = arith.constant 3.000000e-01 : f32
    %186 = vector.broadcast %cst_78 : f32 to vector<128x12xf32>
    %187 = arith.mulf %186, %185 : vector<128x12xf32>
    %188 = arith.maximumf %185, %187 : vector<128x12xf32>
    %c0_79 = arith.constant 0 : index
    %c0_80 = arith.constant 0 : index
    %189 = vector.load %arg24[%c0_79, %c0_80] : memref<512x12xf32, #tpu.memory_space<vmem>>, vector<128x12xf32>
    tpu.vector_store %arg24[%c0_79, %c0_80], %188 {strides = array<i32>} : memref<512x12xf32, #tpu.memory_space<vmem>>, vector<128x12xf32>,
    %c0_81 = arith.constant 0 : index
    %c0_82 = arith.constant 0 : index
    %190 = tpu.strided_load %arg24[%c0_81, %c0_82] {strides = array<i32: 2, 1>} : memref<512x12xf32, #tpu.memory_space<vmem>>, vector<64x12xf32>
    %c1_83 = arith.constant 1 : index
    %c0_84 = arith.constant 0 : index
    %191 = tpu.strided_load %arg24[%c1_83, %c0_84] {strides = array<i32: 2, 1>} : memref<512x12xf32, #tpu.memory_space<vmem>>, vector<64x12xf32>
    %192 = arith.maximumf %190, %191 : vector<64x12xf32>
    %cst_85 = arith.constant 3.000000e-01 : f32
    %193 = vector.broadcast %cst_85 : f32 to vector<64x12xf32>
    %194 = arith.mulf %193, %192 : vector<64x12xf32>
    %195 = arith.maximumf %192, %194 : vector<64x12xf32>
    %196 = tpu.iota {dimensions = array<i32: 0>} : vector<64x12xi32>
    %c0_i32_86 = arith.constant 0 : i32
    %197 = vector.broadcast %c0_i32_86 : i32 to vector<64x12xi32>
    %198 = arith.cmpi eq, %196, %197 : vector<64x12xi32>
    %c31_i32 = arith.constant 31 : i32
    %199 = vector.broadcast %c31_i32 : i32 to vector<64x12xi32>
    %200 = arith.cmpi eq, %196, %199 : vector<64x12xi32>
    %c32_i32 = arith.constant 32 : i32
    %201 = vector.broadcast %c32_i32 : i32 to vector<64x12xi32>
    %202 = arith.cmpi eq, %196, %201 : vector<64x12xi32>
    %203 = arith.ori %198, %202 : vector<64x12xi1>
    %c63_i32_87 = arith.constant 63 : i32
    %204 = vector.broadcast %c63_i32_87 : i32 to vector<64x12xi32>
    %205 = arith.cmpi eq, %196, %204 : vector<64x12xi32>
    %206 = arith.ori %200, %205 : vector<64x12xi1>
    %cst_88 = arith.constant 0.000000e+00 : f32
    %207 = vector.broadcast %cst_88 : f32 to vector<1x12xf32>
    %c3 = arith.constant 3 : index
    %c0_89 = arith.constant 0 : index
    %c0_90 = arith.constant 0 : index
    %208 = vector.load %arg1[%c3, %c0_89, %c0_90] : memref<5x12x36xf32, #tpu.memory_space<vmem>>, vector<1x12x36xf32>
    %209 = vector.shape_cast %208 : vector<1x12x36xf32> to vector<12x36xf32>
    %cst_91 = arith.constant dense<0.000000e+00> : vector<64x36xf32>
    %210 = tpu.matmul %195, %209, %cst_91 {dimension_numbers = #tpu.dot_dimension_numbers<[1], [0], [0], [1], [0, 0, 1, 1], [], []>} : vector<64x12xf32>, vector<12x36xf32>, vector<64x36xf32> -> vector<64x36xf32>
    %211 = vector.extract_strided_slice %210 {offsets = [0, 0], sizes = [64, 12], strides = [1, 1]} : vector<64x36xf32> to vector<64x12xf32>
    %212 = vector.extract_strided_slice %210 {offsets = [0, 12], sizes = [64, 12], strides = [1, 1]} : vector<64x36xf32> to vector<64x12xf32>
    %213 = vector.extract_strided_slice %210 {offsets = [0, 24], sizes = [64, 12], strides = [1, 1]} : vector<64x36xf32> to vector<64x12xf32>
    %214 = vector.extract_strided_slice %211 {offsets = [0, 0], sizes = [63, 12], strides = [1, 1]} : vector<64x12xf32> to vector<63x12xf32>
    %215 = tpu.concatenate %207, %214 in 0 : vector<1x12xf32>, vector<63x12xf32> -> vector<64x12xf32>
    %216 = vector.extract_strided_slice %213 {offsets = [1, 0], sizes = [63, 12], strides = [1, 1]} : vector<64x12xf32> to vector<63x12xf32>
    %217 = tpu.concatenate %216, %207 in 0 : vector<63x12xf32>, vector<1x12xf32> -> vector<64x12xf32>
    %cst_92 = arith.constant 0.000000e+00 : f32
    %218 = vector.broadcast %cst_92 : f32 to vector<64x12xf32>
    %219 = arith.select %203, %218, %215 : vector<64x12xi1>, vector<64x12xf32>
    %220 = arith.addf %219, %212 : vector<64x12xf32>
    %cst_93 = arith.constant 0.000000e+00 : f32
    %221 = vector.broadcast %cst_93 : f32 to vector<64x12xf32>
    %222 = arith.select %206, %221, %217 : vector<64x12xi1>, vector<64x12xf32>
    %223 = arith.addf %220, %222 : vector<64x12xf32>
    %c3_94 = arith.constant 3 : index
    %c0_95 = arith.constant 0 : index
    %c0_96 = arith.constant 0 : index
    %224 = vector.load %arg2[%c3_94, %c0_95, %c0_96] : memref<5x1x12xf32, #tpu.memory_space<vmem>>, vector<1x1x12xf32>
    %225 = vector.shape_cast %224 : vector<1x1x12xf32> to vector<1x12xf32>
    %226 = vector.broadcast %225 : vector<1x12xf32> to vector<64x12xf32>
    %227 = arith.addf %223, %226 : vector<64x12xf32>
    %cst_97 = arith.constant 3.000000e-01 : f32
    %228 = vector.broadcast %cst_97 : f32 to vector<64x12xf32>
    %229 = arith.mulf %228, %227 : vector<64x12xf32>
    %230 = arith.maximumf %227, %229 : vector<64x12xf32>
    %c3_98 = arith.constant 3 : index
    %c0_99 = arith.constant 0 : index
    %c0_100 = arith.constant 0 : index
    %231 = vector.load %arg3[%c3_98, %c0_99, %c0_100] : memref<5x12x36xf32, #tpu.memory_space<vmem>>, vector<1x12x36xf32>
    %232 = vector.shape_cast %231 : vector<1x12x36xf32> to vector<12x36xf32>
    %cst_101 = arith.constant dense<0.000000e+00> : vector<64x36xf32>
    %233 = tpu.matmul %230, %232, %cst_101 {dimension_numbers = #tpu.dot_dimension_numbers<[1], [0], [0], [1], [0, 0, 1, 1], [], []>} : vector<64x12xf32>, vector<12x36xf32>, vector<64x36xf32> -> vector<64x36xf32>
    %234 = vector.extract_strided_slice %233 {offsets = [0, 0], sizes = [64, 12], strides = [1, 1]} : vector<64x36xf32> to vector<64x12xf32>
    %235 = vector.extract_strided_slice %233 {offsets = [0, 12], sizes = [64, 12], strides = [1, 1]} : vector<64x36xf32> to vector<64x12xf32>
    %236 = vector.extract_strided_slice %233 {offsets = [0, 24], sizes = [64, 12], strides = [1, 1]} : vector<64x36xf32> to vector<64x12xf32>
    %237 = vector.extract_strided_slice %234 {offsets = [0, 0], sizes = [63, 12], strides = [1, 1]} : vector<64x12xf32> to vector<63x12xf32>
    %238 = tpu.concatenate %207, %237 in 0 : vector<1x12xf32>, vector<63x12xf32> -> vector<64x12xf32>
    %239 = vector.extract_strided_slice %236 {offsets = [1, 0], sizes = [63, 12], strides = [1, 1]} : vector<64x12xf32> to vector<63x12xf32>
    %240 = tpu.concatenate %239, %207 in 0 : vector<63x12xf32>, vector<1x12xf32> -> vector<64x12xf32>
    %cst_102 = arith.constant 0.000000e+00 : f32
    %241 = vector.broadcast %cst_102 : f32 to vector<64x12xf32>
    %242 = arith.select %203, %241, %238 : vector<64x12xi1>, vector<64x12xf32>
    %243 = arith.addf %242, %235 : vector<64x12xf32>
    %cst_103 = arith.constant 0.000000e+00 : f32
    %244 = vector.broadcast %cst_103 : f32 to vector<64x12xf32>
    %245 = arith.select %206, %244, %240 : vector<64x12xi1>, vector<64x12xf32>
    %246 = arith.addf %243, %245 : vector<64x12xf32>
    %c3_104 = arith.constant 3 : index
    %c0_105 = arith.constant 0 : index
    %c0_106 = arith.constant 0 : index
    %247 = vector.load %arg4[%c3_104, %c0_105, %c0_106] : memref<5x1x12xf32, #tpu.memory_space<vmem>>, vector<1x1x12xf32>
    %248 = vector.shape_cast %247 : vector<1x1x12xf32> to vector<1x12xf32>
    %249 = vector.broadcast %248 : vector<1x12xf32> to vector<64x12xf32>
    %250 = arith.addf %246, %249 : vector<64x12xf32>
    %cst_107 = arith.constant 3.000000e-01 : f32
    %251 = vector.broadcast %cst_107 : f32 to vector<64x12xf32>
    %252 = arith.mulf %251, %250 : vector<64x12xf32>
    %253 = arith.maximumf %250, %252 : vector<64x12xf32>
    %c0_108 = arith.constant 0 : index
    %c0_109 = arith.constant 0 : index
    %254 = vector.load %arg24[%c0_108, %c0_109] : memref<512x12xf32, #tpu.memory_space<vmem>>, vector<64x12xf32>
    tpu.vector_store %arg24[%c0_108, %c0_109], %253 {strides = array<i32>} : memref<512x12xf32, #tpu.memory_space<vmem>>, vector<64x12xf32>,
    %c0_110 = arith.constant 0 : index
    %c0_111 = arith.constant 0 : index
    %255 = tpu.strided_load %arg24[%c0_110, %c0_111] {strides = array<i32: 2, 1>} : memref<512x12xf32, #tpu.memory_space<vmem>>, vector<32x12xf32>
    %c1_112 = arith.constant 1 : index
    %c0_113 = arith.constant 0 : index
    %256 = tpu.strided_load %arg24[%c1_112, %c0_113] {strides = array<i32: 2, 1>} : memref<512x12xf32, #tpu.memory_space<vmem>>, vector<32x12xf32>
    %257 = arith.maximumf %255, %256 : vector<32x12xf32>
    %cst_114 = arith.constant 3.000000e-01 : f32
    %258 = vector.broadcast %cst_114 : f32 to vector<32x12xf32>
    %259 = arith.mulf %258, %257 : vector<32x12xf32>
    %260 = arith.maximumf %257, %259 : vector<32x12xf32>
    %261 = tpu.iota {dimensions = array<i32: 0>} : vector<32x12xi32>
    %c0_i32_115 = arith.constant 0 : i32
    %262 = vector.broadcast %c0_i32_115 : i32 to vector<32x12xi32>
    %263 = arith.cmpi eq, %261, %262 : vector<32x12xi32>
    %c15_i32 = arith.constant 15 : i32
    %264 = vector.broadcast %c15_i32 : i32 to vector<32x12xi32>
    %265 = arith.cmpi eq, %261, %264 : vector<32x12xi32>
    %c16_i32 = arith.constant 16 : i32
    %266 = vector.broadcast %c16_i32 : i32 to vector<32x12xi32>
    %267 = arith.cmpi eq, %261, %266 : vector<32x12xi32>
    %268 = arith.ori %263, %267 : vector<32x12xi1>
    %c31_i32_116 = arith.constant 31 : i32
    %269 = vector.broadcast %c31_i32_116 : i32 to vector<32x12xi32>
    %270 = arith.cmpi eq, %261, %269 : vector<32x12xi32>
    %271 = arith.ori %265, %270 : vector<32x12xi1>
    %cst_117 = arith.constant 0.000000e+00 : f32
    %272 = vector.broadcast %cst_117 : f32 to vector<1x12xf32>
    %c4 = arith.constant 4 : index
    %c0_118 = arith.constant 0 : index
    %c0_119 = arith.constant 0 : index
    %273 = vector.load %arg1[%c4, %c0_118, %c0_119] : memref<5x12x36xf32, #tpu.memory_space<vmem>>, vector<1x12x36xf32>
    %274 = vector.shape_cast %273 : vector<1x12x36xf32> to vector<12x36xf32>
    %cst_120 = arith.constant dense<0.000000e+00> : vector<32x36xf32>
    %275 = tpu.matmul %260, %274, %cst_120 {dimension_numbers = #tpu.dot_dimension_numbers<[1], [0], [0], [1], [0, 0, 1, 1], [], []>} : vector<32x12xf32>, vector<12x36xf32>, vector<32x36xf32> -> vector<32x36xf32>
    %276 = vector.extract_strided_slice %275 {offsets = [0, 0], sizes = [32, 12], strides = [1, 1]} : vector<32x36xf32> to vector<32x12xf32>
    %277 = vector.extract_strided_slice %275 {offsets = [0, 12], sizes = [32, 12], strides = [1, 1]} : vector<32x36xf32> to vector<32x12xf32>
    %278 = vector.extract_strided_slice %275 {offsets = [0, 24], sizes = [32, 12], strides = [1, 1]} : vector<32x36xf32> to vector<32x12xf32>
    %279 = vector.extract_strided_slice %276 {offsets = [0, 0], sizes = [31, 12], strides = [1, 1]} : vector<32x12xf32> to vector<31x12xf32>
    %280 = tpu.concatenate %272, %279 in 0 : vector<1x12xf32>, vector<31x12xf32> -> vector<32x12xf32>
    %281 = vector.extract_strided_slice %278 {offsets = [1, 0], sizes = [31, 12], strides = [1, 1]} : vector<32x12xf32> to vector<31x12xf32>
    %282 = tpu.concatenate %281, %272 in 0 : vector<31x12xf32>, vector<1x12xf32> -> vector<32x12xf32>
    %cst_121 = arith.constant 0.000000e+00 : f32
    %283 = vector.broadcast %cst_121 : f32 to vector<32x12xf32>
    %284 = arith.select %268, %283, %280 : vector<32x12xi1>, vector<32x12xf32>
    %285 = arith.addf %284, %277 : vector<32x12xf32>
    %cst_122 = arith.constant 0.000000e+00 : f32
    %286 = vector.broadcast %cst_122 : f32 to vector<32x12xf32>
    %287 = arith.select %271, %286, %282 : vector<32x12xi1>, vector<32x12xf32>
    %288 = arith.addf %285, %287 : vector<32x12xf32>
    %c4_123 = arith.constant 4 : index
    %c0_124 = arith.constant 0 : index
    %c0_125 = arith.constant 0 : index
    %289 = vector.load %arg2[%c4_123, %c0_124, %c0_125] : memref<5x1x12xf32, #tpu.memory_space<vmem>>, vector<1x1x12xf32>
    %290 = vector.shape_cast %289 : vector<1x1x12xf32> to vector<1x12xf32>
    %291 = vector.broadcast %290 : vector<1x12xf32> to vector<32x12xf32>
    %292 = arith.addf %288, %291 : vector<32x12xf32>
    %cst_126 = arith.constant 3.000000e-01 : f32
    %293 = vector.broadcast %cst_126 : f32 to vector<32x12xf32>
    %294 = arith.mulf %293, %292 : vector<32x12xf32>
    %295 = arith.maximumf %292, %294 : vector<32x12xf32>
    %c4_127 = arith.constant 4 : index
    %c0_128 = arith.constant 0 : index
    %c0_129 = arith.constant 0 : index
    %296 = vector.load %arg3[%c4_127, %c0_128, %c0_129] : memref<5x12x36xf32, #tpu.memory_space<vmem>>, vector<1x12x36xf32>
    %297 = vector.shape_cast %296 : vector<1x12x36xf32> to vector<12x36xf32>
    %cst_130 = arith.constant dense<0.000000e+00> : vector<32x36xf32>
    %298 = tpu.matmul %295, %297, %cst_130 {dimension_numbers = #tpu.dot_dimension_numbers<[1], [0], [0], [1], [0, 0, 1, 1], [], []>} : vector<32x12xf32>, vector<12x36xf32>, vector<32x36xf32> -> vector<32x36xf32>
    %299 = vector.extract_strided_slice %298 {offsets = [0, 0], sizes = [32, 12], strides = [1, 1]} : vector<32x36xf32> to vector<32x12xf32>
    %300 = vector.extract_strided_slice %298 {offsets = [0, 12], sizes = [32, 12], strides = [1, 1]} : vector<32x36xf32> to vector<32x12xf32>
    %301 = vector.extract_strided_slice %298 {offsets = [0, 24], sizes = [32, 12], strides = [1, 1]} : vector<32x36xf32> to vector<32x12xf32>
    %302 = vector.extract_strided_slice %299 {offsets = [0, 0], sizes = [31, 12], strides = [1, 1]} : vector<32x12xf32> to vector<31x12xf32>
    %303 = tpu.concatenate %272, %302 in 0 : vector<1x12xf32>, vector<31x12xf32> -> vector<32x12xf32>
    %304 = vector.extract_strided_slice %301 {offsets = [1, 0], sizes = [31, 12], strides = [1, 1]} : vector<32x12xf32> to vector<31x12xf32>
    %305 = tpu.concatenate %304, %272 in 0 : vector<31x12xf32>, vector<1x12xf32> -> vector<32x12xf32>
    %cst_131 = arith.constant 0.000000e+00 : f32
    %306 = vector.broadcast %cst_131 : f32 to vector<32x12xf32>
    %307 = arith.select %268, %306, %303 : vector<32x12xi1>, vector<32x12xf32>
    %308 = arith.addf %307, %300 : vector<32x12xf32>
    %cst_132 = arith.constant 0.000000e+00 : f32
    %309 = vector.broadcast %cst_132 : f32 to vector<32x12xf32>
    %310 = arith.select %271, %309, %305 : vector<32x12xi1>, vector<32x12xf32>
    %311 = arith.addf %308, %310 : vector<32x12xf32>
    %c4_133 = arith.constant 4 : index
    %c0_134 = arith.constant 0 : index
    %c0_135 = arith.constant 0 : index
    %312 = vector.load %arg4[%c4_133, %c0_134, %c0_135] : memref<5x1x12xf32, #tpu.memory_space<vmem>>, vector<1x1x12xf32>
    %313 = vector.shape_cast %312 : vector<1x1x12xf32> to vector<1x12xf32>
    %314 = vector.broadcast %313 : vector<1x12xf32> to vector<32x12xf32>
    %315 = arith.addf %311, %314 : vector<32x12xf32>
    %cst_136 = arith.constant 3.000000e-01 : f32
    %316 = vector.broadcast %cst_136 : f32 to vector<32x12xf32>
    %317 = arith.mulf %316, %315 : vector<32x12xf32>
    %318 = arith.maximumf %315, %317 : vector<32x12xf32>
    %c0_137 = arith.constant 0 : index
    %c0_138 = arith.constant 0 : index
    %319 = vector.load %arg24[%c0_137, %c0_138] : memref<512x12xf32, #tpu.memory_space<vmem>>, vector<32x12xf32>
    tpu.vector_store %arg24[%c0_137, %c0_138], %318 {strides = array<i32>} : memref<512x12xf32, #tpu.memory_space<vmem>>, vector<32x12xf32>,
    %c0_139 = arith.constant 0 : index
    %c0_140 = arith.constant 0 : index
    %320 = tpu.strided_load %arg24[%c0_139, %c0_140] {strides = array<i32: 2, 1>} : memref<512x12xf32, #tpu.memory_space<vmem>>, vector<16x12xf32>
    %c1_141 = arith.constant 1 : index
    %c0_142 = arith.constant 0 : index
    %321 = tpu.strided_load %arg24[%c1_141, %c0_142] {strides = array<i32: 2, 1>} : memref<512x12xf32, #tpu.memory_space<vmem>>, vector<16x12xf32>
    %322 = arith.maximumf %320, %321 : vector<16x12xf32>
    %cst_143 = arith.constant 3.000000e-01 : f32
    %323 = vector.broadcast %cst_143 : f32 to vector<16x12xf32>
    %324 = arith.mulf %323, %322 : vector<16x12xf32>
    %325 = arith.maximumf %322, %324 : vector<16x12xf32>
    %c0_144 = arith.constant 0 : index
    %c0_145 = arith.constant 0 : index
    %326 = vector.load %arg5[%c0_144, %c0_145] : memref<12x75xf32, #tpu.memory_space<vmem>>, vector<12x75xf32>
    %cst_146 = arith.constant dense<0.000000e+00> : vector<16x75xf32>
    %327 = tpu.matmul %325, %326, %cst_146 {dimension_numbers = #tpu.dot_dimension_numbers<[1], [0], [0], [1], [0, 0, 1, 1], [], []>} : vector<16x12xf32>, vector<12x75xf32>, vector<16x75xf32> -> vector<16x75xf32>
    %c0_147 = arith.constant 0 : index
    %c0_148 = arith.constant 0 : index
    %328 = vector.load %arg7[%c0_147, %c0_148] : memref<1x75xf32, #tpu.memory_space<vmem>>, vector<1x75xf32>
    %329 = vector.broadcast %328 : vector<1x75xf32> to vector<16x75xf32>
    %330 = arith.addf %327, %329 : vector<16x75xf32>
    %c0_149 = arith.constant 0 : index
    %c0_150 = arith.constant 0 : index
    %331 = vector.load %arg25[%c0_149, %c0_150] : memref<16x75xf32, #tpu.memory_space<vmem>>, vector<16x75xf32>
    tpu.vector_store %arg25[%c0_149, %c0_150], %330 {strides = array<i32>} : memref<16x75xf32, #tpu.memory_space<vmem>>, vector<16x75xf32>,
    %c0_151 = arith.constant 0 : index
    %c0_152 = arith.constant 0 : index
    %332 = vector.load %arg9[%c0_151, %c0_152] : memref<12x75xf32, #tpu.memory_space<vmem>>, vector<12x75xf32>
    %cst_153 = arith.constant dense<0.000000e+00> : vector<16x75xf32>
    %333 = tpu.matmul %325, %332, %cst_153 {dimension_numbers = #tpu.dot_dimension_numbers<[1], [0], [0], [1], [0, 0, 1, 1], [], []>} : vector<16x12xf32>, vector<12x75xf32>, vector<16x75xf32> -> vector<16x75xf32>
    %c0_154 = arith.constant 0 : index
    %c0_155 = arith.constant 0 : index
    %334 = vector.load %arg11[%c0_154, %c0_155] : memref<1x75xf32, #tpu.memory_space<vmem>>, vector<1x75xf32>
    %335 = vector.broadcast %334 : vector<1x75xf32> to vector<16x75xf32>
    %336 = arith.addf %333, %335 : vector<16x75xf32>
    %c0_156 = arith.constant 0 : index
    %c0_157 = arith.constant 0 : index
    %337 = vector.load %arg26[%c0_156, %c0_157] : memref<16x75xf32, #tpu.memory_space<vmem>>, vector<16x75xf32>
    tpu.vector_store %arg26[%c0_156, %c0_157], %336 {strides = array<i32>} : memref<16x75xf32, #tpu.memory_space<vmem>>, vector<16x75xf32>,
    %c0_158 = arith.constant 0 : index
    %c0_159 = arith.constant 0 : index
    %338 = vector.load %arg6[%c0_158, %c0_159] : memref<25x75xf32, #tpu.memory_space<vmem>>, vector<25x75xf32>
    %c0_160 = arith.constant 0 : index
    %c0_161 = arith.constant 0 : index
    %339 = vector.load %arg8[%c0_160, %c0_161] : memref<1x75xf32, #tpu.memory_space<vmem>>, vector<1x75xf32>
    %c0_162 = arith.constant 0 : index
    %c0_163 = arith.constant 0 : index
    %340 = vector.load %arg10[%c0_162, %c0_163] : memref<25x75xf32, #tpu.memory_space<vmem>>, vector<25x75xf32>
    %c0_164 = arith.constant 0 : index
    %c0_165 = arith.constant 0 : index
    %341 = vector.load %arg12[%c0_164, %c0_165] : memref<1x75xf32, #tpu.memory_space<vmem>>, vector<1x75xf32>
    %cst_166 = arith.constant 0.000000e+00 : f32
    %342 = vector.broadcast %cst_166 : f32 to vector<2x25xf32>
    %cst_167 = arith.constant 0.000000e+00 : f32
    %343 = vector.broadcast %cst_167 : f32 to vector<2x25xf32>
    %c0_168 = arith.constant 0 : index
    %c0_169 = arith.constant 0 : index
    %344 = tpu.strided_load %arg25[%c0_168, %c0_169] {strides = array<i32: 8, 1>} : memref<16x75xf32, #tpu.memory_space<vmem>>, vector<2x75xf32>
    %c7 = arith.constant 7 : index
    %c0_170 = arith.constant 0 : index
    %345 = tpu.strided_load %arg26[%c7, %c0_170] {strides = array<i32: 8, 1>} : memref<16x75xf32, #tpu.memory_space<vmem>>, vector<2x75xf32>
    %cst_171 = arith.constant dense<0.000000e+00> : vector<2x75xf32>
    %346 = tpu.matmul %342, %338, %cst_171 {dimension_numbers = #tpu.dot_dimension_numbers<[1], [0], [0], [1], [0, 0, 1, 1], [], []>} : vector<2x25xf32>, vector<25x75xf32>, vector<2x75xf32> -> vector<2x75xf32>
    %347 = vector.broadcast %339 : vector<1x75xf32> to vector<2x75xf32>
    %348 = arith.addf %346, %347 : vector<2x75xf32>
    %cst_172 = arith.constant dense<0.000000e+00> : vector<2x75xf32>
    %349 = tpu.matmul %343, %340, %cst_172 {dimension_numbers = #tpu.dot_dimension_numbers<[1], [0], [0], [1], [0, 0, 1, 1], [], []>} : vector<2x25xf32>, vector<25x75xf32>, vector<2x75xf32> -> vector<2x75xf32>
    %350 = vector.broadcast %341 : vector<1x75xf32> to vector<2x75xf32>
    %351 = arith.addf %349, %350 : vector<2x75xf32>
    %352 = arith.addf %344, %348 : vector<2x75xf32>
    %353 = arith.addf %345, %351 : vector<2x75xf32>
    %354 = vector.extract_strided_slice %352 {offsets = [0, 0], sizes = [2, 25], strides = [1, 1]} : vector<2x75xf32> to vector<2x25xf32>
    %355 = arith.negf %354 : vector<2x25xf32>
    %356 = math.exp %355 : vector<2x25xf32>
    %cst_173 = arith.constant 1.000000e+00 : f32
    %357 = vector.broadcast %cst_173 : f32 to vector<2x25xf32>
    %358 = arith.addf %357, %356 : vector<2x25xf32>
    %359 = arith.divf %357, %358 : vector<2x25xf32>
    %360 = vector.extract_strided_slice %353 {offsets = [0, 0], sizes = [2, 25], strides = [1, 1]} : vector<2x75xf32> to vector<2x25xf32>
    %361 = arith.negf %360 : vector<2x25xf32>
    %362 = math.exp %361 : vector<2x25xf32>
    %cst_174 = arith.constant 1.000000e+00 : f32
    %363 = vector.broadcast %cst_174 : f32 to vector<2x25xf32>
    %364 = arith.addf %363, %362 : vector<2x25xf32>
    %365 = arith.divf %363, %364 : vector<2x25xf32>
    %366 = vector.extract_strided_slice %352 {offsets = [0, 25], sizes = [2, 25], strides = [1, 1]} : vector<2x75xf32> to vector<2x25xf32>
    %367 = arith.negf %366 : vector<2x25xf32>
    %368 = math.exp %367 : vector<2x25xf32>
    %cst_175 = arith.constant 1.000000e+00 : f32
    %369 = vector.broadcast %cst_175 : f32 to vector<2x25xf32>
    %370 = arith.addf %369, %368 : vector<2x25xf32>
    %371 = arith.divf %369, %370 : vector<2x25xf32>
    %372 = vector.extract_strided_slice %353 {offsets = [0, 25], sizes = [2, 25], strides = [1, 1]} : vector<2x75xf32> to vector<2x25xf32>
    %373 = arith.negf %372 : vector<2x25xf32>
    %374 = math.exp %373 : vector<2x25xf32>
    %cst_176 = arith.constant 1.000000e+00 : f32
    %375 = vector.broadcast %cst_176 : f32 to vector<2x25xf32>
    %376 = arith.addf %375, %374 : vector<2x25xf32>
    %377 = arith.divf %375, %376 : vector<2x25xf32>
    %378 = vector.extract_strided_slice %344 {offsets = [0, 50], sizes = [2, 25], strides = [1, 1]} : vector<2x75xf32> to vector<2x25xf32>
    %379 = vector.extract_strided_slice %348 {offsets = [0, 50], sizes = [2, 25], strides = [1, 1]} : vector<2x75xf32> to vector<2x25xf32>
    %380 = arith.mulf %359, %379 : vector<2x25xf32>
    %381 = arith.addf %378, %380 : vector<2x25xf32>
    %382 = math.tanh %381 : vector<2x25xf32>
    %383 = vector.extract_strided_slice %345 {offsets = [0, 50], sizes = [2, 25], strides = [1, 1]} : vector<2x75xf32> to vector<2x25xf32>
    %384 = vector.extract_strided_slice %351 {offsets = [0, 50], sizes = [2, 25], strides = [1, 1]} : vector<2x75xf32> to vector<2x25xf32>
    %385 = arith.mulf %365, %384 : vector<2x25xf32>
    %386 = arith.addf %383, %385 : vector<2x25xf32>
    %387 = math.tanh %386 : vector<2x25xf32>
    %388 = arith.subf %342, %382 : vector<2x25xf32>
    %389 = arith.mulf %371, %388 : vector<2x25xf32>
    %390 = arith.addf %382, %389 : vector<2x25xf32>
    %391 = arith.subf %343, %387 : vector<2x25xf32>
    %392 = arith.mulf %377, %391 : vector<2x25xf32>
    %393 = arith.addf %387, %392 : vector<2x25xf32>
    %c0_177 = arith.constant 0 : index
    %c0_178 = arith.constant 0 : index
    %394 = vector.load %arg27[%c0_177, %c0_178] : memref<16x25xf32, #tpu.memory_space<vmem>>, vector<2x25xf32>
    tpu.vector_store %arg27[%c0_177, %c0_178], %390 {strides = array<i32>} : memref<16x25xf32, #tpu.memory_space<vmem>>, vector<2x25xf32>,
    %c14 = arith.constant 14 : index
    %c0_179 = arith.constant 0 : index
    %395 = vector.load %arg28[%c14, %c0_179] : memref<16x25xf32, #tpu.memory_space<vmem>>, vector<2x25xf32>
    tpu.vector_store %arg28[%c14, %c0_179], %393 {strides = array<i32>} : memref<16x25xf32, #tpu.memory_space<vmem>>, vector<2x25xf32>,
    %c1_180 = arith.constant 1 : index
    %c0_181 = arith.constant 0 : index
    %396 = tpu.strided_load %arg25[%c1_180, %c0_181] {strides = array<i32: 8, 1>} : memref<16x75xf32, #tpu.memory_space<vmem>>, vector<2x75xf32>
    %c6 = arith.constant 6 : index
    %c0_182 = arith.constant 0 : index
    %397 = tpu.strided_load %arg26[%c6, %c0_182] {strides = array<i32: 8, 1>} : memref<16x75xf32, #tpu.memory_space<vmem>>, vector<2x75xf32>
    %cst_183 = arith.constant dense<0.000000e+00> : vector<2x75xf32>
    %398 = tpu.matmul %390, %338, %cst_183 {dimension_numbers = #tpu.dot_dimension_numbers<[1], [0], [0], [1], [0, 0, 1, 1], [], []>} : vector<2x25xf32>, vector<25x75xf32>, vector<2x75xf32> -> vector<2x75xf32>
    %399 = vector.broadcast %339 : vector<1x75xf32> to vector<2x75xf32>
    %400 = arith.addf %398, %399 : vector<2x75xf32>
    %cst_184 = arith.constant dense<0.000000e+00> : vector<2x75xf32>
    %401 = tpu.matmul %393, %340, %cst_184 {dimension_numbers = #tpu.dot_dimension_numbers<[1], [0], [0], [1], [0, 0, 1, 1], [], []>} : vector<2x25xf32>, vector<25x75xf32>, vector<2x75xf32> -> vector<2x75xf32>
    %402 = vector.broadcast %341 : vector<1x75xf32> to vector<2x75xf32>
    %403 = arith.addf %401, %402 : vector<2x75xf32>
    %404 = arith.addf %396, %400 : vector<2x75xf32>
    %405 = arith.addf %397, %403 : vector<2x75xf32>
    %406 = vector.extract_strided_slice %404 {offsets = [0, 0], sizes = [2, 25], strides = [1, 1]} : vector<2x75xf32> to vector<2x25xf32>
    %407 = arith.negf %406 : vector<2x25xf32>
    %408 = math.exp %407 : vector<2x25xf32>
    %cst_185 = arith.constant 1.000000e+00 : f32
    %409 = vector.broadcast %cst_185 : f32 to vector<2x25xf32>
    %410 = arith.addf %409, %408 : vector<2x25xf32>
    %411 = arith.divf %409, %410 : vector<2x25xf32>
    %412 = vector.extract_strided_slice %405 {offsets = [0, 0], sizes = [2, 25], strides = [1, 1]} : vector<2x75xf32> to vector<2x25xf32>
    %413 = arith.negf %412 : vector<2x25xf32>
    %414 = math.exp %413 : vector<2x25xf32>
    %cst_186 = arith.constant 1.000000e+00 : f32
    %415 = vector.broadcast %cst_186 : f32 to vector<2x25xf32>
    %416 = arith.addf %415, %414 : vector<2x25xf32>
    %417 = arith.divf %415, %416 : vector<2x25xf32>
    %418 = vector.extract_strided_slice %404 {offsets = [0, 25], sizes = [2, 25], strides = [1, 1]} : vector<2x75xf32> to vector<2x25xf32>
    %419 = arith.negf %418 : vector<2x25xf32>
    %420 = math.exp %419 : vector<2x25xf32>
    %cst_187 = arith.constant 1.000000e+00 : f32
    %421 = vector.broadcast %cst_187 : f32 to vector<2x25xf32>
    %422 = arith.addf %421, %420 : vector<2x25xf32>
    %423 = arith.divf %421, %422 : vector<2x25xf32>
    %424 = vector.extract_strided_slice %405 {offsets = [0, 25], sizes = [2, 25], strides = [1, 1]} : vector<2x75xf32> to vector<2x25xf32>
    %425 = arith.negf %424 : vector<2x25xf32>
    %426 = math.exp %425 : vector<2x25xf32>
    %cst_188 = arith.constant 1.000000e+00 : f32
    %427 = vector.broadcast %cst_188 : f32 to vector<2x25xf32>
    %428 = arith.addf %427, %426 : vector<2x25xf32>
    %429 = arith.divf %427, %428 : vector<2x25xf32>
    %430 = vector.extract_strided_slice %396 {offsets = [0, 50], sizes = [2, 25], strides = [1, 1]} : vector<2x75xf32> to vector<2x25xf32>
    %431 = vector.extract_strided_slice %400 {offsets = [0, 50], sizes = [2, 25], strides = [1, 1]} : vector<2x75xf32> to vector<2x25xf32>
    %432 = arith.mulf %411, %431 : vector<2x25xf32>
    %433 = arith.addf %430, %432 : vector<2x25xf32>
    %434 = math.tanh %433 : vector<2x25xf32>
    %435 = vector.extract_strided_slice %397 {offsets = [0, 50], sizes = [2, 25], strides = [1, 1]} : vector<2x75xf32> to vector<2x25xf32>
    %436 = vector.extract_strided_slice %403 {offsets = [0, 50], sizes = [2, 25], strides = [1, 1]} : vector<2x75xf32> to vector<2x25xf32>
    %437 = arith.mulf %417, %436 : vector<2x25xf32>
    %438 = arith.addf %435, %437 : vector<2x25xf32>
    %439 = math.tanh %438 : vector<2x25xf32>
    %440 = arith.subf %390, %434 : vector<2x25xf32>
    %441 = arith.mulf %423, %440 : vector<2x25xf32>
    %442 = arith.addf %434, %441 : vector<2x25xf32>
    %443 = arith.subf %393, %439 : vector<2x25xf32>
    %444 = arith.mulf %429, %443 : vector<2x25xf32>
    %445 = arith.addf %439, %444 : vector<2x25xf32>
    %c2_189 = arith.constant 2 : index
    %c0_190 = arith.constant 0 : index
    %446 = vector.load %arg27[%c2_189, %c0_190] : memref<16x25xf32, #tpu.memory_space<vmem>>, vector<2x25xf32>
    tpu.vector_store %arg27[%c2_189, %c0_190], %442 {strides = array<i32>} : memref<16x25xf32, #tpu.memory_space<vmem>>, vector<2x25xf32>,
    %c12 = arith.constant 12 : index
    %c0_191 = arith.constant 0 : index
    %447 = vector.load %arg28[%c12, %c0_191] : memref<16x25xf32, #tpu.memory_space<vmem>>, vector<2x25xf32>
    tpu.vector_store %arg28[%c12, %c0_191], %445 {strides = array<i32>} : memref<16x25xf32, #tpu.memory_space<vmem>>, vector<2x25xf32>,
    %c2_192 = arith.constant 2 : index
    %c0_193 = arith.constant 0 : index
    %448 = tpu.strided_load %arg25[%c2_192, %c0_193] {strides = array<i32: 8, 1>} : memref<16x75xf32, #tpu.memory_space<vmem>>, vector<2x75xf32>
    %c5 = arith.constant 5 : index
    %c0_194 = arith.constant 0 : index
    %449 = tpu.strided_load %arg26[%c5, %c0_194] {strides = array<i32: 8, 1>} : memref<16x75xf32, #tpu.memory_space<vmem>>, vector<2x75xf32>
    %cst_195 = arith.constant dense<0.000000e+00> : vector<2x75xf32>
    %450 = tpu.matmul %442, %338, %cst_195 {dimension_numbers = #tpu.dot_dimension_numbers<[1], [0], [0], [1], [0, 0, 1, 1], [], []>} : vector<2x25xf32>, vector<25x75xf32>, vector<2x75xf32> -> vector<2x75xf32>
    %451 = vector.broadcast %339 : vector<1x75xf32> to vector<2x75xf32>
    %452 = arith.addf %450, %451 : vector<2x75xf32>
    %cst_196 = arith.constant dense<0.000000e+00> : vector<2x75xf32>
    %453 = tpu.matmul %445, %340, %cst_196 {dimension_numbers = #tpu.dot_dimension_numbers<[1], [0], [0], [1], [0, 0, 1, 1], [], []>} : vector<2x25xf32>, vector<25x75xf32>, vector<2x75xf32> -> vector<2x75xf32>
    %454 = vector.broadcast %341 : vector<1x75xf32> to vector<2x75xf32>
    %455 = arith.addf %453, %454 : vector<2x75xf32>
    %456 = arith.addf %448, %452 : vector<2x75xf32>
    %457 = arith.addf %449, %455 : vector<2x75xf32>
    %458 = vector.extract_strided_slice %456 {offsets = [0, 0], sizes = [2, 25], strides = [1, 1]} : vector<2x75xf32> to vector<2x25xf32>
    %459 = arith.negf %458 : vector<2x25xf32>
    %460 = math.exp %459 : vector<2x25xf32>
    %cst_197 = arith.constant 1.000000e+00 : f32
    %461 = vector.broadcast %cst_197 : f32 to vector<2x25xf32>
    %462 = arith.addf %461, %460 : vector<2x25xf32>
    %463 = arith.divf %461, %462 : vector<2x25xf32>
    %464 = vector.extract_strided_slice %457 {offsets = [0, 0], sizes = [2, 25], strides = [1, 1]} : vector<2x75xf32> to vector<2x25xf32>
    %465 = arith.negf %464 : vector<2x25xf32>
    %466 = math.exp %465 : vector<2x25xf32>
    %cst_198 = arith.constant 1.000000e+00 : f32
    %467 = vector.broadcast %cst_198 : f32 to vector<2x25xf32>
    %468 = arith.addf %467, %466 : vector<2x25xf32>
    %469 = arith.divf %467, %468 : vector<2x25xf32>
    %470 = vector.extract_strided_slice %456 {offsets = [0, 25], sizes = [2, 25], strides = [1, 1]} : vector<2x75xf32> to vector<2x25xf32>
    %471 = arith.negf %470 : vector<2x25xf32>
    %472 = math.exp %471 : vector<2x25xf32>
    %cst_199 = arith.constant 1.000000e+00 : f32
    %473 = vector.broadcast %cst_199 : f32 to vector<2x25xf32>
    %474 = arith.addf %473, %472 : vector<2x25xf32>
    %475 = arith.divf %473, %474 : vector<2x25xf32>
    %476 = vector.extract_strided_slice %457 {offsets = [0, 25], sizes = [2, 25], strides = [1, 1]} : vector<2x75xf32> to vector<2x25xf32>
    %477 = arith.negf %476 : vector<2x25xf32>
    %478 = math.exp %477 : vector<2x25xf32>
    %cst_200 = arith.constant 1.000000e+00 : f32
    %479 = vector.broadcast %cst_200 : f32 to vector<2x25xf32>
    %480 = arith.addf %479, %478 : vector<2x25xf32>
    %481 = arith.divf %479, %480 : vector<2x25xf32>
    %482 = vector.extract_strided_slice %448 {offsets = [0, 50], sizes = [2, 25], strides = [1, 1]} : vector<2x75xf32> to vector<2x25xf32>
    %483 = vector.extract_strided_slice %452 {offsets = [0, 50], sizes = [2, 25], strides = [1, 1]} : vector<2x75xf32> to vector<2x25xf32>
    %484 = arith.mulf %463, %483 : vector<2x25xf32>
    %485 = arith.addf %482, %484 : vector<2x25xf32>
    %486 = math.tanh %485 : vector<2x25xf32>
    %487 = vector.extract_strided_slice %449 {offsets = [0, 50], sizes = [2, 25], strides = [1, 1]} : vector<2x75xf32> to vector<2x25xf32>
    %488 = vector.extract_strided_slice %455 {offsets = [0, 50], sizes = [2, 25], strides = [1, 1]} : vector<2x75xf32> to vector<2x25xf32>
    %489 = arith.mulf %469, %488 : vector<2x25xf32>
    %490 = arith.addf %487, %489 : vector<2x25xf32>
    %491 = math.tanh %490 : vector<2x25xf32>
    %492 = arith.subf %442, %486 : vector<2x25xf32>
    %493 = arith.mulf %475, %492 : vector<2x25xf32>
    %494 = arith.addf %486, %493 : vector<2x25xf32>
    %495 = arith.subf %445, %491 : vector<2x25xf32>
    %496 = arith.mulf %481, %495 : vector<2x25xf32>
    %497 = arith.addf %491, %496 : vector<2x25xf32>
    %c4_201 = arith.constant 4 : index
    %c0_202 = arith.constant 0 : index
    %498 = vector.load %arg27[%c4_201, %c0_202] : memref<16x25xf32, #tpu.memory_space<vmem>>, vector<2x25xf32>
    tpu.vector_store %arg27[%c4_201, %c0_202], %494 {strides = array<i32>} : memref<16x25xf32, #tpu.memory_space<vmem>>, vector<2x25xf32>,
    %c10 = arith.constant 10 : index
    %c0_203 = arith.constant 0 : index
    %499 = vector.load %arg28[%c10, %c0_203] : memref<16x25xf32, #tpu.memory_space<vmem>>, vector<2x25xf32>
    tpu.vector_store %arg28[%c10, %c0_203], %497 {strides = array<i32>} : memref<16x25xf32, #tpu.memory_space<vmem>>, vector<2x25xf32>,
    %c3_204 = arith.constant 3 : index
    %c0_205 = arith.constant 0 : index
    %500 = tpu.strided_load %arg25[%c3_204, %c0_205] {strides = array<i32: 8, 1>} : memref<16x75xf32, #tpu.memory_space<vmem>>, vector<2x75xf32>
    %c4_206 = arith.constant 4 : index
    %c0_207 = arith.constant 0 : index
    %501 = tpu.strided_load %arg26[%c4_206, %c0_207] {strides = array<i32: 8, 1>} : memref<16x75xf32, #tpu.memory_space<vmem>>, vector<2x75xf32>
    %cst_208 = arith.constant dense<0.000000e+00> : vector<2x75xf32>
    %502 = tpu.matmul %494, %338, %cst_208 {dimension_numbers = #tpu.dot_dimension_numbers<[1], [0], [0], [1], [0, 0, 1, 1], [], []>} : vector<2x25xf32>, vector<25x75xf32>, vector<2x75xf32> -> vector<2x75xf32>
    %503 = vector.broadcast %339 : vector<1x75xf32> to vector<2x75xf32>
    %504 = arith.addf %502, %503 : vector<2x75xf32>
    %cst_209 = arith.constant dense<0.000000e+00> : vector<2x75xf32>
    %505 = tpu.matmul %497, %340, %cst_209 {dimension_numbers = #tpu.dot_dimension_numbers<[1], [0], [0], [1], [0, 0, 1, 1], [], []>} : vector<2x25xf32>, vector<25x75xf32>, vector<2x75xf32> -> vector<2x75xf32>
    %506 = vector.broadcast %341 : vector<1x75xf32> to vector<2x75xf32>
    %507 = arith.addf %505, %506 : vector<2x75xf32>
    %508 = arith.addf %500, %504 : vector<2x75xf32>
    %509 = arith.addf %501, %507 : vector<2x75xf32>
    %510 = vector.extract_strided_slice %508 {offsets = [0, 0], sizes = [2, 25], strides = [1, 1]} : vector<2x75xf32> to vector<2x25xf32>
    %511 = arith.negf %510 : vector<2x25xf32>
    %512 = math.exp %511 : vector<2x25xf32>
    %cst_210 = arith.constant 1.000000e+00 : f32
    %513 = vector.broadcast %cst_210 : f32 to vector<2x25xf32>
    %514 = arith.addf %513, %512 : vector<2x25xf32>
    %515 = arith.divf %513, %514 : vector<2x25xf32>
    %516 = vector.extract_strided_slice %509 {offsets = [0, 0], sizes = [2, 25], strides = [1, 1]} : vector<2x75xf32> to vector<2x25xf32>
    %517 = arith.negf %516 : vector<2x25xf32>
    %518 = math.exp %517 : vector<2x25xf32>
    %cst_211 = arith.constant 1.000000e+00 : f32
    %519 = vector.broadcast %cst_211 : f32 to vector<2x25xf32>
    %520 = arith.addf %519, %518 : vector<2x25xf32>
    %521 = arith.divf %519, %520 : vector<2x25xf32>
    %522 = vector.extract_strided_slice %508 {offsets = [0, 25], sizes = [2, 25], strides = [1, 1]} : vector<2x75xf32> to vector<2x25xf32>
    %523 = arith.negf %522 : vector<2x25xf32>
    %524 = math.exp %523 : vector<2x25xf32>
    %cst_212 = arith.constant 1.000000e+00 : f32
    %525 = vector.broadcast %cst_212 : f32 to vector<2x25xf32>
    %526 = arith.addf %525, %524 : vector<2x25xf32>
    %527 = arith.divf %525, %526 : vector<2x25xf32>
    %528 = vector.extract_strided_slice %509 {offsets = [0, 25], sizes = [2, 25], strides = [1, 1]} : vector<2x75xf32> to vector<2x25xf32>
    %529 = arith.negf %528 : vector<2x25xf32>
    %530 = math.exp %529 : vector<2x25xf32>
    %cst_213 = arith.constant 1.000000e+00 : f32
    %531 = vector.broadcast %cst_213 : f32 to vector<2x25xf32>
    %532 = arith.addf %531, %530 : vector<2x25xf32>
    %533 = arith.divf %531, %532 : vector<2x25xf32>
    %534 = vector.extract_strided_slice %500 {offsets = [0, 50], sizes = [2, 25], strides = [1, 1]} : vector<2x75xf32> to vector<2x25xf32>
    %535 = vector.extract_strided_slice %504 {offsets = [0, 50], sizes = [2, 25], strides = [1, 1]} : vector<2x75xf32> to vector<2x25xf32>
    %536 = arith.mulf %515, %535 : vector<2x25xf32>
    %537 = arith.addf %534, %536 : vector<2x25xf32>
    %538 = math.tanh %537 : vector<2x25xf32>
    %539 = vector.extract_strided_slice %501 {offsets = [0, 50], sizes = [2, 25], strides = [1, 1]} : vector<2x75xf32> to vector<2x25xf32>
    %540 = vector.extract_strided_slice %507 {offsets = [0, 50], sizes = [2, 25], strides = [1, 1]} : vector<2x75xf32> to vector<2x25xf32>
    %541 = arith.mulf %521, %540 : vector<2x25xf32>
    %542 = arith.addf %539, %541 : vector<2x25xf32>
    %543 = math.tanh %542 : vector<2x25xf32>
    %544 = arith.subf %494, %538 : vector<2x25xf32>
    %545 = arith.mulf %527, %544 : vector<2x25xf32>
    %546 = arith.addf %538, %545 : vector<2x25xf32>
    %547 = arith.subf %497, %543 : vector<2x25xf32>
    %548 = arith.mulf %533, %547 : vector<2x25xf32>
    %549 = arith.addf %543, %548 : vector<2x25xf32>
    %c6_214 = arith.constant 6 : index
    %c0_215 = arith.constant 0 : index
    %550 = vector.load %arg27[%c6_214, %c0_215] : memref<16x25xf32, #tpu.memory_space<vmem>>, vector<2x25xf32>
    tpu.vector_store %arg27[%c6_214, %c0_215], %546 {strides = array<i32>} : memref<16x25xf32, #tpu.memory_space<vmem>>, vector<2x25xf32>,
    %c8 = arith.constant 8 : index
    %c0_216 = arith.constant 0 : index
    %551 = vector.load %arg28[%c8, %c0_216] : memref<16x25xf32, #tpu.memory_space<vmem>>, vector<2x25xf32>
    tpu.vector_store %arg28[%c8, %c0_216], %549 {strides = array<i32>} : memref<16x25xf32, #tpu.memory_space<vmem>>, vector<2x25xf32>,
    %c4_217 = arith.constant 4 : index
    %c0_218 = arith.constant 0 : index
    %552 = tpu.strided_load %arg25[%c4_217, %c0_218] {strides = array<i32: 8, 1>} : memref<16x75xf32, #tpu.memory_space<vmem>>, vector<2x75xf32>
    %c3_219 = arith.constant 3 : index
    %c0_220 = arith.constant 0 : index
    %553 = tpu.strided_load %arg26[%c3_219, %c0_220] {strides = array<i32: 8, 1>} : memref<16x75xf32, #tpu.memory_space<vmem>>, vector<2x75xf32>
    %cst_221 = arith.constant dense<0.000000e+00> : vector<2x75xf32>
    %554 = tpu.matmul %546, %338, %cst_221 {dimension_numbers = #tpu.dot_dimension_numbers<[1], [0], [0], [1], [0, 0, 1, 1], [], []>} : vector<2x25xf32>, vector<25x75xf32>, vector<2x75xf32> -> vector<2x75xf32>
    %555 = vector.broadcast %339 : vector<1x75xf32> to vector<2x75xf32>
    %556 = arith.addf %554, %555 : vector<2x75xf32>
    %cst_222 = arith.constant dense<0.000000e+00> : vector<2x75xf32>
    %557 = tpu.matmul %549, %340, %cst_222 {dimension_numbers = #tpu.dot_dimension_numbers<[1], [0], [0], [1], [0, 0, 1, 1], [], []>} : vector<2x25xf32>, vector<25x75xf32>, vector<2x75xf32> -> vector<2x75xf32>
    %558 = vector.broadcast %341 : vector<1x75xf32> to vector<2x75xf32>
    %559 = arith.addf %557, %558 : vector<2x75xf32>
    %560 = arith.addf %552, %556 : vector<2x75xf32>
    %561 = arith.addf %553, %559 : vector<2x75xf32>
    %562 = vector.extract_strided_slice %560 {offsets = [0, 0], sizes = [2, 25], strides = [1, 1]} : vector<2x75xf32> to vector<2x25xf32>
    %563 = arith.negf %562 : vector<2x25xf32>
    %564 = math.exp %563 : vector<2x25xf32>
    %cst_223 = arith.constant 1.000000e+00 : f32
    %565 = vector.broadcast %cst_223 : f32 to vector<2x25xf32>
    %566 = arith.addf %565, %564 : vector<2x25xf32>
    %567 = arith.divf %565, %566 : vector<2x25xf32>
    %568 = vector.extract_strided_slice %561 {offsets = [0, 0], sizes = [2, 25], strides = [1, 1]} : vector<2x75xf32> to vector<2x25xf32>
    %569 = arith.negf %568 : vector<2x25xf32>
    %570 = math.exp %569 : vector<2x25xf32>
    %cst_224 = arith.constant 1.000000e+00 : f32
    %571 = vector.broadcast %cst_224 : f32 to vector<2x25xf32>
    %572 = arith.addf %571, %570 : vector<2x25xf32>
    %573 = arith.divf %571, %572 : vector<2x25xf32>
    %574 = vector.extract_strided_slice %560 {offsets = [0, 25], sizes = [2, 25], strides = [1, 1]} : vector<2x75xf32> to vector<2x25xf32>
    %575 = arith.negf %574 : vector<2x25xf32>
    %576 = math.exp %575 : vector<2x25xf32>
    %cst_225 = arith.constant 1.000000e+00 : f32
    %577 = vector.broadcast %cst_225 : f32 to vector<2x25xf32>
    %578 = arith.addf %577, %576 : vector<2x25xf32>
    %579 = arith.divf %577, %578 : vector<2x25xf32>
    %580 = vector.extract_strided_slice %561 {offsets = [0, 25], sizes = [2, 25], strides = [1, 1]} : vector<2x75xf32> to vector<2x25xf32>
    %581 = arith.negf %580 : vector<2x25xf32>
    %582 = math.exp %581 : vector<2x25xf32>
    %cst_226 = arith.constant 1.000000e+00 : f32
    %583 = vector.broadcast %cst_226 : f32 to vector<2x25xf32>
    %584 = arith.addf %583, %582 : vector<2x25xf32>
    %585 = arith.divf %583, %584 : vector<2x25xf32>
    %586 = vector.extract_strided_slice %552 {offsets = [0, 50], sizes = [2, 25], strides = [1, 1]} : vector<2x75xf32> to vector<2x25xf32>
    %587 = vector.extract_strided_slice %556 {offsets = [0, 50], sizes = [2, 25], strides = [1, 1]} : vector<2x75xf32> to vector<2x25xf32>
    %588 = arith.mulf %567, %587 : vector<2x25xf32>
    %589 = arith.addf %586, %588 : vector<2x25xf32>
    %590 = math.tanh %589 : vector<2x25xf32>
    %591 = vector.extract_strided_slice %553 {offsets = [0, 50], sizes = [2, 25], strides = [1, 1]} : vector<2x75xf32> to vector<2x25xf32>
    %592 = vector.extract_strided_slice %559 {offsets = [0, 50], sizes = [2, 25], strides = [1, 1]} : vector<2x75xf32> to vector<2x25xf32>
    %593 = arith.mulf %573, %592 : vector<2x25xf32>
    %594 = arith.addf %591, %593 : vector<2x25xf32>
    %595 = math.tanh %594 : vector<2x25xf32>
    %596 = arith.subf %546, %590 : vector<2x25xf32>
    %597 = arith.mulf %579, %596 : vector<2x25xf32>
    %598 = arith.addf %590, %597 : vector<2x25xf32>
    %599 = arith.subf %549, %595 : vector<2x25xf32>
    %600 = arith.mulf %585, %599 : vector<2x25xf32>
    %601 = arith.addf %595, %600 : vector<2x25xf32>
    %c8_227 = arith.constant 8 : index
    %c0_228 = arith.constant 0 : index
    %602 = vector.load %arg27[%c8_227, %c0_228] : memref<16x25xf32, #tpu.memory_space<vmem>>, vector<2x25xf32>
    tpu.vector_store %arg27[%c8_227, %c0_228], %598 {strides = array<i32>} : memref<16x25xf32, #tpu.memory_space<vmem>>, vector<2x25xf32>,
    %c6_229 = arith.constant 6 : index
    %c0_230 = arith.constant 0 : index
    %603 = vector.load %arg28[%c6_229, %c0_230] : memref<16x25xf32, #tpu.memory_space<vmem>>, vector<2x25xf32>
    tpu.vector_store %arg28[%c6_229, %c0_230], %601 {strides = array<i32>} : memref<16x25xf32, #tpu.memory_space<vmem>>, vector<2x25xf32>,
    %c5_231 = arith.constant 5 : index
    %c0_232 = arith.constant 0 : index
    %604 = tpu.strided_load %arg25[%c5_231, %c0_232] {strides = array<i32: 8, 1>} : memref<16x75xf32, #tpu.memory_space<vmem>>, vector<2x75xf32>
    %c2_233 = arith.constant 2 : index
    %c0_234 = arith.constant 0 : index
    %605 = tpu.strided_load %arg26[%c2_233, %c0_234] {strides = array<i32: 8, 1>} : memref<16x75xf32, #tpu.memory_space<vmem>>, vector<2x75xf32>
    %cst_235 = arith.constant dense<0.000000e+00> : vector<2x75xf32>
    %606 = tpu.matmul %598, %338, %cst_235 {dimension_numbers = #tpu.dot_dimension_numbers<[1], [0], [0], [1], [0, 0, 1, 1], [], []>} : vector<2x25xf32>, vector<25x75xf32>, vector<2x75xf32> -> vector<2x75xf32>
    %607 = vector.broadcast %339 : vector<1x75xf32> to vector<2x75xf32>
    %608 = arith.addf %606, %607 : vector<2x75xf32>
    %cst_236 = arith.constant dense<0.000000e+00> : vector<2x75xf32>
    %609 = tpu.matmul %601, %340, %cst_236 {dimension_numbers = #tpu.dot_dimension_numbers<[1], [0], [0], [1], [0, 0, 1, 1], [], []>} : vector<2x25xf32>, vector<25x75xf32>, vector<2x75xf32> -> vector<2x75xf32>
    %610 = vector.broadcast %341 : vector<1x75xf32> to vector<2x75xf32>
    %611 = arith.addf %609, %610 : vector<2x75xf32>
    %612 = arith.addf %604, %608 : vector<2x75xf32>
    %613 = arith.addf %605, %611 : vector<2x75xf32>
    %614 = vector.extract_strided_slice %612 {offsets = [0, 0], sizes = [2, 25], strides = [1, 1]} : vector<2x75xf32> to vector<2x25xf32>
    %615 = arith.negf %614 : vector<2x25xf32>
    %616 = math.exp %615 : vector<2x25xf32>
    %cst_237 = arith.constant 1.000000e+00 : f32
    %617 = vector.broadcast %cst_237 : f32 to vector<2x25xf32>
    %618 = arith.addf %617, %616 : vector<2x25xf32>
    %619 = arith.divf %617, %618 : vector<2x25xf32>
    %620 = vector.extract_strided_slice %613 {offsets = [0, 0], sizes = [2, 25], strides = [1, 1]} : vector<2x75xf32> to vector<2x25xf32>
    %621 = arith.negf %620 : vector<2x25xf32>
    %622 = math.exp %621 : vector<2x25xf32>
    %cst_238 = arith.constant 1.000000e+00 : f32
    %623 = vector.broadcast %cst_238 : f32 to vector<2x25xf32>
    %624 = arith.addf %623, %622 : vector<2x25xf32>
    %625 = arith.divf %623, %624 : vector<2x25xf32>
    %626 = vector.extract_strided_slice %612 {offsets = [0, 25], sizes = [2, 25], strides = [1, 1]} : vector<2x75xf32> to vector<2x25xf32>
    %627 = arith.negf %626 : vector<2x25xf32>
    %628 = math.exp %627 : vector<2x25xf32>
    %cst_239 = arith.constant 1.000000e+00 : f32
    %629 = vector.broadcast %cst_239 : f32 to vector<2x25xf32>
    %630 = arith.addf %629, %628 : vector<2x25xf32>
    %631 = arith.divf %629, %630 : vector<2x25xf32>
    %632 = vector.extract_strided_slice %613 {offsets = [0, 25], sizes = [2, 25], strides = [1, 1]} : vector<2x75xf32> to vector<2x25xf32>
    %633 = arith.negf %632 : vector<2x25xf32>
    %634 = math.exp %633 : vector<2x25xf32>
    %cst_240 = arith.constant 1.000000e+00 : f32
    %635 = vector.broadcast %cst_240 : f32 to vector<2x25xf32>
    %636 = arith.addf %635, %634 : vector<2x25xf32>
    %637 = arith.divf %635, %636 : vector<2x25xf32>
    %638 = vector.extract_strided_slice %604 {offsets = [0, 50], sizes = [2, 25], strides = [1, 1]} : vector<2x75xf32> to vector<2x25xf32>
    %639 = vector.extract_strided_slice %608 {offsets = [0, 50], sizes = [2, 25], strides = [1, 1]} : vector<2x75xf32> to vector<2x25xf32>
    %640 = arith.mulf %619, %639 : vector<2x25xf32>
    %641 = arith.addf %638, %640 : vector<2x25xf32>
    %642 = math.tanh %641 : vector<2x25xf32>
    %643 = vector.extract_strided_slice %605 {offsets = [0, 50], sizes = [2, 25], strides = [1, 1]} : vector<2x75xf32> to vector<2x25xf32>
    %644 = vector.extract_strided_slice %611 {offsets = [0, 50], sizes = [2, 25], strides = [1, 1]} : vector<2x75xf32> to vector<2x25xf32>
    %645 = arith.mulf %625, %644 : vector<2x25xf32>
    %646 = arith.addf %643, %645 : vector<2x25xf32>
    %647 = math.tanh %646 : vector<2x25xf32>
    %648 = arith.subf %598, %642 : vector<2x25xf32>
    %649 = arith.mulf %631, %648 : vector<2x25xf32>
    %650 = arith.addf %642, %649 : vector<2x25xf32>
    %651 = arith.subf %601, %647 : vector<2x25xf32>
    %652 = arith.mulf %637, %651 : vector<2x25xf32>
    %653 = arith.addf %647, %652 : vector<2x25xf32>
    %c10_241 = arith.constant 10 : index
    %c0_242 = arith.constant 0 : index
    %654 = vector.load %arg27[%c10_241, %c0_242] : memref<16x25xf32, #tpu.memory_space<vmem>>, vector<2x25xf32>
    tpu.vector_store %arg27[%c10_241, %c0_242], %650 {strides = array<i32>} : memref<16x25xf32, #tpu.memory_space<vmem>>, vector<2x25xf32>,
    %c4_243 = arith.constant 4 : index
    %c0_244 = arith.constant 0 : index
    %655 = vector.load %arg28[%c4_243, %c0_244] : memref<16x25xf32, #tpu.memory_space<vmem>>, vector<2x25xf32>
    tpu.vector_store %arg28[%c4_243, %c0_244], %653 {strides = array<i32>} : memref<16x25xf32, #tpu.memory_space<vmem>>, vector<2x25xf32>,
    %c6_245 = arith.constant 6 : index
    %c0_246 = arith.constant 0 : index
    %656 = tpu.strided_load %arg25[%c6_245, %c0_246] {strides = array<i32: 8, 1>} : memref<16x75xf32, #tpu.memory_space<vmem>>, vector<2x75xf32>
    %c1_247 = arith.constant 1 : index
    %c0_248 = arith.constant 0 : index
    %657 = tpu.strided_load %arg26[%c1_247, %c0_248] {strides = array<i32: 8, 1>} : memref<16x75xf32, #tpu.memory_space<vmem>>, vector<2x75xf32>
    %cst_249 = arith.constant dense<0.000000e+00> : vector<2x75xf32>
    %658 = tpu.matmul %650, %338, %cst_249 {dimension_numbers = #tpu.dot_dimension_numbers<[1], [0], [0], [1], [0, 0, 1, 1], [], []>} : vector<2x25xf32>, vector<25x75xf32>, vector<2x75xf32> -> vector<2x75xf32>
    %659 = vector.broadcast %339 : vector<1x75xf32> to vector<2x75xf32>
    %660 = arith.addf %658, %659 : vector<2x75xf32>
    %cst_250 = arith.constant dense<0.000000e+00> : vector<2x75xf32>
    %661 = tpu.matmul %653, %340, %cst_250 {dimension_numbers = #tpu.dot_dimension_numbers<[1], [0], [0], [1], [0, 0, 1, 1], [], []>} : vector<2x25xf32>, vector<25x75xf32>, vector<2x75xf32> -> vector<2x75xf32>
    %662 = vector.broadcast %341 : vector<1x75xf32> to vector<2x75xf32>
    %663 = arith.addf %661, %662 : vector<2x75xf32>
    %664 = arith.addf %656, %660 : vector<2x75xf32>
    %665 = arith.addf %657, %663 : vector<2x75xf32>
    %666 = vector.extract_strided_slice %664 {offsets = [0, 0], sizes = [2, 25], strides = [1, 1]} : vector<2x75xf32> to vector<2x25xf32>
    %667 = arith.negf %666 : vector<2x25xf32>
    %668 = math.exp %667 : vector<2x25xf32>
    %cst_251 = arith.constant 1.000000e+00 : f32
    %669 = vector.broadcast %cst_251 : f32 to vector<2x25xf32>
    %670 = arith.addf %669, %668 : vector<2x25xf32>
    %671 = arith.divf %669, %670 : vector<2x25xf32>
    %672 = vector.extract_strided_slice %665 {offsets = [0, 0], sizes = [2, 25], strides = [1, 1]} : vector<2x75xf32> to vector<2x25xf32>
    %673 = arith.negf %672 : vector<2x25xf32>
    %674 = math.exp %673 : vector<2x25xf32>
    %cst_252 = arith.constant 1.000000e+00 : f32
    %675 = vector.broadcast %cst_252 : f32 to vector<2x25xf32>
    %676 = arith.addf %675, %674 : vector<2x25xf32>
    %677 = arith.divf %675, %676 : vector<2x25xf32>
    %678 = vector.extract_strided_slice %664 {offsets = [0, 25], sizes = [2, 25], strides = [1, 1]} : vector<2x75xf32> to vector<2x25xf32>
    %679 = arith.negf %678 : vector<2x25xf32>
    %680 = math.exp %679 : vector<2x25xf32>
    %cst_253 = arith.constant 1.000000e+00 : f32
    %681 = vector.broadcast %cst_253 : f32 to vector<2x25xf32>
    %682 = arith.addf %681, %680 : vector<2x25xf32>
    %683 = arith.divf %681, %682 : vector<2x25xf32>
    %684 = vector.extract_strided_slice %665 {offsets = [0, 25], sizes = [2, 25], strides = [1, 1]} : vector<2x75xf32> to vector<2x25xf32>
    %685 = arith.negf %684 : vector<2x25xf32>
    %686 = math.exp %685 : vector<2x25xf32>
    %cst_254 = arith.constant 1.000000e+00 : f32
    %687 = vector.broadcast %cst_254 : f32 to vector<2x25xf32>
    %688 = arith.addf %687, %686 : vector<2x25xf32>
    %689 = arith.divf %687, %688 : vector<2x25xf32>
    %690 = vector.extract_strided_slice %656 {offsets = [0, 50], sizes = [2, 25], strides = [1, 1]} : vector<2x75xf32> to vector<2x25xf32>
    %691 = vector.extract_strided_slice %660 {offsets = [0, 50], sizes = [2, 25], strides = [1, 1]} : vector<2x75xf32> to vector<2x25xf32>
    %692 = arith.mulf %671, %691 : vector<2x25xf32>
    %693 = arith.addf %690, %692 : vector<2x25xf32>
    %694 = math.tanh %693 : vector<2x25xf32>
    %695 = vector.extract_strided_slice %657 {offsets = [0, 50], sizes = [2, 25], strides = [1, 1]} : vector<2x75xf32> to vector<2x25xf32>
    %696 = vector.extract_strided_slice %663 {offsets = [0, 50], sizes = [2, 25], strides = [1, 1]} : vector<2x75xf32> to vector<2x25xf32>
    %697 = arith.mulf %677, %696 : vector<2x25xf32>
    %698 = arith.addf %695, %697 : vector<2x25xf32>
    %699 = math.tanh %698 : vector<2x25xf32>
    %700 = arith.subf %650, %694 : vector<2x25xf32>
    %701 = arith.mulf %683, %700 : vector<2x25xf32>
    %702 = arith.addf %694, %701 : vector<2x25xf32>
    %703 = arith.subf %653, %699 : vector<2x25xf32>
    %704 = arith.mulf %689, %703 : vector<2x25xf32>
    %705 = arith.addf %699, %704 : vector<2x25xf32>
    %c12_255 = arith.constant 12 : index
    %c0_256 = arith.constant 0 : index
    %706 = vector.load %arg27[%c12_255, %c0_256] : memref<16x25xf32, #tpu.memory_space<vmem>>, vector<2x25xf32>
    tpu.vector_store %arg27[%c12_255, %c0_256], %702 {strides = array<i32>} : memref<16x25xf32, #tpu.memory_space<vmem>>, vector<2x25xf32>,
    %c2_257 = arith.constant 2 : index
    %c0_258 = arith.constant 0 : index
    %707 = vector.load %arg28[%c2_257, %c0_258] : memref<16x25xf32, #tpu.memory_space<vmem>>, vector<2x25xf32>
    tpu.vector_store %arg28[%c2_257, %c0_258], %705 {strides = array<i32>} : memref<16x25xf32, #tpu.memory_space<vmem>>, vector<2x25xf32>,
    %c7_259 = arith.constant 7 : index
    %c0_260 = arith.constant 0 : index
    %708 = tpu.strided_load %arg25[%c7_259, %c0_260] {strides = array<i32: 8, 1>} : memref<16x75xf32, #tpu.memory_space<vmem>>, vector<2x75xf32>
    %c0_261 = arith.constant 0 : index
    %c0_262 = arith.constant 0 : index
    %709 = tpu.strided_load %arg26[%c0_261, %c0_262] {strides = array<i32: 8, 1>} : memref<16x75xf32, #tpu.memory_space<vmem>>, vector<2x75xf32>
    %cst_263 = arith.constant dense<0.000000e+00> : vector<2x75xf32>
    %710 = tpu.matmul %702, %338, %cst_263 {dimension_numbers = #tpu.dot_dimension_numbers<[1], [0], [0], [1], [0, 0, 1, 1], [], []>} : vector<2x25xf32>, vector<25x75xf32>, vector<2x75xf32> -> vector<2x75xf32>
    %711 = vector.broadcast %339 : vector<1x75xf32> to vector<2x75xf32>
    %712 = arith.addf %710, %711 : vector<2x75xf32>
    %cst_264 = arith.constant dense<0.000000e+00> : vector<2x75xf32>
    %713 = tpu.matmul %705, %340, %cst_264 {dimension_numbers = #tpu.dot_dimension_numbers<[1], [0], [0], [1], [0, 0, 1, 1], [], []>} : vector<2x25xf32>, vector<25x75xf32>, vector<2x75xf32> -> vector<2x75xf32>
    %714 = vector.broadcast %341 : vector<1x75xf32> to vector<2x75xf32>
    %715 = arith.addf %713, %714 : vector<2x75xf32>
    %716 = arith.addf %708, %712 : vector<2x75xf32>
    %717 = arith.addf %709, %715 : vector<2x75xf32>
    %718 = vector.extract_strided_slice %716 {offsets = [0, 0], sizes = [2, 25], strides = [1, 1]} : vector<2x75xf32> to vector<2x25xf32>
    %719 = arith.negf %718 : vector<2x25xf32>
    %720 = math.exp %719 : vector<2x25xf32>
    %cst_265 = arith.constant 1.000000e+00 : f32
    %721 = vector.broadcast %cst_265 : f32 to vector<2x25xf32>
    %722 = arith.addf %721, %720 : vector<2x25xf32>
    %723 = arith.divf %721, %722 : vector<2x25xf32>
    %724 = vector.extract_strided_slice %717 {offsets = [0, 0], sizes = [2, 25], strides = [1, 1]} : vector<2x75xf32> to vector<2x25xf32>
    %725 = arith.negf %724 : vector<2x25xf32>
    %726 = math.exp %725 : vector<2x25xf32>
    %cst_266 = arith.constant 1.000000e+00 : f32
    %727 = vector.broadcast %cst_266 : f32 to vector<2x25xf32>
    %728 = arith.addf %727, %726 : vector<2x25xf32>
    %729 = arith.divf %727, %728 : vector<2x25xf32>
    %730 = vector.extract_strided_slice %716 {offsets = [0, 25], sizes = [2, 25], strides = [1, 1]} : vector<2x75xf32> to vector<2x25xf32>
    %731 = arith.negf %730 : vector<2x25xf32>
    %732 = math.exp %731 : vector<2x25xf32>
    %cst_267 = arith.constant 1.000000e+00 : f32
    %733 = vector.broadcast %cst_267 : f32 to vector<2x25xf32>
    %734 = arith.addf %733, %732 : vector<2x25xf32>
    %735 = arith.divf %733, %734 : vector<2x25xf32>
    %736 = vector.extract_strided_slice %717 {offsets = [0, 25], sizes = [2, 25], strides = [1, 1]} : vector<2x75xf32> to vector<2x25xf32>
    %737 = arith.negf %736 : vector<2x25xf32>
    %738 = math.exp %737 : vector<2x25xf32>
    %cst_268 = arith.constant 1.000000e+00 : f32
    %739 = vector.broadcast %cst_268 : f32 to vector<2x25xf32>
    %740 = arith.addf %739, %738 : vector<2x25xf32>
    %741 = arith.divf %739, %740 : vector<2x25xf32>
    %742 = vector.extract_strided_slice %708 {offsets = [0, 50], sizes = [2, 25], strides = [1, 1]} : vector<2x75xf32> to vector<2x25xf32>
    %743 = vector.extract_strided_slice %712 {offsets = [0, 50], sizes = [2, 25], strides = [1, 1]} : vector<2x75xf32> to vector<2x25xf32>
    %744 = arith.mulf %723, %743 : vector<2x25xf32>
    %745 = arith.addf %742, %744 : vector<2x25xf32>
    %746 = math.tanh %745 : vector<2x25xf32>
    %747 = vector.extract_strided_slice %709 {offsets = [0, 50], sizes = [2, 25], strides = [1, 1]} : vector<2x75xf32> to vector<2x25xf32>
    %748 = vector.extract_strided_slice %715 {offsets = [0, 50], sizes = [2, 25], strides = [1, 1]} : vector<2x75xf32> to vector<2x25xf32>
    %749 = arith.mulf %729, %748 : vector<2x25xf32>
    %750 = arith.addf %747, %749 : vector<2x25xf32>
    %751 = math.tanh %750 : vector<2x25xf32>
    %752 = arith.subf %702, %746 : vector<2x25xf32>
    %753 = arith.mulf %735, %752 : vector<2x25xf32>
    %754 = arith.addf %746, %753 : vector<2x25xf32>
    %755 = arith.subf %705, %751 : vector<2x25xf32>
    %756 = arith.mulf %741, %755 : vector<2x25xf32>
    %757 = arith.addf %751, %756 : vector<2x25xf32>
    %c14_269 = arith.constant 14 : index
    %c0_270 = arith.constant 0 : index
    %758 = vector.load %arg27[%c14_269, %c0_270] : memref<16x25xf32, #tpu.memory_space<vmem>>, vector<2x25xf32>
    tpu.vector_store %arg27[%c14_269, %c0_270], %754 {strides = array<i32>} : memref<16x25xf32, #tpu.memory_space<vmem>>, vector<2x25xf32>,
    %c0_271 = arith.constant 0 : index
    %c0_272 = arith.constant 0 : index
    %759 = vector.load %arg28[%c0_271, %c0_272] : memref<16x25xf32, #tpu.memory_space<vmem>>, vector<2x25xf32>
    tpu.vector_store %arg28[%c0_271, %c0_272], %757 {strides = array<i32>} : memref<16x25xf32, #tpu.memory_space<vmem>>, vector<2x25xf32>,
    %c0_273 = arith.constant 0 : index
    %c0_274 = arith.constant 0 : index
    %760 = vector.load %arg13[%c0_273, %c0_274] : memref<25x10xf32, #tpu.memory_space<vmem>>, vector<25x10xf32>
    %c0_275 = arith.constant 0 : index
    %c0_276 = arith.constant 0 : index
    %761 = vector.load %arg14[%c0_275, %c0_276] : memref<25x10xf32, #tpu.memory_space<vmem>>, vector<25x10xf32>
    %c0_277 = arith.constant 0 : index
    %c0_278 = arith.constant 0 : index
    %762 = vector.load %arg15[%c0_277, %c0_278] : memref<1x10xf32, #tpu.memory_space<vmem>>, vector<1x10xf32>
    %c0_279 = arith.constant 0 : index
    %c0_280 = arith.constant 0 : index
    %763 = vector.load %arg16[%c0_279, %c0_280] : memref<1x10xf32, #tpu.memory_space<vmem>>, vector<1x10xf32>
    %c0_281 = arith.constant 0 : index
    %c0_282 = arith.constant 0 : index
    %764 = vector.load %arg17[%c0_281, %c0_282] : memref<1x1xf32, #tpu.memory_space<vmem>>, vector<1x1xf32>
    %c0_283 = arith.constant 0 : index
    %c0_284 = arith.constant 0 : index
    %765 = vector.load %arg18[%c0_283, %c0_284] : memref<25x25xf32, #tpu.memory_space<vmem>>, vector<25x25xf32>
    %c0_285 = arith.constant 0 : index
    %c0_286 = arith.constant 0 : index
    %766 = vector.load %arg19[%c0_285, %c0_286] : memref<25x25xf32, #tpu.memory_space<vmem>>, vector<25x25xf32>
    %c0_287 = arith.constant 0 : index
    %c0_288 = arith.constant 0 : index
    %767 = vector.load %arg20[%c0_287, %c0_288] : memref<1x25xf32, #tpu.memory_space<vmem>>, vector<1x25xf32>
    %c0_289 = arith.constant 0 : index
    %c0_290 = arith.constant 0 : index
    %768 = vector.load %arg21[%c0_289, %c0_290] : memref<25x9xf32, #tpu.memory_space<vmem>>, vector<25x9xf32>
    %c0_291 = arith.constant 0 : index
    %c0_292 = arith.constant 0 : index
    %769 = vector.load %arg22[%c0_291, %c0_292] : memref<1x9xf32, #tpu.memory_space<vmem>>, vector<1x9xf32>
    %c0_293 = arith.constant 0 : index
    %c0_294 = arith.constant 0 : index
    %770 = tpu.strided_load %arg27[%c0_293, %c0_294] {strides = array<i32: 2, 1>} : memref<16x25xf32, #tpu.memory_space<vmem>>, vector<8x25xf32>
    %cst_295 = arith.constant 3.000000e-01 : f32
    %771 = vector.broadcast %cst_295 : f32 to vector<8x25xf32>
    %772 = arith.mulf %771, %770 : vector<8x25xf32>
    %773 = arith.maximumf %770, %772 : vector<8x25xf32>
    %c0_296 = arith.constant 0 : index
    %c0_297 = arith.constant 0 : index
    %774 = tpu.strided_load %arg28[%c0_296, %c0_297] {strides = array<i32: 2, 1>} : memref<16x25xf32, #tpu.memory_space<vmem>>, vector<8x25xf32>
    %cst_298 = arith.constant 3.000000e-01 : f32
    %775 = vector.broadcast %cst_298 : f32 to vector<8x25xf32>
    %776 = arith.mulf %775, %774 : vector<8x25xf32>
    %777 = arith.maximumf %774, %776 : vector<8x25xf32>
    %cst_299 = arith.constant dense<0.000000e+00> : vector<8x10xf32>
    %778 = tpu.matmul %773, %760, %cst_299 {dimension_numbers = #tpu.dot_dimension_numbers<[1], [0], [0], [1], [0, 0, 1, 1], [], []>} : vector<8x25xf32>, vector<25x10xf32>, vector<8x10xf32> -> vector<8x10xf32>
    %cst_300 = arith.constant dense<0.000000e+00> : vector<8x10xf32>
    %779 = tpu.matmul %777, %761, %cst_300 {dimension_numbers = #tpu.dot_dimension_numbers<[1], [0], [0], [1], [0, 0, 1, 1], [], []>} : vector<8x25xf32>, vector<25x10xf32>, vector<8x10xf32> -> vector<8x10xf32>
    %780 = arith.addf %778, %779 : vector<8x10xf32>
    %781 = vector.broadcast %762 : vector<1x10xf32> to vector<8x10xf32>
    %782 = arith.addf %780, %781 : vector<8x10xf32>
    %cst_301 = arith.constant 3.000000e-01 : f32
    %783 = vector.broadcast %cst_301 : f32 to vector<8x10xf32>
    %784 = arith.mulf %783, %782 : vector<8x10xf32>
    %785 = arith.maximumf %782, %784 : vector<8x10xf32>
    %786 = vector.broadcast %763 : vector<1x10xf32> to vector<8x10xf32>
    %787 = arith.mulf %785, %786 : vector<8x10xf32>
    %cst_302 = arith.constant dense<0.000000e+00> : vector<8xf32>
    %788 = vector.multi_reduction <add>, %787, %cst_302 [1] : vector<8x10xf32> to vector<8xf32>
    %789 = vector.shape_cast %788 : vector<8xf32> to vector<8x1xf32>
    %790 = vector.broadcast %764 : vector<1x1xf32> to vector<8x1xf32>
    %791 = arith.addf %789, %790 : vector<8x1xf32>
    %792 = arith.negf %791 : vector<8x1xf32>
    %793 = math.exp %792 : vector<8x1xf32>
    %cst_303 = arith.constant 1.000000e+00 : f32
    %794 = vector.broadcast %cst_303 : f32 to vector<8x1xf32>
    %795 = arith.addf %794, %793 : vector<8x1xf32>
    %796 = arith.divf %794, %795 : vector<8x1xf32>
    %cst_304 = arith.constant dense<0.000000e+00> : vector<1xf32>
    %797 = vector.multi_reduction <add>, %796, %cst_304 [0] : vector<8x1xf32> to vector<1xf32>
    %798 = vector.shape_cast %797 : vector<1xf32> to vector<1x1xf32>
    %799 = vector.broadcast %798 : vector<1x1xf32> to vector<8x1xf32>
    %800 = arith.divf %796, %799 : vector<8x1xf32>
    %801 = vector.broadcast %800 : vector<8x1xf32> to vector<8x25xf32>
    %802 = arith.mulf %773, %801 : vector<8x25xf32>
    %cst_305 = arith.constant dense<0.000000e+00> : vector<25xf32>
    %803 = vector.multi_reduction <add>, %802, %cst_305 [0] : vector<8x25xf32> to vector<25xf32>
    %804 = vector.shape_cast %803 : vector<25xf32> to vector<1x25xf32>
    %cst_306 = arith.constant 3.000000e-01 : f32
    %805 = vector.broadcast %cst_306 : f32 to vector<1x25xf32>
    %806 = arith.mulf %805, %804 : vector<1x25xf32>
    %807 = arith.maximumf %804, %806 : vector<1x25xf32>
    %808 = vector.broadcast %800 : vector<8x1xf32> to vector<8x25xf32>
    %809 = arith.mulf %777, %808 : vector<8x25xf32>
    %cst_307 = arith.constant dense<0.000000e+00> : vector<25xf32>
    %810 = vector.multi_reduction <add>, %809, %cst_307 [0] : vector<8x25xf32> to vector<25xf32>
    %811 = vector.shape_cast %810 : vector<25xf32> to vector<1x25xf32>
    %cst_308 = arith.constant 3.000000e-01 : f32
    %812 = vector.broadcast %cst_308 : f32 to vector<1x25xf32>
    %813 = arith.mulf %812, %811 : vector<1x25xf32>
    %814 = arith.maximumf %811, %813 : vector<1x25xf32>
    %cst_309 = arith.constant dense<0.000000e+00> : vector<1x25xf32>
    %815 = tpu.matmul %807, %765, %cst_309 {dimension_numbers = #tpu.dot_dimension_numbers<[1], [0], [0], [1], [0, 0, 1, 1], [], []>} : vector<1x25xf32>, vector<25x25xf32>, vector<1x25xf32> -> vector<1x25xf32>
    %cst_310 = arith.constant dense<0.000000e+00> : vector<1x25xf32>
    %816 = tpu.matmul %814, %766, %cst_310 {dimension_numbers = #tpu.dot_dimension_numbers<[1], [0], [0], [1], [0, 0, 1, 1], [], []>} : vector<1x25xf32>, vector<25x25xf32>, vector<1x25xf32> -> vector<1x25xf32>
    %817 = arith.addf %815, %816 : vector<1x25xf32>
    %818 = arith.addf %817, %767 : vector<1x25xf32>
    %cst_311 = arith.constant 3.000000e-01 : f32
    %819 = vector.broadcast %cst_311 : f32 to vector<1x25xf32>
    %820 = arith.mulf %819, %818 : vector<1x25xf32>
    %821 = arith.maximumf %818, %820 : vector<1x25xf32>
    %cst_312 = arith.constant dense<0.000000e+00> : vector<1x9xf32>
    %822 = tpu.matmul %821, %768, %cst_312 {dimension_numbers = #tpu.dot_dimension_numbers<[1], [0], [0], [1], [0, 0, 1, 1], [], []>} : vector<1x25xf32>, vector<25x9xf32>, vector<1x9xf32> -> vector<1x9xf32>
    %823 = arith.addf %822, %769 : vector<1x9xf32>
    %c0_313 = arith.constant 0 : index
    %c0_314 = arith.constant 0 : index
    %824 = vector.load %arg23[%c0_313, %c0_314] : memref<2x9xf32, #tpu.memory_space<vmem>>, vector<1x9xf32>
    tpu.vector_store %arg23[%c0_313, %c0_314], %823 {strides = array<i32>} : memref<2x9xf32, #tpu.memory_space<vmem>>, vector<1x9xf32>,
    %c1_315 = arith.constant 1 : index
    %c0_316 = arith.constant 0 : index
    %825 = tpu.strided_load %arg27[%c1_315, %c0_316] {strides = array<i32: 2, 1>} : memref<16x25xf32, #tpu.memory_space<vmem>>, vector<8x25xf32>
    %cst_317 = arith.constant 3.000000e-01 : f32
    %826 = vector.broadcast %cst_317 : f32 to vector<8x25xf32>
    %827 = arith.mulf %826, %825 : vector<8x25xf32>
    %828 = arith.maximumf %825, %827 : vector<8x25xf32>
    %c1_318 = arith.constant 1 : index
    %c0_319 = arith.constant 0 : index
    %829 = tpu.strided_load %arg28[%c1_318, %c0_319] {strides = array<i32: 2, 1>} : memref<16x25xf32, #tpu.memory_space<vmem>>, vector<8x25xf32>
    %cst_320 = arith.constant 3.000000e-01 : f32
    %830 = vector.broadcast %cst_320 : f32 to vector<8x25xf32>
    %831 = arith.mulf %830, %829 : vector<8x25xf32>
    %832 = arith.maximumf %829, %831 : vector<8x25xf32>
    %cst_321 = arith.constant dense<0.000000e+00> : vector<8x10xf32>
    %833 = tpu.matmul %828, %760, %cst_321 {dimension_numbers = #tpu.dot_dimension_numbers<[1], [0], [0], [1], [0, 0, 1, 1], [], []>} : vector<8x25xf32>, vector<25x10xf32>, vector<8x10xf32> -> vector<8x10xf32>
    %cst_322 = arith.constant dense<0.000000e+00> : vector<8x10xf32>
    %834 = tpu.matmul %832, %761, %cst_322 {dimension_numbers = #tpu.dot_dimension_numbers<[1], [0], [0], [1], [0, 0, 1, 1], [], []>} : vector<8x25xf32>, vector<25x10xf32>, vector<8x10xf32> -> vector<8x10xf32>
    %835 = arith.addf %833, %834 : vector<8x10xf32>
    %836 = vector.broadcast %762 : vector<1x10xf32> to vector<8x10xf32>
    %837 = arith.addf %835, %836 : vector<8x10xf32>
    %cst_323 = arith.constant 3.000000e-01 : f32
    %838 = vector.broadcast %cst_323 : f32 to vector<8x10xf32>
    %839 = arith.mulf %838, %837 : vector<8x10xf32>
    %840 = arith.maximumf %837, %839 : vector<8x10xf32>
    %841 = vector.broadcast %763 : vector<1x10xf32> to vector<8x10xf32>
    %842 = arith.mulf %840, %841 : vector<8x10xf32>
    %cst_324 = arith.constant dense<0.000000e+00> : vector<8xf32>
    %843 = vector.multi_reduction <add>, %842, %cst_324 [1] : vector<8x10xf32> to vector<8xf32>
    %844 = vector.shape_cast %843 : vector<8xf32> to vector<8x1xf32>
    %845 = vector.broadcast %764 : vector<1x1xf32> to vector<8x1xf32>
    %846 = arith.addf %844, %845 : vector<8x1xf32>
    %847 = arith.negf %846 : vector<8x1xf32>
    %848 = math.exp %847 : vector<8x1xf32>
    %cst_325 = arith.constant 1.000000e+00 : f32
    %849 = vector.broadcast %cst_325 : f32 to vector<8x1xf32>
    %850 = arith.addf %849, %848 : vector<8x1xf32>
    %851 = arith.divf %849, %850 : vector<8x1xf32>
    %cst_326 = arith.constant dense<0.000000e+00> : vector<1xf32>
    %852 = vector.multi_reduction <add>, %851, %cst_326 [0] : vector<8x1xf32> to vector<1xf32>
    %853 = vector.shape_cast %852 : vector<1xf32> to vector<1x1xf32>
    %854 = vector.broadcast %853 : vector<1x1xf32> to vector<8x1xf32>
    %855 = arith.divf %851, %854 : vector<8x1xf32>
    %856 = vector.broadcast %855 : vector<8x1xf32> to vector<8x25xf32>
    %857 = arith.mulf %828, %856 : vector<8x25xf32>
    %cst_327 = arith.constant dense<0.000000e+00> : vector<25xf32>
    %858 = vector.multi_reduction <add>, %857, %cst_327 [0] : vector<8x25xf32> to vector<25xf32>
    %859 = vector.shape_cast %858 : vector<25xf32> to vector<1x25xf32>
    %cst_328 = arith.constant 3.000000e-01 : f32
    %860 = vector.broadcast %cst_328 : f32 to vector<1x25xf32>
    %861 = arith.mulf %860, %859 : vector<1x25xf32>
    %862 = arith.maximumf %859, %861 : vector<1x25xf32>
    %863 = vector.broadcast %855 : vector<8x1xf32> to vector<8x25xf32>
    %864 = arith.mulf %832, %863 : vector<8x25xf32>
    %cst_329 = arith.constant dense<0.000000e+00> : vector<25xf32>
    %865 = vector.multi_reduction <add>, %864, %cst_329 [0] : vector<8x25xf32> to vector<25xf32>
    %866 = vector.shape_cast %865 : vector<25xf32> to vector<1x25xf32>
    %cst_330 = arith.constant 3.000000e-01 : f32
    %867 = vector.broadcast %cst_330 : f32 to vector<1x25xf32>
    %868 = arith.mulf %867, %866 : vector<1x25xf32>
    %869 = arith.maximumf %866, %868 : vector<1x25xf32>
    %cst_331 = arith.constant dense<0.000000e+00> : vector<1x25xf32>
    %870 = tpu.matmul %862, %765, %cst_331 {dimension_numbers = #tpu.dot_dimension_numbers<[1], [0], [0], [1], [0, 0, 1, 1], [], []>} : vector<1x25xf32>, vector<25x25xf32>, vector<1x25xf32> -> vector<1x25xf32>
    %cst_332 = arith.constant dense<0.000000e+00> : vector<1x25xf32>
    %871 = tpu.matmul %869, %766, %cst_332 {dimension_numbers = #tpu.dot_dimension_numbers<[1], [0], [0], [1], [0, 0, 1, 1], [], []>} : vector<1x25xf32>, vector<25x25xf32>, vector<1x25xf32> -> vector<1x25xf32>
    %872 = arith.addf %870, %871 : vector<1x25xf32>
    %873 = arith.addf %872, %767 : vector<1x25xf32>
    %cst_333 = arith.constant 3.000000e-01 : f32
    %874 = vector.broadcast %cst_333 : f32 to vector<1x25xf32>
    %875 = arith.mulf %874, %873 : vector<1x25xf32>
    %876 = arith.maximumf %873, %875 : vector<1x25xf32>
    %cst_334 = arith.constant dense<0.000000e+00> : vector<1x9xf32>
    %877 = tpu.matmul %876, %768, %cst_334 {dimension_numbers = #tpu.dot_dimension_numbers<[1], [0], [0], [1], [0, 0, 1, 1], [], []>} : vector<1x25xf32>, vector<25x9xf32>, vector<1x9xf32> -> vector<1x9xf32>
    %878 = arith.addf %877, %769 : vector<1x9xf32>
    %c1_335 = arith.constant 1 : index
    %c0_336 = arith.constant 0 : index
    %879 = vector.load %arg23[%c1_335, %c0_336] : memref<2x9xf32, #tpu.memory_space<vmem>>, vector<1x9xf32>
    tpu.vector_store %arg23[%c1_335, %c0_336], %878 {strides = array<i32>} : memref<2x9xf32, #tpu.memory_space<vmem>>, vector<1x9xf32>,
    return
  }
}

</mosaic_0001>

<bundles_post_ra>
// kernel: chen_model_forward.1
= control target key start
LH: loop header
LB: loop body
LE: loop exit
PB: predicated region body
PF: predicated region fallthrough
CT: control target
= control target key end

     0   :  { %s18131_s0 = inlined_call_operand.vmem [shape: f32[512,12], index: 0, kind: input, shape index: {}]   ;;  %s18132_s1 = inlined_call_operand.vmem [shape: f32[5,12,36], index: 1, kind: input, shape index: {}]   ;;  %s18133_s2 = inlined_call_operand.vmem [shape: f32[5,1,12], index: 2, kind: input, shape index: {}]   ;;  %s18134_s3 = inlined_call_operand.vmem [shape: f32[5,12,36], index: 3, kind: input, shape index: {}]   ;;  %s18135_s4 = inlined_call_operand.vmem [shape: f32[5,1,12], index: 4, kind: input, shape index: {}]   ;;  %s18136_s5 = inlined_call_operand.vmem [shape: f32[12,75], index: 5, kind: input, shape index: {}]   ;;  %s18137_s6 = inlined_call_operand.vmem [shape: f32[25,75], index: 6, kind: input, shape index: {}]   ;;  %s18138_s7 = inlined_call_operand.vmem [shape: f32[1,75], index: 7, kind: input, shape index: {}]   ;;  %s18139_s8 = inlined_call_operand.vmem [shape: f32[1,75], index: 8, kind: input, shape index: {}]   ;;  %s18140_s9 = inlined_call_operand.vmem [shape: f32[12,75], index: 9, kind: input, shape index: {}]   ;;  %s18141_s10 = inlined_call_operand.vmem [shape: f32[25,75], index: 10, kind: input, shape index: {}]   ;;  %s18142_s11 = inlined_call_operand.vmem [shape: f32[1,75], index: 11, kind: input, shape index: {}]   ;;  %s18143_s12 = inlined_call_operand.vmem [shape: f32[1,75], index: 12, kind: input, shape index: {}]   ;;  %s18144_s13 = inlined_call_operand.vmem [shape: f32[25,10], index: 13, kind: input, shape index: {}]   ;;  %s18145_s14 = inlined_call_operand.vmem [shape: f32[25,10], index: 14, kind: input, shape index: {}]   ;;  %s18146_s15 = inlined_call_operand.vmem [shape: f32[1,10], index: 15, kind: input, shape index: {}]   ;;  %s18147_s16 = inlined_call_operand.vmem [shape: f32[1,10], index: 16, kind: input, shape index: {}]   ;;  %s18148_s17 = inlined_call_operand.<no memory space> [shape: f32[1,1], index: 17, kind: input, shape index: {}]   ;;  %s18149_s18 = inlined_call_operand.vmem [shape: f32[25,25], index: 18, kind: input, shape index: {}]   ;;  %s18150_s19 = inlined_call_operand.vmem [shape: f32[25,25], index: 19, kind: input, shape index: {}]   ;;  %s18151_s20 = inlined_call_operand.vmem [shape: f32[1,25], index: 20, kind: input, shape index: {}]   ;;  %s18152_s21 = inlined_call_operand.vmem [shape: f32[25,9], index: 21, kind: input, shape index: {}]   ;;  %s18153_s22 = inlined_call_operand.vmem [shape: f32[1,9], index: 22, kind: input, shape index: {}]   ;;  %s18154_s23 = inlined_call_operand.hbm [shape: f32[2,9], index: 23, kind: output, shape index: {}]  }
   0x1   :  { %18186 = sst [smem:[#allocation11_spill]] %s18131_s0  ;;  %v28_v0 = vstv %s18148_s17 }
   0x2   :  { %18187 = sst [smem:[#allocation12_spill]] %s18132_s1  ;;  %29 = vst [vmem:[#allocation7] sm:$0x1] %v28_v0 }
   0x3   :  { %18188 = sst [smem:[#allocation13_spill]] %s18133_s2 }
   0x4   :  { %18189 = sst [smem:[#allocation14_spill]] %s18134_s3 }
   0x5   :  { %18190 = sst [smem:[#allocation15_spill]] %s18135_s4 }
   0x6   :  { %18191 = sst [smem:[#allocation16_spill]] %s18136_s5 }
   0x7   :  { %18192 = sst [smem:[#allocation17_spill]] %s18137_s6 }
   0x8   :  { %18193 = sst [smem:[#allocation18_spill]] %s18138_s7 }
   0x9   :  { %s18194_s5 = sld [smem:[#allocation12_spill]]  ;;  %vm785_vm0 = vcmask 1043456   ;;  %vm592_vm1 = vcmask 97280  }
   0xa   :  { %s18195_s27 = sld [smem:[#allocation11_spill]] }
   0xf   :  { %v591_v1 = vld [vmem:[%s18194_s5 + $0x8] sm:$0xf]  ;;  %v590_v2 = vld [vmem:[%s18194_s5] sm:$0xff] }
  0x10   :  { %v77_v3 = vld [vmem:[%s18195_s27] sm:$0xff]  ;;  %12951 = vmatprep.subr.msk.mxu0 %vm785_vm0, %v591_v1  ;;  %v78_v4 = vld [vmem:[%s18195_s27 + $0x8] sm:$0xff]  ;;  %v79_v5 = vld [vmem:[%s18195_s27 + $0x10] sm:$0xff] }
  0x11   :  { %12955 = vmatprep.mubr.msk.f32.mxu0 %vm592_vm1, %v77_v3  ;;  %12952 = vmatpush3.msk.msra.mxu0 %vm785_vm0, %v591_v1  ;;  %v80_v6 = vld [vmem:[%s18195_s27 + $0x18] sm:$0xff]  ;;  %v81_v7 = vld [vmem:[%s18195_s27 + $0x20] sm:$0xff]  ;;  %v82_v8 = vld [vmem:[%s18195_s27 + $0x28] sm:$0xff] }
  0x12   :  { %12953 = vmatprep.subr.mxu0 %v590_v2  ;;  %v83_v9 = vld [vmem:[%s18195_s27 + $0x30] sm:$0xff]  ;;  %v84_v10 = vld [vmem:[%s18195_s27 + $0x38] sm:$0xff]  ;;  %v85_v11 = vld [vmem:[%s18195_s27 + $0x40] sm:$0xff] }
  0x13   :  { %12954 = vmatpush3.msra.mxu0 %v590_v2  ;;  %v86_v12 = vld [vmem:[%s18195_s27 + $0x48] sm:$0xff] }
  0x14   :  { %12956 = vmatmul.mubr.msk.f32.vlgmr.msra.gmra.mxu0 %vm592_vm1, %v78_v4 }
  0x15   :  { %12958 = vmatprep.mubr.msk.f32.mxu0 %vm592_vm1, %v79_v5 }
  0x18   :  { %12959 = vmatmul.mubr.msk.f32.gmra.mxu0 %vm592_vm1, %v80_v6 }
  0x19   :  { %12961 = vmatprep.mubr.msk.f32.mxu0 %vm592_vm1, %v81_v7 }
  0x1c   :  { %12962 = vmatmul.mubr.msk.f32.gmra.mxu0 %vm592_vm1, %v82_v8 }
  0x1d   :  { %12964 = vmatprep.mubr.msk.f32.mxu0 %vm592_vm1, %v83_v9 }
  0x20   :  { %12965 = vmatmul.mubr.msk.f32.gmra.mxu0 %vm592_vm1, %v84_v10 }
  0x21   :  { %12967 = vmatprep.mubr.msk.f32.mxu0 %vm592_vm1, %v85_v11 }
  0x22   :  { %30 = vsyncpa [#allocation9], 0  ;;  %v87_v13 = vld [vmem:[%s18195_s27 + $0x50] sm:$0xff]  ;;  %v88_v14 = vld [vmem:[%s18195_s27 + $0x58] sm:$0xff]  ;;  %s13817_s17 = smov 116   ;;  %vm1431_vm2 = vcmask 1046528  }
  0x23   :  { %v89_v15 = vld [vmem:[%s18195_s27 + $0x60] sm:$0xff]  ;;  %v90_v16 = vld [vmem:[%s18195_s27 + $0x68] sm:$0xff]  ;;  %v91_v17 = vld [vmem:[%s18195_s27 + $0x70] sm:$0xff]  ;;  %s18196_s28 = sld [smem:[#allocation14_spill]]  ;;  %s13818_s29 = smov 104   ;;  %vm1238_vm3 = vcmask 1040384  }
  0x24   :  { %12968 = vmatmul.mubr.msk.f32.gmra.mxu0 %vm592_vm1, %v86_v12  ;;  %v92_v18 = vld [vmem:[%s18195_s27 + $0x78] sm:$0xff]  ;;  %v93_v19 = vld [vmem:[%s18195_s27 + $0x80] sm:$0xff]  ;;  %v94_v20 = vld [vmem:[%s18195_s27 + $0x88] sm:$0xff]  ;;  %s18197_s24 = sld [smem:[#allocation13_spill]]  ;;  %s13821_s26 = smov 78  }
  0x25   :  { %12970 = vmatprep.mubr.msk.f32.mxu0 %vm592_vm1, %v87_v13  ;;  %v95_v21 = vld [vmem:[%s18195_s27 + $0x90] sm:$0xff]  ;;  %v96_v22 = vld [vmem:[%s18195_s27 + $0x98] sm:$0xff]  ;;  %v97_v23 = vld [vmem:[%s18195_s27 + $0xa0] sm:$0xff]  ;;  %s18198_s0 = sld [smem:[#allocation15_spill]]  ;;  %s13822_s2 = smov 50  }
  0x26   :  { %v98_v24 = vld [vmem:[%s18195_s27 + $0xa8] sm:$0xff]  ;;  %v99_v25 = vld [vmem:[%s18195_s27 + $0xb0] sm:$0xff]  ;;  %v100_v26 = vld [vmem:[%s18195_s27 + $0xb8] sm:$0xff]  ;;  %s18223_s1 = sld [smem:[#allocation16_spill]]  ;;  %s13824_s6 = smov 25  }
  0x27   :  { %v101_v27 = vld [vmem:[%s18195_s27 + $0xc0] sm:$0xff]  ;;  %v102_v28 = vld [vmem:[%s18195_s27 + $0xc8] sm:$0xff]  ;;  %v103_v29 = vld [vmem:[%s18195_s27 + $0xd0] sm:$0xff]  ;;  %s18224_s3 = sld [smem:[#allocation17_spill]] }
  0x28   :  { %12971 = vmatmul.mubr.msk.f32.gmra.mxu0 %vm592_vm1, %v88_v14  ;;  %v104_v30 = vld [vmem:[%s18195_s27 + $0xd8] sm:$0xff]  ;;  %v105_v31 = vld [vmem:[%s18195_s27 + $0xe0] sm:$0xff]  ;;  %v106_v32 = vld [vmem:[%s18195_s27 + $0xe8] sm:$0xff]  ;;  %s18225_s4 = sld [smem:[#allocation18_spill]] }
  0x29   :  { %12973 = vmatprep.mubr.msk.f32.mxu0 %vm592_vm1, %v89_v15  ;;  %v107_v33 = vld [vmem:[%s18195_s27 + $0xf0] sm:$0xff]  ;;  %v108_v34 = vld [vmem:[%s18195_s27 + $0xf8] sm:$0xff]  ;;  %v109_v35 = vld [vmem:[%s18195_s27 + $0x100] sm:$0xff] }
  0x2a   :  { %v110_v36 = vld [vmem:[%s18195_s27 + $0x108] sm:$0xff]  ;;  %v111_v37 = vld [vmem:[%s18195_s27 + $0x110] sm:$0xff]  ;;  %v112_v38 = vld [vmem:[%s18195_s27 + $0x118] sm:$0xff] }
  0x2b   :  { %v113_v39 = vld [vmem:[%s18195_s27 + $0x120] sm:$0xff]  ;;  %v114_v40 = vld [vmem:[%s18195_s27 + $0x128] sm:$0xff]  ;;  %v115_v41 = vld [vmem:[%s18195_s27 + $0x130] sm:$0xff] }
  0x2c   :  { %12974 = vmatmul.mubr.msk.f32.gmra.mxu0 %vm592_vm1, %v90_v16  ;;  %v116_v42 = vld [vmem:[%s18195_s27 + $0x138] sm:$0xff]  ;;  %v117_v43 = vld [vmem:[%s18195_s27 + $0x140] sm:$0xff]  ;;  %v118_v44 = vld [vmem:[%s18195_s27 + $0x148] sm:$0xff] }
  0x2d   :  { %12976 = vmatprep.mubr.msk.f32.mxu0 %vm592_vm1, %v91_v17  ;;  %v119_v45 = vld [vmem:[%s18195_s27 + $0x150] sm:$0xff]  ;;  %v120_v46 = vld [vmem:[%s18195_s27 + $0x158] sm:$0xff]  ;;  %v121_v47 = vld [vmem:[%s18195_s27 + $0x160] sm:$0xff] }
  0x2e   :  { %v122_v48 = vld [vmem:[%s18195_s27 + $0x168] sm:$0xff]  ;;  %v123_v49 = vld [vmem:[%s18195_s27 + $0x170] sm:$0xff]  ;;  %v124_v50 = vld [vmem:[%s18195_s27 + $0x178] sm:$0xff] }
  0x2f   :  { %v125_v51 = vld [vmem:[%s18195_s27 + $0x180] sm:$0xff]  ;;  %v126_v52 = vld [vmem:[%s18195_s27 + $0x188] sm:$0xff]  ;;  %v127_v53 = vld [vmem:[%s18195_s27 + $0x190] sm:$0xff] }
  0x30   :  { %12977 = vmatmul.mubr.msk.f32.gmra.mxu0 %vm592_vm1, %v92_v18  ;;  %v128_v54 = vld [vmem:[%s18195_s27 + $0x198] sm:$0xff]  ;;  %v129_v55 = vld [vmem:[%s18195_s27 + $0x1a0] sm:$0xff]  ;;  %v130_v56 = vld [vmem:[%s18195_s27 + $0x1a8] sm:$0xff] }
  0x31   :  { %12979 = vmatprep.mubr.msk.f32.mxu0 %vm592_vm1, %v93_v19  ;;  %v131_v57 = vld [vmem:[%s18195_s27 + $0x1b0] sm:$0xff]  ;;  %v132_v58 = vld [vmem:[%s18195_s27 + $0x1b8] sm:$0xff]  ;;  %v133_v59 = vld [vmem:[%s18195_s27 + $0x1c0] sm:$0xff] }
  0x32   :  { %v134_v60 = vld [vmem:[%s18195_s27 + $0x1c8] sm:$0xff]  ;;  %v135_v61 = vld [vmem:[%s18195_s27 + $0x1d0] sm:$0xff]  ;;  %v136_v62 = vld [vmem:[%s18195_s27 + $0x1d8] sm:$0xff] }
  0x33   :  { %v137_v63 = vld [vmem:[%s18195_s27 + $0x1e0] sm:$0xff]  ;;  %v138_v0 = vld [vmem:[%s18195_s27 + $0x1e8] sm:$0xff]  ;;  %v139_v1 = vld [vmem:[%s18195_s27 + $0x1f0] sm:$0xff] }
  0x34   :  { %12980 = vmatmul.mubr.msk.f32.gmra.mxu0 %vm592_vm1, %v94_v20  ;;  %v140_v2 = vld [vmem:[%s18195_s27 + $0x1f8] sm:$0xff]  ;;  %v2528_v11 = vld [vmem:[%s18196_s28 + $0x8] sm:$0xf]  ;;  %v2527_v13 = vld [vmem:[%s18196_s28] sm:$0xff] }
  0x35   :  { %12982 = vmatprep.mubr.msk.f32.mxu0 %vm592_vm1, %v95_v21  ;;  %13051 = vmatprep.subr.msk.mxu1 %vm785_vm0, %v2528_v11 }
  0x36   :  { %13052 = vmatpush3.msk.msra.mxu1 %vm785_vm0, %v2528_v11 }
  0x37   :  { %13053 = vmatprep.subr.mxu1 %v2527_v13 }
  0x38   :  { %12983 = vmatmul.mubr.msk.f32.gmra.mxu0 %vm592_vm1, %v96_v22  ;;  %13054 = vmatpush3.msra.mxu1 %v2527_v13 }
  0x39   :  { %12985 = vmatprep.mubr.msk.f32.mxu0 %vm592_vm1, %v97_v23 }
  0x3c   :  { %12986 = vmatmul.mubr.msk.f32.gmra.mxu0 %vm592_vm1, %v98_v24 }
  0x3d   :  { %12988 = vmatprep.mubr.msk.f32.mxu0 %vm592_vm1, %v99_v25 }
  0x40   :  { %12989 = vmatmul.mubr.msk.f32.gmra.mxu0 %vm592_vm1, %v100_v26 }
  0x41   :  { %12991 = vmatprep.mubr.msk.f32.mxu0 %vm592_vm1, %v101_v27 }
  0x44   :  { %12992 = vmatmul.mubr.msk.f32.gmra.mxu0 %vm592_vm1, %v102_v28 }
  0x45   :  { %12994 = vmatprep.mubr.msk.f32.mxu0 %vm592_vm1, %v103_v29 }
  0x48   :  { %12995 = vmatmul.mubr.msk.f32.gmra.mxu0 %vm592_vm1, %v104_v30 }
  0x49   :  { %12997 = vmatprep.mubr.msk.f32.mxu0 %vm592_vm1, %v105_v31 }
  0x4c   :  { %12998 = vmatmul.mubr.msk.f32.gmra.mxu0 %vm592_vm1, %v106_v32 }
  0x4d   :  { %13000 = vmatprep.mubr.msk.f32.mxu0 %vm592_vm1, %v107_v33 }
  0x50   :  { %13001 = vmatmul.mubr.msk.f32.gmra.mxu0 %vm592_vm1, %v108_v34 }
  0x51   :  { %13003 = vmatprep.mubr.msk.f32.mxu0 %vm592_vm1, %v109_v35 }
  0x54   :  { %13004 = vmatmul.mubr.msk.f32.gmra.mxu0 %vm592_vm1, %v110_v36 }
  0x55   :  { %13006 = vmatprep.mubr.msk.f32.mxu0 %vm592_vm1, %v111_v37 }
  0x58   :  { %13007 = vmatmul.mubr.msk.f32.gmra.mxu0 %vm592_vm1, %v112_v38 }
  0x59   :  { %13009 = vmatprep.mubr.msk.f32.mxu0 %vm592_vm1, %v113_v39 }
  0x5c   :  { %13010 = vmatmul.mubr.msk.f32.gmra.mxu0 %vm592_vm1, %v114_v40 }
  0x5d   :  { %13012 = vmatprep.mubr.msk.f32.mxu0 %vm592_vm1, %v115_v41 }
  0x60   :  { %13013 = vmatmul.mubr.msk.f32.gmra.mxu0 %vm592_vm1, %v116_v42 }
  0x61   :  { %13015 = vmatprep.mubr.msk.f32.mxu0 %vm592_vm1, %v117_v43 }
  0x64   :  { %13016 = vmatmul.mubr.msk.f32.gmra.mxu0 %vm592_vm1, %v118_v44 }
  0x65   :  { %13018 = vmatprep.mubr.msk.f32.mxu0 %vm592_vm1, %v119_v45 }
  0x68   :  { %13019 = vmatmul.mubr.msk.f32.gmra.mxu0 %vm592_vm1, %v120_v46 }
  0x69   :  { %13021 = vmatprep.mubr.msk.f32.mxu0 %vm592_vm1, %v121_v47 }
  0x6c   :  { %13022 = vmatmul.mubr.msk.f32.gmra.mxu0 %vm592_vm1, %v122_v48 }
  0x6d   :  { %13024 = vmatprep.mubr.msk.f32.mxu0 %vm592_vm1, %v123_v49 }
  0x70   :  { %13025 = vmatmul.mubr.msk.f32.gmra.mxu0 %vm592_vm1, %v124_v50 }
  0x71   :  { %13027 = vmatprep.mubr.msk.f32.mxu0 %vm592_vm1, %v125_v51 }
  0x74   :  { %13028 = vmatmul.mubr.msk.f32.gmra.mxu0 %vm592_vm1, %v126_v52 }
  0x75   :  { %13030 = vmatprep.mubr.msk.f32.mxu0 %vm592_vm1, %v127_v53 }
  0x78   :  { %13031 = vmatmul.mubr.msk.f32.gmra.mxu0 %vm592_vm1, %v128_v54 }
  0x79   :  { %13033 = vmatprep.mubr.msk.f32.mxu0 %vm592_vm1, %v129_v55 }
  0x7c   :  { %13034 = vmatmul.mubr.msk.f32.gmra.mxu0 %vm592_vm1, %v130_v56 }
  0x7d   :  { %13036 = vmatprep.mubr.msk.f32.mxu0 %vm592_vm1, %v131_v57 }
  0x80   :  { %13037 = vmatmul.mubr.msk.f32.gmra.mxu0 %vm592_vm1, %v132_v58 }
  0x81   :  { %13039 = vmatprep.mubr.msk.f32.mxu0 %vm592_vm1, %v133_v59 }
  0x84   :  { %13040 = vmatmul.mubr.msk.f32.gmra.mxu0 %vm592_vm1, %v134_v60 }
  0x85   :  { %13042 = vmatprep.mubr.msk.f32.mxu0 %vm592_vm1, %v135_v61 }
  0x88   :  { %13043 = vmatmul.mubr.msk.f32.gmra.mxu0 %vm592_vm1, %v136_v62 }
  0x89   :  { %13045 = vmatprep.mubr.msk.f32.mxu0 %vm592_vm1, %v137_v63 }
  0x8c   :  { %13046 = vmatmul.mubr.msk.f32.gmra.mxu0 %vm592_vm1, %v138_v0 }
  0x8d   :  { %13048 = vmatprep.mubr.msk.f32.mxu0 %vm592_vm1, %v139_v1 }
  0x90   :  { %13049 = vmatmul.mubr.msk.f32.gmra.mxu0 %vm592_vm1, %v140_v2 }
  0xd4   :  { %v14214_v3 = vpop.f32.mrf.mxu0 }
  0xd5   :  { %1690 = vrot.lane.b32.xlu0 %v14214_v3, %s13817_s17  ;;  %v1433_v7 = vrot.slane %v14214_v3, 1 }
  0xd6   :  { %v14218_v4 = vpop.f32.mrf.mxu0 }
  0xd7   :  { %v1432_v5 = vrot.slane %v14218_v4, 1 }
  0xd8   :  { %v14221_v6 = vpop.f32.mrf.mxu0 }
  0xd9   :  { %1688 = vrot.lane.b32.xlu0 %v14218_v4, %s13817_s17  ;;  %1694 = vrot.lane.b32.xlu1 %v14221_v6, %s13817_s17  ;;  %v1434_v10 = vsel %vm1431_vm2, %v1432_v5, %v1433_v7  ;;  %v1437_v12 = vrot.slane %v14221_v6, 1 }
  0xda   :  { %v14228_v8 = vpop.f32.mrf.mxu0 }
  0xdb   :  { %v1435_v9 = vrot.slane %v14228_v8, 1 }
  0xdc   :  { %v14243_v14 = vpop.f32.mrf.mxu0 }
  0xdd   :  { %2072 = vrot.lane.b32.xlu1 %v1434_v10, %s13818_s29  ;;  %1692 = vrot.lane.b32.xlu0 %v14228_v8, %s13817_s17  ;;  %v1438_v15 = vsel %vm1431_vm2, %v1435_v9, %v1437_v12  ;;  %v1441_v17 = vrot.slane %v14243_v14, 1  ;;  %v1436_v18 = vsel %vm1431_vm2, %v1433_v7, %v1435_v9 }
  0xde   :  { %v14250_v16 = vpop.f32.mrf.mxu0 }
  0xdf   :  { %v1439_v19 = vrot.slane %v14250_v16, 1 }
  0xe0   :  { %v14258_v20 = vpop.f32.mrf.mxu0 }
  0xe1   :  { %2076 = vrot.lane.b32.xlu0 %v1438_v15, %s13818_s29  ;;  %1698 = vrot.lane.b32.xlu1 %v14243_v14, %s13817_s17  ;;  %v1442_v21 = vsel %vm1431_vm2, %v1439_v19, %v1441_v17  ;;  %v1445_v23 = vrot.slane %v14258_v20, 1  ;;  %v1440_v24 = vsel %vm1431_vm2, %v1437_v12, %v1439_v19 }
  0xe2   :  { %v14264_v22 = vpop.f32.mrf.mxu0 }
  0xe3   :  { %v1443_v25 = vrot.slane %v14264_v22, 1 }
  0xe4   :  { %v14272_v26 = vpop.f32.mrf.mxu0 }
  0xe5   :  { %2074 = vrot.lane.b32.xlu1 %v1436_v18, %s13818_s29  ;;  %1696 = vrot.lane.b32.xlu0 %v14250_v16, %s13817_s17  ;;  %v1446_v27 = vsel %vm1431_vm2, %v1443_v25, %v1445_v23  ;;  %v1449_v29 = vrot.slane %v14272_v26, 1  ;;  %v1444_v30 = vsel %vm1431_vm2, %v1441_v17, %v1443_v25 }
  0xe6   :  { %v14278_v28 = vpop.f32.mrf.mxu0 }
  0xe7   :  { %v1447_v31 = vrot.slane %v14278_v28, 1 }
  0xe8   :  { %v14286_v32 = vpop.f32.mrf.mxu0 }
  0xe9   :  { %2080 = vrot.lane.b32.xlu0 %v1442_v21, %s13818_s29  ;;  %1702 = vrot.lane.b32.xlu1 %v14258_v20, %s13817_s17  ;;  %v1450_v33 = vsel %vm1431_vm2, %v1447_v31, %v1449_v29  ;;  %v1453_v35 = vrot.slane %v14286_v32, 1  ;;  %v1448_v36 = vsel %vm1431_vm2, %v1445_v23, %v1447_v31 }
  0xea   :  { %v14292_v34 = vpop.f32.mrf.mxu0 }
  0xeb   :  { %v1451_v37 = vrot.slane %v14292_v34, 1 }
  0xec   :  { %v14300_v38 = vpop.f32.mrf.mxu0 }
  0xed   :  { %2078 = vrot.lane.b32.xlu1 %v1440_v24, %s13818_s29  ;;  %1700 = vrot.lane.b32.xlu0 %v14264_v22, %s13817_s17  ;;  %v1454_v39 = vsel %vm1431_vm2, %v1451_v37, %v1453_v35  ;;  %v1457_v41 = vrot.slane %v14300_v38, 1  ;;  %v1452_v42 = vsel %vm1431_vm2, %v1449_v29, %v1451_v37 }
  0xee   :  { %v14306_v40 = vpop.f32.mrf.mxu0 }
  0xef   :  { %v1455_v43 = vrot.slane %v14306_v40, 1 }
  0xf0   :  { %v14314_v44 = vpop.f32.mrf.mxu0 }
  0xf1   :  { %2084 = vrot.lane.b32.xlu0 %v1446_v27, %s13818_s29  ;;  %1706 = vrot.lane.b32.xlu1 %v14272_v26, %s13817_s17  ;;  %v1458_v45 = vsel %vm1431_vm2, %v1455_v43, %v1457_v41  ;;  %v1461_v47 = vrot.slane %v14314_v44, 1  ;;  %v1456_v48 = vsel %vm1431_vm2, %v1453_v35, %v1455_v43 }
  0xf2   :  { %v14320_v46 = vpop.f32.mrf.mxu0 }
  0xf3   :  { %v1459_v49 = vrot.slane %v14320_v46, 1 }
  0xf4   :  { %v14328_v50 = vpop.f32.mrf.mxu0 }
  0xf5   :  { %2082 = vrot.lane.b32.xlu1 %v1444_v30, %s13818_s29  ;;  %1704 = vrot.lane.b32.xlu0 %v14278_v28, %s13817_s17  ;;  %v1462_v51 = vsel %vm1431_vm2, %v1459_v49, %v1461_v47  ;;  %v1465_v53 = vrot.slane %v14328_v50, 1  ;;  %v1460_v54 = vsel %vm1431_vm2, %v1457_v41, %v1459_v49 }
  0xf6   :  { %v14334_v52 = vpop.f32.mrf.mxu0 }
  0xf7   :  { %v1463_v55 = vrot.slane %v14334_v52, 1 }
  0xf8   :  { %v14342_v56 = vpop.f32.mrf.mxu0 }
  0xf9   :  { %2088 = vrot.lane.b32.xlu0 %v1450_v33, %s13818_s29  ;;  %1710 = vrot.lane.b32.xlu1 %v14286_v32, %s13817_s17  ;;  %v1466_v57 = vsel %vm1431_vm2, %v1463_v55, %v1465_v53  ;;  %v1469_v59 = vrot.slane %v14342_v56, 1  ;;  %v1464_v60 = vsel %vm1431_vm2, %v1461_v47, %v1463_v55 }
  0xfa   :  { %v14348_v58 = vpop.f32.mrf.mxu0 }
  0xfb   :  { %v1467_v61 = vrot.slane %v14348_v58, 1 }
  0xfc   :  { %v14356_v62 = vpop.f32.mrf.mxu0 }
  0xfd   :  { %2086 = vrot.lane.b32.xlu1 %v1448_v36, %s13818_s29  ;;  %1708 = vrot.lane.b32.xlu0 %v14292_v34, %s13817_s17  ;;  %v1470_v63 = vsel %vm1431_vm2, %v1467_v61, %v1469_v59  ;;  %v1473_v1 = vrot.slane %v14356_v62, 1  ;;  %v1468_v2 = vsel %vm1431_vm2, %v1465_v53, %v1467_v61  ;;  %v141_v36 = vlaneseq }
  0xfe   :  { %v14362_v0 = vpop.f32.mrf.mxu0 }
  0xff   :  { %v1471_v5 = vrot.slane %v14362_v0, 1  ;;  %v14429_v47 = vshrl.u32 %v141_v36, 7 }
 0x100   :  { %v14370_v7 = vpop.f32.mrf.mxu0 }
 0x101   :  { %2092 = vrot.lane.b32.xlu0 %v1454_v39, %s13818_s29  ;;  %1714 = vrot.lane.b32.xlu1 %v14300_v38, %s13817_s17  ;;  %v1474_v9 = vsel %vm1431_vm2, %v1471_v5, %v1473_v1  ;;  %v1477_v11 = vrot.slane %v14370_v7, 1  ;;  %v1472_v12 = vsel %vm1431_vm2, %v1469_v59, %v1471_v5  ;;  %vm206_vm4 = vcmp.eq.s32.totalorder %v14429_v47, 0 }
 0x102   :  { %v14376_v10 = vpop.f32.mrf.mxu0  ;;  %v1242_v59 = vrot.slane %v14228_v8, 7  ;;  %v14456_v8 = vld [vmem:[%s18197_s24] ss:$0 sm:$0xff] }
 0x103   :  { %v1475_v13 = vrot.slane %v14376_v10, 1 }
 0x104   :  { %v14384_v15 = vpop.f32.mrf.mxu0 }
 0x105   :  { %2090 = vrot.lane.b32.xlu1 %v1452_v42, %s13818_s29  ;;  %1712 = vrot.lane.b32.xlu0 %v14306_v40, %s13817_s17  ;;  %v1478_v17 = vsel %vm1431_vm2, %v1475_v13, %v1477_v11  ;;  %v1481_v19 = vrot.slane %v14384_v15, 1  ;;  %v1476_v21 = vsel %vm1431_vm2, %v1473_v1, %v1475_v13  ;;  %v1239_v42 = vrot.slane %v14218_v4, 7 }
 0x106   :  { %v14390_v18 = vpop.f32.mrf.mxu0 }
 0x107   :  { %v1479_v23 = vrot.slane %v14390_v18, 1  ;;  %v1430_v4 = vsel %vm1238_vm3, 0.0, %v1239_v42 }
 0x108   :  { %v14398_v24 = vpop.f32.mrf.mxu0 }
 0x109   :  { %2096 = vrot.lane.b32.xlu0 %v1458_v45, %s13818_s29  ;;  %1718 = vrot.lane.b32.xlu1 %v14314_v44, %s13817_s17  ;;  %v1482_v25 = vsel %vm1431_vm2, %v1479_v23, %v1481_v19  ;;  %v1485_v29 = vrot.slane %v14398_v24, 1  ;;  %v1480_v30 = vsel %vm1431_vm2, %v1477_v11, %v1479_v23 }
 0x10a   :  { %v14404_v27 = vpop.f32.mrf.mxu0 }
 0x10b   :  { %v1483_v31 = vrot.slane %v14404_v27, 1 }
 0x10c   :  { %v14412_v33 = vpop.f32.mrf.mxu0 }
 0x10d   :  { %2094 = vrot.lane.b32.xlu1 %v1456_v48, %s13818_s29  ;;  %1716 = vrot.lane.b32.xlu0 %v14320_v46, %s13817_s17  ;;  %v1486_v35 = vsel %vm1431_vm2, %v1483_v31, %v1485_v29  ;;  %v1489_v39 = vrot.slane %v14412_v33, 1  ;;  %v1484_v41 = vsel %vm1431_vm2, %v1481_v19, %v1483_v31 }
 0x10e   :  { %v14418_v37 = vpop.f32.mrf.mxu0 }
 0x10f   :  { %v1487_v43 = vrot.slane %v14418_v37, 1 }
 0x110   :  { %v14427_v45 = vpop.f32.mrf.mxu0 }
 0x111   :  { %2100 = vrot.lane.b32.xlu0 %v1462_v51, %s13818_s29  ;;  %1722 = vrot.lane.b32.xlu1 %v14328_v50, %s13817_s17  ;;  %v1490_v49 = vsel %vm1431_vm2, %v1487_v43, %v1489_v39  ;;  %v1493_v55 = vrot.slane %v14427_v45, 1 }
 0x112   :  { %v14435_v51 = vpop.f32.mrf.mxu0 }
 0x113   :  { %v1491_v61 = vrot.slane %v14435_v51, 1 }
 0x115   :  { %2098 = vrot.lane.b32.xlu1 %v1460_v54, %s13818_s29  ;;  %1720 = vrot.lane.b32.xlu0 %v14334_v52, %s13817_s17 }
 0x119   :  { %2104 = vrot.lane.b32.xlu0 %v1466_v57, %s13818_s29  ;;  %1726 = vrot.lane.b32.xlu1 %v14342_v56, %s13817_s17  ;;  %v1488_v57 = vsel %vm1431_vm2, %v1485_v29, %v1487_v43  ;;  %v14477_v43 = vadd.s32 248, %v14429_v47 }
 0x11b   :  { %vm301_vm5 = vcmp.eq.s32.totalorder %v14477_v43, 255 }
 0x11d   :  { %2102 = vrot.lane.b32.xlu1 %v1464_v60, %s13818_s29  ;;  %1724 = vrot.lane.b32.xlu0 %v14348_v58, %s13817_s17  ;;  %v1624_v60 = vsel %vm206_vm4, 0.0, %v1430_v4 }
 0x121   :  { %2108 = vrot.lane.b32.xlu0 %v1470_v63, %s13818_s29  ;;  %1730 = vrot.lane.b32.xlu1 %v14356_v62, %s13817_s17  ;;  %v14450_v63 = vpop.f32.mrf.mxu0 }
 0x125   :  { %2106 = vrot.lane.b32.xlu1 %v1468_v2, %s13818_s29  ;;  %1728 = vrot.lane.b32.xlu0 %v14362_v0, %s13817_s17  ;;  %v1240_v2 = vrot.slane %v14214_v3, 7 }
 0x127   :  { %v1243_v13 = vsel %vm1238_vm3, %v1240_v2, %v1242_v59  ;;  %v1241_v36 = vsel %vm1238_vm3, %v1239_v42, %v1240_v2 }
 0x129   :  { %2112 = vrot.lane.b32.xlu0 %v1474_v9, %s13818_s29  ;;  %1734 = vrot.lane.b32.xlu1 %v14370_v7, %s13817_s17 }
 0x12d   :  { %2110 = vrot.lane.b32.xlu1 %v1472_v12, %s13818_s29  ;;  %1732 = vrot.lane.b32.xlu0 %v14376_v10, %s13817_s17  ;;  %v1494_v12 = vsel %vm1431_vm2, %v1491_v61, %v1493_v55 }
 0x131   :  { %2116 = vrot.lane.b32.xlu0 %v1478_v17, %s13818_s29  ;;  %1738 = vrot.lane.b32.xlu1 %v14384_v15, %s13817_s17  ;;  %v14463_v17 = vpop.f32.mrf.mxu0 }
 0x133   :  { %v14479_v4 = vpop.f32.mrf.mxu0 }
 0x135   :  { %2114 = vrot.lane.b32.xlu1 %v1476_v21, %s13818_s29  ;;  %1736 = vrot.lane.b32.xlu0 %v14390_v18, %s13817_s17  ;;  %v14495_v2 = vpop.f32.mrf.mxu0 }
 0x139   :  { %2120 = vrot.lane.b32.xlu0 %v1482_v25, %s13818_s29  ;;  %1742 = vrot.lane.b32.xlu1 %v14398_v24, %s13817_s17  ;;  %v1497_v25 = vrot.slane %v14450_v63, 1 }
 0x13d   :  { %2118 = vrot.lane.b32.xlu1 %v1480_v30, %s13818_s29  ;;  %1740 = vrot.lane.b32.xlu0 %v14404_v27, %s13817_s17  ;;  %v1492_v30 = vsel %vm1431_vm2, %v1489_v39, %v1491_v61  ;;  %v1244_v39 = vrot.slane %v14221_v6, 7 }
 0x141   :  { %2124 = vrot.lane.b32.xlu0 %v1486_v35, %s13818_s29  ;;  %1746 = vrot.lane.b32.xlu1 %v14412_v33, %s13817_s17  ;;  %v1246_v35 = vrot.slane %v14250_v16, 7 }
 0x145   :  { %2122 = vrot.lane.b32.xlu1 %v1484_v41, %s13818_s29  ;;  %1744 = vrot.lane.b32.xlu0 %v14418_v37, %s13817_s17  ;;  %v1495_v41 = vrot.slane %v14463_v17, 1 }
 0x147   :  { %v1691_v48 = vpop.permute.xlu0 %1690  ;;  %v1496_v6 = vsel %vm1431_vm2, %v1493_v55, %v1495_v41  ;;  %v1245_v55 = vsel %vm1238_vm3, %v1242_v59, %v1244_v39 }
 0x149   :  { %2128 = vrot.lane.b32.xlu0 %v1490_v49, %s13818_s29  ;;  %1750 = vrot.lane.b32.xlu1 %v14427_v45, %s13817_s17  ;;  %v1881_v49 = vadd.f32 %v1691_v48, %v1241_v36  ;;  %v1247_v48 = vsel %vm1238_vm3, %v1244_v39, %v1246_v35  ;;  %v1499_v36 = vrot.slane %v14495_v2, 1 }
 0x14b   :  { %v1689_v53 = vpop.permute.xlu0 %1688  ;;  %v14439_v54 = vpop.permute.xlu1 %1694 }
 0x14c   :  { %v1880_v1 = vadd.f32 %v1689_v53, %v1624_v60 }
 0x14d   :  { %2126 = vrot.lane.b32.xlu1 %v1488_v57, %s13818_s29  ;;  %1748 = vrot.lane.b32.xlu0 %v14435_v51, %s13817_s17 }
 0x14f   :  { %v2073_v5 = vpop.permute.xlu1 %2072  ;;  %v1693_v9 = vpop.permute.xlu0 %1692 }
 0x150   :  { %v2264_v11 = vadd.f32 %v2073_v5, %v1880_v1  ;;  %v1882_v3 = vadd.f32 %v1693_v9, %v1243_v13  ;;  %v1498_v1 = vsel %vm1431_vm2, %v1495_v41, %v1497_v25  ;;  %v14510_v41 = vpop.f32.mrf.mxu0 }
 0x151   :  { %2132 = vrot.lane.b32.xlu0 %v1494_v12, %s13818_s29  ;;  %1754 = vrot.lane.b32.xlu1 %v14450_v63, %s13817_s17 }
 0x152   :  { %v2335_v19 = vadd.f32 %v14456_v8, %v2264_v11 }
 0x153   :  { %v2077_v21 = vpop.permute.xlu0 %2076  ;;  %v14466_v23 = vpop.permute.xlu1 %1698 }
 0x154   :  { %v2266_v29 = vadd.f32 %v2077_v21, %v1882_v3  ;;  %v2399_v31 = vmul.f32 0.3, %v2335_v19  ;;  %v1501_v3 = vrot.slane %v14479_v4, 1 }
 0x155   :  { %2130 = vrot.lane.b32.xlu1 %v1492_v30, %s13818_s29  ;;  %1752 = vrot.lane.b32.xlu0 %v14463_v17, %s13817_s17  ;;  %v1250_v30 = vrot.slane %v14264_v22, 7 }
 0x156   :  { %v2463_v53 = vmax.f32 %v2335_v19, %v2399_v31  ;;  %v2337_v57 = vadd.f32 %v14456_v8, %v2266_v29  ;;  %v1975_v29 = vsel %vm301_vm5, 0.0, %v1496_v6  ;;  %v1883_v31 = vadd.f32 %v14439_v54, %v1245_v55 }
 0x157   :  { %v2075_v60 = vpop.permute.xlu1 %2074  ;;  %v1697_v42 = vpop.permute.xlu0 %1696  ;;  %v1502_v39 = vsel %vm1431_vm2, %v1499_v36, %v1501_v3  ;;  %v1500_v55 = vsel %vm1431_vm2, %v1497_v25, %v1499_v36 }
 0x158   :  { %v2265_v61 = vadd.f32 %v2075_v60, %v1881_v49  ;;  %13055 = vmatprep.mubr.msk.f32.mxu1 %vm592_vm1, %v2463_v53  ;;  %v1884_v9 = vadd.f32 %v1697_v42, %v1247_v48  ;;  %v2401_v11 = vmul.f32 0.3, %v2337_v57  ;;  %v1248_v53 = vrot.slane %v14243_v14, 7 }
 0x159   :  { %2136 = vrot.lane.b32.xlu0 %v1498_v1, %s13818_s29  ;;  %1758 = vrot.lane.b32.xlu1 %v14479_v4, %s13817_s17  ;;  %v14521_v1 = vpop.f32.mrf.mxu0 }
 0x15a   :  { %v2336_v5 = vadd.f32 %v14456_v8, %v2265_v61  ;;  %v2465_v60 = vmax.f32 %v2337_v57, %v2401_v11  ;;  %v1251_v54 = vsel %vm1238_vm3, %v1248_v53, %v1250_v30 }
 0x15b   :  { %v2081_v12 = vpop.permute.xlu0 %2080  ;;  %v14498_v13 = vpop.permute.xlu1 %1702 }
 0x15c   :  { %v2400_v19 = vmul.f32 0.3, %v2336_v5  ;;  %v2268_v21 = vadd.f32 %v2081_v12, %v1884_v9  ;;  %v1505_v9 = vrot.slane %v14510_v41, 1 }
 0x15d   :  { %2134 = vrot.lane.b32.xlu1 %v1975_v29, %s13818_s29  ;;  %1756 = vrot.lane.b32.xlu0 %v14495_v2, %s13817_s17  ;;  %v1249_v29 = vsel %vm1238_vm3, %v1246_v35, %v1248_v53 }
 0x15e   :  { %v2464_v49 = vmax.f32 %v2336_v5, %v2400_v19  ;;  %v2339_v42 = vadd.f32 %v14456_v8, %v2268_v21  ;;  %v1252_v19 = vrot.slane %v14258_v20, 7  ;;  %v1254_v21 = vrot.slane %v14278_v28, 7 }
 0x15f   :  { %v2079_v22 = vpop.permute.xlu1 %2078  ;;  %v1701_v61 = vpop.permute.xlu0 %1700 }
 0x160   :  { %v2267_v59 = vadd.f32 %v2079_v22, %v1883_v31  ;;  %13056 = vmatmul.mubr.msk.f32.vlgmr.msra.gmra.mxu1 %vm592_vm1, %v2464_v49  ;;  %v1886_v57 = vadd.f32 %v1701_v61, %v1251_v54  ;;  %v2403_v48 = vmul.f32 0.3, %v2339_v42  ;;  %v1885_v31 = vadd.f32 %v14466_v23, %v1249_v29 }
 0x161   :  { %13058 = vmatprep.mubr.msk.f32.mxu1 %vm592_vm1, %v2465_v60  ;;  %2140 = vrot.lane.b32.xlu0 %v1502_v39, %s13818_s29  ;;  %v1503_v49 = vrot.slane %v14521_v1, 1  ;;  %v14541_v60 = vpop.f32.mrf.mxu0  ;;  %v1255_v23 = vsel %vm1238_vm3, %v1252_v19, %v1254_v21 }
 0x162   :  { %v2338_v14 = vadd.f32 %v14456_v8, %v2267_v59  ;;  %1762 = vrot.lane.b32.xlu1 %v14510_v41, %s13817_s17  ;;  %v2467_v28 = vmax.f32 %v2339_v42, %v2403_v48 }
 0x163   :  { %v2085_v6 = vpop.permute.xlu0 %2084  ;;  %v14526_v5 = vpop.permute.xlu1 %1706  ;;  %v1506_v25 = vsel %vm1431_vm2, %v1503_v49, %v1505_v9  ;;  %v1504_v29 = vsel %vm1431_vm2, %v1501_v3, %v1503_v49 }
 0x164   :  { %v2402_v11 = vmul.f32 0.3, %v2338_v14  ;;  %v2270_v12 = vadd.f32 %v2085_v6, %v1886_v57  ;;  %v14552_v36 = vpop.f32.mrf.mxu0  ;;  %v1256_v6 = vrot.slane %v14272_v26, 7 }
 0x165   :  { %1760 = vrot.lane.b32.xlu0 %v14521_v1, %s13817_s17 }
 0x166   :  { %v2466_v20 = vmax.f32 %v2338_v14, %v2402_v11  ;;  %2138 = vrot.lane.b32.xlu1 %v1500_v55, %s13818_s29  ;;  %v2341_v16 = vadd.f32 %v14456_v8, %v2270_v12  ;;  %v1509_v14 = vrot.slane %v14541_v60, 1  ;;  %v1258_v11 = vrot.slane %v14292_v34, 7 }
 0x167   :  { %v2083_v35 = vpop.permute.xlu1 %2082  ;;  %v1705_v53 = vpop.permute.xlu0 %1704  ;;  %v1253_v12 = vsel %vm1238_vm3, %v1250_v30, %v1252_v19 }
 0x168   :  { %v2269_v22 = vadd.f32 %v2083_v35, %v1885_v31  ;;  %13059 = vmatmul.mubr.msk.f32.gmra.mxu1 %vm592_vm1, %v2466_v20  ;;  %v1888_v61 = vadd.f32 %v1705_v53, %v1255_v23  ;;  %v2405_v59 = vmul.f32 0.3, %v2341_v16  ;;  %v1887_v55 = vadd.f32 %v14498_v13, %v1253_v12  ;;  %v14570_v20 = vpop.f32.mrf.mxu0 }
 0x169   :  { %13061 = vmatprep.mubr.msk.f32.mxu1 %vm592_vm1, %v2467_v28  ;;  %2144 = vrot.lane.b32.xlu0 %v1506_v25, %s13818_s29  ;;  %v1507_v31 = vrot.slane %v14552_v36, 1  ;;  %v1259_v13 = vsel %vm1238_vm3, %v1256_v6, %v1258_v11 }
 0x16a   :  { %v2340_v42 = vadd.f32 %v14456_v8, %v2269_v22  ;;  %1766 = vrot.lane.b32.xlu1 %v14541_v60, %s13817_s17  ;;  %v2469_v26 = vmax.f32 %v2341_v16, %v2405_v59  ;;  %v14581_v49 = vpop.f32.mrf.mxu0 }
 0x16b   :  { %v2089_v39 = vpop.permute.xlu0 %2088  ;;  %v14557_v54 = vpop.permute.xlu1 %1710  ;;  %v1510_v3 = vsel %vm1431_vm2, %v1507_v31, %v1509_v14  ;;  %v1508_v12 = vsel %vm1431_vm2, %v1505_v9, %v1507_v31 }
 0x16c   :  { %v2404_v57 = vmul.f32 0.3, %v2340_v42  ;;  %v2272_v48 = vadd.f32 %v2089_v39, %v1888_v61  ;;  %v1260_v39 = vrot.slane %v14286_v32, 7 }
 0x16d   :  { %1764 = vrot.lane.b32.xlu0 %v14552_v36, %s13817_s17 }
 0x16e   :  { %v2468_v28 = vmax.f32 %v2340_v42, %v2404_v57  ;;  %2142 = vrot.lane.b32.xlu1 %v1504_v29, %s13818_s29  ;;  %v2343_v34 = vadd.f32 %v14456_v8, %v2272_v48  ;;  %v1513_v42 = vrot.slane %v14570_v20, 1  ;;  %v1262_v57 = vrot.slane %v14306_v40, 7 }
 0x16f   :  { %v2087_v30 = vpop.permute.xlu1 %2086  ;;  %v1709_v19 = vpop.permute.xlu0 %1708  ;;  %v1257_v48 = vsel %vm1238_vm3, %v1254_v21, %v1256_v6 }
 0x170   :  { %v2271_v35 = vadd.f32 %v2087_v30, %v1887_v55  ;;  %13062 = vmatmul.mubr.msk.f32.gmra.mxu1 %vm592_vm1, %v2468_v28  ;;  %v1890_v53 = vadd.f32 %v1709_v19, %v1259_v13  ;;  %v2407_v22 = vmul.f32 0.3, %v2343_v34  ;;  %v1889_v29 = vadd.f32 %v14526_v5, %v1257_v48  ;;  %v14599_v28 = vpop.f32.mrf.mxu0 }
 0x171   :  { %13064 = vmatprep.mubr.msk.f32.mxu1 %vm592_vm1, %v2469_v26  ;;  %2148 = vrot.lane.b32.xlu0 %v1510_v3, %s13818_s29  ;;  %v1511_v55 = vrot.slane %v14581_v49, 1  ;;  %v1263_v5 = vsel %vm1238_vm3, %v1260_v39, %v1262_v57 }
 0x172   :  { %v2342_v16 = vadd.f32 %v14456_v8, %v2271_v35  ;;  %1770 = vrot.lane.b32.xlu1 %v14570_v20, %s13817_s17  ;;  %v2471_v32 = vmax.f32 %v2343_v34, %v2407_v22  ;;  %v14610_v31 = vpop.f32.mrf.mxu0 }
 0x173   :  { %v2093_v25 = vpop.permute.xlu0 %2092  ;;  %v14586_v23 = vpop.permute.xlu1 %1714  ;;  %v1514_v9 = vsel %vm1431_vm2, %v1511_v55, %v1513_v42  ;;  %v1512_v48 = vsel %vm1431_vm2, %v1509_v14, %v1511_v55 }
 0x174   :  { %v2406_v61 = vmul.f32 0.3, %v2342_v16  ;;  %v2274_v59 = vadd.f32 %v2093_v25, %v1890_v53  ;;  %v1264_v25 = vrot.slane %v14300_v38, 7 }
 0x175   :  { %1768 = vrot.lane.b32.xlu0 %v14581_v49, %s13817_s17 }
 0x176   :  { %v2470_v26 = vmax.f32 %v2342_v16, %v2406_v61  ;;  %2146 = vrot.lane.b32.xlu1 %v1508_v12, %s13818_s29  ;;  %v2345_v40 = vadd.f32 %v14456_v8, %v2274_v59  ;;  %v1517_v16 = vrot.slane %v14599_v28, 1  ;;  %v1266_v61 = vrot.slane %v14320_v46, 7 }
 0x177   :  { %v2091_v21 = vpop.permute.xlu1 %2090  ;;  %v1713_v6 = vpop.permute.xlu0 %1712  ;;  %v1261_v59 = vsel %vm1238_vm3, %v1258_v11, %v1260_v39 }
 0x178   :  { %v2273_v30 = vadd.f32 %v2091_v21, %v1889_v29  ;;  %13065 = vmatmul.mubr.msk.f32.gmra.mxu1 %vm592_vm1, %v2470_v26  ;;  %v1892_v19 = vadd.f32 %v1713_v6, %v1263_v5  ;;  %v2409_v35 = vmul.f32 0.3, %v2345_v40  ;;  %v1891_v12 = vadd.f32 %v14557_v54, %v1261_v59  ;;  %v14628_v26 = vpop.f32.mrf.mxu0 }
 0x179   :  { %13067 = vmatprep.mubr.msk.f32.mxu1 %vm592_vm1, %v2471_v32  ;;  %2152 = vrot.lane.b32.xlu0 %v1514_v9, %s13818_s29  ;;  %v1515_v29 = vrot.slane %v14610_v31, 1  ;;  %v1267_v54 = vsel %vm1238_vm3, %v1264_v25, %v1266_v61 }
 0x17a   :  { %v2344_v34 = vadd.f32 %v14456_v8, %v2273_v30  ;;  %1774 = vrot.lane.b32.xlu1 %v14599_v28, %s13817_s17  ;;  %v2473_v38 = vmax.f32 %v2345_v40, %v2409_v35  ;;  %v14639_v55 = vpop.f32.mrf.mxu0 }
 0x17b   :  { %v2097_v3 = vpop.permute.xlu0 %2096  ;;  %v14615_v13 = vpop.permute.xlu1 %1718  ;;  %v1518_v14 = vsel %vm1431_vm2, %v1515_v29, %v1517_v16  ;;  %v1516_v59 = vsel %vm1431_vm2, %v1513_v42, %v1515_v29 }
 0x17c   :  { %v2408_v53 = vmul.f32 0.3, %v2344_v34  ;;  %v2276_v22 = vadd.f32 %v2097_v3, %v1892_v19  ;;  %v1268_v3 = vrot.slane %v14314_v44, 7 }
 0x17d   :  { %1772 = vrot.lane.b32.xlu0 %v14610_v31, %s13817_s17 }
 0x17e   :  { %v2472_v32 = vmax.f32 %v2344_v34, %v2408_v53  ;;  %2150 = vrot.lane.b32.xlu1 %v1512_v48, %s13818_s29  ;;  %v2347_v46 = vadd.f32 %v14456_v8, %v2276_v22  ;;  %v1521_v34 = vrot.slane %v14628_v26, 1  ;;  %v1270_v53 = vrot.slane %v14334_v52, 7 }
 0x17f   :  { %v2095_v11 = vpop.permute.xlu1 %2094  ;;  %v1717_v39 = vpop.permute.xlu0 %1716  ;;  %v1265_v22 = vsel %vm1238_vm3, %v1262_v57, %v1264_v25 }
 0x180   :  { %v2275_v21 = vadd.f32 %v2095_v11, %v1891_v12  ;;  %13068 = vmatmul.mubr.msk.f32.gmra.mxu1 %vm592_vm1, %v2472_v32  ;;  %v1894_v6 = vadd.f32 %v1717_v39, %v1267_v54  ;;  %v2411_v30 = vmul.f32 0.3, %v2347_v46  ;;  %v1893_v48 = vadd.f32 %v14586_v23, %v1265_v22  ;;  %v14657_v32 = vpop.f32.mrf.mxu0 }
 0x181   :  { %13070 = vmatprep.mubr.msk.f32.mxu1 %vm592_vm1, %v2473_v38  ;;  %2156 = vrot.lane.b32.xlu0 %v1518_v14, %s13818_s29  ;;  %v1519_v12 = vrot.slane %v14639_v55, 1  ;;  %v1271_v23 = vsel %vm1238_vm3, %v1268_v3, %v1270_v53 }
 0x182   :  { %v2346_v40 = vadd.f32 %v14456_v8, %v2275_v21  ;;  %1778 = vrot.lane.b32.xlu1 %v14628_v26, %s13817_s17  ;;  %v2475_v44 = vmax.f32 %v2347_v46, %v2411_v30  ;;  %v14668_v29 = vpop.f32.mrf.mxu0 }
 0x183   :  { %v2101_v9 = vpop.permute.xlu0 %2100  ;;  %v14644_v5 = vpop.permute.xlu1 %1722  ;;  %v1522_v42 = vsel %vm1431_vm2, %v1519_v12, %v1521_v34  ;;  %v1520_v22 = vsel %vm1431_vm2, %v1517_v16, %v1519_v12 }
 0x184   :  { %v2410_v19 = vmul.f32 0.3, %v2346_v40  ;;  %v2278_v35 = vadd.f32 %v2101_v9, %v1894_v6  ;;  %v1272_v9 = vrot.slane %v14328_v50, 7 }
 0x185   :  { %1776 = vrot.lane.b32.xlu0 %v14639_v55, %s13817_s17 }
 0x186   :  { %v2474_v38 = vmax.f32 %v2346_v40, %v2410_v19  ;;  %2154 = vrot.lane.b32.xlu1 %v1516_v59, %s13818_s29  ;;  %v2349_v52 = vadd.f32 %v14456_v8, %v2278_v35  ;;  %v1525_v40 = vrot.slane %v14657_v32, 1  ;;  %v1274_v19 = vrot.slane %v14348_v58, 7 }
 0x187   :  { %v2099_v57 = vpop.permute.xlu1 %2098  ;;  %v1721_v25 = vpop.permute.xlu0 %1720  ;;  %v1269_v35 = vsel %vm1238_vm3, %v1266_v61, %v1268_v3 }
 0x188   :  { %v2277_v11 = vadd.f32 %v2099_v57, %v1893_v48  ;;  %13071 = vmatmul.mubr.msk.f32.gmra.mxu1 %vm592_vm1, %v2474_v38  ;;  %v1896_v39 = vadd.f32 %v1721_v25, %v1271_v23  ;;  %v2413_v21 = vmul.f32 0.3, %v2349_v52  ;;  %v1895_v59 = vadd.f32 %v14615_v13, %v1269_v35  ;;  %v14686_v38 = vpop.f32.mrf.mxu0 }
 0x189   :  { %13073 = vmatprep.mubr.msk.f32.mxu1 %vm592_vm1, %v2475_v44  ;;  %2160 = vrot.lane.b32.xlu0 %v1522_v42, %s13818_s29  ;;  %v1523_v48 = vrot.slane %v14668_v29, 1  ;;  %v1275_v13 = vsel %vm1238_vm3, %v1272_v9, %v1274_v19 }
 0x18a   :  { %v2348_v46 = vadd.f32 %v14456_v8, %v2277_v11  ;;  %1782 = vrot.lane.b32.xlu1 %v14657_v32, %s13817_s17  ;;  %v2477_v50 = vmax.f32 %v2349_v52, %v2413_v21  ;;  %v14697_v12 = vpop.f32.mrf.mxu0 }
 0x18b   :  { %v2105_v14 = vpop.permute.xlu0 %2104  ;;  %v14673_v54 = vpop.permute.xlu1 %1726  ;;  %v1526_v16 = vsel %vm1431_vm2, %v1523_v48, %v1525_v40  ;;  %v1524_v35 = vsel %vm1431_vm2, %v1521_v34, %v1523_v48 }
 0x18c   :  { %v2412_v6 = vmul.f32 0.3, %v2348_v46  ;;  %v2280_v30 = vadd.f32 %v2105_v14, %v1896_v39  ;;  %v1276_v14 = vrot.slane %v14342_v56, 7 }
 0x18d   :  { %1780 = vrot.lane.b32.xlu0 %v14668_v29, %s13817_s17 }
 0x18e   :  { %v2476_v44 = vmax.f32 %v2348_v46, %v2412_v6  ;;  %2158 = vrot.lane.b32.xlu1 %v1520_v22, %s13818_s29  ;;  %v2351_v58 = vadd.f32 %v14456_v8, %v2280_v30  ;;  %v1529_v46 = vrot.slane %v14686_v38, 1  ;;  %v1278_v6 = vrot.slane %v14362_v0, 7 }
 0x18f   :  { %v2103_v61 = vpop.permute.xlu1 %2102  ;;  %v1725_v3 = vpop.permute.xlu0 %1724  ;;  %v1273_v30 = vsel %vm1238_vm3, %v1270_v53, %v1272_v9 }
 0x190   :  { %v2279_v57 = vadd.f32 %v2103_v61, %v1895_v59  ;;  %13074 = vmatmul.mubr.msk.f32.gmra.mxu1 %vm592_vm1, %v2476_v44  ;;  %v1898_v25 = vadd.f32 %v1725_v3, %v1275_v13  ;;  %v2415_v11 = vmul.f32 0.3, %v2351_v58  ;;  %v1897_v22 = vadd.f32 %v14644_v5, %v1273_v30  ;;  %v14715_v44 = vpop.f32.mrf.mxu0 }
 0x191   :  { %13076 = vmatprep.mubr.msk.f32.mxu1 %vm592_vm1, %v2477_v50  ;;  %2164 = vrot.lane.b32.xlu0 %v1526_v16, %s13818_s29  ;;  %v1527_v59 = vrot.slane %v14697_v12, 1  ;;  %v1279_v5 = vsel %vm1238_vm3, %v1276_v14, %v1278_v6 }
 0x192   :  { %v2350_v52 = vadd.f32 %v14456_v8, %v2279_v57  ;;  %1786 = vrot.lane.b32.xlu1 %v14686_v38, %s13817_s17  ;;  %v2479_v56 = vmax.f32 %v2351_v58, %v2415_v11  ;;  %v14726_v48 = vpop.f32.mrf.mxu0 }
 0x193   :  { %v2109_v42 = vpop.permute.xlu0 %2108  ;;  %v14702_v23 = vpop.permute.xlu1 %1730  ;;  %v1530_v34 = vsel %vm1431_vm2, %v1527_v59, %v1529_v46  ;;  %v1528_v30 = vsel %vm1431_vm2, %v1525_v40, %v1527_v59 }
 0x194   :  { %v2414_v39 = vmul.f32 0.3, %v2350_v52  ;;  %v2282_v21 = vadd.f32 %v2109_v42, %v1898_v25  ;;  %v1280_v42 = vrot.slane %v14356_v62, 7 }
 0x195   :  { %1784 = vrot.lane.b32.xlu0 %v14697_v12, %s13817_s17 }
 0x196   :  { %v2478_v50 = vmax.f32 %v2350_v52, %v2414_v39  ;;  %2162 = vrot.lane.b32.xlu1 %v1524_v35, %s13818_s29  ;;  %v2353_v0 = vadd.f32 %v14456_v8, %v2282_v21  ;;  %v1533_v52 = vrot.slane %v14715_v44, 1  ;;  %v1282_v39 = vrot.slane %v14376_v10, 7 }
 0x197   :  { %v2107_v53 = vpop.permute.xlu1 %2106  ;;  %v1729_v9 = vpop.permute.xlu0 %1728  ;;  %v1277_v21 = vsel %vm1238_vm3, %v1274_v19, %v1276_v14 }
 0x198   :  { %v2281_v61 = vadd.f32 %v2107_v53, %v1897_v22  ;;  %13077 = vmatmul.mubr.msk.f32.gmra.mxu1 %vm592_vm1, %v2478_v50  ;;  %v1900_v3 = vadd.f32 %v1729_v9, %v1279_v5  ;;  %v2417_v57 = vmul.f32 0.3, %v2353_v0  ;;  %v1899_v35 = vadd.f32 %v14673_v54, %v1277_v21  ;;  %v14744_v50 = vpop.f32.mrf.mxu0 }
 0x199   :  { %13079 = vmatprep.mubr.msk.f32.mxu1 %vm592_vm1, %v2479_v56  ;;  %2168 = vrot.lane.b32.xlu0 %v1530_v34, %s13818_s29  ;;  %v1531_v22 = vrot.slane %v14726_v48, 1  ;;  %v1283_v54 = vsel %vm1238_vm3, %v1280_v42, %v1282_v39 }
 0x19a   :  { %v2352_v58 = vadd.f32 %v14456_v8, %v2281_v61  ;;  %1790 = vrot.lane.b32.xlu1 %v14715_v44, %s13817_s17  ;;  %v2481_v62 = vmax.f32 %v2353_v0, %v2417_v57  ;;  %v14755_v59 = vpop.f32.mrf.mxu0 }
 0x19b   :  { %v2113_v16 = vpop.permute.xlu0 %2112  ;;  %v14731_v13 = vpop.permute.xlu1 %1734  ;;  %v1534_v40 = vsel %vm1431_vm2, %v1531_v22, %v1533_v52  ;;  %v1532_v21 = vsel %vm1431_vm2, %v1529_v46, %v1531_v22 }
 0x19c   :  { %v2416_v25 = vmul.f32 0.3, %v2352_v58  ;;  %v2284_v11 = vadd.f32 %v2113_v16, %v1900_v3  ;;  %v1284_v16 = vrot.slane %v14370_v7, 7 }
 0x19d   :  { %1788 = vrot.lane.b32.xlu0 %v14726_v48, %s13817_s17 }
 0x19e   :  { %v2480_v56 = vmax.f32 %v2352_v58, %v2416_v25  ;;  %2166 = vrot.lane.b32.xlu1 %v1528_v30, %s13818_s29  ;;  %v2355_v10 = vadd.f32 %v14456_v8, %v2284_v11  ;;  %v1537_v58 = vrot.slane %v14744_v50, 1  ;;  %v1286_v25 = vrot.slane %v14390_v18, 7 }
 0x19f   :  { %v2111_v19 = vpop.permute.xlu1 %2110  ;;  %v1733_v14 = vpop.permute.xlu0 %1732  ;;  %v1281_v11 = vsel %vm1238_vm3, %v1278_v6, %v1280_v42 }
 0x1a0   :  { %v2283_v53 = vadd.f32 %v2111_v19, %v1899_v35  ;;  %13080 = vmatmul.mubr.msk.f32.gmra.mxu1 %vm592_vm1, %v2480_v56  ;;  %v1902_v9 = vadd.f32 %v1733_v14, %v1283_v54  ;;  %v2419_v61 = vmul.f32 0.3, %v2355_v10  ;;  %v1901_v30 = vadd.f32 %v14702_v23, %v1281_v11  ;;  %v14773_v56 = vpop.f32.mrf.mxu0 }
 0x1a1   :  { %13082 = vmatprep.mubr.msk.f32.mxu1 %vm592_vm1, %v2481_v62  ;;  %2172 = vrot.lane.b32.xlu0 %v1534_v40, %s13818_s29  ;;  %v1535_v35 = vrot.slane %v14755_v59, 1  ;;  %v1287_v23 = vsel %vm1238_vm3, %v1284_v16, %v1286_v25 }
 0x1a2   :  { %v2354_v0 = vadd.f32 %v14456_v8, %v2283_v53  ;;  %1794 = vrot.lane.b32.xlu1 %v14744_v50, %s13817_s17  ;;  %v2483_v7 = vmax.f32 %v2355_v10, %v2419_v61  ;;  %v14784_v22 = vpop.f32.mrf.mxu0 }
 0x1a3   :  { %v2117_v34 = vpop.permute.xlu0 %2116  ;;  %v14760_v5 = vpop.permute.xlu1 %1738  ;;  %v1538_v46 = vsel %vm1431_vm2, %v1535_v35, %v1537_v58  ;;  %v1536_v11 = vsel %vm1431_vm2, %v1533_v52, %v1535_v35 }
 0x1a4   :  { %v2418_v3 = vmul.f32 0.3, %v2354_v0  ;;  %v2286_v57 = vadd.f32 %v2117_v34, %v1902_v9  ;;  %v1288_v34 = vrot.slane %v14384_v15, 7 }
 0x1a5   :  { %1792 = vrot.lane.b32.xlu0 %v14755_v59, %s13817_s17 }
 0x1a6   :  { %v2482_v62 = vmax.f32 %v2354_v0, %v2418_v3  ;;  %2170 = vrot.lane.b32.xlu1 %v1532_v21, %s13818_s29  ;;  %v2357_v18 = vadd.f32 %v14456_v8, %v2286_v57  ;;  %v1541_v0 = vrot.slane %v14773_v56, 1  ;;  %v1290_v3 = vrot.slane %v14404_v27, 7 }
 0x1a7   :  { %v2115_v6 = vpop.permute.xlu1 %2114  ;;  %v1737_v42 = vpop.permute.xlu0 %1736  ;;  %v1285_v57 = vsel %vm1238_vm3, %v1282_v39, %v1284_v16 }
 0x1a8   :  { %v2285_v19 = vadd.f32 %v2115_v6, %v1901_v30  ;;  %13083 = vmatmul.mubr.msk.f32.gmra.mxu1 %vm592_vm1, %v2482_v62  ;;  %v1904_v14 = vadd.f32 %v1737_v42, %v1287_v23  ;;  %v2421_v53 = vmul.f32 0.3, %v2357_v18  ;;  %v1903_v21 = vadd.f32 %v14731_v13, %v1285_v57  ;;  %v14802_v62 = vpop.f32.mrf.mxu0 }
 0x1a9   :  { %13085 = vmatprep.mubr.msk.f32.mxu1 %vm592_vm1, %v2483_v7  ;;  %2176 = vrot.lane.b32.xlu0 %v1538_v46, %s13818_s29  ;;  %v1539_v30 = vrot.slane %v14784_v22, 1  ;;  %v1291_v13 = vsel %vm1238_vm3, %v1288_v34, %v1290_v3 }
 0x1aa   :  { %v2356_v10 = vadd.f32 %v14456_v8, %v2285_v19  ;;  %1798 = vrot.lane.b32.xlu1 %v14773_v56, %s13817_s17  ;;  %v2485_v15 = vmax.f32 %v2357_v18, %v2421_v53  ;;  %v14813_v35 = vpop.f32.mrf.mxu0 }
 0x1ab   :  { %v2121_v40 = vpop.permute.xlu0 %2120  ;;  %v14789_v54 = vpop.permute.xlu1 %1742  ;;  %v1542_v52 = vsel %vm1431_vm2, %v1539_v30, %v1541_v0  ;;  %v1540_v57 = vsel %vm1431_vm2, %v1537_v58, %v1539_v30 }
 0x1ac   :  { %v2420_v9 = vmul.f32 0.3, %v2356_v10  ;;  %v2288_v61 = vadd.f32 %v2121_v40, %v1904_v14  ;;  %v1292_v40 = vrot.slane %v14398_v24, 7 }
 0x1ad   :  { %1796 = vrot.lane.b32.xlu0 %v14784_v22, %s13817_s17 }
 0x1ae   :  { %v2484_v7 = vmax.f32 %v2356_v10, %v2420_v9  ;;  %2174 = vrot.lane.b32.xlu1 %v1536_v11, %s13818_s29  ;;  %v2359_v27 = vadd.f32 %v14456_v8, %v2288_v61  ;;  %v1545_v10 = vrot.slane %v14802_v62, 1  ;;  %v1294_v9 = vrot.slane %v14418_v37, 7 }
 0x1af   :  { %v2119_v39 = vpop.permute.xlu1 %2118  ;;  %v1741_v16 = vpop.permute.xlu0 %1740  ;;  %v1289_v61 = vsel %vm1238_vm3, %v1286_v25, %v1288_v34 }
 0x1b0   :  { %v2287_v6 = vadd.f32 %v2119_v39, %v1903_v21  ;;  %13086 = vmatmul.mubr.msk.f32.gmra.mxu1 %vm592_vm1, %v2484_v7  ;;  %v1906_v42 = vadd.f32 %v1741_v16, %v1291_v13  ;;  %v2423_v19 = vmul.f32 0.3, %v2359_v27  ;;  %v1905_v11 = vadd.f32 %v14760_v5, %v1289_v61  ;;  %v14831_v7 = vpop.f32.mrf.mxu0 }
 0x1b1   :  { %13088 = vmatprep.mubr.msk.f32.mxu1 %vm592_vm1, %v2485_v15  ;;  %2180 = vrot.lane.b32.xlu0 %v1542_v52, %s13818_s29  ;;  %v1543_v21 = vrot.slane %v14813_v35, 1  ;;  %v1295_v5 = vsel %vm1238_vm3, %v1292_v40, %v1294_v9  ;;  %v1293_v61 = vsel %vm1238_vm3, %v1290_v3, %v1292_v40 }
 0x1b2   :  { %v2358_v18 = vadd.f32 %v14456_v8, %v2287_v6  ;;  %1802 = vrot.lane.b32.xlu1 %v14802_v62, %s13817_s17  ;;  %v2487_v24 = vmax.f32 %v2359_v27, %v2423_v19  ;;  %v14844_v30 = vpop.f32.mrf.mxu0 }
 0x1b3   :  { %v2125_v46 = vpop.permute.xlu0 %2124  ;;  %v14818_v23 = vpop.permute.xlu1 %1746  ;;  %v1546_v58 = vsel %vm1431_vm2, %v1543_v21, %v1545_v10 }
 0x1b4   :  { %v2422_v14 = vmul.f32 0.3, %v2358_v18  ;;  %v2290_v53 = vadd.f32 %v2125_v46, %v1906_v42  ;;  %v1549_v42 = vrot.slane %v14831_v7, 1 }
 0x1b5   :  { %1800 = vrot.lane.b32.xlu0 %v14813_v35, %s13817_s17 }
 0x1b6   :  { %v2486_v15 = vmax.f32 %v2358_v18, %v2422_v14  ;;  %2178 = vrot.lane.b32.xlu1 %v1540_v57, %s13818_s29  ;;  %v2361_v39 = vadd.f32 %v14456_v8, %v2290_v53  ;;  %v1296_v14 = vrot.slane %v14412_v33, 7  ;;  %v1298_v53 = vrot.slane %v14435_v51, 7 }
 0x1b7   :  { %v2123_v25 = vpop.permute.xlu1 %2122  ;;  %v1745_v34 = vpop.permute.xlu0 %1744  ;;  %v1544_v57 = vsel %vm1431_vm2, %v1541_v0, %v1543_v21  ;;  %v14876_v21 = vadd.s32 256, %v14429_v47 }
 0x1b8   :  { %v2289_v16 = vadd.f32 %v2123_v25, %v1905_v11  ;;  %13089 = vmatmul.mubr.msk.f32.gmra.mxu1 %vm592_vm1, %v2486_v15  ;;  %v1908_v6 = vadd.f32 %v1745_v34, %v1295_v5  ;;  %v2425_v52 = vmul.f32 0.3, %v2361_v39  ;;  %v1907_v11 = vadd.f32 %v14789_v54, %v1293_v61 }
 0x1b9   :  { %13091 = vmatprep.mubr.msk.f32.mxu1 %vm592_vm1, %v2487_v24  ;;  %2184 = vrot.lane.b32.xlu0 %v1546_v58, %s13818_s29  ;;  %v1547_v15 = vrot.slane %v14844_v30, 1  ;;  %v14862_v24 = vpop.f32.mrf.mxu0  ;;  %v1299_v54 = vsel %vm1238_vm3, %v1296_v14, %v1298_v53  ;;  %v1302_v58 = vrot.slane %v14463_v17, 7  ;;  %vm366_vm6 = vcmp.eq.s32.totalorder %v14876_v21, 256 }
 0x1ba   :  { %v2360_v27 = vadd.f32 %v14456_v8, %v2289_v16  ;;  %1806 = vrot.lane.b32.xlu1 %v14831_v7, %s13817_s17  ;;  %v2489_v33 = vmax.f32 %v2361_v39, %v2425_v52  ;;  %v1300_v39 = vrot.slane %v14427_v45, 7  ;;  %v1297_v45 = vsel %vm1238_vm3, %v1294_v9, %v1296_v14 }
 0x1bb   :  { %v2129_v13 = vpop.permute.xlu0 %2128  ;;  %v14849_v18 = vpop.permute.xlu1 %1750  ;;  %v1550_v0 = vsel %vm1431_vm2, %v1547_v15, %v1549_v42 }
 0x1bc   :  { %v2424_v19 = vmul.f32 0.3, %v2360_v27  ;;  %v2292_v46 = vadd.f32 %v2129_v13, %v1908_v6  ;;  %v14880_v5 = vpop.f32.mrf.mxu0  ;;  %v1303_v37 = vsel %vm1238_vm3, %v1300_v39, %v1302_v58 }
 0x1bd   :  { %1804 = vrot.lane.b32.xlu0 %v14844_v30, %s13817_s17 }
 0x1be   :  { %v2488_v25 = vmax.f32 %v2360_v27, %v2424_v19  ;;  %2182 = vrot.lane.b32.xlu1 %v1544_v57, %s13818_s29  ;;  %v2363_v34 = vadd.f32 %v14456_v8, %v2292_v46  ;;  %v1553_v46 = vrot.slane %v14862_v24, 1 }
 0x1bf   :  { %v2127_v3 = vpop.permute.xlu1 %2126  ;;  %v1749_v40 = vpop.permute.xlu0 %1748 }
 0x1c0   :  { %v2291_v16 = vadd.f32 %v2127_v3, %v1907_v11  ;;  %13092 = vmatmul.mubr.msk.f32.gmra.mxu1 %vm592_vm1, %v2488_v25  ;;  %v1910_v6 = vadd.f32 %v1749_v40, %v1299_v54  ;;  %v2427_v52 = vmul.f32 0.3, %v2363_v34  ;;  %v1548_v11 = vsel %vm1431_vm2, %v1545_v10, %v1547_v15  ;;  %v14899_v3 = vpop.f32.mrf.mxu0 }
 0x1c1   :  { %13094 = vmatprep.mubr.msk.f32.mxu1 %vm592_vm1, %v2489_v33  ;;  %2188 = vrot.lane.b32.xlu0 %v1550_v0, %s13818_s29  ;;  %v1909_v25 = vadd.f32 %v14818_v23, %v1297_v45  ;;  %v1551_v33 = vrot.slane %v14880_v5, 1  ;;  %v1656_v0 = vsel %vm366_vm6, 0.0, %v1303_v37 }
 0x1c2   :  { %v2362_v27 = vadd.f32 %v14456_v8, %v2291_v16  ;;  %1810 = vrot.lane.b32.xlu1 %v14862_v24, %s13817_s17  ;;  %v2491_v9 = vmax.f32 %v2363_v34, %v2427_v52  ;;  %v14912_v54 = vpop.f32.mrf.mxu0 }
 0x1c3   :  { %v2133_v13 = vpop.permute.xlu0 %2132  ;;  %v14885_v19 = vpop.permute.xlu1 %1754  ;;  %v1554_v23 = vsel %vm1431_vm2, %v1551_v33, %v1553_v46  ;;  %v1555_v37 = vrot.slane %v14912_v54, 1 }
 0x1c4   :  { %v2426_v61 = vmul.f32 0.3, %v2362_v27  ;;  %v2294_v57 = vadd.f32 %v2133_v13, %v1910_v6 }
 0x1c5   :  { %1808 = vrot.lane.b32.xlu0 %v14880_v5, %s13817_s17 }
 0x1c6   :  { %v2490_v40 = vmax.f32 %v2362_v27, %v2426_v61  ;;  %2186 = vrot.lane.b32.xlu1 %v1548_v11, %s13818_s29  ;;  %v2365_v10 = vadd.f32 %v14456_v8, %v2294_v57  ;;  %v1304_v61 = vrot.slane %v14450_v63, 7  ;;  %v1557_v57 = vrot.slane %v14899_v3, 1 }
 0x1c7   :  { %v2131_v14 = vpop.permute.xlu1 %2130  ;;  %v1753_v15 = vpop.permute.xlu0 %1752 }
 0x1c8   :  { %v2293_v16 = vadd.f32 %v2131_v14, %v1909_v25  ;;  %13095 = vmatmul.mubr.msk.f32.gmra.mxu1 %vm592_vm1, %v2490_v40  ;;  %v1912_v27 = vadd.f32 %v1753_v15, %v1656_v0  ;;  %v2429_v6 = vmul.f32 0.3, %v2365_v10  ;;  %v1306_v25 = vrot.slane %v14495_v2, 7 }
 0x1c9   :  { %13097 = vmatprep.mubr.msk.f32.mxu1 %vm592_vm1, %v2491_v9  ;;  %2192 = vrot.lane.b32.xlu0 %v1554_v23, %s13818_s29  ;;  %v1301_v40 = vsel %vm1238_vm3, %v1298_v53, %v1300_v39  ;;  %v1552_v9 = vsel %vm1431_vm2, %v1549_v42, %v1551_v33  ;;  %v14932_v2 = vadd.s32 504, %v14429_v47  ;;  %v1558_v42 = vsel %vm1431_vm2, %v1555_v37, %v1557_v57 }
 0x1ca   :  { %v2364_v34 = vadd.f32 %v14456_v8, %v2293_v16  ;;  %1814 = vrot.lane.b32.xlu1 %v14899_v3, %s13817_s17  ;;  %v1911_v63 = vadd.f32 %v14849_v18, %v1301_v40  ;;  %v2493_v51 = vmax.f32 %v2365_v10, %v2429_v6  ;;  %v1307_v33 = vsel %vm1238_vm3, %v1304_v61, %v1306_v25 }
 0x1cb   :  { %v2137_v52 = vpop.permute.xlu0 %2136  ;;  %v1759_v13 = vpop.permute.xlu1 %1758  ;;  %v1556_v18 = vsel %vm1431_vm2, %v1553_v46, %v1555_v37  ;;  %vm525_vm7 = vcmp.eq.s32.totalorder %v14932_v2, 511  ;;  %v1623_v0 = vsel %vm1431_vm2, %v1557_v57, 0.0  ;;  %v1310_v40 = vrot.slane %v14521_v1, 7 }
 0x1cc   :  { %v2428_v45 = vmul.f32 0.3, %v2364_v34  ;;  %v2296_v11 = vadd.f32 %v2137_v52, %v1912_v27  ;;  %v2007_v46 = vsel %vm525_vm7, 0.0, %v1623_v0  ;;  %v1305_v37 = vsel %vm1238_vm3, %v1302_v58, %v1304_v61  ;;  %v14961_v58 = vld [vmem:[%s18197_s24] ss:$0 sm:$0xff] }
 0x1cd   :  { %1812 = vrot.lane.b32.xlu0 %v14912_v54, %s13817_s17  ;;  %v1913_v57 = vadd.f32 %v14885_v19, %v1305_v37 }
 0x1ce   :  { %v2492_v14 = vmax.f32 %v2364_v34, %v2428_v45  ;;  %2190 = vrot.lane.b32.xlu1 %v1552_v9, %s13818_s29  ;;  %v2367_v53 = vadd.f32 %v14456_v8, %v2296_v11  ;;  %v1308_v11 = vrot.slane %v14479_v4, 7 }
 0x1cf   :  { %v2135_v39 = vpop.permute.xlu1 %2134  ;;  %v1757_v15 = vpop.permute.xlu0 %1756 }
 0x1d0   :  { %v2295_v16 = vadd.f32 %v2135_v39, %v1911_v63  ;;  %13098 = vmatmul.mubr.msk.f32.gmra.mxu1 %vm592_vm1, %v2492_v14  ;;  %v1914_v10 = vadd.f32 %v1757_v15, %v1307_v33  ;;  %v2431_v34 = vmul.f32 0.3, %v2367_v53  ;;  %v1311_v1 = vsel %vm1238_vm3, %v1308_v11, %v1310_v40 }
 0x1d1   :  { %13100 = vmatprep.mubr.msk.f32.mxu1 %vm592_vm1, %v2493_v51  ;;  %2196 = vrot.lane.b32.xlu0 %v1558_v42, %s13818_s29  ;;  %v1314_v42 = vrot.slane %v14552_v36, 7 }
 0x1d2   :  { %v2366_v23 = vadd.f32 %v14456_v8, %v2295_v16  ;;  %2194 = vrot.lane.b32.xlu1 %v1556_v18, %s13818_s29  ;;  %v2495_v63 = vmax.f32 %v2367_v53, %v2431_v34  ;;  %v1312_v16 = vrot.slane %v14510_v41, 7  ;;  %v1309_v18 = vsel %vm1238_vm3, %v1306_v25, %v1308_v11 }
 0x1d3   :  { %v2141_v27 = vpop.permute.xlu0 %2140  ;;  %v1316_v11 = vrot.slane %v14541_v60, 7 }
 0x1d4   :  { %v2430_v6 = vmul.f32 0.3, %v2366_v23  ;;  %v2298_v52 = vadd.f32 %v2141_v27, %v1914_v10  ;;  %v1763_v45 = vpop.permute.xlu1 %1762 }
 0x1d6   :  { %v2494_v9 = vmax.f32 %v2366_v23, %v2430_v6  ;;  %2198 = vrot.lane.b32.xlu1 %v2007_v46, %s13818_s29  ;;  %v2369_v51 = vadd.f32 %v14456_v8, %v2298_v52  ;;  %v1915_v23 = vadd.f32 %v1759_v13, %v1309_v18  ;;  %v1315_v46 = vsel %vm1238_vm3, %v1312_v16, %v1314_v42 }
 0x1d7   :  { %v1761_v14 = vpop.permute.xlu0 %1760  ;;  %v1322_v18 = vrot.slane %v14610_v31, 7 }
 0x1d8   :  { %v2139_v39 = vpop.permute.xlu1 %2138  ;;  %13101 = vmatmul.mubr.msk.f32.gmra.mxu1 %vm592_vm1, %v2494_v9  ;;  %v1916_v17 = vadd.f32 %v1761_v14, %v1311_v1  ;;  %v2433_v53 = vmul.f32 0.3, %v2369_v51  ;;  %v1313_v14 = vsel %vm1238_vm3, %v1310_v40, %v1312_v16  ;;  %v1320_v16 = vrot.slane %v14570_v20, 7 }
 0x1d9   :  { %v2297_v4 = vadd.f32 %v2139_v39, %v1913_v57  ;;  %13103 = vmatprep.mubr.msk.f32.mxu1 %vm592_vm1, %v2495_v63  ;;  %v1318_v57 = vrot.slane %v14581_v49, 7 }
 0x1da   :  { %v2497_v34 = vmax.f32 %v2369_v51, %v2433_v53  ;;  %v1917_v51 = vadd.f32 %v1763_v45, %v1313_v14 }
 0x1db   :  { %v2368_v19 = vadd.f32 %v14961_v58, %v2297_v4  ;;  %v2145_v61 = vpop.permute.xlu0 %2144  ;;  %v1319_v53 = vsel %vm1238_vm3, %v1316_v11, %v1318_v57  ;;  %v1321_v14 = vsel %vm1238_vm3, %v1318_v57, %v1320_v16 }
 0x1dc   :  { %v2300_v15 = vadd.f32 %v2145_v61, %v1916_v17  ;;  %v1767_v8 = vpop.permute.xlu1 %1766 }
 0x1dd   :  { %v2432_v33 = vmul.f32 0.3, %v2368_v19 }
 0x1de   :  { %v2371_v27 = vadd.f32 %v14961_v58, %v2300_v15 }
 0x1df   :  { %v2496_v10 = vmax.f32 %v2368_v19, %v2432_v33  ;;  %v1765_v0 = vpop.permute.xlu0 %1764 }
 0x1e0   :  { %v2143_v6 = vpop.permute.xlu1 %2142  ;;  %v1918_v37 = vadd.f32 %v1765_v0, %v1315_v46  ;;  %v2435_v9 = vmul.f32 0.3, %v2371_v27 }
 0x1e1   :  { %v2299_v52 = vadd.f32 %v2143_v6, %v1915_v23  ;;  %13104 = vmatmul.mubr.msk.f32.gmra.mxu1 %vm592_vm1, %v2496_v10  ;;  %v1317_v10 = vsel %vm1238_vm3, %v1314_v42, %v1316_v11  ;;  %v1326_v11 = vrot.slane %v14639_v55, 7 }
 0x1e2   :  { %13106 = vmatprep.mubr.msk.f32.mxu1 %vm592_vm1, %v2497_v34  ;;  %v2499_v1 = vmax.f32 %v2371_v27, %v2435_v9  ;;  %v1919_v0 = vadd.f32 %v1767_v8, %v1317_v10 }
 0x1e3   :  { %v2370_v41 = vadd.f32 %v14961_v58, %v2299_v52  ;;  %v2149_v36 = vpop.permute.xlu0 %2148 }
 0x1e4   :  { %v2302_v25 = vadd.f32 %v2149_v36, %v1918_v37  ;;  %v1771_v13 = vpop.permute.xlu1 %1770 }
 0x1e5   :  { %v2434_v63 = vmul.f32 0.3, %v2370_v41 }
 0x1e6   :  { %v2373_v17 = vadd.f32 %v14961_v58, %v2302_v25  ;;  %v1324_v25 = vrot.slane %v14599_v28, 7 }
 0x1e7   :  { %v2498_v39 = vmax.f32 %v2370_v41, %v2434_v63  ;;  %v1769_v4 = vpop.permute.xlu0 %1768  ;;  %v1323_v41 = vsel %vm1238_vm3, %v1320_v16, %v1322_v18 }
 0x1e8   :  { %v2147_v19 = vpop.permute.xlu1 %2146  ;;  %v1920_v15 = vadd.f32 %v1769_v4, %v1319_v53  ;;  %v2437_v33 = vmul.f32 0.3, %v2373_v17  ;;  %v1327_v53 = vsel %vm1238_vm3, %v1324_v25, %v1326_v11  ;;  %v1325_v16 = vsel %vm1238_vm3, %v1322_v18, %v1324_v25 }
 0x1e9   :  { %v2301_v61 = vadd.f32 %v2147_v19, %v1917_v51  ;;  %13107 = vmatmul.mubr.msk.f32.gmra.mxu1 %vm592_vm1, %v2498_v39  ;;  %v1921_v51 = vadd.f32 %v1771_v13, %v1321_v14 }
 0x1ea   :  { %13109 = vmatprep.mubr.msk.f32.mxu1 %vm592_vm1, %v2499_v1  ;;  %v2501_v6 = vmax.f32 %v2373_v17, %v2437_v33  ;;  %v1330_v33 = vrot.slane %v14668_v29, 7 }
 0x1eb   :  { %v2372_v60 = vadd.f32 %v14961_v58, %v2301_v61  ;;  %v2153_v49 = vpop.permute.xlu0 %2152 }
 0x1ec   :  { %v2304_v40 = vadd.f32 %v2153_v49, %v1920_v15  ;;  %v1775_v45 = vpop.permute.xlu1 %1774  ;;  %v1328_v49 = vrot.slane %v14628_v26, 7 }
 0x1ed   :  { %v2436_v23 = vmul.f32 0.3, %v2372_v60 }
 0x1ee   :  { %v2375_v52 = vadd.f32 %v14961_v58, %v2304_v40 }
 0x1ef   :  { %v2500_v34 = vmax.f32 %v2372_v60, %v2436_v23  ;;  %v1773_v27 = vpop.permute.xlu0 %1772  ;;  %v1923_v23 = vadd.f32 %v1775_v45, %v1325_v16 }
 0x1f0   :  { %v2151_v46 = vpop.permute.xlu1 %2150  ;;  %v1922_v36 = vadd.f32 %v1773_v27, %v1323_v41  ;;  %v2439_v9 = vmul.f32 0.3, %v2375_v52 }
 0x1f1   :  { %v2303_v37 = vadd.f32 %v2151_v46, %v1919_v0  ;;  %13110 = vmatmul.mubr.msk.f32.gmra.mxu1 %vm592_vm1, %v2500_v34  ;;  %v1331_v46 = vsel %vm1238_vm3, %v1328_v49, %v1330_v33 }
 0x1f2   :  { %13112 = vmatprep.mubr.msk.f32.mxu1 %vm592_vm1, %v2501_v6  ;;  %v2503_v1 = vmax.f32 %v2375_v52, %v2439_v9  ;;  %v1329_v9 = vsel %vm1238_vm3, %v1326_v11, %v1328_v49 }
 0x1f3   :  { %v2374_v20 = vadd.f32 %v14961_v58, %v2303_v37  ;;  %v2157_v31 = vpop.permute.xlu0 %2156 }
 0x1f4   :  { %v2306_v42 = vadd.f32 %v2157_v31, %v1922_v36  ;;  %v1779_v8 = vpop.permute.xlu1 %1778  ;;  %v1332_v36 = vrot.slane %v14657_v32, 7 }
 0x1f5   :  { %v2438_v63 = vmul.f32 0.3, %v2374_v20 }
 0x1f6   :  { %v2377_v17 = vadd.f32 %v14961_v58, %v2306_v42  ;;  %v1925_v42 = vadd.f32 %v1779_v8, %v1329_v9 }
 0x1f7   :  { %v2502_v39 = vmax.f32 %v2374_v20, %v2438_v63  ;;  %v1777_v4 = vpop.permute.xlu0 %1776  ;;  %v1334_v20 = vrot.slane %v14697_v12, 7 }
 0x1f8   :  { %v2155_v19 = vpop.permute.xlu1 %2154  ;;  %v1924_v15 = vadd.f32 %v1777_v4, %v1327_v53  ;;  %v2441_v60 = vmul.f32 0.3, %v2377_v17  ;;  %v1338_v53 = vrot.slane %v14726_v48, 7 }
 0x1f9   :  { %v2305_v61 = vadd.f32 %v2155_v19, %v1921_v51  ;;  %13113 = vmatmul.mubr.msk.f32.gmra.mxu1 %vm592_vm1, %v2502_v39 }
 0x1fa   :  { %13115 = vmatprep.mubr.msk.f32.mxu1 %vm592_vm1, %v2503_v1  ;;  %v2505_v34 = vmax.f32 %v2377_v17, %v2441_v60  ;;  %v1335_v1 = vsel %vm1238_vm3, %v1332_v36, %v1334_v20 }
 0x1fb   :  { %v2376_v28 = vadd.f32 %v14961_v58, %v2305_v61  ;;  %v2161_v55 = vpop.permute.xlu0 %2160  ;;  %v1336_v61 = vrot.slane %v14686_v38, 7 }
 0x1fc   :  { %v2308_v57 = vadd.f32 %v2161_v55, %v1924_v15  ;;  %v1783_v13 = vpop.permute.xlu1 %1782 }
 0x1fd   :  { %v2440_v40 = vmul.f32 0.3, %v2376_v28 }
 0x1fe   :  { %v2379_v27 = vadd.f32 %v14961_v58, %v2308_v57 }
 0x1ff   :  { %v2504_v10 = vmax.f32 %v2376_v28, %v2440_v40  ;;  %v1781_v0 = vpop.permute.xlu0 %1780  ;;  %v1333_v28 = vsel %vm1238_vm3, %v1330_v33, %v1332_v36 }
 0x200   :  { %v2159_v6 = vpop.permute.xlu1 %2158  ;;  %v1926_v37 = vadd.f32 %v1781_v0, %v1331_v46  ;;  %v2443_v41 = vmul.f32 0.3, %v2379_v27  ;;  %v1927_v55 = vadd.f32 %v1783_v13, %v1333_v28  ;;  %v1337_v46 = vsel %vm1238_vm3, %v1334_v20, %v1336_v61 }
 0x201   :  { %v2307_v52 = vadd.f32 %v2159_v6, %v1923_v23  ;;  %13116 = vmatmul.mubr.msk.f32.gmra.mxu1 %vm592_vm1, %v2504_v10  ;;  %v1339_v10 = vsel %vm1238_vm3, %v1336_v61, %v1338_v53  ;;  %v1342_v6 = vrot.slane %v14755_v59, 7 }
 0x202   :  { %13118 = vmatprep.mubr.msk.f32.mxu1 %vm592_vm1, %v2505_v34  ;;  %v2507_v14 = vmax.f32 %v2379_v27, %v2443_v41  ;;  %v1340_v27 = vrot.slane %v14715_v44, 7 }
 0x203   :  { %v2378_v26 = vadd.f32 %v14961_v58, %v2307_v52  ;;  %v2165_v29 = vpop.permute.xlu0 %2164 }
 0x204   :  { %v2310_v18 = vadd.f32 %v2165_v29, %v1926_v37  ;;  %v1787_v45 = vpop.permute.xlu1 %1786  ;;  %v1343_v9 = vsel %vm1238_vm3, %v1340_v27, %v1342_v6 }
 0x205   :  { %v2442_v31 = vmul.f32 0.3, %v2378_v26  ;;  %v1929_v37 = vadd.f32 %v1787_v45, %v1337_v46 }
 0x206   :  { %v2381_v51 = vadd.f32 %v14961_v58, %v2310_v18 }
 0x207   :  { %v2506_v25 = vmax.f32 %v2378_v26, %v2442_v31  ;;  %v1785_v63 = vpop.permute.xlu0 %1784 }
 0x208   :  { %v2163_v39 = vpop.permute.xlu1 %2162  ;;  %v1928_v17 = vadd.f32 %v1785_v63, %v1335_v1  ;;  %v2445_v19 = vmul.f32 0.3, %v2381_v51  ;;  %v1344_v63 = vrot.slane %v14744_v50, 7 }
 0x209   :  { %v2309_v4 = vadd.f32 %v2163_v39, %v1925_v42  ;;  %13119 = vmatmul.mubr.msk.f32.gmra.mxu1 %vm592_vm1, %v2506_v25  ;;  %v1341_v39 = vsel %vm1238_vm3, %v1338_v53, %v1340_v27 }
 0x20a   :  { %13121 = vmatprep.mubr.msk.f32.mxu1 %vm592_vm1, %v2507_v14  ;;  %v2509_v49 = vmax.f32 %v2381_v51, %v2445_v19  ;;  %v1346_v14 = vrot.slane %v14784_v22, 7 }
 0x20b   :  { %v2380_v32 = vadd.f32 %v14961_v58, %v2309_v4  ;;  %v2169_v12 = vpop.permute.xlu0 %2168 }
 0x20c   :  { %v2312_v11 = vadd.f32 %v2169_v12, %v1928_v17  ;;  %v1791_v8 = vpop.permute.xlu1 %1790 }
 0x20d   :  { %v2444_v15 = vmul.f32 0.3, %v2380_v32  ;;  %v1931_v4 = vadd.f32 %v1791_v8, %v1341_v39 }
 0x20e   :  { %v2383_v40 = vadd.f32 %v14961_v58, %v2312_v11 }
 0x20f   :  { %v2508_v60 = vmax.f32 %v2380_v32, %v2444_v15  ;;  %v1789_v57 = vpop.permute.xlu0 %1788  ;;  %v1347_v15 = vsel %vm1238_vm3, %v1344_v63, %v1346_v14 }
 0x210   :  { %v2167_v16 = vpop.permute.xlu1 %2166  ;;  %v1930_v0 = vadd.f32 %v1789_v57, %v1339_v10  ;;  %v2447_v34 = vmul.f32 0.3, %v2383_v40 }
 0x211   :  { %v2311_v23 = vadd.f32 %v2167_v16, %v1927_v55  ;;  %13122 = vmatmul.mubr.msk.f32.gmra.mxu1 %vm592_vm1, %v2508_v60  ;;  %v1350_v16 = vrot.slane %v14813_v35, 7 }
 0x212   :  { %13124 = vmatprep.mubr.msk.f32.mxu1 %vm592_vm1, %v2509_v49  ;;  %v2511_v41 = vmax.f32 %v2383_v40, %v2447_v34  ;;  %v1348_v40 = vrot.slane %v14773_v56, 7 }
 0x213   :  { %v2382_v38 = vadd.f32 %v14961_v58, %v2311_v23  ;;  %v2173_v48 = vpop.permute.xlu0 %2172 }
 0x214   :  { %v2314_v33 = vadd.f32 %v2173_v48, %v1930_v0  ;;  %v1795_v13 = vpop.permute.xlu1 %1794  ;;  %v1345_v0 = vsel %vm1238_vm3, %v1342_v6, %v1344_v63  ;;  %v1351_v35 = vsel %vm1238_vm3, %v1348_v40, %v1350_v16 }
 0x215   :  { %v2446_v52 = vmul.f32 0.3, %v2382_v38 }
 0x216   :  { %v2385_v18 = vadd.f32 %v14961_v58, %v2314_v33 }
 0x217   :  { %v2510_v26 = vmax.f32 %v2382_v38, %v2446_v52  ;;  %v1793_v29 = vpop.permute.xlu0 %1792  ;;  %v1933_v38 = vadd.f32 %v1795_v13, %v1345_v0 }
 0x218   :  { %v2171_v36 = vpop.permute.xlu1 %2170  ;;  %v1932_v42 = vadd.f32 %v1793_v29, %v1343_v9  ;;  %v2449_v25 = vmul.f32 0.3, %v2385_v18  ;;  %v1352_v9 = vrot.slane %v14802_v62, 7 }
 0x219   :  { %v2313_v31 = vadd.f32 %v2171_v36, %v1929_v37  ;;  %13125 = vmatmul.mubr.msk.f32.gmra.mxu1 %vm592_vm1, %v2510_v26 }
 0x21a   :  { %13127 = vmatprep.mubr.msk.f32.mxu1 %vm592_vm1, %v2511_v41  ;;  %v2513_v32 = vmax.f32 %v2385_v18, %v2449_v25  ;;  %v1349_v25 = vsel %vm1238_vm3, %v1346_v14, %v1348_v40 }
 0x21b   :  { %v2384_v44 = vadd.f32 %v14961_v58, %v2313_v31  ;;  %v2177_v59 = vpop.permute.xlu0 %2176 }
 0x21c   :  { %v2316_v20 = vadd.f32 %v2177_v59, %v1932_v42  ;;  %v1799_v45 = vpop.permute.xlu1 %1798  ;;  %v1354_v42 = vrot.slane %v14844_v30, 7 }
 0x21d   :  { %v2448_v51 = vmul.f32 0.3, %v2384_v44 }
 0x21e   :  { %v2387_v12 = vadd.f32 %v14961_v58, %v2316_v20  ;;  %v1935_v20 = vadd.f32 %v1799_v45, %v1349_v25 }
 0x21f   :  { %v2512_v1 = vmax.f32 %v2384_v44, %v2448_v51  ;;  %v1797_v17 = vpop.permute.xlu0 %1796 }
 0x220   :  { %v2175_v19 = vpop.permute.xlu1 %2174  ;;  %v15032_v11 = vpop.f32.mrf.mxu1  ;;  %v1934_v50 = vadd.f32 %v1797_v17, %v1347_v15  ;;  %v2451_v60 = vmul.f32 0.3, %v2387_v12 }
 0x221   :  { %v2315_v61 = vadd.f32 %v2175_v19, %v1931_v4  ;;  %13128 = vmatmul.mubr.msk.f32.gmra.mxu1 %vm592_vm1, %v2512_v1  ;;  %3623 = vrot.lane.b32.xlu1 %v15032_v11, %s13817_s17  ;;  %v3366_v53 = vrot.slane %v15032_v11, 1 }
 0x222   :  { %13130 = vmatprep.mubr.msk.f32.mxu1 %vm592_vm1, %v2513_v32  ;;  %v15039_v22 = vpop.f32.mrf.mxu1  ;;  %v2515_v33 = vmax.f32 %v2387_v12, %v2451_v60  ;;  %v1355_v32 = vsel %vm1238_vm3, %v1352_v9, %v1354_v42  ;;  %v1356_v60 = vrot.slane %v14831_v7, 7 }
 0x223   :  { %v2386_v8 = vadd.f32 %v14961_v58, %v2315_v61  ;;  %v3365_v28 = vrot.slane %v15039_v22, 1  ;;  %v2181_v55 = vpop.permute.xlu0 %2180  ;;  %3621 = vrot.lane.b32.xlu0 %v15039_v22, %s13817_s17 }
 0x224   :  { %v2318_v57 = vadd.f32 %v2181_v55, %v1934_v50  ;;  %v15046_v49 = vpop.permute.xlu1 %1802  ;;  %v1357_v25 = vsel %vm1238_vm3, %v1354_v42, %v1356_v60 }
 0x225   :  { %v2450_v23 = vmul.f32 0.3, %v2386_v8  ;;  %v3367_v10 = vsel %vm1431_vm2, %v3365_v28, %v3366_v53 }
 0x226   :  { %v2389_v27 = vadd.f32 %v14961_v58, %v2318_v57  ;;  %v1358_v57 = vrot.slane %v14880_v5, 7 }
 0x227   :  { %v2514_v48 = vmax.f32 %v2386_v8, %v2450_v23  ;;  %v1801_v34 = vpop.permute.xlu0 %1800  ;;  %4005 = vrot.lane.b32.xlu0 %v3367_v10, %s13818_s29  ;;  %v1353_v10 = vsel %vm1238_vm3, %v1350_v16, %v1352_v9  ;;  %v1362_v9 = vrot.slane %v14912_v54, 7 }
 0x228   :  { %v2179_v52 = vpop.permute.xlu1 %2178  ;;  %v15056_v46 = vpop.f32.mrf.mxu1  ;;  %v1936_v6 = vadd.f32 %v1801_v34, %v1351_v35  ;;  %v2453_v18 = vmul.f32 0.3, %v2389_v27  ;;  %v1937_v0 = vadd.f32 %v15046_v49, %v1353_v10 }
 0x229   :  { %v2317_v56 = vadd.f32 %v2179_v52, %v1933_v38  ;;  %13131 = vmatmul.mubr.msk.f32.gmra.mxu1 %vm592_vm1, %v2514_v48  ;;  %3627 = vrot.lane.b32.xlu1 %v15056_v46, %s13817_s17  ;;  %v3370_v26 = vrot.slane %v15056_v46, 1 }
 0x22a   :  { %13133 = vmatprep.mubr.msk.f32.mxu1 %vm592_vm1, %v2515_v33  ;;  %v15063_v13 = vpop.f32.mrf.mxu1  ;;  %v2517_v39 = vmax.f32 %v2389_v27, %v2453_v18  ;;  %v1359_v27 = vsel %vm1238_vm3, %v1356_v60, %v1358_v57 }
 0x22b   :  { %v2388_v37 = vadd.f32 %v14961_v58, %v2317_v56  ;;  %v3368_v29 = vrot.slane %v15063_v13, 1  ;;  %v2185_v41 = vpop.permute.xlu0 %2184  ;;  %3625 = vrot.lane.b32.xlu0 %v15063_v13, %s13817_s17 }
 0x22c   :  { %v2320_v36 = vadd.f32 %v2185_v41, %v1936_v6  ;;  %v15070_v31 = vpop.permute.xlu1 %1806 }
 0x22d   :  { %v2452_v44 = vmul.f32 0.3, %v2388_v37  ;;  %v3371_v59 = vsel %vm1431_vm2, %v3368_v29, %v3370_v26  ;;  %v3369_v55 = vsel %vm1431_vm2, %v3366_v53, %v3368_v29 }
 0x22e   :  { %v2391_v4 = vadd.f32 %v14961_v58, %v2320_v36  ;;  %v1360_v36 = vrot.slane %v14862_v24, 7 }
 0x22f   :  { %v2516_v63 = vmax.f32 %v2388_v37, %v2452_v44  ;;  %v1805_v51 = vpop.permute.xlu0 %1804  ;;  %4009 = vrot.lane.b32.xlu0 %v3371_v59, %s13818_s29 }
 0x230   :  { %v2183_v1 = vpop.permute.xlu1 %2182  ;;  %v15080_v17 = vpop.f32.mrf.mxu1  ;;  %v1938_v45 = vadd.f32 %v1805_v51, %v1355_v32  ;;  %v2455_v50 = vmul.f32 0.3, %v2391_v4  ;;  %v1363_v30 = vsel %vm1238_vm3, %v1360_v36, %v1362_v9  ;;  %v1361_v42 = vsel %vm1238_vm3, %v1358_v57, %v1360_v36 }
 0x231   :  { %v2319_v62 = vadd.f32 %v2183_v1, %v1935_v20  ;;  %13134 = vmatmul.mubr.msk.f32.gmra.mxu1 %vm592_vm1, %v2516_v63  ;;  %3631 = vrot.lane.b32.xlu1 %v15080_v17, %s13817_s17  ;;  %v3374_v19 = vrot.slane %v15080_v17, 1  ;;  %v1939_v20 = vadd.f32 %v15070_v31, %v1357_v25  ;;  %v1364_v31 = vrot.slane %v14899_v3, 7 }
 0x232   :  { %13136 = vmatprep.mubr.msk.f32.mxu1 %vm592_vm1, %v2517_v39  ;;  %v15089_v14 = vpop.f32.mrf.mxu1  ;;  %v2519_v53 = vmax.f32 %v2391_v4, %v2455_v50  ;;  %v12305_v4 = vld [vmem:[%s18194_s5 + $0x18] sm:$0xf] }
 0x233   :  { %v2390_v12 = vadd.f32 %v14961_v58, %v2319_v62  ;;  %v3372_v61 = vrot.slane %v15089_v14, 1  ;;  %v2189_v15 = vpop.permute.xlu0 %2188  ;;  %3629 = vrot.lane.b32.xlu0 %v15089_v14, %s13817_s17  ;;  %13151 = vmatprep.subr.msk.mxu0 %vm785_vm0, %v12305_v4  ;;  %v1365_v10 = vsel %vm1238_vm3, %v1362_v9, %v1364_v31 }
 0x234   :  { %v2322_v8 = vadd.f32 %v2189_v15, %v1938_v45  ;;  %v1811_v28 = vpop.permute.xlu1 %1810  ;;  %13152 = vmatpush3.msk.msra.mxu0 %vm785_vm0, %v12305_v4 }
 0x235   :  { %v2454_v40 = vmul.f32 0.3, %v2390_v12  ;;  %4007 = vrot.lane.b32.xlu1 %v3369_v55, %s13818_s29  ;;  %v3375_v23 = vsel %vm1431_vm2, %v3372_v61, %v3374_v19  ;;  %v3373_v18 = vsel %vm1431_vm2, %v3370_v26, %v3372_v61  ;;  %v1941_v45 = vadd.f32 %v1811_v28, %v1361_v42 }
 0x236   :  { %v2393_v7 = vadd.f32 %v14961_v58, %v2322_v8 }
 0x237   :  { %v2518_v38 = vmax.f32 %v2390_v12, %v2454_v40  ;;  %v1809_v48 = vpop.permute.xlu0 %1808  ;;  %4013 = vrot.lane.b32.xlu0 %v3375_v23, %s13818_s29  ;;  %v12304_v23 = vld [vmem:[%s18194_s5 + $0x10] sm:$0xff] }
 0x238   :  { %v2187_v34 = vpop.permute.xlu1 %2186  ;;  %v15109_v5 = vpop.f32.mrf.mxu1  ;;  %v1940_v16 = vadd.f32 %v1809_v48, %v1359_v27  ;;  %v2457_v37 = vmul.f32 0.3, %v2393_v7  ;;  %13153 = vmatprep.subr.mxu0 %v12304_v23 }
 0x239   :  { %v2321_v33 = vadd.f32 %v2187_v34, %v1937_v0  ;;  %13137 = vmatmul.mubr.msk.f32.gmra.mxu1 %vm592_vm1, %v2518_v38  ;;  %3635 = vrot.lane.b32.xlu1 %v15109_v5, %s13817_s17  ;;  %v3378_v56 = vrot.slane %v15109_v5, 1 }
 0x23a   :  { %13139 = vmatprep.mubr.msk.f32.mxu1 %vm592_vm1, %v2519_v53  ;;  %v15116_v49 = vpop.f32.mrf.mxu1  ;;  %v2521_v24 = vmax.f32 %v2393_v7, %v2457_v37  ;;  %13154 = vmatpush3.msra.mxu0 %v12304_v23 }
 0x23b   :  { %v2392_v52 = vadd.f32 %v14961_v58, %v2321_v33  ;;  %v3376_v35 = vrot.slane %v15116_v49, 1  ;;  %v2193_v6 = vpop.permute.xlu0 %2192  ;;  %3633 = vrot.lane.b32.xlu0 %v15116_v49, %s13817_s17 }
 0x23c   :  { %v2324_v29 = vadd.f32 %v2193_v6, %v1940_v16  ;;  %v1815_v41 = vpop.permute.xlu1 %1814 }
 0x23d   :  { %v2456_v44 = vmul.f32 0.3, %v2392_v52  ;;  %4011 = vrot.lane.b32.xlu1 %v3373_v18, %s13818_s29  ;;  %v3379_v59 = vsel %vm1431_vm2, %v3376_v35, %v3378_v56  ;;  %v3377_v60 = vsel %vm1431_vm2, %v3374_v19, %v3376_v35  ;;  %v1943_v38 = vadd.f32 %v1815_v41, %v1365_v10 }
 0x23e   :  { %v2395_v54 = vadd.f32 %v14961_v58, %v2324_v29 }
 0x23f   :  { %v2520_v63 = vmax.f32 %v2392_v52, %v2456_v44  ;;  %v1813_v51 = vpop.permute.xlu0 %1812  ;;  %4017 = vrot.lane.b32.xlu0 %v3379_v59, %s13818_s29 }
 0x240   :  { %v2191_v26 = vpop.permute.xlu1 %2190  ;;  %v15138_v39 = vpop.f32.mrf.mxu1  ;;  %v1942_v62 = vadd.f32 %v1813_v51, %v1363_v30  ;;  %v2459_v50 = vmul.f32 0.3, %v2395_v54 }
 0x241   :  { %v2323_v1 = vadd.f32 %v2191_v26, %v1939_v20  ;;  %13140 = vmatmul.mubr.msk.f32.gmra.mxu1 %vm592_vm1, %v2520_v63  ;;  %3639 = vrot.lane.b32.xlu1 %v15138_v39, %s13817_s17  ;;  %v3382_v61 = vrot.slane %v15138_v39, 1 }
 0x242   :  { %13142 = vmatprep.mubr.msk.f32.mxu1 %vm592_vm1, %v2521_v24  ;;  %v15150_v32 = vpop.f32.mrf.mxu1  ;;  %v2523_v19 = vmax.f32 %v2395_v54, %v2459_v50 }
 0x243   :  { %v2394_v12 = vadd.f32 %v14961_v58, %v2323_v1  ;;  %v3380_v15 = vrot.slane %v15150_v32, 1  ;;  %3637 = vrot.lane.b32.xlu0 %v15150_v32, %s13817_s17  ;;  %v2197_v3 = vpop.permute.xlu0 %2196 }
 0x244   :  { %v2326_v8 = vadd.f32 %v2197_v3, %v1942_v62  ;;  %v2195_v55 = vpop.permute.xlu1 %2194 }
 0x245   :  { %v2458_v28 = vmul.f32 0.3, %v2394_v12  ;;  %v2325_v57 = vadd.f32 %v2195_v55, %v1941_v45  ;;  %4015 = vrot.lane.b32.xlu1 %v3377_v60, %s13818_s29  ;;  %v3383_v40 = vsel %vm1431_vm2, %v3380_v15, %v3382_v61  ;;  %v3381_v18 = vsel %vm1431_vm2, %v3378_v56, %v3380_v15 }
 0x246   :  { %v2397_v0 = vadd.f32 %v14961_v58, %v2326_v8 }
 0x247   :  { %v2522_v48 = vmax.f32 %v2394_v12, %v2458_v28  ;;  %v2396_v53 = vadd.f32 %v14961_v58, %v2325_v57  ;;  %4021 = vrot.lane.b32.xlu0 %v3383_v40, %s13818_s29 }
 0x248   :  { %v2461_v7 = vmul.f32 0.3, %v2397_v0  ;;  %v2199_v34 = vpop.permute.xlu1 %2198  ;;  %v15171_v33 = vpop.f32.mrf.mxu1 }
 0x249   :  { %v2460_v27 = vmul.f32 0.3, %v2396_v53  ;;  %v2327_v16 = vadd.f32 %v2199_v34, %v1943_v38  ;;  %13143 = vmatmul.mubr.msk.f32.gmra.mxu1 %vm592_vm1, %v2522_v48  ;;  %3643 = vrot.lane.b32.xlu1 %v15171_v33, %s13817_s17  ;;  %v3386_v29 = vrot.slane %v15171_v33, 1 }
 0x24a   :  { %v2525_v52 = vmax.f32 %v2397_v0, %v2461_v7  ;;  %13145 = vmatprep.mubr.msk.f32.mxu1 %vm592_vm1, %v2523_v19  ;;  %v15177_v35 = vpop.f32.mrf.mxu1 }
 0x24b   :  { %v2524_v6 = vmax.f32 %v2396_v53, %v2460_v27  ;;  %v2398_v37 = vadd.f32 %v14961_v58, %v2327_v16  ;;  %v3384_v41 = vrot.slane %v15177_v35, 1  ;;  %3641 = vrot.lane.b32.xlu0 %v15177_v35, %s13817_s17 }
 0x24d   :  { %v2462_v36 = vmul.f32 0.3, %v2398_v37  ;;  %13146 = vmatmul.mubr.msk.f32.gmra.mxu1 %vm592_vm1, %v2524_v6  ;;  %4019 = vrot.lane.b32.xlu1 %v3381_v18, %s13818_s29  ;;  %v3387_v9 = vsel %vm1431_vm2, %v3384_v41, %v3386_v29  ;;  %v3385_v20 = vsel %vm1431_vm2, %v3382_v61, %v3384_v41 }
 0x24e   :  { %13148 = vmatprep.mubr.msk.f32.mxu1 %vm592_vm1, %v2525_v52 }
 0x24f   :  { %v2526_v58 = vmax.f32 %v2398_v37, %v2462_v36  ;;  %4025 = vrot.lane.b32.xlu0 %v3387_v9, %s13818_s29 }
 0x250   :  { %v15192_v44 = vpop.f32.mrf.mxu1 }
 0x251   :  { %13149 = vmatmul.mubr.msk.f32.gmra.mxu1 %vm592_vm1, %v2526_v58  ;;  %3647 = vrot.lane.b32.xlu1 %v15192_v44, %s13817_s17  ;;  %v3390_v59 = vrot.slane %v15192_v44, 1 }
 0x252   :  { %v15197_v56 = vpop.f32.mrf.mxu1 }
 0x253   :  { %v3388_v25 = vrot.slane %v15197_v56, 1  ;;  %3645 = vrot.lane.b32.xlu0 %v15197_v56, %s13817_s17 }
 0x255   :  { %4023 = vrot.lane.b32.xlu1 %v3385_v20, %s13818_s29  ;;  %v3391_v63 = vsel %vm1431_vm2, %v3388_v25, %v3390_v59  ;;  %v3389_v4 = vsel %vm1431_vm2, %v3386_v29, %v3388_v25 }
 0x257   :  { %4029 = vrot.lane.b32.xlu0 %v3391_v63, %s13818_s29 }
 0x258   :  { %v15207_v51 = vpop.f32.mrf.mxu1 }
 0x259   :  { %3651 = vrot.lane.b32.xlu1 %v15207_v51, %s13817_s17  ;;  %v3394_v54 = vrot.slane %v15207_v51, 1 }
 0x25a   :  { %v15211_v24 = vpop.f32.mrf.mxu1 }
 0x25b   :  { %v3392_v26 = vrot.slane %v15211_v24, 1  ;;  %3649 = vrot.lane.b32.xlu0 %v15211_v24, %s13817_s17 }
 0x25d   :  { %4027 = vrot.lane.b32.xlu1 %v3389_v4, %s13818_s29  ;;  %v3395_v1 = vsel %vm1431_vm2, %v3392_v26, %v3394_v54  ;;  %v3393_v45 = vsel %vm1431_vm2, %v3390_v59, %v3392_v26  ;;  %v3173_v59 = vrot.slane %v15039_v22, 7 }
 0x25f   :  { %4033 = vrot.lane.b32.xlu0 %v3395_v1, %s13818_s29  ;;  %v3364_v26 = vsel %vm1238_vm3, 0.0, %v3173_v59 }
 0x260   :  { %v15221_v30 = vpop.f32.mrf.mxu1 }
 0x261   :  { %3655 = vrot.lane.b32.xlu1 %v15221_v30, %s13817_s17  ;;  %v3398_v42 = vrot.slane %v15221_v30, 1 }
 0x262   :  { %v15225_v31 = vpop.f32.mrf.mxu1 }
 0x263   :  { %v3396_v62 = vrot.slane %v15225_v31, 1  ;;  %3653 = vrot.lane.b32.xlu0 %v15225_v31, %s13817_s17 }
 0x265   :  { %4031 = vrot.lane.b32.xlu1 %v3393_v45, %s13818_s29  ;;  %v3399_v12 = vsel %vm1431_vm2, %v3396_v62, %v3398_v42  ;;  %v3397_v8 = vsel %vm1431_vm2, %v3394_v54, %v3396_v62 }
 0x267   :  { %4037 = vrot.lane.b32.xlu0 %v3399_v12, %s13818_s29 }
 0x268   :  { %v15235_v61 = vpop.f32.mrf.mxu1 }
 0x269   :  { %3659 = vrot.lane.b32.xlu1 %v15235_v61, %s13817_s17  ;;  %v3402_v3 = vrot.slane %v15235_v61, 1 }
 0x26a   :  { %v15239_v15 = vpop.f32.mrf.mxu1 }
 0x26b   :  { %v3400_v50 = vrot.slane %v15239_v15, 1  ;;  %3657 = vrot.lane.b32.xlu0 %v15239_v15, %s13817_s17 }
 0x26d   :  { %4035 = vrot.lane.b32.xlu1 %v3397_v8, %s13818_s29  ;;  %v3403_v55 = vsel %vm1431_vm2, %v3400_v50, %v3402_v3  ;;  %v3401_v23 = vsel %vm1431_vm2, %v3398_v42, %v3400_v50  ;;  %v3557_v42 = vsel %vm206_vm4, 0.0, %v3364_v26 }
 0x26f   :  { %4041 = vrot.lane.b32.xlu0 %v3403_v55, %s13818_s29 }
 0x270   :  { %v15249_v60 = vpop.f32.mrf.mxu1 }
 0x271   :  { %3663 = vrot.lane.b32.xlu1 %v15249_v60, %s13817_s17  ;;  %v3406_v57 = vrot.slane %v15249_v60, 1 }
 0x272   :  { %v15253_v28 = vpop.f32.mrf.mxu1 }
 0x273   :  { %v3404_v40 = vrot.slane %v15253_v28, 1  ;;  %3661 = vrot.lane.b32.xlu0 %v15253_v28, %s13817_s17 }
 0x275   :  { %4039 = vrot.lane.b32.xlu1 %v3401_v23, %s13818_s29  ;;  %v3407_v10 = vsel %vm1431_vm2, %v3404_v40, %v3406_v57  ;;  %v3405_v19 = vsel %vm1431_vm2, %v3402_v3, %v3404_v40  ;;  %v15329_v3 = vld [vmem:[%s18198_s0] ss:$0 sm:$0xff] }
 0x277   :  { %4045 = vrot.lane.b32.xlu0 %v3407_v10, %s13818_s29 }
 0x278   :  { %v15263_v0 = vpop.f32.mrf.mxu1 }
 0x279   :  { %3667 = vrot.lane.b32.xlu1 %v15263_v0, %s13817_s17  ;;  %v3410_v48 = vrot.slane %v15263_v0, 1 }
 0x27a   :  { %v15267_v38 = vpop.f32.mrf.mxu1 }
 0x27b   :  { %v3408_v53 = vrot.slane %v15267_v38, 1  ;;  %3665 = vrot.lane.b32.xlu0 %v15267_v38, %s13817_s17 }
 0x27d   :  { %4043 = vrot.lane.b32.xlu1 %v3405_v19, %s13818_s29  ;;  %v3411_v7 = vsel %vm1431_vm2, %v3408_v53, %v3410_v48  ;;  %v3409_v6 = vsel %vm1431_vm2, %v3406_v57, %v3408_v53  ;;  %v3176_v57 = vrot.slane %v15063_v13, 7  ;;  %v3174_v53 = vrot.slane %v15032_v11, 7 }
 0x27f   :  { %4049 = vrot.lane.b32.xlu0 %v3411_v7, %s13818_s29 }
 0x280   :  { %v15277_v34 = vpop.f32.mrf.mxu1 }
 0x281   :  { %3671 = vrot.lane.b32.xlu1 %v15277_v34, %s13817_s17  ;;  %v3414_v16 = vrot.slane %v15277_v34, 1 }
 0x282   :  { %v15281_v27 = vpop.f32.mrf.mxu1 }
 0x283   :  { %v3412_v52 = vrot.slane %v15281_v27, 1  ;;  %3669 = vrot.lane.b32.xlu0 %v15281_v27, %s13817_s17 }
 0x285   :  { %4047 = vrot.lane.b32.xlu1 %v3409_v6, %s13818_s29  ;;  %v3415_v37 = vsel %vm1431_vm2, %v3412_v52, %v3414_v16  ;;  %v3413_v9 = vsel %vm1431_vm2, %v3410_v48, %v3412_v52  ;;  %v3177_v52 = vsel %vm1238_vm3, %v3174_v53, %v3176_v57 }
 0x287   :  { %4053 = vrot.lane.b32.xlu0 %v3415_v37, %s13818_s29 }
 0x288   :  { %v15291_v29 = vpop.f32.mrf.mxu1 }
 0x289   :  { %3675 = vrot.lane.b32.xlu1 %v15291_v29, %s13817_s17  ;;  %v3418_v18 = vrot.slane %v15291_v29, 1 }
 0x28a   :  { %v15295_v41 = vpop.f32.mrf.mxu1 }
 0x28b   :  { %v3416_v36 = vrot.slane %v15295_v41, 1  ;;  %3673 = vrot.lane.b32.xlu0 %v15295_v41, %s13817_s17 }
 0x28d   :  { %4051 = vrot.lane.b32.xlu1 %v3413_v9, %s13818_s29  ;;  %v3419_v58 = vsel %vm1431_vm2, %v3416_v36, %v3418_v18  ;;  %v3417_v4 = vsel %vm1431_vm2, %v3414_v16, %v3416_v36  ;;  %v3180_v9 = vrot.slane %v15089_v14, 7 }
 0x28f   :  { %4057 = vrot.lane.b32.xlu0 %v3419_v58, %s13818_s29 }
 0x290   :  { %v15306_v25 = vpop.f32.mrf.mxu1 }
 0x291   :  { %3679 = vrot.lane.b32.xlu1 %v15306_v25, %s13817_s17  ;;  %v3422_v63 = vrot.slane %v15306_v25, 1 }
 0x292   :  { %v15310_v20 = vpop.f32.mrf.mxu1 }
 0x293   :  { %v3420_v54 = vrot.slane %v15310_v20, 1  ;;  %3677 = vrot.lane.b32.xlu0 %v15310_v20, %s13817_s17  ;;  %v3624_v40 = vpop.permute.xlu1 %3623 }
 0x295   :  { %v3622_v1 = vpop.permute.xlu0 %3621  ;;  %4055 = vrot.lane.b32.xlu1 %v3417_v4, %s13818_s29  ;;  %v3423_v22 = vsel %vm1431_vm2, %v3420_v54, %v3422_v63  ;;  %v3421_v12 = vsel %vm1431_vm2, %v3418_v18, %v3420_v54 }
 0x296   :  { %v3813_v62 = vadd.f32 %v3622_v1, %v3557_v42  ;;  %v3175_v42 = vsel %vm1238_vm3, %v3173_v59, %v3174_v53 }
 0x297   :  { %4061 = vrot.lane.b32.xlu0 %v3423_v22, %s13818_s29  ;;  %v3178_v22 = vrot.slane %v15056_v46, 7 }
 0x298   :  { %v15323_v45 = vpop.f32.mrf.mxu1 }
 0x299   :  { %v4006_v50 = vpop.permute.xlu0 %4005  ;;  %4059 = vrot.lane.b32.xlu1 %v3421_v12, %s13818_s29  ;;  %v3426_v23 = vrot.slane %v15323_v45, 1 }
 0x29a   :  { %v4197_v8 = vadd.f32 %v4006_v50, %v3813_v62  ;;  %v15332_v55 = vpop.f32.mrf.mxu1  ;;  %v3814_v50 = vadd.f32 %v3624_v40, %v3175_v42 }
 0x29b   :  { %v3424_v10 = vrot.slane %v15332_v55, 1  ;;  %3681 = vrot.lane.b32.xlu0 %v15332_v55, %s13817_s17  ;;  %v3628_v13 = vpop.permute.xlu1 %3627 }
 0x29c   :  { %v4268_v48 = vadd.f32 %v15329_v3, %v4197_v8 }
 0x29d   :  { %v3626_v19 = vpop.permute.xlu0 %3625  ;;  %3683 = vrot.lane.b32.xlu1 %v15323_v45, %s13817_s17  ;;  %v3427_v7 = vsel %vm1431_vm2, %v3424_v10, %v3426_v23  ;;  %v3425_v12 = vsel %vm1431_vm2, %v3422_v63, %v3424_v10 }
 0x29e   :  { %v4332_v16 = vmul.f32 0.3, %v4268_v48  ;;  %v3815_v37 = vadd.f32 %v3626_v19, %v3177_v52  ;;  %v3181_v19 = vsel %vm1238_vm3, %v3178_v22, %v3180_v9 }
 0x29f   :  { %4065 = vrot.lane.b32.xlu0 %v3427_v7, %s13818_s29 }
 0x2a0   :  { %v4396_v6 = vmax.f32 %v4268_v48, %v4332_v16 }
 0x2a1   :  { %v15346_v18 = vpop.f32.mrf.mxu1  ;;  %v4010_v36 = vpop.permute.xlu0 %4009 }
 0x2a2   :  { %4460 = vst.msk [vmem:[#allocation2] sm:$0xff] %vm592_vm1, %v4396_v6  ;;  %v4199_v11 = vadd.f32 %v4010_v36, %v3815_v37  ;;  %3687 = vrot.lane.b32.xlu1 %v15346_v18, %s13817_s17  ;;  %v3430_v26 = vrot.slane %v15346_v18, 1  ;;  %v3184_v6 = vrot.slane %v15116_v49, 7 }
 0x2a3   :  { %v15352_v58 = vpop.f32.mrf.mxu1  ;;  %v15354_v54 = vpop.permute.xlu1 %3631 }
 0x2a4   :  { %v4270_v4 = vadd.f32 %v15329_v3, %v4199_v11  ;;  %v3428_v1 = vrot.slane %v15352_v58, 1  ;;  %3685 = vrot.lane.b32.xlu0 %v15352_v58, %s13817_s17 }
 0x2a5   :  { %v3630_v62 = vpop.permute.xlu0 %3629 }
 0x2a6   :  { %v4334_v8 = vmul.f32 0.3, %v4270_v4  ;;  %4063 = vrot.lane.b32.xlu1 %v3425_v12, %s13818_s29  ;;  %v3431_v48 = vsel %vm1431_vm2, %v3428_v1, %v3430_v26  ;;  %v3817_v46 = vadd.f32 %v3630_v62, %v3181_v19  ;;  %v3429_v52 = vsel %vm1431_vm2, %v3426_v23, %v3428_v1 }
 0x2a7   :  { %v4008_v7 = vpop.permute.xlu1 %4007  ;;  %v3182_v12 = vrot.slane %v15080_v17, 7  ;;  %v3179_v23 = vsel %vm1238_vm3, %v3176_v57, %v3178_v22 }
 0x2a8   :  { %v4398_v16 = vmax.f32 %v4270_v4, %v4334_v8  ;;  %4069 = vrot.lane.b32.xlu0 %v3431_v48, %s13818_s29  ;;  %v4198_v59 = vadd.f32 %v4008_v7, %v3814_v50  ;;  %v3908_v50 = vsel %vm301_vm5, 0.0, %v3429_v52  ;;  %v3816_v8 = vadd.f32 %v3628_v13, %v3179_v23 }
 0x2a9   :  { %v15372_v53 = vpop.f32.mrf.mxu1  ;;  %v4014_v63 = vpop.permute.xlu0 %4013 }
 0x2aa   :  { %4462 = vst.msk [vmem:[#allocation2 + $0x10] sm:$0xff] %vm592_vm1, %v4398_v16  ;;  %v4269_v40 = vadd.f32 %v15329_v3, %v4198_v59  ;;  %v4201_v10 = vadd.f32 %v4014_v63, %v3817_v46  ;;  %3691 = vrot.lane.b32.xlu1 %v15372_v53, %s13817_s17  ;;  %v3434_v4 = vrot.slane %v15372_v53, 1  ;;  %v3185_v16 = vsel %vm1238_vm3, %v3182_v12, %v3184_v6 }
 0x2ab   :  { %v15380_v37 = vpop.f32.mrf.mxu1  ;;  %v15382_v36 = vpop.permute.xlu1 %3635 }
 0x2ac   :  { %v4333_v11 = vmul.f32 0.3, %v4269_v40  ;;  %v4272_v42 = vadd.f32 %v15329_v3, %v4201_v10  ;;  %v3432_v62 = vrot.slane %v15380_v37, 1  ;;  %3689 = vrot.lane.b32.xlu0 %v15380_v37, %s13817_s17  ;;  %v3188_v10 = vrot.slane %v15150_v32, 7 }
 0x2ad   :  { %v3634_v1 = vpop.permute.xlu0 %3633  ;;  %v3240_v21 = vrot.slane %v15380_v37, 7 }
 0x2ae   :  { %v4397_v48 = vmax.f32 %v4269_v40, %v4333_v11  ;;  %v4336_v19 = vmul.f32 0.3, %v4272_v42  ;;  %4067 = vrot.lane.b32.xlu1 %v3908_v50, %s13818_s29  ;;  %v3435_v7 = vsel %vm1431_vm2, %v3432_v62, %v3434_v4  ;;  %v3819_v22 = vadd.f32 %v3634_v1, %v3185_v16 }
 0x2af   :  { %v4012_v17 = vpop.permute.xlu1 %4011 }
 0x2b0   :  { %4461 = vst.msk [vmem:[#allocation2 + $0x8] sm:$0xff] %vm592_vm1, %v4397_v48  ;;  %v4400_v57 = vmax.f32 %v4272_v42, %v4336_v19  ;;  %4073 = vrot.lane.b32.xlu0 %v3435_v7, %s13818_s29  ;;  %v4200_v13 = vadd.f32 %v4012_v17, %v3816_v8  ;;  %v3186_v8 = vrot.slane %v15109_v5, 7  ;;  %v3183_v48 = vsel %vm1238_vm3, %v3180_v9, %v3182_v12 }
 0x2b1   :  { %v15402_v46 = vpop.f32.mrf.mxu1  ;;  %v4018_v59 = vpop.permute.xlu0 %4017  ;;  %v3433_v7 = vsel %vm1431_vm2, %v3430_v26, %v3432_v62  ;;  %v3818_v16 = vadd.f32 %v15354_v54, %v3183_v48  ;;  %v3192_v48 = vrot.slane %v15177_v35, 7 }
 0x2b2   :  { %4464 = vst.msk [vmem:[#allocation2 + $0x20] sm:$0xff] %vm592_vm1, %v4400_v57  ;;  %v4271_v63 = vadd.f32 %v15329_v3, %v4200_v13  ;;  %v4203_v40 = vadd.f32 %v4018_v59, %v3819_v22  ;;  %3695 = vrot.lane.b32.xlu1 %v15402_v46, %s13817_s17  ;;  %v3438_v23 = vrot.slane %v15402_v46, 1  ;;  %v3189_v14 = vsel %vm1238_vm3, %v3186_v8, %v3188_v10 }
 0x2b3   :  { %v15409_v52 = vpop.f32.mrf.mxu1  ;;  %v15411_v11 = vpop.permute.xlu1 %3639 }
 0x2b4   :  { %v4335_v42 = vmul.f32 0.3, %v4271_v63  ;;  %v4274_v1 = vadd.f32 %v15329_v3, %v4203_v40  ;;  %v3436_v50 = vrot.slane %v15409_v52, 1  ;;  %3693 = vrot.lane.b32.xlu0 %v15409_v52, %s13817_s17 }
 0x2b5   :  { %v3638_v19 = vpop.permute.xlu0 %3637 }
 0x2b6   :  { %v4399_v17 = vmax.f32 %v4271_v63, %v4335_v42  ;;  %v4338_v57 = vmul.f32 0.3, %v4274_v1  ;;  %4071 = vrot.lane.b32.xlu1 %v3433_v7, %s13818_s29  ;;  %v3439_v22 = vsel %vm1431_vm2, %v3436_v50, %v3438_v23  ;;  %v3821_v62 = vadd.f32 %v3638_v19, %v3189_v14 }
 0x2b7   :  { %v4016_v5 = vpop.permute.xlu1 %4015  ;;  %v4524_v9 = vld [vmem:[#allocation2] ss:$2 sm:$0xff]  ;;  %v4588_v12 = vld [vmem:[#allocation2 + $0x1] ss:$2 sm:$0xff]  ;;  %v3190_v14 = vrot.slane %v15138_v39, 7 }
 0x2b8   :  { %4463 = vst.msk [vmem:[#allocation2 + $0x18] sm:$0xff] %vm592_vm1, %v4399_v17  ;;  %v4402_v26 = vmax.f32 %v4274_v1, %v4338_v57  ;;  %4077 = vrot.lane.b32.xlu0 %v3439_v22, %s13818_s29  ;;  %v4202_v54 = vadd.f32 %v4016_v5, %v3818_v16  ;;  %v4651_v13 = vmax.f32 %v4524_v9, %v4588_v12 }
 0x2b9   :  { %v15435_v59 = vpop.f32.mrf.mxu1  ;;  %v4022_v63 = vpop.permute.xlu0 %4021  ;;  %v3187_v5 = vsel %vm1238_vm3, %v3184_v6, %v3186_v8  ;;  %v3437_v12 = vsel %vm1431_vm2, %v3434_v4, %v3436_v50  ;;  %v3193_v49 = vsel %vm1238_vm3, %v3190_v14, %v3192_v48 }
 0x2ba   :  { %4466 = vst.msk [vmem:[#allocation2 + $0x30] sm:$0xff] %vm592_vm1, %v4402_v26  ;;  %v4273_v40 = vadd.f32 %v15329_v3, %v4202_v54  ;;  %v4205_v42 = vadd.f32 %v4022_v63, %v3821_v62  ;;  %3699 = vrot.lane.b32.xlu1 %v15435_v59, %s13817_s17  ;;  %v4683_v19 = vmul.f32 0.3, %v4651_v13  ;;  %v18162_v17 = vrot.slane %v15435_v59, 1 }
 0x2bb   :  { %v15442_v7 = vpop.f32.mrf.mxu1  ;;  %v15444_v1 = vpop.permute.xlu1 %3643  ;;  %v3820_v62 = vadd.f32 %v15382_v36, %v3187_v5 }
 0x2bc   :  { %v4337_v16 = vmul.f32 0.3, %v4273_v40  ;;  %v4276_v57 = vadd.f32 %v15329_v3, %v4205_v42  ;;  %v3440_v22 = vrot.slane %v15442_v7, 1  ;;  %3697 = vrot.lane.b32.xlu0 %v15442_v7, %s13817_s17  ;;  %v4715_v26 = vmax.f32 %v4651_v13, %v4683_v19 }
 0x2bd   :  { %v3642_v9 = vpop.permute.xlu0 %3641 }
 0x2be   :  { %v4401_v54 = vmax.f32 %v4273_v40, %v4337_v16  ;;  %v4340_v63 = vmul.f32 0.3, %v4276_v57  ;;  %4075 = vrot.lane.b32.xlu1 %v3437_v12, %s13818_s29  ;;  %v3443_v39 = vsel %vm1431_vm2, %v3440_v22, %v18162_v17  ;;  %13155 = vmatprep.mubr.msk.f32.mxu0 %vm592_vm1, %v4715_v26  ;;  %v3823_v50 = vadd.f32 %v3642_v9, %v3193_v49 }
 0x2bf   :  { %v4020_v6 = vpop.permute.xlu1 %4019  ;;  %v4526_v8 = vld [vmem:[#allocation2 + $0x10] ss:$2 sm:$0xff]  ;;  %v4590_v4 = vld [vmem:[#allocation2 + $0x11] ss:$2 sm:$0xff]  ;;  %v3191_v16 = vsel %vm1238_vm3, %v3188_v10, %v3190_v14  ;;  %v18165_v9 = vrot.slane %v15197_v56, 7  ;;  %v18164_v49 = vrot.slane %v15435_v59, 7 }
 0x2c0   :  { %4465 = vst.msk [vmem:[#allocation2 + $0x28] sm:$0xff] %vm592_vm1, %v4401_v54  ;;  %v4404_v36 = vmax.f32 %v4276_v57, %v4340_v63  ;;  %4081 = vrot.lane.b32.xlu0 %v3443_v39, %s13818_s29  ;;  %v4204_v13 = vadd.f32 %v4020_v6, %v3820_v62  ;;  %v4652_v40 = vmax.f32 %v4526_v8, %v4590_v4  ;;  %v3194_v57 = vrot.slane %v15171_v33, 7 }
 0x2c1   :  { %v15469_v42 = vpop.f32.mrf.mxu1  ;;  %v4026_v19 = vpop.permute.xlu0 %4025  ;;  %v3441_v8 = vsel %vm1431_vm2, %v3438_v23, %v3440_v22 }
 0x2c2   :  { %4468 = vst.msk [vmem:[#allocation2 + $0x40] sm:$0xff] %vm592_vm1, %v4404_v36  ;;  %v4275_v5 = vadd.f32 %v15329_v3, %v4204_v13  ;;  %v4207_v12 = vadd.f32 %v4026_v19, %v3823_v50  ;;  %3703 = vrot.lane.b32.xlu1 %v15469_v42, %s13817_s17  ;;  %v18163_v26 = vrot.slane %v15469_v42, 1  ;;  %v4684_v32 = vmul.f32 0.3, %v4652_v40 }
 0x2c3   :  { %v2990_v62 = vpop.f32.mrf.mxu1  ;;  %v15481_v54 = vpop.permute.xlu1 %3647  ;;  %v3254_v6 = vrot.slane %v15469_v42, 7  ;;  %v3822_v36 = vadd.f32 %v15411_v11, %v3191_v16 }
 0x2c4   :  { %v4339_v63 = vmul.f32 0.3, %v4275_v5  ;;  %v4278_v10 = vadd.f32 %v15329_v3, %v4207_v12  ;;  %v3252_v14 = vrot.slane %v2990_v62, 7  ;;  %v3444_v39 = vrot.slane %v2990_v62, 1  ;;  %3701 = vrot.lane.b32.xlu0 %v2990_v62, %s13817_s17 }
 0x2c5   :  { %v3646_v33 = vpop.permute.xlu0 %3645  ;;  %v4716_v4 = vmax.f32 %v4652_v40, %v4684_v32  ;;  %v3197_v12 = vsel %vm1238_vm3, %v3194_v57, %v18165_v9 }
 0x2c6   :  { %v4403_v50 = vmax.f32 %v4275_v5, %v4339_v63  ;;  %v4342_v13 = vmul.f32 0.3, %v4278_v10  ;;  %4079 = vrot.lane.b32.xlu1 %v3441_v8, %s13818_s29  ;;  %v3447_v19 = vsel %vm1431_vm2, %v3444_v39, %v18163_v26  ;;  %v15500_v22 = vsel %vm1238_vm3, %v3252_v14, %v3254_v6 }
 0x2c7   :  { %13156 = vmatmul.mubr.msk.f32.vlgmr.msra.gmra.mxu0 %vm592_vm1, %v4716_v4  ;;  %v4024_v62 = vpop.permute.xlu1 %4023  ;;  %v4528_v17 = vld [vmem:[#allocation2 + $0x20] ss:$2 sm:$0xff]  ;;  %v4592_v23 = vld [vmem:[#allocation2 + $0x21] ss:$2 sm:$0xff]  ;;  %v15505_v11 = vsel %vm1238_vm3, %v18164_v49, %v3252_v14  ;;  %v3825_v16 = vadd.f32 %v3646_v33, %v3197_v12  ;;  %v18167_v14 = vrot.slane %v15211_v24, 7 }
 0x2c8   :  { %4467 = vst.msk [vmem:[#allocation2 + $0x38] sm:$0xff] %vm592_vm1, %v4403_v50  ;;  %v4406_v40 = vmax.f32 %v4278_v10, %v4342_v13  ;;  %4085 = vrot.lane.b32.xlu0 %v3447_v19, %s13818_s29  ;;  %v4206_v5 = vadd.f32 %v4024_v62, %v3822_v36  ;;  %v4653_v32 = vmax.f32 %v4528_v17, %v4592_v23  ;;  %v3198_v23 = vrot.slane %v15192_v44, 7 }
 0x2c9   :  { %v15509_v63 = vpop.f32.mrf.mxu1  ;;  %v4030_v8 = vpop.permute.xlu0 %4029  ;;  %v3195_v10 = vsel %vm1238_vm3, %v3192_v48, %v3194_v57  ;;  %v18199_v48 = vrot.slane %v15435_v59, 1 }
 0x2ca   :  { %4470 = vst.msk [vmem:[#allocation2 + $0x50] sm:$0xff] %vm592_vm1, %v4406_v40  ;;  %v4277_v4 = vadd.f32 %v15329_v3, %v4206_v5  ;;  %v4209_v26 = vadd.f32 %v4030_v8, %v3825_v16  ;;  %3707 = vrot.lane.b32.xlu1 %v15509_v63, %s13817_s17  ;;  %v18166_v33 = vrot.slane %v15509_v63, 1  ;;  %v4685_v50 = vmul.f32 0.3, %v4653_v32 }
 0x2cb   :  { %v3000_v17 = vpop.f32.mrf.mxu1  ;;  %v15520_v36 = vpop.permute.xlu1 %3651  ;;  %v3258_v40 = vrot.slane %v15509_v63, 7  ;;  %v3445_v57 = vsel %vm1431_vm2, %v18199_v48, %v3444_v39  ;;  %v3824_v5 = vadd.f32 %v15444_v1, %v3195_v10  ;;  %v3201_v44 = vsel %vm1238_vm3, %v3198_v23, %v18167_v14 }
 0x2cc   :  { %v4341_v13 = vmul.f32 0.3, %v4277_v4  ;;  %v4280_v19 = vadd.f32 %v15329_v3, %v4209_v26  ;;  %v3256_v12 = vrot.slane %v3000_v17, 7  ;;  %v3448_v62 = vrot.slane %v3000_v17, 1  ;;  %3705 = vrot.lane.b32.xlu0 %v3000_v17, %s13817_s17 }
 0x2cd   :  { %v3650_v35 = vpop.permute.xlu0 %3649  ;;  %v4717_v16 = vmax.f32 %v4653_v32, %v4685_v50 }
 0x2ce   :  { %v4405_v8 = vmax.f32 %v4277_v4, %v4341_v13  ;;  %v4344_v49 = vmul.f32 0.3, %v4280_v19  ;;  %4083 = vrot.lane.b32.xlu1 %v3445_v57, %s13818_s29  ;;  %v3451_v26 = vsel %vm1431_vm2, %v3448_v62, %v18166_v33  ;;  %v15539_v32 = vsel %vm1238_vm3, %v3256_v12, %v3258_v40 }
 0x2cf   :  { %13158 = vmatprep.mubr.msk.f32.mxu0 %vm592_vm1, %v4717_v16  ;;  %v4028_v17 = vpop.permute.xlu1 %4027  ;;  %v4530_v9 = vld [vmem:[#allocation2 + $0x30] ss:$2 sm:$0xff]  ;;  %v4594_v39 = vld [vmem:[#allocation2 + $0x31] ss:$2 sm:$0xff]  ;;  %v15542_v1 = vsel %vm1238_vm3, %v3254_v6, %v3256_v12  ;;  %v3827_v10 = vadd.f32 %v3650_v35, %v3201_v44  ;;  %v18169_v6 = vrot.slane %v15225_v31, 7 }
 0x2d0   :  { %4469 = vst.msk [vmem:[#allocation2 + $0x48] sm:$0xff] %vm592_vm1, %v4405_v8  ;;  %v4408_v4 = vmax.f32 %v4280_v19, %v4344_v49  ;;  %4089 = vrot.lane.b32.xlu0 %v3451_v26, %s13818_s29  ;;  %v4208_v50 = vadd.f32 %v4028_v17, %v3824_v5  ;;  %v4654_v13 = vmax.f32 %v4530_v9, %v4594_v39  ;;  %v18200_v49 = vrot.slane %v15197_v56, 7 }
 0x2d1   :  { %v15546_v48 = vpop.f32.mrf.mxu1  ;;  %v4034_v57 = vpop.permute.xlu0 %4033  ;;  %v3202_v39 = vrot.slane %v15207_v51, 7 }
 0x2d2   :  { %4472 = vst.msk [vmem:[#allocation2 + $0x60] sm:$0xff] %vm592_vm1, %v4408_v4  ;;  %v4279_v16 = vadd.f32 %v15329_v3, %v4208_v50  ;;  %v4211_v33 = vadd.f32 %v4034_v57, %v3827_v10  ;;  %3711 = vrot.lane.b32.xlu1 %v15546_v48, %s13817_s17  ;;  %v3199_v19 = vsel %vm1238_vm3, %v18200_v49, %v3198_v23  ;;  %v18168_v12 = vrot.slane %v15546_v48, 1 }
 0x2d3   :  { %v3010_v9 = vpop.f32.mrf.mxu1  ;;  %v15557_v35 = vpop.permute.xlu1 %3655  ;;  %v4686_v5 = vmul.f32 0.3, %v4654_v13  ;;  %v3262_v4 = vrot.slane %v15546_v48, 7  ;;  %v18201_v23 = vrot.slane %v15469_v42, 1  ;;  %v3826_v57 = vadd.f32 %v15481_v54, %v3199_v19 }
 0x2d4   :  { %v4343_v8 = vmul.f32 0.3, %v4279_v16  ;;  %v4282_v26 = vadd.f32 %v15329_v3, %v4211_v33  ;;  %v3260_v44 = vrot.slane %v3010_v9, 7  ;;  %v3452_v17 = vrot.slane %v3010_v9, 1  ;;  %3709 = vrot.lane.b32.xlu0 %v3010_v9, %s13817_s17 }
 0x2d5   :  { %v3654_v56 = vpop.permute.xlu0 %3653  ;;  %v3449_v10 = vsel %vm1431_vm2, %v18201_v23, %v3448_v62  ;;  %v4718_v50 = vmax.f32 %v4654_v13, %v4686_v5  ;;  %v3205_v51 = vsel %vm1238_vm3, %v3202_v39, %v18169_v6 }
 0x2d6   :  { %v4407_v49 = vmax.f32 %v4279_v16, %v4343_v8  ;;  %v4346_v14 = vmul.f32 0.3, %v4282_v26  ;;  %4087 = vrot.lane.b32.xlu1 %v3449_v10, %s13818_s29  ;;  %v3455_v33 = vsel %vm1431_vm2, %v3452_v17, %v18168_v12  ;;  %v15576_v13 = vsel %vm1238_vm3, %v3260_v44, %v3262_v4 }
 0x2d7   :  { %13159 = vmatmul.mubr.msk.f32.gmra.mxu0 %vm592_vm1, %v4718_v50  ;;  %v4032_v42 = vpop.permute.xlu1 %4031  ;;  %v4532_v9 = vld [vmem:[#allocation2 + $0x40] ss:$2 sm:$0xff]  ;;  %v4596_v62 = vld [vmem:[#allocation2 + $0x41] ss:$2 sm:$0xff]  ;;  %v15579_v54 = vsel %vm1238_vm3, %v3258_v40, %v3260_v44  ;;  %v3829_v19 = vadd.f32 %v3654_v56, %v3205_v51  ;;  %v18171_v40 = vrot.slane %v15239_v15, 7 }
 0x2d8   :  { %4471 = vst.msk [vmem:[#allocation2 + $0x58] sm:$0xff] %vm592_vm1, %v4407_v49  ;;  %v4410_v16 = vmax.f32 %v4282_v26, %v4346_v14  ;;  %4093 = vrot.lane.b32.xlu0 %v3455_v33, %s13818_s29  ;;  %v4210_v5 = vadd.f32 %v4032_v42, %v3826_v57  ;;  %v4655_v8 = vmax.f32 %v4532_v9, %v4596_v62  ;;  %v18202_v14 = vrot.slane %v15211_v24, 7 }
 0x2d9   :  { %v15583_v23 = vpop.f32.mrf.mxu1  ;;  %v4038_v10 = vpop.permute.xlu0 %4037  ;;  %v3206_v62 = vrot.slane %v15221_v30, 7 }
 0x2da   :  { %4474 = vst.msk [vmem:[#allocation2 + $0x70] sm:$0xff] %vm592_vm1, %v4410_v16  ;;  %v4281_v50 = vadd.f32 %v15329_v3, %v4210_v5  ;;  %v4213_v12 = vadd.f32 %v4038_v10, %v3829_v19  ;;  %3715 = vrot.lane.b32.xlu1 %v15583_v23, %s13817_s17  ;;  %v3203_v26 = vsel %vm1238_vm3, %v18202_v14, %v3202_v39  ;;  %v18170_v44 = vrot.slane %v15583_v23, 1 }
 0x2db   :  { %v3020_v56 = vpop.f32.mrf.mxu1  ;;  %v15594_v57 = vpop.permute.xlu1 %3659  ;;  %v4687_v49 = vmul.f32 0.3, %v4655_v8  ;;  %v3266_v16 = vrot.slane %v15583_v23, 7  ;;  %v18203_v39 = vrot.slane %v15509_v63, 1  ;;  %v3828_v10 = vadd.f32 %v15520_v36, %v3203_v26 }
 0x2dc   :  { %v4345_v33 = vmul.f32 0.3, %v4281_v50  ;;  %v4284_v51 = vadd.f32 %v15329_v3, %v4213_v12  ;;  %v3264_v42 = vrot.slane %v3020_v56, 7  ;;  %v3456_v9 = vrot.slane %v3020_v56, 1  ;;  %3713 = vrot.lane.b32.xlu0 %v3020_v56, %s13817_s17 }
 0x2dd   :  { %v3658_v24 = vpop.permute.xlu0 %3657  ;;  %v3453_v19 = vsel %vm1431_vm2, %v18203_v39, %v3452_v17  ;;  %v4719_v5 = vmax.f32 %v4655_v8, %v4687_v49  ;;  %v3209_v30 = vsel %vm1238_vm3, %v3206_v62, %v18171_v40 }
 0x2de   :  { %v4409_v14 = vmax.f32 %v4281_v50, %v4345_v33  ;;  %v4348_v6 = vmul.f32 0.3, %v4284_v51  ;;  %4091 = vrot.lane.b32.xlu1 %v3453_v19, %s13818_s29  ;;  %v3459_v12 = vsel %vm1431_vm2, %v3456_v9, %v18170_v44  ;;  %v15613_v8 = vsel %vm1238_vm3, %v3264_v42, %v3266_v16 }
 0x2df   :  { %13161 = vmatprep.mubr.msk.f32.mxu0 %vm592_vm1, %v4719_v5  ;;  %v4036_v63 = vpop.permute.xlu1 %4035  ;;  %v4534_v56 = vld [vmem:[#allocation2 + $0x50] ss:$2 sm:$0xff]  ;;  %v4598_v17 = vld [vmem:[#allocation2 + $0x51] ss:$2 sm:$0xff]  ;;  %v15616_v36 = vsel %vm1238_vm3, %v3262_v4, %v3264_v42  ;;  %v3831_v26 = vadd.f32 %v3658_v24, %v3209_v30  ;;  %v18173_v4 = vrot.slane %v15253_v28, 7 }
 0x2e0   :  { %4473 = vst.msk [vmem:[#allocation2 + $0x68] sm:$0xff] %vm592_vm1, %v4409_v14  ;;  %v4412_v50 = vmax.f32 %v4284_v51, %v4348_v6  ;;  %4097 = vrot.lane.b32.xlu0 %v3459_v12, %s13818_s29  ;;  %v4212_v49 = vadd.f32 %v4036_v63, %v3828_v10  ;;  %v4656_v33 = vmax.f32 %v4534_v56, %v4598_v17  ;;  %v18204_v6 = vrot.slane %v15225_v31, 7 }
 0x2e1   :  { %v15620_v39 = vpop.f32.mrf.mxu1  ;;  %v4042_v19 = vpop.permute.xlu0 %4041  ;;  %v3210_v17 = vrot.slane %v15235_v61, 7 }
 0x2e2   :  { %4476 = vst.msk [vmem:[#allocation2 + $0x80] sm:$0xff] %vm592_vm1, %v4412_v50  ;;  %v4283_v5 = vadd.f32 %v15329_v3, %v4212_v49  ;;  %v4215_v44 = vadd.f32 %v4042_v19, %v3831_v26  ;;  %3719 = vrot.lane.b32.xlu1 %v15620_v39, %s13817_s17  ;;  %v3207_v51 = vsel %vm1238_vm3, %v18204_v6, %v3206_v62  ;;  %v18172_v42 = vrot.slane %v15620_v39, 1 }
 0x2e3   :  { %v3030_v24 = vpop.f32.mrf.mxu1  ;;  %v15631_v10 = vpop.permute.xlu1 %3663  ;;  %v4688_v14 = vmul.f32 0.3, %v4656_v33  ;;  %v3270_v50 = vrot.slane %v15620_v39, 7  ;;  %v18205_v62 = vrot.slane %v15546_v48, 1  ;;  %v3830_v19 = vadd.f32 %v15557_v35, %v3207_v51 }
 0x2e4   :  { %v4347_v12 = vmul.f32 0.3, %v4283_v5  ;;  %v4286_v30 = vadd.f32 %v15329_v3, %v4215_v44  ;;  %v3268_v63 = vrot.slane %v3030_v24, 7  ;;  %v3460_v56 = vrot.slane %v3030_v24, 1  ;;  %3717 = vrot.lane.b32.xlu0 %v3030_v24, %s13817_s17 }
 0x2e5   :  { %v3662_v31 = vpop.permute.xlu0 %3661  ;;  %v3457_v26 = vsel %vm1431_vm2, %v18205_v62, %v3456_v9  ;;  %v4720_v49 = vmax.f32 %v4656_v33, %v4688_v14  ;;  %v3213_v61 = vsel %vm1238_vm3, %v3210_v17, %v18173_v4 }
 0x2e6   :  { %v4411_v6 = vmax.f32 %v4283_v5, %v4347_v12  ;;  %v4350_v40 = vmul.f32 0.3, %v4286_v30  ;;  %4095 = vrot.lane.b32.xlu1 %v3457_v26, %s13818_s29  ;;  %v3463_v44 = vsel %vm1431_vm2, %v3460_v56, %v18172_v42  ;;  %v15650_v33 = vsel %vm1238_vm3, %v3268_v63, %v3270_v50 }
 0x2e7   :  { %13162 = vmatmul.mubr.msk.f32.gmra.mxu0 %vm592_vm1, %v4720_v49  ;;  %v4040_v48 = vpop.permute.xlu1 %4039  ;;  %v4536_v24 = vld [vmem:[#allocation2 + $0x60] ss:$2 sm:$0xff]  ;;  %v4600_v9 = vld [vmem:[#allocation2 + $0x61] ss:$2 sm:$0xff]  ;;  %v15653_v35 = vsel %vm1238_vm3, %v3266_v16, %v3268_v63  ;;  %v3833_v51 = vadd.f32 %v3662_v31, %v3213_v61  ;;  %v18175_v16 = vrot.slane %v15267_v38, 7 }
 0x2e8   :  { %4475 = vst.msk [vmem:[#allocation2 + $0x78] sm:$0xff] %vm592_vm1, %v4411_v6  ;;  %v4414_v5 = vmax.f32 %v4286_v30, %v4350_v40  ;;  %4101 = vrot.lane.b32.xlu0 %v3463_v44, %s13818_s29  ;;  %v4214_v14 = vadd.f32 %v4040_v48, %v3830_v19  ;;  %v4657_v12 = vmax.f32 %v4536_v24, %v4600_v9  ;;  %v18206_v40 = vrot.slane %v15239_v15, 7 }
 0x2e9   :  { %v15657_v62 = vpop.f32.mrf.mxu1  ;;  %v4046_v26 = vpop.permute.xlu0 %4045  ;;  %v3214_v9 = vrot.slane %v15249_v60, 7 }
 0x2ea   :  { %4478 = vst.msk [vmem:[#allocation2 + $0x90] sm:$0xff] %vm592_vm1, %v4414_v5  ;;  %v4285_v49 = vadd.f32 %v15329_v3, %v4214_v14  ;;  %v4217_v42 = vadd.f32 %v4046_v26, %v3833_v51  ;;  %3723 = vrot.lane.b32.xlu1 %v15657_v62, %s13817_s17  ;;  %v3211_v30 = vsel %vm1238_vm3, %v18206_v40, %v3210_v17  ;;  %v18174_v63 = vrot.slane %v15657_v62, 1 }
 0x2eb   :  { %v3040_v31 = vpop.f32.mrf.mxu1  ;;  %v15668_v19 = vpop.permute.xlu1 %3667  ;;  %v4689_v6 = vmul.f32 0.3, %v4657_v12  ;;  %v3274_v5 = vrot.slane %v15657_v62, 7  ;;  %v18207_v17 = vrot.slane %v15583_v23, 1  ;;  %v3832_v26 = vadd.f32 %v15594_v57, %v3211_v30 }
 0x2ec   :  { %v4349_v44 = vmul.f32 0.3, %v4285_v49  ;;  %v4288_v61 = vadd.f32 %v15329_v3, %v4217_v42  ;;  %v3272_v48 = vrot.slane %v3040_v31, 7  ;;  %v3464_v24 = vrot.slane %v3040_v31, 1  ;;  %3721 = vrot.lane.b32.xlu0 %v3040_v31, %s13817_s17 }
 0x2ed   :  { %v3666_v15 = vpop.permute.xlu0 %3665  ;;  %v3461_v51 = vsel %vm1431_vm2, %v18207_v17, %v3460_v56  ;;  %v4721_v14 = vmax.f32 %v4657_v12, %v4689_v6  ;;  %v3217_v60 = vsel %vm1238_vm3, %v3214_v9, %v18175_v16 }
 0x2ee   :  { %v4413_v40 = vmax.f32 %v4285_v49, %v4349_v44  ;;  %v4352_v4 = vmul.f32 0.3, %v4288_v61  ;;  %4099 = vrot.lane.b32.xlu1 %v3461_v51, %s13818_s29  ;;  %v3467_v42 = vsel %vm1431_vm2, %v3464_v24, %v18174_v63  ;;  %v15687_v12 = vsel %vm1238_vm3, %v3272_v48, %v3274_v5 }
 0x2ef   :  { %13164 = vmatprep.mubr.msk.f32.mxu0 %vm592_vm1, %v4721_v14  ;;  %v4044_v23 = vpop.permute.xlu1 %4043  ;;  %v4538_v31 = vld [vmem:[#allocation2 + $0x70] ss:$2 sm:$0xff]  ;;  %v4602_v56 = vld [vmem:[#allocation2 + $0x71] ss:$2 sm:$0xff]  ;;  %v15690_v57 = vsel %vm1238_vm3, %v3270_v50, %v3272_v48  ;;  %v3835_v30 = vadd.f32 %v3666_v15, %v3217_v60  ;;  %v18177_v50 = vrot.slane %v15281_v27, 7 }
 0x2f0   :  { %4477 = vst.msk [vmem:[#allocation2 + $0x88] sm:$0xff] %vm592_vm1, %v4413_v40  ;;  %v4416_v49 = vmax.f32 %v4288_v61, %v4352_v4  ;;  %4105 = vrot.lane.b32.xlu0 %v3467_v42, %s13818_s29  ;;  %v4216_v6 = vadd.f32 %v4044_v23, %v3832_v26  ;;  %v4658_v44 = vmax.f32 %v4538_v31, %v4602_v56  ;;  %v18208_v4 = vrot.slane %v15253_v28, 7 }
 0x2f1   :  { %v15694_v17 = vpop.f32.mrf.mxu1  ;;  %v4050_v51 = vpop.permute.xlu0 %4049  ;;  %v3218_v56 = vrot.slane %v15263_v0, 7 }
 0x2f2   :  { %4480 = vst.msk [vmem:[#allocation2 + $0xa0] sm:$0xff] %vm592_vm1, %v4416_v49  ;;  %v4287_v14 = vadd.f32 %v15329_v3, %v4216_v6  ;;  %v4219_v63 = vadd.f32 %v4050_v51, %v3835_v30  ;;  %3727 = vrot.lane.b32.xlu1 %v15694_v17, %s13817_s17  ;;  %v3215_v61 = vsel %vm1238_vm3, %v18208_v4, %v3214_v9  ;;  %v18176_v48 = vrot.slane %v15694_v17, 1 }
 0x2f3   :  { %v3050_v15 = vpop.f32.mrf.mxu1  ;;  %v15705_v26 = vpop.permute.xlu1 %3671  ;;  %v4690_v40 = vmul.f32 0.3, %v4658_v44  ;;  %v3278_v49 = vrot.slane %v15694_v17, 7  ;;  %v18209_v9 = vrot.slane %v15620_v39, 1  ;;  %v3834_v51 = vadd.f32 %v15631_v10, %v3215_v61 }
 0x2f4   :  { %v4351_v42 = vmul.f32 0.3, %v4287_v14  ;;  %v4290_v60 = vadd.f32 %v15329_v3, %v4219_v63  ;;  %v3276_v23 = vrot.slane %v3050_v15, 7  ;;  %v3468_v31 = vrot.slane %v3050_v15, 1  ;;  %3725 = vrot.lane.b32.xlu0 %v3050_v15, %s13817_s17 }
 0x2f5   :  { %v3670_v28 = vpop.permute.xlu0 %3669  ;;  %v3465_v30 = vsel %vm1431_vm2, %v18209_v9, %v3464_v24  ;;  %v4722_v6 = vmax.f32 %v4658_v44, %v4690_v40  ;;  %v3221_v0 = vsel %vm1238_vm3, %v3218_v56, %v18177_v50 }
 0x2f6   :  { %v4415_v4 = vmax.f32 %v4287_v14, %v4351_v42  ;;  %v4354_v16 = vmul.f32 0.3, %v4290_v60  ;;  %4103 = vrot.lane.b32.xlu1 %v3465_v30, %s13818_s29  ;;  %v3471_v63 = vsel %vm1431_vm2, %v3468_v31, %v18176_v48  ;;  %v15724_v44 = vsel %vm1238_vm3, %v3276_v23, %v3278_v49 }
 0x2f7   :  { %13165 = vmatmul.mubr.msk.f32.gmra.mxu0 %vm592_vm1, %v4722_v6  ;;  %v4048_v39 = vpop.permute.xlu1 %4047  ;;  %v4540_v15 = vld [vmem:[#allocation2 + $0x80] ss:$2 sm:$0xff]  ;;  %v4604_v24 = vld [vmem:[#allocation2 + $0x81] ss:$2 sm:$0xff]  ;;  %v15727_v10 = vsel %vm1238_vm3, %v3274_v5, %v3276_v23  ;;  %v3837_v61 = vadd.f32 %v3670_v28, %v3221_v0  ;;  %v18179_v5 = vrot.slane %v15295_v41, 7 }
 0x2f8   :  { %4479 = vst.msk [vmem:[#allocation2 + $0x98] sm:$0xff] %vm592_vm1, %v4415_v4  ;;  %v4418_v14 = vmax.f32 %v4290_v60, %v4354_v16  ;;  %4109 = vrot.lane.b32.xlu0 %v3471_v63, %s13818_s29  ;;  %v4218_v40 = vadd.f32 %v4048_v39, %v3834_v51  ;;  %v4659_v42 = vmax.f32 %v4540_v15, %v4604_v24  ;;  %v18210_v16 = vrot.slane %v15267_v38, 7 }
 0x2f9   :  { %v15731_v9 = vpop.f32.mrf.mxu1  ;;  %v4054_v30 = vpop.permute.xlu0 %4053  ;;  %v3222_v24 = vrot.slane %v15277_v34, 7 }
 0x2fa   :  { %4482 = vst.msk [vmem:[#allocation2 + $0xb0] sm:$0xff] %vm592_vm1, %v4418_v14  ;;  %v4289_v6 = vadd.f32 %v15329_v3, %v4218_v40  ;;  %v4221_v48 = vadd.f32 %v4054_v30, %v3837_v61  ;;  %3731 = vrot.lane.b32.xlu1 %v15731_v9, %s13817_s17  ;;  %v3219_v60 = vsel %vm1238_vm3, %v18210_v16, %v3218_v56  ;;  %v18178_v23 = vrot.slane %v15731_v9, 1 }
 0x2fb   :  { %v3060_v28 = vpop.f32.mrf.mxu1  ;;  %v15742_v51 = vpop.permute.xlu1 %3675  ;;  %v4691_v4 = vmul.f32 0.3, %v4659_v42  ;;  %v3282_v14 = vrot.slane %v15731_v9, 7  ;;  %v18211_v56 = vrot.slane %v15657_v62, 1  ;;  %v3836_v30 = vadd.f32 %v15668_v19, %v3219_v60 }
 0x2fc   :  { %v4353_v63 = vmul.f32 0.3, %v4289_v6  ;;  %v4292_v0 = vadd.f32 %v15329_v3, %v4221_v48  ;;  %v3280_v39 = vrot.slane %v3060_v28, 7  ;;  %v3472_v15 = vrot.slane %v3060_v28, 1  ;;  %3729 = vrot.lane.b32.xlu0 %v3060_v28, %s13817_s17 }
 0x2fd   :  { %v3674_v38 = vpop.permute.xlu0 %3673  ;;  %v3469_v61 = vsel %vm1431_vm2, %v18211_v56, %v3468_v31  ;;  %v4723_v40 = vmax.f32 %v4659_v42, %v4691_v4  ;;  %v3225_v34 = vsel %vm1238_vm3, %v3222_v24, %v18179_v5 }
 0x2fe   :  { %v4417_v16 = vmax.f32 %v4289_v6, %v4353_v63  ;;  %v4356_v50 = vmul.f32 0.3, %v4292_v0  ;;  %4107 = vrot.lane.b32.xlu1 %v3469_v61, %s13818_s29  ;;  %v3475_v48 = vsel %vm1431_vm2, %v3472_v15, %v18178_v23  ;;  %v15761_v42 = vsel %vm1238_vm3, %v3280_v39, %v3282_v14 }
 0x2ff   :  { %13167 = vmatprep.mubr.msk.f32.mxu0 %vm592_vm1, %v4723_v40  ;;  %v4052_v62 = vpop.permute.xlu1 %4051  ;;  %v4542_v28 = vld [vmem:[#allocation2 + $0x90] ss:$2 sm:$0xff]  ;;  %v4606_v31 = vld [vmem:[#allocation2 + $0x91] ss:$2 sm:$0xff]  ;;  %v15764_v19 = vsel %vm1238_vm3, %v3278_v49, %v3280_v39  ;;  %v3839_v60 = vadd.f32 %v3674_v38, %v3225_v34  ;;  %v18180_v49 = vrot.slane %v15310_v20, 7 }
 0x300   :  { %4481 = vst.msk [vmem:[#allocation2 + $0xa8] sm:$0xff] %vm592_vm1, %v4417_v16  ;;  %v4420_v6 = vmax.f32 %v4292_v0, %v4356_v50  ;;  %4113 = vrot.lane.b32.xlu0 %v3475_v48, %s13818_s29  ;;  %v4220_v4 = vadd.f32 %v4052_v62, %v3836_v30  ;;  %v4660_v63 = vmax.f32 %v4542_v28, %v4606_v31  ;;  %v18212_v50 = vrot.slane %v15281_v27, 7 }
 0x301   :  { %v15768_v56 = vpop.f32.mrf.mxu1  ;;  %v4058_v61 = vpop.permute.xlu0 %4057  ;;  %v3226_v31 = vrot.slane %v15291_v29, 7 }
 0x302   :  { %4484 = vst.msk [vmem:[#allocation2 + $0xc0] sm:$0xff] %vm592_vm1, %v4420_v6  ;;  %v4291_v40 = vadd.f32 %v15329_v3, %v4220_v4  ;;  %v4223_v23 = vadd.f32 %v4058_v61, %v3839_v60  ;;  %3735 = vrot.lane.b32.xlu1 %v15768_v56, %s13817_s17  ;;  %v3223_v0 = vsel %vm1238_vm3, %v18212_v50, %v3222_v24  ;;  %v18182_v39 = vrot.slane %v15768_v56, 1 }
 0x303   :  { %v3070_v38 = vpop.f32.mrf.mxu1  ;;  %v15779_v30 = vpop.permute.xlu1 %3679  ;;  %v4692_v16 = vmul.f32 0.3, %v4660_v63  ;;  %v3286_v6 = vrot.slane %v15768_v56, 7  ;;  %v18213_v24 = vrot.slane %v15694_v17, 1  ;;  %v3838_v61 = vadd.f32 %v15705_v26, %v3223_v0 }
 0x304   :  { %v4355_v48 = vmul.f32 0.3, %v4291_v40  ;;  %v4294_v34 = vadd.f32 %v15329_v3, %v4223_v23  ;;  %v3284_v62 = vrot.slane %v3070_v38, 7  ;;  %v3476_v28 = vrot.slane %v3070_v38, 1  ;;  %3733 = vrot.lane.b32.xlu0 %v3070_v38, %s13817_s17 }
 0x305   :  { %v3678_v27 = vpop.permute.xlu0 %3677  ;;  %v3473_v60 = vsel %vm1431_vm2, %v18213_v24, %v3472_v15  ;;  %v4724_v4 = vmax.f32 %v4660_v63, %v4692_v16  ;;  %v3229_v29 = vsel %vm1238_vm3, %v3226_v31, %v18180_v49 }
 0x306   :  { %v4419_v50 = vmax.f32 %v4291_v40, %v4355_v48  ;;  %v4358_v5 = vmul.f32 0.3, %v4294_v34  ;;  %4111 = vrot.lane.b32.xlu1 %v3473_v60, %s13818_s29  ;;  %v3479_v3 = vsel %vm1431_vm2, %v3476_v28, %v18182_v39  ;;  %v15800_v26 = vsel %vm1238_vm3, %v3284_v62, %v3286_v6 }
 0x307   :  { %13168 = vmatmul.mubr.msk.f32.gmra.mxu0 %vm592_vm1, %v4724_v4  ;;  %v4056_v17 = vpop.permute.xlu1 %4055  ;;  %v4544_v23 = vld [vmem:[#allocation2 + $0xa0] ss:$2 sm:$0xff]  ;;  %v4608_v15 = vld [vmem:[#allocation2 + $0xa1] ss:$2 sm:$0xff]  ;;  %v15803_v63 = vsel %vm1238_vm3, %v3282_v14, %v3284_v62  ;;  %v3841_v0 = vadd.f32 %v3678_v27, %v3229_v29  ;;  %v18181_v60 = vrot.slane %v15332_v55, 7  ;;  %v18214_v4 = vrot.slane %v15295_v41, 7 }
 0x308   :  { %4483 = vst.msk [vmem:[#allocation2 + $0xb8] sm:$0xff] %vm592_vm1, %v4419_v50  ;;  %v4422_v40 = vmax.f32 %v4294_v34, %v4358_v5  ;;  %4117 = vrot.lane.b32.xlu0 %v3479_v3, %s13818_s29  ;;  %v4222_v38 = vadd.f32 %v4056_v17, %v3838_v61  ;;  %v4661_v16 = vmax.f32 %v4544_v23, %v4608_v15  ;;  %v15817_v5 = vld [vmem:[%s18198_s0] ss:$0 sm:$0xff]  ;;  %v3230_v62 = vrot.slane %v15306_v25, 7 }
 0x309   :  { %v15807_v48 = vpop.f32.mrf.mxu1  ;;  %v4062_v24 = vpop.permute.xlu0 %4061  ;;  %v3227_v49 = vsel %vm1238_vm3, %v18214_v4, %v3226_v31  ;;  %v18215_v17 = vrot.slane %v15731_v9, 1  ;;  %v18185_v9 = vrot.slane %v15352_v58, 7 }
 0x30a   :  { %4486 = vst.msk [vmem:[#allocation2 + $0xd0] sm:$0xff] %vm592_vm1, %v4422_v40  ;;  %v4293_v14 = vadd.f32 %v15817_v5, %v4222_v38  ;;  %v4225_v34 = vadd.f32 %v4062_v24, %v3841_v0  ;;  %3739 = vrot.lane.b32.xlu1 %v15807_v48, %s13817_s17  ;;  %v3840_v27 = vadd.f32 %v15742_v51, %v3227_v49  ;;  %v4693_v31 = vmul.f32 0.3, %v4661_v16 }
 0x30b   :  { %v3080_v41 = vpop.f32.mrf.mxu1  ;;  %v4060_v61 = vpop.permute.xlu1 %4059  ;;  %v3477_v23 = vsel %vm1431_vm2, %v18215_v17, %v3476_v28  ;;  %v18183_v15 = vrot.slane %v15807_v48, 1  ;;  %v3233_v4 = vsel %vm1238_vm3, %v3230_v62, %v18181_v60  ;;  %v3290_v28 = vrot.slane %v15807_v48, 7 }
 0x30c   :  { %v4357_v50 = vmul.f32 0.3, %v4293_v14  ;;  %v4296_v3 = vadd.f32 %v15817_v5, %v4225_v34  ;;  %v3480_v29 = vrot.slane %v3080_v41, 1  ;;  %3737 = vrot.lane.b32.xlu0 %v3080_v41, %s13817_s17  ;;  %v3288_v40 = vrot.slane %v3080_v41, 7 }
 0x30d   :  { %v4224_v0 = vadd.f32 %v4060_v61, %v3840_v27  ;;  %v15830_v25 = vpop.f32.mrf.mxu1  ;;  %v3682_v51 = vpop.permute.xlu0 %3681  ;;  %v4725_v49 = vmax.f32 %v4661_v16, %v4693_v31 }
 0x30e   :  { %v4421_v38 = vmax.f32 %v4293_v14, %v4357_v50  ;;  %v4360_v24 = vmul.f32 0.3, %v4296_v3  ;;  %4115 = vrot.lane.b32.xlu1 %v3477_v23, %s13818_s29  ;;  %v3483_v16 = vsel %vm1431_vm2, %v3480_v29, %v18183_v15  ;;  %v18184_v50 = vrot.slane %v15830_v25, 7 }
 0x30f   :  { %v4295_v34 = vadd.f32 %v15817_v5, %v4224_v0  ;;  %v15839_v41 = vpop.f32.mrf.mxu1  ;;  %13170 = vmatprep.mubr.msk.f32.mxu0 %vm592_vm1, %v4725_v49  ;;  %v15845_v14 = vpop.permute.xlu1 %3683  ;;  %v4546_v27 = vld [vmem:[#allocation2 + $0xb0] ss:$2 sm:$0xff]  ;;  %v4610_v61 = vld [vmem:[#allocation2 + $0xb1] ss:$2 sm:$0xff]  ;;  %v3843_v17 = vadd.f32 %v3682_v51, %v3233_v4  ;;  %v15852_v39 = vsel %vm1238_vm3, %v3288_v40, %v3290_v28  ;;  %v15857_v15 = vsel %vm1238_vm3, %v3286_v6, %v3288_v40 }
 0x310   :  { %4485 = vst.msk [vmem:[#allocation2 + $0xc8] sm:$0xff] %vm592_vm1, %v4421_v38  ;;  %v4424_v31 = vmax.f32 %v4296_v3, %v4360_v24  ;;  %v3292_v23 = vrot.slane %v15839_v41, 7  ;;  %4121 = vrot.lane.b32.xlu0 %v3483_v16, %s13818_s29  ;;  %v4662_v60 = vmax.f32 %v4546_v27, %v4610_v61  ;;  %v3234_v3 = vrot.slane %v15323_v45, 7 }
 0x311   :  { %v4359_v0 = vmul.f32 0.3, %v4295_v34  ;;  %v4066_v49 = vpop.permute.xlu0 %4065  ;;  %v3484_v24 = vrot.slane %v15839_v41, 1  ;;  %v15869_v27 = vpop.f32.mrf.mxu1  ;;  %v18216_v61 = vrot.slane %v15768_v56, 1 }
 0x312   :  { %4488 = vst.msk [vmem:[#allocation2 + $0xe0] sm:$0xff] %vm592_vm1, %v4424_v31  ;;  %v4227_v51 = vadd.f32 %v4066_v49, %v3843_v17  ;;  %3743 = vrot.lane.b32.xlu1 %v15830_v25, %s13817_s17  ;;  %v4694_v4 = vmul.f32 0.3, %v4662_v60  ;;  %v15867_v16 = vsel %vm1238_vm3, %v3292_v23, %v18184_v50  ;;  %v3237_v40 = vsel %vm1238_vm3, %v3234_v3, %v18185_v9 }
 0x313   :  { %v4423_v38 = vmax.f32 %v4295_v34, %v4359_v0  ;;  %v3486_v34 = vrot.slane %v15830_v25, 1  ;;  %v3481_v31 = vsel %vm1431_vm2, %v18216_v61, %v3480_v29  ;;  %v15885_v0 = vsel %vm1238_vm3, %v3290_v28, %v3292_v23 }
 0x314   :  { %v4298_v6 = vadd.f32 %v15817_v5, %v4227_v51  ;;  %3741 = vrot.lane.b32.xlu0 %v15839_v41, %s13817_s17  ;;  %v15874_v45 = vpop.permute.xlu1 %3687  ;;  %v4726_v17 = vmax.f32 %v4662_v60, %v4694_v4  ;;  %v18217_v41 = vrot.slane %v15310_v20, 7  ;;  %v15894_v4 = vpop.f32.mrf.mxu1  ;;  %v3589_v20 = vsel %vm366_vm6, 0.0, %v3237_v40 }
 0x315   :  { %4487 = vst.msk [vmem:[#allocation2 + $0xd8] sm:$0xff] %vm592_vm1, %v4423_v38  ;;  %v3487_v56 = vsel %vm1431_vm2, %v3484_v24, %v3486_v34  ;;  %v18218_v40 = vrot.slane %v15332_v55, 7  ;;  %vm11465_vm6 = vcmask 7168  }
 0x316   :  { %v3231_v49 = vsel %vm1238_vm3, %v18217_v41, %v3230_v62  ;;  %v4362_v51 = vmul.f32 0.3, %v4298_v6  ;;  %v3686_v50 = vpop.permute.xlu0 %3685  ;;  %4119 = vrot.lane.b32.xlu1 %v3481_v31, %s13818_s29  ;;  %13171 = vmatmul.mubr.msk.f32.gmra.mxu0 %vm592_vm1, %v4726_v17 }
 0x317   :  { %v3842_v38 = vadd.f32 %v15779_v30, %v3231_v49  ;;  %v4548_v9 = vld [vmem:[#allocation2 + $0xc0] ss:$2 sm:$0xff]  ;;  %v4612_v29 = vld [vmem:[#allocation2 + $0xc1] ss:$2 sm:$0xff]  ;;  %v3845_v23 = vadd.f32 %v3686_v50, %v3589_v20  ;;  %v3490_v50 = vrot.slane %v15869_v27, 1  ;;  %v18219_v20 = vrot.slane %v15807_v48, 1 }
 0x318   :  { %v4426_v60 = vmax.f32 %v4298_v6, %v4362_v51  ;;  %4125 = vrot.lane.b32.xlu0 %v3487_v56, %s13818_s29  ;;  %v4064_v62 = vpop.permute.xlu1 %4063  ;;  %v4663_v28 = vmax.f32 %v4548_v9, %v4612_v29  ;;  %v3488_v6 = vrot.slane %v15894_v4, 1  ;;  %v3235_v9 = vsel %vm1238_vm3, %v18218_v40, %v3234_v3 }
 0x319   :  { %v4226_v61 = vadd.f32 %v4064_v62, %v3842_v38  ;;  %v3485_v62 = vsel %vm1431_vm2, %v18219_v20, %v3484_v24  ;;  %v3238_v3 = vrot.slane %v15346_v18, 7 }
 0x31a   :  { %4490 = vst.msk [vmem:[#allocation2 + $0xf0] sm:$0xff] %vm592_vm1, %v4426_v60  ;;  %v4070_v30 = vpop.permute.xlu0 %4069  ;;  %3747 = vrot.lane.b32.xlu1 %v15869_v27, %s13817_s17  ;;  %v4695_v31 = vmul.f32 0.3, %v4663_v28  ;;  %v3489_v18 = vsel %vm1431_vm2, %v3486_v34, %v3488_v6  ;;  %v3244_v34 = vrot.slane %v15409_v52, 7 }
 0x31b   :  { %v4297_v17 = vadd.f32 %v15817_v5, %v4226_v61  ;;  %v4229_v41 = vadd.f32 %v4070_v30, %v3845_v23  ;;  %v3844_v23 = vadd.f32 %v15845_v14, %v3235_v9  ;;  %v3241_v48 = vsel %vm1238_vm3, %v3238_v3, %v3240_v21 }
 0x31c   :  { %v15909_v49 = vpop.permute.xlu1 %3691  ;;  %3745 = vrot.lane.b32.xlu0 %v15894_v4, %s13817_s17  ;;  %v4727_v51 = vmax.f32 %v4663_v28, %v4695_v31  ;;  %v4550_v38 = vld [vmem:[#allocation2 + $0xd0] ss:$2 sm:$0xff]  ;;  %v4614_v56 = vld [vmem:[#allocation2 + $0xd1] ss:$2 sm:$0xff]  ;;  %v3491_v31 = vsel %vm1431_vm2, %v3488_v6, %v3490_v50 }
 0x31d   :  { %v4361_v29 = vmul.f32 0.3, %v4297_v17  ;;  %v4300_v60 = vadd.f32 %v15817_v5, %v4229_v41  ;;  %v4664_v55 = vmax.f32 %v4550_v38, %v4614_v56  ;;  %v3556_v38 = vsel %vm1431_vm2, %v3490_v50, 0.0 }
 0x31e   :  { %v3690_v61 = vpop.permute.xlu0 %3689  ;;  %4123 = vrot.lane.b32.xlu1 %v3485_v62, %s13818_s29  ;;  %13173 = vmatprep.mubr.msk.f32.mxu0 %vm592_vm1, %v4727_v51  ;;  %v3940_v62 = vsel %vm525_vm7, 0.0, %v3556_v38  ;;  %v18220_v50 = vrot.slane %v15352_v58, 7  ;;  %vm11731_vm7 = vcmask 65536  }
 0x31f   :  { %v4425_v28 = vmax.f32 %v4297_v17, %v4361_v29  ;;  %v4364_v30 = vmul.f32 0.3, %v4300_v60  ;;  %v4696_v40 = vmul.f32 0.3, %v4664_v55  ;;  %v3847_v41 = vadd.f32 %v3690_v61, %v3241_v48 }
 0x320   :  { %v4068_v24 = vpop.permute.xlu1 %4067  ;;  %4129 = vrot.lane.b32.xlu0 %v3491_v31, %s13818_s29 }
 0x321   :  { %4489 = vst.msk [vmem:[#allocation2 + $0xe8] sm:$0xff] %vm592_vm1, %v4425_v28  ;;  %v4428_v14 = vmax.f32 %v4300_v60, %v4364_v30  ;;  %v4228_v9 = vadd.f32 %v4068_v24, %v3844_v23  ;;  %v4728_v51 = vmax.f32 %v4664_v55, %v4696_v40  ;;  %v3242_v55 = vrot.slane %v15372_v53, 7 }
 0x322   :  { %v4074_v17 = vpop.permute.xlu0 %4073  ;;  %4127 = vrot.lane.b32.xlu1 %v3489_v18, %s13818_s29  ;;  %v3239_v23 = vsel %vm1238_vm3, %v18220_v50, %v3238_v3 }
 0x323   :  { %4492 = vst.msk [vmem:[#allocation2 + $0x100] sm:$0xff] %vm592_vm1, %v4428_v14  ;;  %v4299_v56 = vadd.f32 %v15817_v5, %v4228_v9  ;;  %v4231_v29 = vadd.f32 %v4074_v17, %v3847_v41  ;;  %13174 = vmatmul.mubr.msk.f32.gmra.mxu0 %vm592_vm1, %v4728_v51  ;;  %v3846_v28 = vadd.f32 %v15874_v45, %v3239_v23  ;;  %v3248_v9 = vrot.slane %v15442_v7, 7 }
 0x324   :  { %v3696_v6 = vpop.permute.xlu1 %3695  ;;  %v3245_v31 = vsel %vm1238_vm3, %v3242_v55, %v3244_v34 }
 0x325   :  { %v4363_v20 = vmul.f32 0.3, %v4299_v56  ;;  %v4302_v60 = vadd.f32 %v15817_v5, %v4231_v29  ;;  %v3246_v29 = vrot.slane %v15402_v46, 7 }
 0x326   :  { %v3694_v61 = vpop.permute.xlu0 %3693  ;;  %4131 = vrot.lane.b32.xlu1 %v3940_v62, %s13818_s29 }
 0x327   :  { %v4427_v30 = vmax.f32 %v4299_v56, %v4363_v20  ;;  %v4366_v52 = vmul.f32 0.3, %v4302_v60  ;;  %v3849_v53 = vadd.f32 %v3694_v61, %v3245_v31  ;;  %v3243_v20 = vsel %vm1238_vm3, %v3240_v21, %v3242_v55 }
 0x328   :  { %v4072_v40 = vpop.permute.xlu1 %4071  ;;  %v4552_v48 = vld [vmem:[#allocation2 + $0xe0] ss:$2 sm:$0xff]  ;;  %v4616_v24 = vld [vmem:[#allocation2 + $0xe1] ss:$2 sm:$0xff]  ;;  %v3848_v62 = vadd.f32 %v15909_v49, %v3243_v20  ;;  %v3249_v7 = vsel %vm1238_vm3, %v3246_v29, %v3248_v9 }
 0x329   :  { %4491 = vst.msk [vmem:[#allocation2 + $0xf8] sm:$0xff] %vm592_vm1, %v4427_v30  ;;  %v4430_v2 = vmax.f32 %v4302_v60, %v4366_v52  ;;  %v4230_v18 = vadd.f32 %v4072_v40, %v3846_v28  ;;  %v4665_v58 = vmax.f32 %v4552_v48, %v4616_v24 }
 0x32a   :  { %v4078_v14 = vpop.permute.xlu0 %4077 }
 0x32b   :  { %4494 = vst.msk [vmem:[#allocation2 + $0x110] sm:$0xff] %vm592_vm1, %v4430_v2  ;;  %v4301_v3 = vadd.f32 %v15817_v5, %v4230_v18  ;;  %v4233_v41 = vadd.f32 %v4078_v14, %v3849_v53  ;;  %v4697_v45 = vmul.f32 0.3, %v4665_v58  ;;  %v3247_v18 = vsel %vm1238_vm3, %v3244_v34, %v3246_v29 }
 0x32c   :  { %v3700_v51 = vpop.permute.xlu1 %3699  ;;  %v3850_v14 = vadd.f32 %v3696_v6, %v3247_v18 }
 0x32d   :  { %v4365_v17 = vmul.f32 0.3, %v4301_v3  ;;  %v4304_v38 = vadd.f32 %v15817_v5, %v4233_v41  ;;  %v4729_v56 = vmax.f32 %v4665_v58, %v4697_v45 }
 0x32e   :  { %v3698_v60 = vpop.permute.xlu0 %3697 }
 0x32f   :  { %v4429_v50 = vmax.f32 %v4301_v3, %v4365_v17  ;;  %v4368_v23 = vmul.f32 0.3, %v4304_v38  ;;  %13176 = vmatprep.mubr.msk.f32.mxu0 %vm592_vm1, %v4729_v56  ;;  %v3851_v46 = vadd.f32 %v3698_v60, %v3249_v7 }
 0x330   :  { %v4076_v61 = vpop.permute.xlu1 %4075  ;;  %v4554_v28 = vld [vmem:[#allocation2 + $0xf0] ss:$2 sm:$0xff]  ;;  %v4618_v30 = vld [vmem:[#allocation2 + $0xf1] ss:$2 sm:$0xff] }
 0x331   :  { %4493 = vst.msk [vmem:[#allocation2 + $0x108] sm:$0xff] %vm592_vm1, %v4429_v50  ;;  %v4432_v52 = vmax.f32 %v4304_v38, %v4368_v23  ;;  %v4232_v31 = vadd.f32 %v4076_v61, %v3848_v62  ;;  %v4666_v37 = vmax.f32 %v4554_v28, %v4618_v30  ;;  %v18221_v30 = vrot.slane %v15435_v59, 7 }
 0x332   :  { %v4082_v40 = vpop.permute.xlu0 %4081 }
 0x333   :  { %4496 = vst.msk [vmem:[#allocation2 + $0x120] sm:$0xff] %vm592_vm1, %v4432_v52  ;;  %v4303_v21 = vadd.f32 %v15817_v5, %v4232_v31  ;;  %v4235_v49 = vadd.f32 %v4082_v40, %v3851_v46  ;;  %v4698_v55 = vmul.f32 0.3, %v4666_v37  ;;  %v3251_v52 = vsel %vm1238_vm3, %v3248_v9, %v18221_v30 }
 0x334   :  { %v3704_v48 = vpop.permute.xlu1 %3703 }
 0x335   :  { %v4367_v24 = vmul.f32 0.3, %v4303_v21  ;;  %v4306_v2 = vadd.f32 %v15817_v5, %v4235_v49  ;;  %v4730_v53 = vmax.f32 %v4666_v37, %v4698_v55 }
 0x336   :  { %v3702_v58 = vpop.permute.xlu0 %3701 }
 0x337   :  { %v4431_v3 = vmax.f32 %v4303_v21, %v4367_v24  ;;  %v4370_v41 = vmul.f32 0.3, %v4306_v2  ;;  %13177 = vmatmul.mubr.msk.f32.gmra.mxu0 %vm592_vm1, %v4730_v53  ;;  %v3853_v20 = vadd.f32 %v3702_v58, %v15505_v11  ;;  %v3852_v11 = vadd.f32 %v3700_v51, %v3251_v52 }
 0x338   :  { %v4080_v45 = vpop.permute.xlu1 %4079  ;;  %v4556_v17 = vld [vmem:[#allocation2 + $0x100] ss:$2 sm:$0xff]  ;;  %v4620_v38 = vld [vmem:[#allocation2 + $0x101] ss:$2 sm:$0xff] }
 0x339   :  { %4495 = vst.msk [vmem:[#allocation2 + $0x118] sm:$0xff] %vm592_vm1, %v4431_v3  ;;  %v4434_v56 = vmax.f32 %v4306_v2, %v4370_v41  ;;  %v4234_v60 = vadd.f32 %v4080_v45, %v3850_v14  ;;  %v4667_v62 = vmax.f32 %v4556_v17, %v4620_v38  ;;  %v3854_v17 = vadd.f32 %v3704_v48, %v15500_v22 }
 0x33a   :  { %v4086_v50 = vpop.permute.xlu0 %4085 }
 0x33b   :  { %4498 = vst.msk [vmem:[#allocation2 + $0x130] sm:$0xff] %vm592_vm1, %v4434_v56  ;;  %v4305_v34 = vadd.f32 %v15817_v5, %v4234_v60  ;;  %v4237_v6 = vadd.f32 %v4086_v50, %v3853_v20  ;;  %v4699_v29 = vmul.f32 0.3, %v4667_v62 }
 0x33c   :  { %v3708_v23 = vpop.permute.xlu1 %3707 }
 0x33d   :  { %v4369_v7 = vmul.f32 0.3, %v4305_v34  ;;  %v4308_v61 = vadd.f32 %v15817_v5, %v4237_v6  ;;  %v4731_v28 = vmax.f32 %v4667_v62, %v4699_v29 }
 0x33e   :  { %v3706_v46 = vpop.permute.xlu0 %3705 }
 0x33f   :  { %v4433_v31 = vmax.f32 %v4305_v34, %v4369_v7  ;;  %v4372_v37 = vmul.f32 0.3, %v4308_v61  ;;  %13179 = vmatprep.mubr.msk.f32.mxu0 %vm592_vm1, %v4731_v28  ;;  %v3855_v24 = vadd.f32 %v3706_v46, %v15542_v1 }
 0x340   :  { %v4084_v40 = vpop.permute.xlu1 %4083  ;;  %v4558_v21 = vld [vmem:[#allocation2 + $0x110] ss:$2 sm:$0xff]  ;;  %v4622_v49 = vld [vmem:[#allocation2 + $0x111] ss:$2 sm:$0xff] }
 0x341   :  { %4497 = vst.msk [vmem:[#allocation2 + $0x128] sm:$0xff] %vm592_vm1, %v4433_v31  ;;  %v4436_v55 = vmax.f32 %v4308_v61, %v4372_v37  ;;  %v4236_v2 = vadd.f32 %v4084_v40, %v3852_v11  ;;  %v4668_v53 = vmax.f32 %v4558_v21, %v4622_v49  ;;  %v3856_v11 = vadd.f32 %v3708_v23, %v15539_v32 }
 0x342   :  { %v4090_v18 = vpop.permute.xlu0 %4089 }
 0x343   :  { %4500 = vst.msk [vmem:[#allocation2 + $0x140] sm:$0xff] %vm592_vm1, %v4436_v55  ;;  %v4307_v59 = vadd.f32 %v15817_v5, %v4236_v2  ;;  %v4239_v9 = vadd.f32 %v4090_v18, %v3855_v24  ;;  %v4700_v51 = vmul.f32 0.3, %v4668_v53 }
 0x344   :  { %v3712_v58 = vpop.permute.xlu1 %3711 }
 0x345   :  { %v4371_v14 = vmul.f32 0.3, %v4307_v59  ;;  %v4310_v3 = vadd.f32 %v15817_v5, %v4239_v9  ;;  %v4732_v41 = vmax.f32 %v4668_v53, %v4700_v51 }
 0x346   :  { %v3710_v45 = vpop.permute.xlu0 %3709 }
 0x347   :  { %v4435_v38 = vmax.f32 %v4307_v59, %v4371_v14  ;;  %v4374_v56 = vmul.f32 0.3, %v4310_v3  ;;  %13180 = vmatmul.mubr.msk.f32.gmra.mxu0 %vm592_vm1, %v4732_v41  ;;  %v3857_v50 = vadd.f32 %v3710_v45, %v15579_v54  ;;  %v3858_v41 = vadd.f32 %v3712_v58, %v15576_v13 }
 0x348   :  { %v4088_v1 = vpop.permute.xlu1 %4087  ;;  %v4560_v20 = vld [vmem:[#allocation2 + $0x120] ss:$2 sm:$0xff]  ;;  %v4624_v60 = vld [vmem:[#allocation2 + $0x121] ss:$2 sm:$0xff] }
 0x349   :  { %4499 = vst.msk [vmem:[#allocation2 + $0x138] sm:$0xff] %vm592_vm1, %v4435_v38  ;;  %v4438_v62 = vmax.f32 %v4310_v3, %v4374_v56  ;;  %v4238_v34 = vadd.f32 %v4088_v1, %v3854_v17  ;;  %v4669_v6 = vmax.f32 %v4560_v20, %v4624_v60 }
 0x34a   :  { %v4094_v29 = vpop.permute.xlu0 %4093 }
 0x34b   :  { %4502 = vst.msk [vmem:[#allocation2 + $0x150] sm:$0xff] %vm592_vm1, %v4438_v62  ;;  %v4309_v7 = vadd.f32 %v15817_v5, %v4238_v34  ;;  %v4241_v22 = vadd.f32 %v4094_v29, %v3857_v50  ;;  %v4701_v48 = vmul.f32 0.3, %v4669_v6 }
 0x34c   :  { %v3716_v61 = vpop.permute.xlu1 %3715 }
 0x34d   :  { %v4373_v28 = vmul.f32 0.3, %v4309_v7  ;;  %v4312_v30 = vadd.f32 %v15817_v5, %v4241_v22  ;;  %v4733_v52 = vmax.f32 %v4669_v6, %v4701_v48 }
 0x34e   :  { %v3714_v46 = vpop.permute.xlu0 %3713 }
 0x34f   :  { %v4437_v31 = vmax.f32 %v4309_v7, %v4373_v28  ;;  %v4376_v37 = vmul.f32 0.3, %v4312_v30  ;;  %13182 = vmatprep.mubr.msk.f32.mxu0 %vm592_vm1, %v4733_v52  ;;  %v3859_v55 = vadd.f32 %v3714_v46, %v15616_v36  ;;  %v3860_v28 = vadd.f32 %v3716_v61, %v15613_v8 }
 0x350   :  { %v4092_v54 = vpop.permute.xlu1 %4091  ;;  %v4562_v40 = vld [vmem:[#allocation2 + $0x130] ss:$2 sm:$0xff]  ;;  %v4626_v21 = vld [vmem:[#allocation2 + $0x131] ss:$2 sm:$0xff] }
 0x351   :  { %4501 = vst.msk [vmem:[#allocation2 + $0x148] sm:$0xff] %vm592_vm1, %v4437_v31  ;;  %v4440_v49 = vmax.f32 %v4312_v30, %v4376_v37  ;;  %v4240_v24 = vadd.f32 %v4092_v54, %v3856_v11  ;;  %v4670_v2 = vmax.f32 %v4562_v40, %v4626_v21 }
 0x352   :  { %v4098_v53 = vpop.permute.xlu0 %4097 }
 0x353   :  { %4504 = vst.msk [vmem:[#allocation2 + $0x160] sm:$0xff] %vm592_vm1, %v4440_v49  ;;  %v4311_v18 = vadd.f32 %v15817_v5, %v4240_v24  ;;  %v4243_v32 = vadd.f32 %v4098_v53, %v3859_v55  ;;  %v4702_v23 = vmul.f32 0.3, %v4670_v2 }
 0x354   :  { %v3720_v59 = vpop.permute.xlu1 %3719 }
 0x355   :  { %v4375_v9 = vmul.f32 0.3, %v4311_v18  ;;  %v4314_v51 = vadd.f32 %v15817_v5, %v4243_v32  ;;  %v4734_v14 = vmax.f32 %v4670_v2, %v4702_v23  ;;  %v3862_v32 = vadd.f32 %v3720_v59, %v15650_v33 }
 0x356   :  { %v3718_v3 = vpop.permute.xlu0 %3717 }
 0x357   :  { %v4439_v45 = vmax.f32 %v4311_v18, %v4375_v9  ;;  %v4378_v17 = vmul.f32 0.3, %v4314_v51  ;;  %13183 = vmatmul.mubr.msk.f32.gmra.mxu0 %vm592_vm1, %v4734_v14  ;;  %v3861_v20 = vadd.f32 %v3718_v3, %v15653_v35 }
 0x358   :  { %v4096_v36 = vpop.permute.xlu1 %4095  ;;  %v4564_v38 = vld [vmem:[#allocation2 + $0x140] ss:$2 sm:$0xff]  ;;  %v4628_v56 = vld [vmem:[#allocation2 + $0x141] ss:$2 sm:$0xff] }
 0x359   :  { %4503 = vst.msk [vmem:[#allocation2 + $0x158] sm:$0xff] %vm592_vm1, %v4439_v45  ;;  %v4442_v1 = vmax.f32 %v4314_v51, %v4378_v17  ;;  %v4242_v60 = vadd.f32 %v4096_v36, %v3858_v41  ;;  %v4671_v62 = vmax.f32 %v4564_v38, %v4628_v56 }
 0x35a   :  { %v4102_v50 = vpop.permute.xlu0 %4101 }
 0x35b   :  { %4506 = vst.msk [vmem:[#allocation2 + $0x170] sm:$0xff] %vm592_vm1, %v4442_v1  ;;  %v4313_v34 = vadd.f32 %v15817_v5, %v4242_v60  ;;  %v4245_v13 = vadd.f32 %v4102_v50, %v3861_v20  ;;  %v4703_v58 = vmul.f32 0.3, %v4671_v62 }
 0x35c   :  { %v3724_v6 = vpop.permute.xlu1 %3723 }
 0x35d   :  { %v4377_v29 = vmul.f32 0.3, %v4313_v34  ;;  %v4316_v7 = vadd.f32 %v15817_v5, %v4245_v13  ;;  %v4735_v22 = vmax.f32 %v4671_v62, %v4703_v58  ;;  %v3864_v50 = vadd.f32 %v3724_v6, %v15687_v12 }
 0x35e   :  { %v3722_v48 = vpop.permute.xlu0 %3721 }
 0x35f   :  { %v4441_v30 = vmax.f32 %v4313_v34, %v4377_v29  ;;  %v4380_v52 = vmul.f32 0.3, %v4316_v7  ;;  %13185 = vmatprep.mubr.msk.f32.mxu0 %vm592_vm1, %v4735_v22  ;;  %v3863_v37 = vadd.f32 %v3722_v48, %v15690_v57 }
 0x360   :  { %v4100_v35 = vpop.permute.xlu1 %4099  ;;  %v4566_v46 = vld [vmem:[#allocation2 + $0x150] ss:$2 sm:$0xff]  ;;  %v4630_v11 = vld [vmem:[#allocation2 + $0x151] ss:$2 sm:$0xff] }
 0x361   :  { %4505 = vst.msk [vmem:[#allocation2 + $0x168] sm:$0xff] %vm592_vm1, %v4441_v30  ;;  %v4444_v31 = vmax.f32 %v4316_v7, %v4380_v52  ;;  %v4244_v54 = vadd.f32 %v4100_v35, %v3860_v28  ;;  %v4672_v40 = vmax.f32 %v4566_v46, %v4630_v11 }
 0x362   :  { %v4106_v21 = vpop.permute.xlu0 %4105 }
 0x363   :  { %4508 = vst.msk [vmem:[#allocation2 + $0x180] sm:$0xff] %vm592_vm1, %v4444_v31  ;;  %v4315_v49 = vadd.f32 %v15817_v5, %v4244_v54  ;;  %v4247_v8 = vadd.f32 %v4106_v21, %v3863_v37  ;;  %v4704_v61 = vmul.f32 0.3, %v4672_v40 }
 0x364   :  { %v3728_v55 = vpop.permute.xlu1 %3727 }
 0x365   :  { %v4379_v24 = vmul.f32 0.3, %v4315_v49  ;;  %v4318_v2 = vadd.f32 %v15817_v5, %v4247_v8  ;;  %v4736_v53 = vmax.f32 %v4672_v40, %v4704_v61  ;;  %v3866_v54 = vadd.f32 %v3728_v55, %v15724_v44 }
 0x366   :  { %v3726_v18 = vpop.permute.xlu0 %3725 }
 0x367   :  { %v4443_v23 = vmax.f32 %v4315_v49, %v4379_v24  ;;  %v4382_v9 = vmul.f32 0.3, %v4318_v2  ;;  %13186 = vmatmul.mubr.msk.f32.gmra.mxu0 %vm592_vm1, %v4736_v53  ;;  %v3865_v41 = vadd.f32 %v3726_v18, %v15727_v10 }
 0x368   :  { %v4104_v57 = vpop.permute.xlu1 %4103  ;;  %v4568_v51 = vld [vmem:[#allocation2 + $0x160] ss:$2 sm:$0xff]  ;;  %v4632_v14 = vld [vmem:[#allocation2 + $0x161] ss:$2 sm:$0xff] }
 0x369   :  { %4507 = vst.msk [vmem:[#allocation2 + $0x178] sm:$0xff] %vm592_vm1, %v4443_v23  ;;  %v4446_v3 = vmax.f32 %v4318_v2, %v4382_v9  ;;  %v4246_v45 = vadd.f32 %v4104_v57, %v3862_v32  ;;  %v4673_v17 = vmax.f32 %v4568_v51, %v4632_v14 }
 0x36a   :  { %v4110_v36 = vpop.permute.xlu0 %4109 }
 0x36b   :  { %4510 = vst.msk [vmem:[#allocation2 + $0x190] sm:$0xff] %vm592_vm1, %v4446_v3  ;;  %v4317_v38 = vadd.f32 %v15817_v5, %v4246_v45  ;;  %v4249_v33 = vadd.f32 %v4110_v36, %v3865_v41  ;;  %v4705_v59 = vmul.f32 0.3, %v4673_v17 }
 0x36c   :  { %v3732_v56 = vpop.permute.xlu1 %3731 }
 0x36d   :  { %v4381_v1 = vmul.f32 0.3, %v4317_v38  ;;  %v4320_v20 = vadd.f32 %v15817_v5, %v4249_v33  ;;  %v4737_v60 = vmax.f32 %v4673_v17, %v4705_v59  ;;  %v3868_v3 = vadd.f32 %v3732_v56, %v15761_v42 }
 0x36e   :  { %v3730_v62 = vpop.permute.xlu0 %3729 }
 0x36f   :  { %v4445_v34 = vmax.f32 %v4317_v38, %v4381_v1  ;;  %v4384_v13 = vmul.f32 0.3, %v4320_v20  ;;  %13188 = vmatprep.mubr.msk.f32.mxu0 %vm592_vm1, %v4737_v60  ;;  %v3867_v22 = vadd.f32 %v3730_v62, %v15764_v19 }
 0x370   :  { %v4108_v10 = vpop.permute.xlu1 %4107  ;;  %v4570_v58 = vld [vmem:[#allocation2 + $0x170] ss:$2 sm:$0xff]  ;;  %v4634_v29 = vld [vmem:[#allocation2 + $0x171] ss:$2 sm:$0xff] }
 0x371   :  { %4509 = vst.msk [vmem:[#allocation2 + $0x188] sm:$0xff] %vm592_vm1, %v4445_v34  ;;  %v4448_v7 = vmax.f32 %v4320_v20, %v4384_v13  ;;  %v4248_v48 = vadd.f32 %v4108_v10, %v3864_v50  ;;  %v4674_v28 = vmax.f32 %v4570_v58, %v4634_v29 }
 0x372   :  { %v4114_v30 = vpop.permute.xlu0 %4113 }
 0x373   :  { %4512 = vst.msk [vmem:[#allocation2 + $0x1a0] sm:$0xff] %vm592_vm1, %v4448_v7  ;;  %v4319_v52 = vadd.f32 %v15817_v5, %v4248_v48  ;;  %v4251_v12 = vadd.f32 %v4114_v30, %v3867_v22  ;;  %v4706_v6 = vmul.f32 0.3, %v4674_v28  ;;  %v12342_v22 = vld [vmem:[%s18196_s28 + $0x18] sm:$0xf] }
 0x374   :  { %v3736_v35 = vpop.permute.xlu1 %3735  ;;  %13203 = vmatprep.subr.msk.mxu1 %vm785_vm0, %v12342_v22 }
 0x375   :  { %v4383_v46 = vmul.f32 0.3, %v4319_v52  ;;  %v4322_v11 = vadd.f32 %v15817_v5, %v4251_v12  ;;  %v4738_v31 = vmax.f32 %v4674_v28, %v4706_v6  ;;  %v3870_v58 = vadd.f32 %v3736_v35, %v15800_v26  ;;  %13204 = vmatpush3.msk.msra.mxu1 %vm785_vm0, %v12342_v22 }
 0x376   :  { %v3734_v37 = vpop.permute.xlu0 %3733 }
 0x377   :  { %v4447_v40 = vmax.f32 %v4319_v52, %v4383_v46  ;;  %v4386_v21 = vmul.f32 0.3, %v4322_v11  ;;  %13189 = vmatmul.mubr.msk.f32.gmra.mxu0 %vm592_vm1, %v4738_v31  ;;  %v3869_v24 = vadd.f32 %v3734_v37, %v15803_v63 }
 0x378   :  { %v4112_v19 = vpop.permute.xlu1 %4111  ;;  %v4572_v49 = vld [vmem:[#allocation2 + $0x180] ss:$2 sm:$0xff]  ;;  %v4636_v8 = vld [vmem:[#allocation2 + $0x181] ss:$2 sm:$0xff] }
 0x379   :  { %4511 = vst.msk [vmem:[#allocation2 + $0x198] sm:$0xff] %vm592_vm1, %v4447_v40  ;;  %v4450_v61 = vmax.f32 %v4322_v11, %v4386_v21  ;;  %v4250_v2 = vadd.f32 %v4112_v19, %v3866_v54  ;;  %v4675_v53 = vmax.f32 %v4572_v49, %v4636_v8  ;;  %v3296_v19 = vrot.slane %v15894_v4, 7 }
 0x37a   :  { %v4118_v18 = vpop.permute.xlu0 %4117 }
 0x37b   :  { %4514 = vst.msk [vmem:[#allocation2 + $0x1b0] sm:$0xff] %vm592_vm1, %v4450_v61  ;;  %v4321_v32 = vadd.f32 %v15817_v5, %v4250_v2  ;;  %v4253_v44 = vadd.f32 %v4118_v18, %v3869_v24  ;;  %v4707_v55 = vmul.f32 0.3, %v4675_v53 }
 0x37c   :  { %v16024_v23 = vpop.permute.xlu1 %3739 }
 0x37d   :  { %v4385_v9 = vmul.f32 0.3, %v4321_v32  ;;  %v4324_v57 = vadd.f32 %v15817_v5, %v4253_v44  ;;  %v4739_v51 = vmax.f32 %v4675_v53, %v4707_v55  ;;  %v3872_v4 = vadd.f32 %v16024_v23, %v15852_v39 }
 0x37e   :  { %v3738_v14 = vpop.permute.xlu0 %3737  ;;  %v18222_v55 = vrot.slane %v15830_v25, 7 }
 0x37f   :  { %v4449_v41 = vmax.f32 %v4321_v32, %v4385_v9  ;;  %v4388_v63 = vmul.f32 0.3, %v4324_v57  ;;  %13191 = vmatprep.mubr.msk.f32.mxu0 %vm592_vm1, %v4739_v51  ;;  %v3871_v33 = vadd.f32 %v3738_v14, %v15857_v15 }
 0x380   :  { %v4116_v45 = vpop.permute.xlu1 %4115  ;;  %v4574_v17 = vld [vmem:[#allocation2 + $0x190] ss:$2 sm:$0xff]  ;;  %v4638_v36 = vld [vmem:[#allocation2 + $0x191] ss:$2 sm:$0xff]  ;;  %v3297_v9 = vsel %vm1238_vm3, %v18222_v55, %v3296_v19 }
 0x381   :  { %4513 = vst.msk [vmem:[#allocation2 + $0x1a8] sm:$0xff] %vm592_vm1, %v4449_v41  ;;  %v4452_v38 = vmax.f32 %v4324_v57, %v4388_v63  ;;  %v4252_v59 = vadd.f32 %v4116_v45, %v3868_v3  ;;  %v4676_v1 = vmax.f32 %v4574_v17, %v4638_v36 }
 0x382   :  { %v4122_v20 = vpop.permute.xlu0 %4121 }
 0x383   :  { %4516 = vst.msk [vmem:[#allocation2 + $0x1c0] sm:$0xff] %vm592_vm1, %v4452_v38  ;;  %v4323_v60 = vadd.f32 %v15817_v5, %v4252_v59  ;;  %v4255_v42 = vadd.f32 %v4122_v20, %v3871_v33  ;;  %v4708_v56 = vmul.f32 0.3, %v4676_v1  ;;  %v3298_v38 = vrot.slane %v15869_v27, 7  ;;  %v12341_v27 = vld [vmem:[%s18196_s28 + $0x10] sm:$0xff] }
 0x384   :  { %v3744_v62 = vpop.permute.xlu1 %3743  ;;  %13205 = vmatprep.subr.mxu1 %v12341_v27 }
 0x385   :  { %v4387_v50 = vmul.f32 0.3, %v4323_v60  ;;  %v4326_v34 = vadd.f32 %v15817_v5, %v4255_v42  ;;  %v4740_v13 = vmax.f32 %v4676_v1, %v4708_v56  ;;  %v3874_v39 = vadd.f32 %v3744_v62, %v15867_v16  ;;  %13206 = vmatpush3.msra.mxu1 %v12341_v27 }
 0x386   :  { %v3742_v10 = vpop.permute.xlu0 %3741  ;;  %v3299_v42 = vsel %vm1238_vm3, %v3296_v19, %v3298_v38 }
 0x387   :  { %v4451_v29 = vmax.f32 %v4323_v60, %v4387_v50  ;;  %v4390_v7 = vmul.f32 0.3, %v4326_v34  ;;  %v16035_v15 = vpop.f32.mrf.mxu0  ;;  %13192 = vmatmul.mubr.msk.f32.gmra.mxu0 %vm592_vm1, %v4740_v13  ;;  %v3873_v52 = vadd.f32 %v3742_v10, %v15885_v0 }
 0x388   :  { %v4120_v48 = vpop.permute.xlu1 %4119  ;;  %5460 = vrot.lane.b32.xlu1 %v16035_v15, %s13817_s17  ;;  %v4576_v28 = vld [vmem:[#allocation2 + $0x1a0] ss:$2 sm:$0xff]  ;;  %v4640_v30 = vld [vmem:[#allocation2 + $0x1a1] ss:$2 sm:$0xff]  ;;  %v5235_v46 = vrot.slane %v16035_v15, 7  ;;  %v5331_v11 = vrot.slane %v16035_v15, 1 }
 0x389   :  { %4515 = vst.msk [vmem:[#allocation2 + $0x1b8] sm:$0xff] %vm592_vm1, %v4451_v29  ;;  %v4454_v26 = vmax.f32 %v4326_v34, %v4390_v7  ;;  %v4254_v12 = vadd.f32 %v4120_v48, %v3870_v58  ;;  %v16046_v6 = vpop.f32.mrf.mxu0  ;;  %v4677_v35 = vmax.f32 %v4576_v28, %v4640_v30 }
 0x38a   :  { %v5234_v31 = vrot.slane %v16046_v6, 7  ;;  %v5330_v37 = vrot.slane %v16046_v6, 1  ;;  %v4126_v54 = vpop.permute.xlu0 %4125  ;;  %5458 = vrot.lane.b32.xlu0 %v16046_v6, %s13817_s17 }
 0x38b   :  { %4518 = vst.msk [vmem:[#allocation2 + $0x1d0] sm:$0xff] %vm592_vm1, %v4454_v26  ;;  %v4325_v0 = vadd.f32 %v15817_v5, %v4254_v12  ;;  %v4257_v40 = vadd.f32 %v4126_v54, %v3873_v52  ;;  %v4709_v21 = vmul.f32 0.3, %v4677_v35 }
 0x38c   :  { %v3748_v49 = vpop.permute.xlu1 %3747  ;;  %v5332_v8 = vsel %vm1431_vm2, %v5330_v37, %v5331_v11  ;;  %v16066_v61 = vsel %vm1238_vm3, %v5234_v31, %v5235_v46 }
 0x38d   :  { %v4389_v24 = vmul.f32 0.3, %v4325_v0  ;;  %v4328_v2 = vadd.f32 %v15817_v5, %v4257_v40  ;;  %v4741_v53 = vmax.f32 %v4677_v35, %v4709_v21  ;;  %v3876_v56 = vadd.f32 %v3748_v49, %v3299_v42 }
 0x38e   :  { %v3746_v18 = vpop.permute.xlu0 %3745  ;;  %5650 = vrot.lane.b32.xlu0 %v5332_v8, %s13818_s29 }
 0x38f   :  { %v4453_v32 = vmax.f32 %v4325_v0, %v4389_v24  ;;  %v4392_v44 = vmul.f32 0.3, %v4328_v2  ;;  %13194 = vmatprep.mubr.msk.f32.mxu0 %vm592_vm1, %v4741_v53  ;;  %v3875_v41 = vadd.f32 %v3746_v18, %v3297_v9 }
 0x390   :  { %v4124_v57 = vpop.permute.xlu1 %4123  ;;  %v4578_v51 = vld [vmem:[#allocation2 + $0x1b0] ss:$2 sm:$0xff]  ;;  %v4642_v14 = vld [vmem:[#allocation2 + $0x1b1] ss:$2 sm:$0xff] }
 0x391   :  { %4517 = vst.msk [vmem:[#allocation2 + $0x1c8] sm:$0xff] %vm592_vm1, %v4453_v32  ;;  %v4456_v3 = vmax.f32 %v4328_v2, %v4392_v44  ;;  %v4256_v63 = vadd.f32 %v4124_v57, %v3872_v4  ;;  %v4678_v45 = vmax.f32 %v4578_v51, %v4642_v14 }
 0x392   :  { %v4130_v17 = vpop.permute.xlu0 %4129 }
 0x393   :  { %4520 = vst.msk [vmem:[#allocation2 + $0x1e0] sm:$0xff] %vm592_vm1, %v4456_v3  ;;  %v4327_v23 = vadd.f32 %v15817_v5, %v4256_v63  ;;  %v4259_v36 = vadd.f32 %v4130_v17, %v3875_v41  ;;  %v4710_v25 = vmul.f32 0.3, %v4678_v45 }
 0x394   :  { %v4128_v33 = vpop.permute.xlu1 %4127 }
 0x395   :  { %v4391_v59 = vmul.f32 0.3, %v4327_v23  ;;  %v4330_v1 = vadd.f32 %v15817_v5, %v4259_v36  ;;  %v4258_v20 = vadd.f32 %v4128_v33, %v3874_v39  ;;  %v4742_v60 = vmax.f32 %v4678_v45, %v4710_v25 }
 0x397   :  { %v4455_v50 = vmax.f32 %v4327_v23, %v4391_v59  ;;  %v4394_v34 = vmul.f32 0.3, %v4330_v1  ;;  %v4329_v16 = vadd.f32 %v15817_v5, %v4258_v20  ;;  %v16084_v62 = vpop.f32.mrf.mxu0  ;;  %13195 = vmatmul.mubr.msk.f32.gmra.mxu0 %vm592_vm1, %v4742_v60 }
 0x398   :  { %5464 = vrot.lane.b32.xlu1 %v16084_v62, %s13817_s17  ;;  %v4132_v13 = vpop.permute.xlu1 %4131  ;;  %v4580_v10 = vld [vmem:[#allocation2 + $0x1c0] ss:$2 sm:$0xff]  ;;  %v4644_v58 = vld [vmem:[#allocation2 + $0x1c1] ss:$2 sm:$0xff]  ;;  %v5239_v30 = vrot.slane %v16084_v62, 7  ;;  %v5335_v26 = vrot.slane %v16084_v62, 1 }
 0x399   :  { %4519 = vst.msk [vmem:[#allocation2 + $0x1d8] sm:$0xff] %vm592_vm1, %v4455_v50  ;;  %v4458_v29 = vmax.f32 %v4330_v1, %v4394_v34  ;;  %v4393_v7 = vmul.f32 0.3, %v4329_v16  ;;  %v4260_v22 = vadd.f32 %v4132_v13, %v3876_v56  ;;  %v5053_v48 = vpop.f32.mrf.mxu0  ;;  %v4679_v28 = vmax.f32 %v4580_v10, %v4644_v58 }
 0x39a   :  { %v5237_v52 = vrot.slane %v5053_v48, 7  ;;  %v5333_v12 = vrot.slane %v5053_v48, 1  ;;  %5462 = vrot.lane.b32.xlu0 %v5053_v48, %s13817_s17 }
 0x39b   :  { %4522 = vst.msk [vmem:[#allocation2 + $0x1f0] sm:$0xff] %vm592_vm1, %v4458_v29  ;;  %v4457_v35 = vmax.f32 %v4329_v16, %v4393_v7  ;;  %v4331_v37 = vadd.f32 %v15817_v5, %v4260_v22  ;;  %v4711_v54 = vmul.f32 0.3, %v4679_v28 }
 0x39c   :  { %v5334_v0 = vsel %vm1431_vm2, %v5331_v11, %v5333_v12  ;;  %v5336_v40 = vsel %vm1431_vm2, %v5333_v12, %v5335_v26  ;;  %v16103_v21 = vsel %vm1238_vm3, %v5237_v52, %v5239_v30  ;;  %v16108_v19 = vsel %vm1238_vm3, %v5235_v46, %v5237_v52 }
 0x39d   :  { %4521 = vst.msk [vmem:[#allocation2 + $0x1e8] sm:$0xff] %vm592_vm1, %v4457_v35  ;;  %v4395_v49 = vmul.f32 0.3, %v4331_v37  ;;  %5652 = vrot.lane.b32.xlu1 %v5334_v0, %s13818_s29  ;;  %v4743_v5 = vmax.f32 %v4679_v28, %v4711_v54 }
 0x39e   :  { %5654 = vrot.lane.b32.xlu0 %v5336_v40, %s13818_s29 }
 0x39f   :  { %v4459_v8 = vmax.f32 %v4331_v37, %v4395_v49  ;;  %13197 = vmatprep.mubr.msk.f32.mxu0 %vm592_vm1, %v4743_v5 }
 0x3a0   :  { %v4582_v11 = vld [vmem:[#allocation2 + $0x1d0] ss:$2 sm:$0xff]  ;;  %v4646_v24 = vld [vmem:[#allocation2 + $0x1d1] ss:$2 sm:$0xff] }
 0x3a1   :  { %4523 = vst.msk [vmem:[#allocation2 + $0x1f8] sm:$0xff] %vm592_vm1, %v4459_v8  ;;  %v4680_v2 = vmax.f32 %v4582_v11, %v4646_v24 }
 0x3a3   :  { %v4712_v15 = vmul.f32 0.3, %v4680_v2 }
 0x3a4   :  { %v4584_v53 = vld [vmem:[#allocation2 + $0x1e0] ss:$2 sm:$0xff]  ;;  %v4648_v46 = vld [vmem:[#allocation2 + $0x1e1] ss:$2 sm:$0xff] }
 0x3a5   :  { %v4744_v18 = vmax.f32 %v4680_v2, %v4712_v15  ;;  %v4681_v4 = vmax.f32 %v4584_v53, %v4648_v46 }
 0x3a7   :  { %v13163_v32 = vpop.f32.mrf.mxu0  ;;  %13198 = vmatmul.mubr.msk.f32.gmra.mxu0 %vm592_vm1, %v4744_v18  ;;  %v4713_v44 = vmul.f32 0.3, %v4681_v4 }
 0x3a8   :  { %5468 = vrot.lane.b32.xlu1 %v13163_v32, %s13817_s17  ;;  %v4586_v55 = vld [vmem:[#allocation2 + $0x1f0] ss:$2 sm:$0xff]  ;;  %v4650_v9 = vld [vmem:[#allocation2 + $0x1f1] ss:$2 sm:$0xff]  ;;  %v5243_v3 = vrot.slane %v13163_v32, 7  ;;  %v5339_v41 = vrot.slane %v13163_v32, 1 }
 0x3a9   :  { %v5063_v57 = vpop.f32.mrf.mxu0  ;;  %v4745_v51 = vmax.f32 %v4681_v4, %v4713_v44  ;;  %v4682_v14 = vmax.f32 %v4586_v55, %v4650_v9 }
 0x3aa   :  { %v5241_v63 = vrot.slane %v5063_v57, 7  ;;  %v5337_v45 = vrot.slane %v5063_v57, 1  ;;  %5466 = vrot.lane.b32.xlu0 %v5063_v57, %s13817_s17 }
 0x3ab   :  { %13200 = vmatprep.mubr.msk.f32.mxu0 %vm592_vm1, %v4745_v51  ;;  %v4714_v17 = vmul.f32 0.3, %v4682_v14 }
 0x3ac   :  { %v5338_v39 = vsel %vm1431_vm2, %v5335_v26, %v5337_v45  ;;  %v5340_v23 = vsel %vm1431_vm2, %v5337_v45, %v5339_v41  ;;  %v16122_v36 = vsel %vm1238_vm3, %v5241_v63, %v5243_v3  ;;  %v16125_v25 = vsel %vm1238_vm3, %v5239_v30, %v5241_v63 }
 0x3ad   :  { %5656 = vrot.lane.b32.xlu1 %v5338_v39, %s13818_s29  ;;  %v4746_v38 = vmax.f32 %v4682_v14, %v4714_v17  ;;  %v5329_v14 = vsel %vm1238_vm3, 0.0, %v5234_v31  ;;  %v16198_v31 = vld [vmem:[%s18197_s24 + $0x1] ss:$0 sm:$0xff] }
 0x3ae   :  { %5658 = vrot.lane.b32.xlu0 %v5340_v23, %s13818_s29  ;;  %v5426_v39 = vsel %vm206_vm4, 0.0, %v5329_v14 }
 0x3af   :  { %13201 = vmatmul.mubr.msk.f32.gmra.mxu0 %vm592_vm1, %v4746_v38 }
 0x3b7   :  { %v13166_v33 = vpop.f32.mrf.mxu0 }
 0x3b8   :  { %5472 = vrot.lane.b32.xlu1 %v13166_v33, %s13817_s17  ;;  %v5247_v1 = vrot.slane %v13166_v33, 7  ;;  %v5343_v20 = vrot.slane %v13166_v33, 1 }
 0x3b9   :  { %v5073_v59 = vpop.f32.mrf.mxu0 }
 0x3ba   :  { %v5245_v60 = vrot.slane %v5073_v59, 7  ;;  %v5341_v42 = vrot.slane %v5073_v59, 1  ;;  %5470 = vrot.lane.b32.xlu0 %v5073_v59, %s13817_s17 }
 0x3bc   :  { %v5342_v56 = vsel %vm1431_vm2, %v5339_v41, %v5341_v42  ;;  %v5344_v50 = vsel %vm1431_vm2, %v5341_v42, %v5343_v20  ;;  %v16135_v34 = vsel %vm1238_vm3, %v5245_v60, %v5247_v1  ;;  %v16138_v16 = vsel %vm1238_vm3, %v5243_v3, %v5245_v60 }
 0x3bd   :  { %5660 = vrot.lane.b32.xlu1 %v5342_v56, %s13818_s29 }
 0x3be   :  { %5662 = vrot.lane.b32.xlu0 %v5344_v50, %s13818_s29 }
 0x3c7   :  { %v13169_v62 = vpop.f32.mrf.mxu0 }
 0x3c8   :  { %5476 = vrot.lane.b32.xlu1 %v13169_v62, %s13817_s17  ;;  %v5251_v13 = vrot.slane %v13169_v62, 7  ;;  %v5347_v10 = vrot.slane %v13169_v62, 1 }
 0x3c9   :  { %v5083_v27 = vpop.f32.mrf.mxu0 }
 0x3ca   :  { %v5249_v58 = vrot.slane %v5083_v27, 7  ;;  %v5345_v29 = vrot.slane %v5083_v27, 1  ;;  %5474 = vrot.lane.b32.xlu0 %v5083_v27, %s13817_s17 }
 0x3cc   :  { %v5346_v7 = vsel %vm1431_vm2, %v5343_v20, %v5345_v29  ;;  %v5348_v22 = vsel %vm1431_vm2, %v5345_v29, %v5347_v10  ;;  %v16147_v48 = vsel %vm1238_vm3, %v5249_v58, %v5251_v13  ;;  %v16150_v28 = vsel %vm1238_vm3, %v5247_v1, %v5249_v58 }
 0x3cd   :  { %5664 = vrot.lane.b32.xlu1 %v5346_v7, %s13818_s29  ;;  %v16202_v1 = vadd.s32 120, %v14429_v47 }
 0x3ce   :  { %5666 = vrot.lane.b32.xlu0 %v5348_v22, %s13818_s29 }
 0x3cf   :  { %vm4762_vm8 = vcmp.eq.s32.totalorder %v16202_v1, 127 }
 0x3d6   :  { %v13172_v30 = vpop.f32.mrf.mxu0 }
 0x3d7   :  { %5480 = vrot.lane.b32.xlu1 %v13172_v30, %s13817_s17  ;;  %v5255_v52 = vrot.slane %v13172_v30, 7  ;;  %v5351_v12 = vrot.slane %v13172_v30, 1 }
 0x3d8   :  { %v5093_v26 = vpop.f32.mrf.mxu0 }
 0x3d9   :  { %v5253_v35 = vrot.slane %v5093_v26, 7  ;;  %v5349_v37 = vrot.slane %v5093_v26, 1  ;;  %5478 = vrot.lane.b32.xlu0 %v5093_v26, %s13817_s17 }
 0x3db   :  { %v5350_v54 = vsel %vm1431_vm2, %v5347_v10, %v5349_v37  ;;  %v5352_v0 = vsel %vm1431_vm2, %v5349_v37, %v5351_v12  ;;  %v16159_v40 = vsel %vm1238_vm3, %v5253_v35, %v5255_v52  ;;  %v16162_v49 = vsel %vm1238_vm3, %v5251_v13, %v5253_v35 }
 0x3dc   :  { %5668 = vrot.lane.b32.xlu1 %v5350_v54, %s13818_s29 }
 0x3dd   :  { %5670 = vrot.lane.b32.xlu0 %v5352_v0, %s13818_s29 }
 0x3e3   :  { %v13175_v5 = vpop.f32.mrf.mxu0 }
 0x3e4   :  { %5484 = vrot.lane.b32.xlu1 %v13175_v5, %s13817_s17  ;;  %v5259_v11 = vrot.slane %v13175_v5, 7  ;;  %v5355_v24 = vrot.slane %v13175_v5, 1 }
 0x3e5   :  { %v5103_v8 = vpop.f32.mrf.mxu0 }
 0x3e6   :  { %v5257_v2 = vrot.slane %v5103_v8, 7  ;;  %v5353_v15 = vrot.slane %v5103_v8, 1  ;;  %5482 = vrot.lane.b32.xlu0 %v5103_v8, %s13817_s17 }
 0x3e8   :  { %v5354_v53 = vsel %vm1431_vm2, %v5351_v12, %v5353_v15  ;;  %v5356_v46 = vsel %vm1431_vm2, %v5353_v15, %v5355_v24  ;;  %v16171_v18 = vsel %vm1238_vm3, %v5257_v2, %v5259_v11  ;;  %v16174_v4 = vsel %vm1238_vm3, %v5255_v52, %v5257_v2 }
 0x3e9   :  { %5672 = vrot.lane.b32.xlu1 %v5354_v53, %s13818_s29 }
 0x3ea   :  { %5674 = vrot.lane.b32.xlu0 %v5356_v46, %s13818_s29 }
 0x3f7   :  { %v13178_v32 = vpop.f32.mrf.mxu0 }
 0x3f8   :  { %5488 = vrot.lane.b32.xlu1 %v13178_v32, %s13817_s17  ;;  %v5263_v55 = vrot.slane %v13178_v32, 7  ;;  %v5359_v9 = vrot.slane %v13178_v32, 1 }
 0x3f9   :  { %v5113_v44 = vpop.f32.mrf.mxu0 }
 0x3fa   :  { %v5261_v57 = vrot.slane %v5113_v44, 7  ;;  %v5357_v51 = vrot.slane %v5113_v44, 1  ;;  %5486 = vrot.lane.b32.xlu0 %v5113_v44, %s13817_s17  ;;  %v5461_v20 = vpop.permute.xlu1 %5460 }
 0x3fb   :  { %v5555_v52 = vadd.f32 %v5461_v20, %v16066_v61 }
 0x3fc   :  { %v5459_v3 = vpop.permute.xlu0 %5458  ;;  %v5358_v41 = vsel %vm1431_vm2, %v5355_v24, %v5357_v51  ;;  %v5360_v63 = vsel %vm1431_vm2, %v5357_v51, %v5359_v9  ;;  %v16186_v45 = vsel %vm1238_vm3, %v5261_v57, %v5263_v55  ;;  %v16189_v17 = vsel %vm1238_vm3, %v5259_v11, %v5261_v57 }
 0x3fd   :  { %5676 = vrot.lane.b32.xlu1 %v5358_v41, %s13818_s29  ;;  %v5554_v6 = vadd.f32 %v5459_v3, %v5426_v39 }
 0x3fe   :  { %5678 = vrot.lane.b32.xlu0 %v5360_v63, %s13818_s29 }
 0x400   :  { %v5651_v23 = vpop.permute.xlu0 %5650 }
 0x401   :  { %v5746_v38 = vadd.f32 %v5651_v23, %v5554_v6 }
 0x403   :  { %v5786_v33 = vadd.f32 %v16198_v31, %v5746_v38 }
 0x405   :  { %v5818_v59 = vmul.f32 0.3, %v5786_v33 }
 0x407   :  { %v5850_v60 = vmax.f32 %v5786_v33, %v5818_v59  ;;  %v13181_v42 = vpop.f32.mrf.mxu0 }
 0x408   :  { %5492 = vrot.lane.b32.xlu1 %v13181_v42, %s13817_s17  ;;  %v5267_v50 = vrot.slane %v13181_v42, 7  ;;  %v5363_v62 = vrot.slane %v13181_v42, 1 }
 0x409   :  { %v5123_v56 = vpop.f32.mrf.mxu0  ;;  %13207 = vmatprep.mubr.msk.f32.mxu1 %vm592_vm1, %v5850_v60 }
 0x40a   :  { %v5265_v27 = vrot.slane %v5123_v56, 7  ;;  %v5361_v13 = vrot.slane %v5123_v56, 1  ;;  %5490 = vrot.lane.b32.xlu0 %v5123_v56, %s13817_s17  ;;  %v5465_v10 = vpop.permute.xlu1 %5464 }
 0x40b   :  { %v5557_v41 = vadd.f32 %v5465_v10, %v16103_v21 }
 0x40c   :  { %v5463_v58 = vpop.permute.xlu0 %5462  ;;  %v5364_v29 = vsel %vm1431_vm2, %v5361_v13, %v5363_v62  ;;  %v5362_v7 = vsel %vm1431_vm2, %v5359_v9, %v5361_v13  ;;  %v16211_v22 = vsel %vm1238_vm3, %v5265_v27, %v5267_v50  ;;  %v16214_v30 = vsel %vm1238_vm3, %v5263_v55, %v5265_v27 }
 0x40d   :  { %v5601_v26 = vsel %vm4762_vm8, 0.0, %v5362_v7  ;;  %v5556_v12 = vadd.f32 %v5463_v58, %v16108_v19 }
 0x40e   :  { %5682 = vrot.lane.b32.xlu0 %v5364_v29, %s13818_s29  ;;  %5680 = vrot.lane.b32.xlu1 %v5601_v26, %s13818_s29 }
 0x40f   :  { %v5653_v35 = vpop.permute.xlu1 %5652 }
 0x410   :  { %v5747_v37 = vadd.f32 %v5653_v35, %v5555_v52  ;;  %v5655_v54 = vpop.permute.xlu0 %5654 }
 0x411   :  { %v5748_v0 = vadd.f32 %v5655_v54, %v5556_v12 }
 0x412   :  { %v5787_v5 = vadd.f32 %v16198_v31, %v5747_v37 }
 0x413   :  { %v5788_v8 = vadd.f32 %v16198_v31, %v5748_v0 }
 0x414   :  { %v5819_v11 = vmul.f32 0.3, %v5787_v5 }
 0x415   :  { %v5820_v24 = vmul.f32 0.3, %v5788_v8 }
 0x416   :  { %v5851_v2 = vmax.f32 %v5787_v5, %v5819_v11 }
 0x417   :  { %v5852_v15 = vmax.f32 %v5788_v8, %v5820_v24  ;;  %v13184_v53 = vpop.f32.mrf.mxu0 }
 0x418   :  { %5496 = vrot.lane.b32.xlu1 %v13184_v53, %s13817_s17  ;;  %13208 = vmatmul.mubr.msk.f32.vlgmr.msra.gmra.mxu1 %vm592_vm1, %v5851_v2  ;;  %v5271_v19 = vrot.slane %v13184_v53, 7  ;;  %v5367_v46 = vrot.slane %v13184_v53, 1 }
 0x419   :  { %v5133_v61 = vpop.f32.mrf.mxu0  ;;  %13210 = vmatprep.mubr.msk.f32.mxu1 %vm592_vm1, %v5852_v15 }
 0x41a   :  { %v5269_v32 = vrot.slane %v5133_v61, 7  ;;  %v5365_v44 = vrot.slane %v5133_v61, 1  ;;  %5494 = vrot.lane.b32.xlu0 %v5133_v61, %s13817_s17  ;;  %v5469_v55 = vpop.permute.xlu1 %5468 }
 0x41b   :  { %v5559_v12 = vadd.f32 %v5469_v55, %v16122_v36 }
 0x41c   :  { %v5467_v9 = vpop.permute.xlu0 %5466  ;;  %v5366_v57 = vsel %vm1431_vm2, %v5363_v62, %v5365_v44  ;;  %v5368_v51 = vsel %vm1431_vm2, %v5365_v44, %v5367_v46  ;;  %v16231_v14 = vsel %vm1238_vm3, %v5269_v32, %v5271_v19  ;;  %v16234_v3 = vsel %vm1238_vm3, %v5267_v50, %v5269_v32 }
 0x41d   :  { %5684 = vrot.lane.b32.xlu1 %v5366_v57, %s13818_s29  ;;  %v5558_v63 = vadd.f32 %v5467_v9, %v16125_v25 }
 0x41e   :  { %5686 = vrot.lane.b32.xlu0 %v5368_v51, %s13818_s29 }
 0x41f   :  { %v5657_v39 = vpop.permute.xlu1 %5656 }
 0x420   :  { %v5749_v6 = vadd.f32 %v5657_v39, %v5557_v41  ;;  %v5659_v23 = vpop.permute.xlu0 %5658 }
 0x421   :  { %v5750_v38 = vadd.f32 %v5659_v23, %v5558_v63 }
 0x422   :  { %v5789_v33 = vadd.f32 %v16198_v31, %v5749_v6 }
 0x423   :  { %v5790_v59 = vadd.f32 %v16198_v31, %v5750_v38 }
 0x424   :  { %v5821_v20 = vmul.f32 0.3, %v5789_v33 }
 0x425   :  { %v5822_v60 = vmul.f32 0.3, %v5790_v59 }
 0x426   :  { %v5853_v42 = vmax.f32 %v5789_v33, %v5821_v20 }
 0x427   :  { %v5854_v56 = vmax.f32 %v5790_v59, %v5822_v60  ;;  %v13187_v50 = vpop.f32.mrf.mxu0 }
 0x428   :  { %5500 = vrot.lane.b32.xlu1 %v13187_v50, %s13817_s17  ;;  %13211 = vmatmul.mubr.msk.f32.gmra.mxu1 %vm592_vm1, %v5853_v42  ;;  %v5275_v25 = vrot.slane %v13187_v50, 7  ;;  %v5371_v62 = vrot.slane %v13187_v50, 1 }
 0x429   :  { %v5143_v21 = vpop.f32.mrf.mxu0  ;;  %13213 = vmatprep.mubr.msk.f32.mxu1 %vm592_vm1, %v5854_v56 }
 0x42a   :  { %v5273_v27 = vrot.slane %v5143_v21, 7  ;;  %v5369_v13 = vrot.slane %v5143_v21, 1  ;;  %5498 = vrot.lane.b32.xlu0 %v5143_v21, %s13817_s17  ;;  %v5473_v10 = vpop.permute.xlu1 %5472 }
 0x42b   :  { %v5561_v63 = vadd.f32 %v5473_v10, %v16135_v34 }
 0x42c   :  { %v5471_v58 = vpop.permute.xlu0 %5470  ;;  %v5370_v29 = vsel %vm1431_vm2, %v5367_v46, %v5369_v13  ;;  %v5372_v7 = vsel %vm1431_vm2, %v5369_v13, %v5371_v62  ;;  %v16249_v26 = vsel %vm1238_vm3, %v5273_v27, %v5275_v25  ;;  %v16252_v52 = vsel %vm1238_vm3, %v5271_v19, %v5273_v27 }
 0x42d   :  { %5688 = vrot.lane.b32.xlu1 %v5370_v29, %s13818_s29  ;;  %v5560_v35 = vadd.f32 %v5471_v58, %v16138_v16 }
 0x42e   :  { %5690 = vrot.lane.b32.xlu0 %v5372_v7, %s13818_s29 }
 0x42f   :  { %v5661_v37 = vpop.permute.xlu1 %5660 }
 0x430   :  { %v5751_v54 = vadd.f32 %v5661_v37, %v5559_v12  ;;  %v5663_v0 = vpop.permute.xlu0 %5662 }
 0x431   :  { %v5752_v5 = vadd.f32 %v5663_v0, %v5560_v35 }
 0x432   :  { %v5791_v8 = vadd.f32 %v16198_v31, %v5751_v54 }
 0x433   :  { %v5792_v11 = vadd.f32 %v16198_v31, %v5752_v5 }
 0x434   :  { %v5823_v24 = vmul.f32 0.3, %v5791_v8 }
 0x435   :  { %v5824_v2 = vmul.f32 0.3, %v5792_v11 }
 0x436   :  { %v5855_v15 = vmax.f32 %v5791_v8, %v5823_v24 }
 0x437   :  { %v5856_v53 = vmax.f32 %v5792_v11, %v5824_v2  ;;  %v13190_v61 = vpop.f32.mrf.mxu0 }
 0x438   :  { %5504 = vrot.lane.b32.xlu1 %v13190_v61, %s13817_s17  ;;  %13214 = vmatmul.mubr.msk.f32.gmra.mxu1 %vm592_vm1, %v5855_v15  ;;  %v5279_v16 = vrot.slane %v13190_v61, 7  ;;  %v5375_v19 = vrot.slane %v13190_v61, 1 }
 0x439   :  { %v5153_v36 = vpop.f32.mrf.mxu0  ;;  %13216 = vmatprep.mubr.msk.f32.mxu1 %vm592_vm1, %v5856_v53 }
 0x43a   :  { %v5277_v46 = vrot.slane %v5153_v36, 7  ;;  %v5373_v32 = vrot.slane %v5153_v36, 1  ;;  %5502 = vrot.lane.b32.xlu0 %v5153_v36, %s13817_s17  ;;  %v5477_v44 = vpop.permute.xlu1 %5476 }
 0x43b   :  { %v5563_v35 = vadd.f32 %v5477_v44, %v16147_v48 }
 0x43c   :  { %v5475_v55 = vpop.permute.xlu0 %5474  ;;  %v5374_v9 = vsel %vm1431_vm2, %v5371_v62, %v5373_v32  ;;  %v5376_v57 = vsel %vm1431_vm2, %v5373_v32, %v5375_v19  ;;  %v16267_v51 = vsel %vm1238_vm3, %v5277_v46, %v5279_v16  ;;  %v16270_v41 = vsel %vm1238_vm3, %v5275_v25, %v5277_v46 }
 0x43d   :  { %5692 = vrot.lane.b32.xlu1 %v5374_v9, %s13818_s29  ;;  %v5562_v39 = vadd.f32 %v5475_v55, %v16150_v28 }
 0x43e   :  { %5694 = vrot.lane.b32.xlu0 %v5376_v57, %s13818_s29 }
 0x43f   :  { %v5665_v6 = vpop.permute.xlu1 %5664 }
 0x440   :  { %v5753_v23 = vadd.f32 %v5665_v6, %v5561_v63  ;;  %v5667_v38 = vpop.permute.xlu0 %5666 }
 0x441   :  { %v5754_v33 = vadd.f32 %v5667_v38, %v5562_v39 }
 0x442   :  { %v5793_v59 = vadd.f32 %v16198_v31, %v5753_v23 }
 0x443   :  { %v5794_v20 = vadd.f32 %v16198_v31, %v5754_v33 }
 0x444   :  { %v5825_v60 = vmul.f32 0.3, %v5793_v59 }
 0x445   :  { %v5826_v42 = vmul.f32 0.3, %v5794_v20 }
 0x446   :  { %v5857_v56 = vmax.f32 %v5793_v59, %v5825_v60 }
 0x447   :  { %v5858_v50 = vmax.f32 %v5794_v20, %v5826_v42  ;;  %v13193_v21 = vpop.f32.mrf.mxu0 }
 0x448   :  { %5508 = vrot.lane.b32.xlu1 %v13193_v21, %s13817_s17  ;;  %13217 = vmatmul.mubr.msk.f32.gmra.mxu1 %vm592_vm1, %v5857_v56  ;;  %v5283_v28 = vrot.slane %v13193_v21, 7  ;;  %v5379_v25 = vrot.slane %v13193_v21, 1 }
 0x449   :  { %v5163_v34 = vpop.f32.mrf.mxu0  ;;  %13219 = vmatprep.mubr.msk.f32.mxu1 %vm592_vm1, %v5858_v50  ;;  %v5481_v13 = vpop.permute.xlu1 %5480 }
 0x44a   :  { %v5281_v62 = vrot.slane %v5163_v34, 7  ;;  %v5377_v27 = vrot.slane %v5163_v34, 1  ;;  %5506 = vrot.lane.b32.xlu0 %v5163_v34, %s13817_s17  ;;  %v5565_v48 = vadd.f32 %v5481_v13, %v16159_v40 }
 0x44b   :  { %v5479_v10 = vpop.permute.xlu0 %5478 }
 0x44c   :  { %v5378_v58 = vsel %vm1431_vm2, %v5375_v19, %v5377_v27  ;;  %v5380_v29 = vsel %vm1431_vm2, %v5377_v27, %v5379_v25  ;;  %v16285_v7 = vsel %vm1238_vm3, %v5281_v62, %v5283_v28  ;;  %v16288_v12 = vsel %vm1238_vm3, %v5279_v16, %v5281_v62 }
 0x44d   :  { %5696 = vrot.lane.b32.xlu1 %v5378_v58, %s13818_s29  ;;  %v5564_v37 = vadd.f32 %v5479_v10, %v16162_v49 }
 0x44e   :  { %5698 = vrot.lane.b32.xlu0 %v5380_v29, %s13818_s29  ;;  %v5669_v54 = vpop.permute.xlu1 %5668 }
 0x44f   :  { %v5755_v0 = vadd.f32 %v5669_v54, %v5563_v35  ;;  %v5671_v5 = vpop.permute.xlu0 %5670 }
 0x450   :  { %v5756_v8 = vadd.f32 %v5671_v5, %v5564_v37 }
 0x451   :  { %v5795_v11 = vadd.f32 %v16198_v31, %v5755_v0 }
 0x452   :  { %v5796_v24 = vadd.f32 %v16198_v31, %v5756_v8 }
 0x453   :  { %v5827_v2 = vmul.f32 0.3, %v5795_v11 }
 0x454   :  { %v5828_v15 = vmul.f32 0.3, %v5796_v24 }
 0x455   :  { %v5859_v53 = vmax.f32 %v5795_v11, %v5827_v2 }
 0x456   :  { %v5485_v61 = vpop.permute.xlu1 %5484  ;;  %v5860_v36 = vmax.f32 %v5796_v24, %v5828_v15 }
 0x457   :  { %v13196_v16 = vpop.f32.mrf.mxu0  ;;  %13220 = vmatmul.mubr.msk.f32.gmra.mxu1 %vm592_vm1, %v5859_v53  ;;  %v5567_v37 = vadd.f32 %v5485_v61, %v16171_v18 }
 0x458   :  { %v5483_v19 = vpop.permute.xlu0 %5482  ;;  %5512 = vrot.lane.b32.xlu1 %v13196_v16, %s13817_s17  ;;  %13222 = vmatprep.mubr.msk.f32.mxu1 %vm592_vm1, %v5860_v36  ;;  %v5287_v46 = vrot.slane %v13196_v16, 7  ;;  %v5383_v32 = vrot.slane %v13196_v16, 1 }
 0x459   :  { %v5173_v49 = vpop.f32.mrf.mxu0  ;;  %v5566_v9 = vadd.f32 %v5483_v19, %v16174_v4 }
 0x45a   :  { %v5285_v44 = vrot.slane %v5173_v49, 7  ;;  %v5381_v55 = vrot.slane %v5173_v49, 1  ;;  %5510 = vrot.lane.b32.xlu0 %v5173_v49, %s13817_s17 }
 0x45b   :  { %v5673_v57 = vpop.permute.xlu1 %5672 }
 0x45c   :  { %v5757_v63 = vadd.f32 %v5673_v57, %v5565_v48  ;;  %v5675_v39 = vpop.permute.xlu0 %5674  ;;  %v5382_v6 = vsel %vm1431_vm2, %v5379_v25, %v5381_v55  ;;  %v5384_v23 = vsel %vm1431_vm2, %v5381_v55, %v5383_v32  ;;  %v16305_v40 = vsel %vm1238_vm3, %v5285_v44, %v5287_v46 }
 0x45d   :  { %v5758_v38 = vadd.f32 %v5675_v39, %v5566_v9  ;;  %5700 = vrot.lane.b32.xlu1 %v5382_v6, %s13818_s29  ;;  %v16309_v33 = vsel %vm1238_vm3, %v5283_v28, %v5285_v44 }
 0x45e   :  { %v5797_v59 = vadd.f32 %v16198_v31, %v5757_v63  ;;  %5702 = vrot.lane.b32.xlu0 %v5384_v23, %s13818_s29 }
 0x45f   :  { %v5798_v4 = vadd.f32 %v16198_v31, %v5758_v38 }
 0x460   :  { %v5829_v20 = vmul.f32 0.3, %v5797_v59 }
 0x461   :  { %v5830_v60 = vmul.f32 0.3, %v5798_v4 }
 0x462   :  { %v5861_v42 = vmax.f32 %v5797_v59, %v5829_v20 }
 0x463   :  { %v5862_v56 = vmax.f32 %v5798_v4, %v5830_v60 }
 0x464   :  { %13223 = vmatmul.mubr.msk.f32.gmra.mxu1 %vm592_vm1, %v5861_v42 }
 0x465   :  { %13225 = vmatprep.mubr.msk.f32.mxu1 %vm592_vm1, %v5862_v56 }
 0x467   :  { %v16316_v50 = vpop.f32.mrf.mxu0 }
 0x468   :  { %5516 = vrot.lane.b32.xlu1 %v16316_v50, %s13817_s17  ;;  %v5291_v34 = vrot.slane %v16316_v50, 7  ;;  %v5387_v28 = vrot.slane %v16316_v50, 1 }
 0x469   :  { %v5183_v21 = vpop.f32.mrf.mxu0 }
 0x46a   :  { %v5289_v25 = vrot.slane %v5183_v21, 7  ;;  %v5385_v62 = vrot.slane %v5183_v21, 1  ;;  %5514 = vrot.lane.b32.xlu0 %v5183_v21, %s13817_s17  ;;  %v5489_v27 = vpop.permute.xlu1 %5488 }
 0x46b   :  { %v5569_v63 = vadd.f32 %v5489_v27, %v16186_v45 }
 0x46c   :  { %v5487_v13 = vpop.permute.xlu0 %5486  ;;  %v5386_v10 = vsel %vm1431_vm2, %v5383_v32, %v5385_v62  ;;  %v5388_v58 = vsel %vm1431_vm2, %v5385_v62, %v5387_v28  ;;  %v16328_v29 = vsel %vm1238_vm3, %v5289_v25, %v5291_v34  ;;  %v16331_v35 = vsel %vm1238_vm3, %v5287_v46, %v5289_v25 }
 0x46d   :  { %5704 = vrot.lane.b32.xlu1 %v5386_v10, %s13818_s29  ;;  %v5568_v54 = vadd.f32 %v5487_v13, %v16189_v17  ;;  %v16355_v32 = vadd.s32 128, %v14429_v47 }
 0x46e   :  { %5706 = vrot.lane.b32.xlu0 %v5388_v58, %s13818_s29 }
 0x46f   :  { %v5677_v0 = vpop.permute.xlu1 %5676  ;;  %v16337_v5 = vpop.f32.mrf.mxu0  ;;  %vm4795_vm9 = vcmp.eq.s32.totalorder %v16355_v32, 128 }
 0x470   :  { %v5759_v8 = vadd.f32 %v5677_v0, %v5567_v37  ;;  %v5679_v11 = vpop.permute.xlu0 %5678  ;;  %v5391_v24 = vrot.slane %v16337_v5, 1  ;;  %v5442_v57 = vsel %vm4795_vm9, 0.0, %v16214_v30 }
 0x471   :  { %v5760_v2 = vadd.f32 %v5679_v11, %v5568_v54  ;;  %5520 = vrot.lane.b32.xlu1 %v16337_v5, %s13817_s17  ;;  %v16342_v15 = vpop.f32.mrf.mxu0 }
 0x472   :  { %v5799_v53 = vadd.f32 %v16198_v31, %v5759_v8  ;;  %v5389_v18 = vrot.slane %v16342_v15, 1  ;;  %5518 = vrot.lane.b32.xlu0 %v16342_v15, %s13817_s17  ;;  %v5425_v48 = vsel %vm1431_vm2, %v5391_v24, 0.0 }
 0x473   :  { %v5800_v17 = vadd.f32 %v16198_v31, %v5760_v2  ;;  %v5617_v44 = vsel %vm301_vm5, 0.0, %v5425_v48 }
 0x474   :  { %v5831_v61 = vmul.f32 0.3, %v5799_v53  ;;  %v5390_v36 = vsel %vm1431_vm2, %v5387_v28, %v5389_v18  ;;  %v5392_v16 = vsel %vm1431_vm2, %v5389_v18, %v5391_v24 }
 0x475   :  { %v5832_v19 = vmul.f32 0.3, %v5800_v17  ;;  %5708 = vrot.lane.b32.xlu1 %v5390_v36, %s13818_s29 }
 0x476   :  { %v5863_v49 = vmax.f32 %v5799_v53, %v5831_v61  ;;  %5710 = vrot.lane.b32.xlu0 %v5392_v16, %s13818_s29 }
 0x477   :  { %v5864_v46 = vmax.f32 %v5800_v17, %v5832_v19 }
 0x478   :  { %13226 = vmatmul.mubr.msk.f32.gmra.mxu1 %vm592_vm1, %v5863_v49 }
 0x479   :  { %13228 = vmatprep.mubr.msk.f32.mxu1 %vm592_vm1, %v5864_v46  ;;  %5712 = vrot.lane.b32.xlu1 %v5617_v44, %s13818_s29 }
 0x47a   :  { %v5493_v55 = vpop.permute.xlu1 %5492 }
 0x47b   :  { %v5571_v45 = vadd.f32 %v5493_v55, %v16211_v22 }
 0x47c   :  { %v5491_v9 = vpop.permute.xlu0 %5490 }
 0x47d   :  { %v5570_v39 = vadd.f32 %v5491_v9, %v5442_v57 }
 0x480   :  { %v5683_v6 = vpop.permute.xlu0 %5682  ;;  %v5681_v23 = vpop.permute.xlu1 %5680 }
 0x481   :  { %v5762_v38 = vadd.f32 %v5683_v6, %v5570_v39  ;;  %v5761_v59 = vadd.f32 %v5681_v23, %v5569_v63 }
 0x483   :  { %v5802_v4 = vadd.f32 %v16198_v31, %v5762_v38  ;;  %v5801_v20 = vadd.f32 %v16198_v31, %v5761_v59 }
 0x485   :  { %v5834_v60 = vmul.f32 0.3, %v5802_v4  ;;  %v5833_v42 = vmul.f32 0.3, %v5801_v20 }
 0x487   :  { %v5866_v56 = vmax.f32 %v5802_v4, %v5834_v60  ;;  %v5865_v21 = vmax.f32 %v5801_v20, %v5833_v42 }
 0x489   :  { %13229 = vmatmul.mubr.msk.f32.gmra.mxu1 %vm592_vm1, %v5865_v21 }
 0x48a   :  { %13231 = vmatprep.mubr.msk.f32.mxu1 %vm592_vm1, %v5866_v56  ;;  %v5497_v30 = vpop.permute.xlu1 %5496 }
 0x48c   :  { %v5495_v28 = vpop.permute.xlu0 %5494 }
 0x48d   :  { %v5572_v25 = vadd.f32 %v5495_v28, %v16234_v3  ;;  %v5573_v3 = vadd.f32 %v5497_v30, %v16231_v14 }
 0x48f   :  { %v5685_v62 = vpop.permute.xlu1 %5684 }
 0x490   :  { %v5763_v27 = vadd.f32 %v5685_v62, %v5571_v45  ;;  %v5687_v13 = vpop.permute.xlu0 %5686 }
 0x491   :  { %v5764_v10 = vadd.f32 %v5687_v13, %v5572_v25 }
 0x492   :  { %v5803_v58 = vadd.f32 %v16198_v31, %v5763_v27 }
 0x493   :  { %v5804_v37 = vadd.f32 %v16198_v31, %v5764_v10 }
 0x494   :  { %v5835_v54 = vmul.f32 0.3, %v5803_v58 }
 0x495   :  { %v5836_v0 = vmul.f32 0.3, %v5804_v37 }
 0x496   :  { %v5867_v8 = vmax.f32 %v5803_v58, %v5835_v54 }
 0x497   :  { %v5868_v11 = vmax.f32 %v5804_v37, %v5836_v0 }
 0x498   :  { %13232 = vmatmul.mubr.msk.f32.gmra.mxu1 %vm592_vm1, %v5867_v8 }
 0x499   :  { %13234 = vmatprep.mubr.msk.f32.mxu1 %vm592_vm1, %v5868_v11 }
 0x49a   :  { %v5501_v24 = vpop.permute.xlu1 %5500 }
 0x49c   :  { %v5499_v22 = vpop.permute.xlu0 %5498 }
 0x49d   :  { %v5574_v2 = vadd.f32 %v5499_v22, %v16252_v52  ;;  %v5575_v52 = vadd.f32 %v5501_v24, %v16249_v26 }
 0x49f   :  { %v5689_v53 = vpop.permute.xlu1 %5688 }
 0x4a0   :  { %v5765_v18 = vadd.f32 %v5689_v53, %v5573_v3  ;;  %v5691_v17 = vpop.permute.xlu0 %5690 }
 0x4a1   :  { %v5766_v61 = vadd.f32 %v5691_v17, %v5574_v2 }
 0x4a2   :  { %v5805_v36 = vadd.f32 %v16198_v31, %v5765_v18 }
 0x4a3   :  { %v5806_v16 = vadd.f32 %v16198_v31, %v5766_v61 }
 0x4a4   :  { %v5837_v19 = vmul.f32 0.3, %v5805_v36 }
 0x4a5   :  { %v5838_v48 = vmul.f32 0.3, %v5806_v16 }
 0x4a6   :  { %v5869_v49 = vmax.f32 %v5805_v36, %v5837_v19 }
 0x4a7   :  { %v5870_v46 = vmax.f32 %v5806_v16, %v5838_v48 }
 0x4a8   :  { %13235 = vmatmul.mubr.msk.f32.gmra.mxu1 %vm592_vm1, %v5869_v49 }
 0x4a9   :  { %13237 = vmatprep.mubr.msk.f32.mxu1 %vm592_vm1, %v5870_v46 }
 0x4aa   :  { %v5505_v44 = vpop.permute.xlu1 %5504 }
 0x4ac   :  { %v5503_v14 = vpop.permute.xlu0 %5502 }
 0x4ad   :  { %v5576_v55 = vadd.f32 %v5503_v14, %v16270_v41  ;;  %v5577_v41 = vadd.f32 %v5505_v44, %v16267_v51 }
 0x4af   :  { %v5693_v9 = vpop.permute.xlu1 %5692 }
 0x4b0   :  { %v5767_v57 = vadd.f32 %v5693_v9, %v5575_v52  ;;  %v5695_v63 = vpop.permute.xlu0 %5694 }
 0x4b1   :  { %v5768_v39 = vadd.f32 %v5695_v63, %v5576_v55  ;;  %v5293_v63 = vrot.slane %v16342_v15, 7 }
 0x4b2   :  { %v5807_v6 = vadd.f32 %v16198_v31, %v5767_v57 }
 0x4b3   :  { %v5808_v23 = vadd.f32 %v16198_v31, %v5768_v39 }
 0x4b4   :  { %v5839_v38 = vmul.f32 0.3, %v5807_v6 }
 0x4b5   :  { %v5840_v59 = vmul.f32 0.3, %v5808_v23 }
 0x4b6   :  { %v5871_v4 = vmax.f32 %v5807_v6, %v5839_v38 }
 0x4b7   :  { %v5872_v20 = vmax.f32 %v5808_v23, %v5840_v59 }
 0x4b8   :  { %13238 = vmatmul.mubr.msk.f32.gmra.mxu1 %vm592_vm1, %v5871_v4 }
 0x4b9   :  { %13240 = vmatprep.mubr.msk.f32.mxu1 %vm592_vm1, %v5872_v20 }
 0x4ba   :  { %v5509_v60 = vpop.permute.xlu1 %5508 }
 0x4bc   :  { %v5507_v26 = vpop.permute.xlu0 %5506 }
 0x4bd   :  { %v5578_v42 = vadd.f32 %v5507_v26, %v16288_v12  ;;  %v5579_v12 = vadd.f32 %v5509_v60, %v16285_v7  ;;  %v5295_v60 = vrot.slane %v16337_v5, 7 }
 0x4bf   :  { %v5697_v56 = vpop.permute.xlu1 %5696 }
 0x4c0   :  { %v5769_v21 = vadd.f32 %v5697_v56, %v5577_v41  ;;  %v5699_v30 = vpop.permute.xlu0 %5698 }
 0x4c1   :  { %v5770_v28 = vadd.f32 %v5699_v30, %v5578_v42  ;;  %v5296_v30 = vsel %vm1238_vm3, %v5293_v63, %v5295_v60 }
 0x4c2   :  { %v5809_v45 = vadd.f32 %v16198_v31, %v5769_v21 }
 0x4c3   :  { %v5810_v25 = vadd.f32 %v16198_v31, %v5770_v28 }
 0x4c4   :  { %v5841_v62 = vmul.f32 0.3, %v5809_v45 }
 0x4c5   :  { %v5842_v27 = vmul.f32 0.3, %v5810_v25 }
 0x4c6   :  { %v5873_v13 = vmax.f32 %v5809_v45, %v5841_v62 }
 0x4c7   :  { %v5874_v10 = vmax.f32 %v5810_v25, %v5842_v27 }
 0x4c8   :  { %13241 = vmatmul.mubr.msk.f32.gmra.mxu1 %vm592_vm1, %v5873_v13 }
 0x4c9   :  { %13243 = vmatprep.mubr.msk.f32.mxu1 %vm592_vm1, %v5874_v10 }
 0x4ca   :  { %v5513_v58 = vpop.permute.xlu1 %5512 }
 0x4cb   :  { %v5581_v44 = vadd.f32 %v5513_v58, %v16305_v40 }
 0x4cc   :  { %v5511_v51 = vpop.permute.xlu0 %5510 }
 0x4cd   :  { %v5580_v37 = vadd.f32 %v5511_v51, %v16309_v33 }
 0x4cf   :  { %v5701_v54 = vpop.permute.xlu1 %5700 }
 0x4d0   :  { %v5771_v0 = vadd.f32 %v5701_v54, %v5579_v12  ;;  %v5703_v8 = vpop.permute.xlu0 %5702 }
 0x4d1   :  { %v5772_v11 = vadd.f32 %v5703_v8, %v5580_v37 }
 0x4d2   :  { %v5811_v24 = vadd.f32 %v16198_v31, %v5771_v0 }
 0x4d3   :  { %v5812_v22 = vadd.f32 %v16198_v31, %v5772_v11 }
 0x4d4   :  { %v5843_v3 = vmul.f32 0.3, %v5811_v24 }
 0x4d5   :  { %v5844_v2 = vmul.f32 0.3, %v5812_v22 }
 0x4d6   :  { %v5875_v53 = vmax.f32 %v5811_v24, %v5843_v3 }
 0x4d7   :  { %v5876_v18 = vmax.f32 %v5812_v22, %v5844_v2 }
 0x4d8   :  { %v16399_v17 = vpop.f32.mrf.mxu1  ;;  %13244 = vmatmul.mubr.msk.f32.gmra.mxu1 %vm592_vm1, %v5875_v53 }
 0x4d9   :  { %13246 = vmatprep.mubr.msk.f32.mxu1 %vm592_vm1, %v5876_v18  ;;  %6467 = vrot.lane.b32.xlu1 %v16399_v17, %s13817_s17  ;;  %v6242_v61 = vrot.slane %v16399_v17, 7  ;;  %v6338_v36 = vrot.slane %v16399_v17, 1 }
 0x4da   :  { %v16405_v7 = vpop.f32.mrf.mxu1  ;;  %v5517_v33 = vpop.permute.xlu1 %5516 }
 0x4db   :  { %v6241_v16 = vrot.slane %v16405_v7, 7  ;;  %v6337_v19 = vrot.slane %v16405_v7, 1  ;;  %6465 = vrot.lane.b32.xlu0 %v16405_v7, %s13817_s17  ;;  %v5583_v40 = vadd.f32 %v5517_v33, %v16328_v29 }
 0x4dc   :  { %v5515_v48 = vpop.permute.xlu0 %5514 }
 0x4dd   :  { %v6339_v49 = vsel %vm1431_vm2, %v6337_v19, %v6338_v36  ;;  %v16417_v46 = vsel %vm1238_vm3, %v6241_v16, %v6242_v61  ;;  %v5582_v14 = vadd.f32 %v5515_v48, %v16331_v35  ;;  %v5294_v35 = vsel %vm1238_vm3, %v5291_v34, %v5293_v63 }
 0x4df   :  { %v5705_v52 = vpop.permute.xlu1 %5704  ;;  %6657 = vrot.lane.b32.xlu0 %v6339_v49, %s13818_s29  ;;  %v12379_v49 = vld [vmem:[%s18194_s5 + $0x28] sm:$0xf] }
 0x4e0   :  { %v5773_v55 = vadd.f32 %v5705_v52, %v5581_v44  ;;  %v5707_v9 = vpop.permute.xlu0 %5706  ;;  %13255 = vmatprep.subr.msk.mxu0 %vm785_vm0, %v12379_v49  ;;  %v12378_v44 = vld [vmem:[%s18194_s5 + $0x20] sm:$0xff] }
 0x4e1   :  { %v5774_v57 = vadd.f32 %v5707_v9, %v5582_v14  ;;  %13256 = vmatpush3.msk.msra.mxu0 %vm785_vm0, %v12379_v49 }
 0x4e2   :  { %v5813_v39 = vadd.f32 %v16198_v31, %v5773_v55  ;;  %13257 = vmatprep.subr.mxu0 %v12378_v44 }
 0x4e3   :  { %v5814_v6 = vadd.f32 %v16198_v31, %v5774_v57  ;;  %v5521_v23 = vpop.permute.xlu1 %5520  ;;  %13258 = vmatpush3.msra.mxu0 %v12378_v44  ;;  %v16539_v44 = vld [vmem:[%s18198_s0 + $0x1] ss:$0 sm:$0xff] }
 0x4e4   :  { %v5845_v38 = vmul.f32 0.3, %v5813_v39  ;;  %v5519_v59 = vpop.permute.xlu0 %5518  ;;  %v5585_v50 = vadd.f32 %v5521_v23, %v5296_v30 }
 0x4e5   :  { %v5846_v4 = vmul.f32 0.3, %v5814_v6  ;;  %v5584_v41 = vadd.f32 %v5519_v59, %v5294_v35 }
 0x4e6   :  { %v5877_v20 = vmax.f32 %v5813_v39, %v5845_v38 }
 0x4e7   :  { %v5878_v26 = vmax.f32 %v5814_v6, %v5846_v4  ;;  %v5709_v15 = vpop.permute.xlu1 %5708 }
 0x4e8   :  { %v5775_v42 = vadd.f32 %v5709_v15, %v5583_v40  ;;  %v13212_v56 = vpop.f32.mrf.mxu1  ;;  %13247 = vmatmul.mubr.msk.f32.gmra.mxu1 %vm592_vm1, %v5877_v20  ;;  %v5711_v21 = vpop.permute.xlu0 %5710 }
 0x4e9   :  { %v5776_v28 = vadd.f32 %v5711_v21, %v5584_v41  ;;  %13249 = vmatprep.mubr.msk.f32.mxu1 %vm592_vm1, %v5878_v26  ;;  %6471 = vrot.lane.b32.xlu1 %v13212_v56, %s13817_s17  ;;  %v6246_v29 = vrot.slane %v13212_v56, 7  ;;  %v6342_v45 = vrot.slane %v13212_v56, 1 }
 0x4ea   :  { %v5815_v34 = vadd.f32 %v16198_v31, %v5775_v42  ;;  %v6060_v5 = vpop.f32.mrf.mxu1 }
 0x4eb   :  { %v5816_v25 = vadd.f32 %v16198_v31, %v5776_v28  ;;  %v6244_v62 = vrot.slane %v6060_v5, 7  ;;  %v6340_v27 = vrot.slane %v6060_v5, 1  ;;  %6469 = vrot.lane.b32.xlu0 %v6060_v5, %s13817_s17  ;;  %v5713_v13 = vpop.permute.xlu1 %5712 }
 0x4ec   :  { %v5847_v10 = vmul.f32 0.3, %v5815_v34  ;;  %v5777_v58 = vadd.f32 %v5713_v13, %v5585_v50 }
 0x4ed   :  { %v5848_v51 = vmul.f32 0.3, %v5816_v25  ;;  %v6341_v12 = vsel %vm1431_vm2, %v6338_v36, %v6340_v27  ;;  %v6343_v37 = vsel %vm1431_vm2, %v6340_v27, %v6342_v45  ;;  %v16440_v54 = vsel %vm1238_vm3, %v6244_v62, %v6246_v29 }
 0x4ee   :  { %v5879_v0 = vmax.f32 %v5815_v34, %v5847_v10  ;;  %v5817_v8 = vadd.f32 %v16198_v31, %v5777_v58  ;;  %6659 = vrot.lane.b32.xlu1 %v6341_v12, %s13818_s29  ;;  %v16445_v11 = vsel %vm1238_vm3, %v6242_v61, %v6244_v62 }
 0x4ef   :  { %v5880_v24 = vmax.f32 %v5816_v25, %v5848_v51  ;;  %6661 = vrot.lane.b32.xlu0 %v6343_v37, %s13818_s29 }
 0x4f0   :  { %v5849_v22 = vmul.f32 0.3, %v5817_v8  ;;  %13250 = vmatmul.mubr.msk.f32.gmra.mxu1 %vm592_vm1, %v5879_v0 }
 0x4f1   :  { %13252 = vmatprep.mubr.msk.f32.mxu1 %vm592_vm1, %v5880_v24 }
 0x4f2   :  { %v5881_v3 = vmax.f32 %v5817_v8, %v5849_v22 }
 0x4f4   :  { %13253 = vmatmul.mubr.msk.f32.gmra.mxu1 %vm592_vm1, %v5881_v3  ;;  %v6336_v3 = vsel %vm1238_vm3, 0.0, %v6241_v16 }
 0x4f5   :  { %v6433_v49 = vsel %vm206_vm4, 0.0, %v6336_v3 }
 0x4f8   :  { %v13215_v2 = vpop.f32.mrf.mxu1 }
 0x4f9   :  { %6475 = vrot.lane.b32.xlu1 %v13215_v2, %s13817_s17  ;;  %v6250_v53 = vrot.slane %v13215_v2, 7  ;;  %v6346_v18 = vrot.slane %v13215_v2, 1 }
 0x4fa   :  { %v6070_v31 = vpop.f32.mrf.mxu1 }
 0x4fb   :  { %v6248_v17 = vrot.slane %v6070_v31, 7  ;;  %v6344_v33 = vrot.slane %v6070_v31, 1  ;;  %6473 = vrot.lane.b32.xlu0 %v6070_v31, %s13817_s17 }
 0x4fd   :  { %v6345_v61 = vsel %vm1431_vm2, %v6342_v45, %v6344_v33  ;;  %v6347_v36 = vsel %vm1431_vm2, %v6344_v33, %v6346_v18  ;;  %v16456_v19 = vsel %vm1238_vm3, %v6248_v17, %v6250_v53  ;;  %v16459_v48 = vsel %vm1238_vm3, %v6246_v29, %v6248_v17 }
 0x4fe   :  { %6663 = vrot.lane.b32.xlu1 %v6345_v61, %s13818_s29 }
 0x4ff   :  { %6665 = vrot.lane.b32.xlu0 %v6347_v36, %s13818_s29 }
 0x508   :  { %v13218_v14 = vpop.f32.mrf.mxu1 }
 0x509   :  { %6479 = vrot.lane.b32.xlu1 %v13218_v14, %s13817_s17  ;;  %v6254_v55 = vrot.slane %v13218_v14, 7  ;;  %v6350_v9 = vrot.slane %v13218_v14, 1 }
 0x50a   :  { %v6080_v52 = vpop.f32.mrf.mxu1 }
 0x50b   :  { %v6252_v57 = vrot.slane %v6080_v52, 7  ;;  %v6348_v63 = vrot.slane %v6080_v52, 1  ;;  %6477 = vrot.lane.b32.xlu0 %v6080_v52, %s13817_s17 }
 0x50d   :  { %v6349_v39 = vsel %vm1431_vm2, %v6346_v18, %v6348_v63  ;;  %v6351_v6 = vsel %vm1431_vm2, %v6348_v63, %v6350_v9  ;;  %v16476_v23 = vsel %vm1238_vm3, %v6252_v57, %v6254_v55  ;;  %v16479_v38 = vsel %vm1238_vm3, %v6250_v53, %v6252_v57 }
 0x50e   :  { %6667 = vrot.lane.b32.xlu1 %v6349_v39, %s13818_s29 }
 0x50f   :  { %6669 = vrot.lane.b32.xlu0 %v6351_v6, %s13818_s29 }
 0x517   :  { %v13221_v59 = vpop.f32.mrf.mxu1 }
 0x518   :  { %6483 = vrot.lane.b32.xlu1 %v13221_v59, %s13817_s17  ;;  %v6258_v40 = vrot.slane %v13221_v59, 7  ;;  %v6354_v20 = vrot.slane %v13221_v59, 1 }
 0x519   :  { %v6090_v4 = vpop.f32.mrf.mxu1 }
 0x51a   :  { %v6256_v35 = vrot.slane %v6090_v4, 7  ;;  %v6352_v60 = vrot.slane %v6090_v4, 1  ;;  %6481 = vrot.lane.b32.xlu0 %v6090_v4, %s13817_s17 }
 0x51c   :  { %v6353_v26 = vsel %vm1431_vm2, %v6350_v9, %v6352_v60  ;;  %v6355_v41 = vsel %vm1431_vm2, %v6352_v60, %v6354_v20  ;;  %v16488_v15 = vsel %vm1238_vm3, %v6256_v35, %v6258_v40  ;;  %v16491_v42 = vsel %vm1238_vm3, %v6254_v55, %v6256_v35 }
 0x51d   :  { %6671 = vrot.lane.b32.xlu1 %v6353_v26, %s13818_s29 }
 0x51e   :  { %6673 = vrot.lane.b32.xlu0 %v6355_v41, %s13818_s29 }
 0x524   :  { %v13224_v56 = vpop.f32.mrf.mxu1 }
 0x525   :  { %6487 = vrot.lane.b32.xlu1 %v13224_v56, %s13817_s17  ;;  %v6262_v30 = vrot.slane %v13224_v56, 7  ;;  %v6358_v28 = vrot.slane %v13224_v56, 1 }
 0x526   :  { %v6100_v21 = vpop.f32.mrf.mxu1 }
 0x527   :  { %v6260_v50 = vrot.slane %v6100_v21, 7  ;;  %v6356_v34 = vrot.slane %v6100_v21, 1  ;;  %6485 = vrot.lane.b32.xlu0 %v6100_v21, %s13817_s17 }
 0x529   :  { %v6357_v29 = vsel %vm1431_vm2, %v6354_v20, %v6356_v34  ;;  %v6359_v5 = vsel %vm1431_vm2, %v6356_v34, %v6358_v28  ;;  %v16500_v45 = vsel %vm1238_vm3, %v6260_v50, %v6262_v30  ;;  %v16503_v25 = vsel %vm1238_vm3, %v6258_v40, %v6260_v50 }
 0x52a   :  { %6675 = vrot.lane.b32.xlu1 %v6357_v29, %s13818_s29 }
 0x52b   :  { %6677 = vrot.lane.b32.xlu0 %v6359_v5, %s13818_s29 }
 0x538   :  { %v13227_v62 = vpop.f32.mrf.mxu1 }
 0x539   :  { %6491 = vrot.lane.b32.xlu1 %v13227_v62, %s13817_s17  ;;  %v6266_v13 = vrot.slane %v13227_v62, 7  ;;  %v6362_v10 = vrot.slane %v13227_v62, 1 }
 0x53a   :  { %v6110_v27 = vpop.f32.mrf.mxu1 }
 0x53b   :  { %v6264_v58 = vrot.slane %v6110_v27, 7  ;;  %v6360_v51 = vrot.slane %v6110_v27, 1  ;;  %6489 = vrot.lane.b32.xlu0 %v6110_v27, %s13817_s17 }
 0x53d   :  { %v6361_v12 = vsel %vm1431_vm2, %v6358_v28, %v6360_v51  ;;  %v6363_v37 = vsel %vm1431_vm2, %v6360_v51, %v6362_v10  ;;  %v16512_v0 = vsel %vm1238_vm3, %v6264_v58, %v6266_v13  ;;  %v16515_v8 = vsel %vm1238_vm3, %v6262_v30, %v6264_v58 }
 0x53e   :  { %6679 = vrot.lane.b32.xlu1 %v6361_v12, %s13818_s29 }
 0x53f   :  { %6681 = vrot.lane.b32.xlu0 %v6363_v37, %s13818_s29 }
 0x549   :  { %v13230_v24 = vpop.f32.mrf.mxu1 }
 0x54a   :  { %6495 = vrot.lane.b32.xlu1 %v13230_v24, %s13817_s17  ;;  %v6270_v2 = vrot.slane %v13230_v24, 7  ;;  %v6366_v31 = vrot.slane %v13230_v24, 1 }
 0x54b   :  { %v6120_v22 = vpop.f32.mrf.mxu1  ;;  %v6468_v57 = vpop.permute.xlu1 %6467 }
 0x54c   :  { %v6268_v53 = vrot.slane %v6120_v22, 7  ;;  %v6364_v18 = vrot.slane %v6120_v22, 1  ;;  %6493 = vrot.lane.b32.xlu0 %v6120_v22, %s13817_s17  ;;  %v6562_v28 = vadd.f32 %v6468_v57, %v16417_v46 }
 0x54d   :  { %v6466_v17 = vpop.permute.xlu0 %6465 }
 0x54e   :  { %v6365_v33 = vsel %vm1431_vm2, %v6362_v10, %v6364_v18  ;;  %v6367_v61 = vsel %vm1431_vm2, %v6364_v18, %v6366_v31  ;;  %v16527_v36 = vsel %vm1238_vm3, %v6268_v53, %v6270_v2  ;;  %v16533_v7 = vsel %vm1238_vm3, %v6266_v13, %v6268_v53 }
 0x54f   :  { %6683 = vrot.lane.b32.xlu1 %v6365_v33, %s13818_s29  ;;  %v6561_v16 = vadd.f32 %v6466_v17, %v6433_v49 }
 0x550   :  { %6685 = vrot.lane.b32.xlu0 %v6367_v61, %s13818_s29 }
 0x551   :  { %v6658_v14 = vpop.permute.xlu0 %6657 }
 0x552   :  { %v6753_v52 = vadd.f32 %v6658_v14, %v6561_v16 }
 0x554   :  { %v6793_v55 = vadd.f32 %v16539_v44, %v6753_v52 }
 0x556   :  { %v6825_v9 = vmul.f32 0.3, %v6793_v55 }
 0x558   :  { %v6857_v63 = vmax.f32 %v6793_v55, %v6825_v9  ;;  %v13233_v39 = vpop.f32.mrf.mxu1 }
 0x559   :  { %6499 = vrot.lane.b32.xlu1 %v13233_v39, %s13817_s17  ;;  %v6274_v59 = vrot.slane %v13233_v39, 7  ;;  %v6370_v4 = vrot.slane %v13233_v39, 1 }
 0x55a   :  { %6889 = vst.msk [vmem:[#allocation2] sm:$0xff] %vm592_vm1, %v6857_v63  ;;  %v6130_v6 = vpop.f32.mrf.mxu1 }
 0x55b   :  { %v6272_v40 = vrot.slane %v6130_v6, 7  ;;  %v6368_v20 = vrot.slane %v6130_v6, 1  ;;  %6497 = vrot.lane.b32.xlu0 %v6130_v6, %s13817_s17  ;;  %v6472_v35 = vpop.permute.xlu1 %6471 }
 0x55c   :  { %v6564_v61 = vadd.f32 %v6472_v35, %v16440_v54 }
 0x55d   :  { %v6470_v60 = vpop.permute.xlu0 %6469  ;;  %v6371_v26 = vsel %vm1431_vm2, %v6368_v20, %v6370_v4  ;;  %v6369_v41 = vsel %vm1431_vm2, %v6366_v31, %v6368_v20  ;;  %v16548_v56 = vsel %vm1238_vm3, %v6272_v40, %v6274_v59  ;;  %v16551_v21 = vsel %vm1238_vm3, %v6270_v2, %v6272_v40 }
 0x55e   :  { %v6608_v30 = vsel %vm4762_vm8, 0.0, %v6369_v41  ;;  %v6563_v50 = vadd.f32 %v6470_v60, %v16445_v11 }
 0x55f   :  { %6689 = vrot.lane.b32.xlu0 %v6371_v26, %s13818_s29  ;;  %6687 = vrot.lane.b32.xlu1 %v6608_v30, %s13818_s29 }
 0x560   :  { %v6660_v34 = vpop.permute.xlu1 %6659 }
 0x561   :  { %v6754_v29 = vadd.f32 %v6660_v34, %v6562_v28  ;;  %v6662_v5 = vpop.permute.xlu0 %6661 }
 0x562   :  { %v6755_v62 = vadd.f32 %v6662_v5, %v6563_v50 }
 0x563   :  { %v6794_v27 = vadd.f32 %v16539_v44, %v6754_v29 }
 0x564   :  { %v6795_v13 = vadd.f32 %v16539_v44, %v6755_v62 }
 0x565   :  { %v6826_v10 = vmul.f32 0.3, %v6794_v27 }
 0x566   :  { %v6827_v58 = vmul.f32 0.3, %v6795_v13 }
 0x567   :  { %v6858_v51 = vmax.f32 %v6794_v27, %v6826_v10 }
 0x568   :  { %v6859_v12 = vmax.f32 %v6795_v13, %v6827_v58  ;;  %v13236_v37 = vpop.f32.mrf.mxu1 }
 0x569   :  { %6890 = vst.msk [vmem:[#allocation2 + $0x8] sm:$0xff] %vm592_vm1, %v6858_v51  ;;  %6503 = vrot.lane.b32.xlu1 %v13236_v37, %s13817_s17  ;;  %v6278_v11 = vrot.slane %v13236_v37, 7  ;;  %v6374_v24 = vrot.slane %v13236_v37, 1 }
 0x56a   :  { %6891 = vst.msk [vmem:[#allocation2 + $0x10] sm:$0xff] %vm592_vm1, %v6859_v12  ;;  %v6140_v46 = vpop.f32.mrf.mxu1 }
 0x56b   :  { %v6276_v22 = vrot.slane %v6140_v46, 7  ;;  %v6372_v3 = vrot.slane %v6140_v46, 1  ;;  %6501 = vrot.lane.b32.xlu0 %v6140_v46, %s13817_s17  ;;  %v6476_v2 = vpop.permute.xlu1 %6475 }
 0x56c   :  { %v6566_v13 = vadd.f32 %v6476_v2, %v16456_v19 }
 0x56d   :  { %v6474_v31 = vpop.permute.xlu0 %6473  ;;  %v6373_v53 = vsel %vm1431_vm2, %v6370_v4, %v6372_v3  ;;  %v6375_v18 = vsel %vm1431_vm2, %v6372_v3, %v6374_v24  ;;  %v16568_v17 = vsel %vm1238_vm3, %v6276_v22, %v6278_v11  ;;  %v16571_v33 = vsel %vm1238_vm3, %v6274_v59, %v6276_v22 }
 0x56e   :  { %6691 = vrot.lane.b32.xlu1 %v6373_v53, %s13818_s29  ;;  %v6565_v49 = vadd.f32 %v6474_v31, %v16459_v48 }
 0x56f   :  { %6693 = vrot.lane.b32.xlu0 %v6375_v18, %s13818_s29 }
 0x570   :  { %v6664_v16 = vpop.permute.xlu1 %6663  ;;  %v6921_v14 = vld [vmem:[#allocation2] ss:$2 sm:$0xff]  ;;  %v6937_v52 = vld [vmem:[#allocation2 + $0x1] ss:$2 sm:$0xff] }
 0x571   :  { %v6756_v55 = vadd.f32 %v6664_v16, %v6564_v61  ;;  %v6666_v9 = vpop.permute.xlu0 %6665  ;;  %v6953_v57 = vmax.f32 %v6921_v14, %v6937_v52 }
 0x572   :  { %v6757_v63 = vadd.f32 %v6666_v9, %v6565_v49 }
 0x573   :  { %v6796_v39 = vadd.f32 %v16539_v44, %v6756_v55  ;;  %v6969_v6 = vmul.f32 0.3, %v6953_v57 }
 0x574   :  { %v6797_v59 = vadd.f32 %v16539_v44, %v6757_v63 }
 0x575   :  { %v6828_v4 = vmul.f32 0.3, %v6796_v39  ;;  %v6985_v40 = vmax.f32 %v6953_v57, %v6969_v6 }
 0x576   :  { %v6829_v20 = vmul.f32 0.3, %v6797_v59 }
 0x577   :  { %v6860_v54 = vmax.f32 %v6796_v39, %v6828_v4  ;;  %13259 = vmatprep.mubr.msk.f32.mxu0 %vm592_vm1, %v6985_v40 }
 0x578   :  { %v6861_v35 = vmax.f32 %v6797_v59, %v6829_v20  ;;  %v13239_v48 = vpop.f32.mrf.mxu1 }
 0x579   :  { %6892 = vst.msk [vmem:[#allocation2 + $0x18] sm:$0xff] %vm592_vm1, %v6860_v54  ;;  %6507 = vrot.lane.b32.xlu1 %v13239_v48, %s13817_s17  ;;  %v6282_v26 = vrot.slane %v13239_v48, 7  ;;  %v6378_v41 = vrot.slane %v13239_v48, 1 }
 0x57a   :  { %6893 = vst.msk [vmem:[#allocation2 + $0x20] sm:$0xff] %vm592_vm1, %v6861_v35  ;;  %v6150_v60 = vpop.f32.mrf.mxu1 }
 0x57b   :  { %v6280_v30 = vrot.slane %v6150_v60, 7  ;;  %v6376_v28 = vrot.slane %v6150_v60, 1  ;;  %6505 = vrot.lane.b32.xlu0 %v6150_v60, %s13817_s17  ;;  %v6480_v50 = vpop.permute.xlu1 %6479 }
 0x57c   :  { %v6568_v4 = vadd.f32 %v6480_v50, %v16476_v23 }
 0x57d   :  { %v6478_v34 = vpop.permute.xlu0 %6477  ;;  %v6377_v29 = vsel %vm1431_vm2, %v6374_v24, %v6376_v28  ;;  %v6379_v5 = vsel %vm1431_vm2, %v6376_v28, %v6378_v41  ;;  %v16587_v62 = vsel %vm1238_vm3, %v6280_v30, %v6282_v26  ;;  %v16590_v27 = vsel %vm1238_vm3, %v6278_v11, %v6280_v30 }
 0x57e   :  { %6695 = vrot.lane.b32.xlu1 %v6377_v29, %s13818_s29  ;;  %v6567_v10 = vadd.f32 %v6478_v34, %v16479_v38 }
 0x57f   :  { %6697 = vrot.lane.b32.xlu0 %v6379_v5, %s13818_s29 }
 0x580   :  { %v6668_v58 = vpop.permute.xlu1 %6667  ;;  %v6922_v51 = vld [vmem:[#allocation2 + $0x10] ss:$2 sm:$0xff]  ;;  %v6938_v12 = vld [vmem:[#allocation2 + $0x11] ss:$2 sm:$0xff] }
 0x581   :  { %v6758_v37 = vadd.f32 %v6668_v58, %v6566_v13  ;;  %v6670_v46 = vpop.permute.xlu0 %6669  ;;  %v6954_v24 = vmax.f32 %v6922_v51, %v6938_v12 }
 0x582   :  { %v6759_v22 = vadd.f32 %v6670_v46, %v6567_v10 }
 0x583   :  { %v6798_v3 = vadd.f32 %v16539_v44, %v6758_v37  ;;  %v6970_v31 = vmul.f32 0.3, %v6954_v24 }
 0x584   :  { %v6799_v11 = vadd.f32 %v16539_v44, %v6759_v22 }
 0x585   :  { %v6830_v53 = vmul.f32 0.3, %v6798_v3  ;;  %v6986_v18 = vmax.f32 %v6954_v24, %v6970_v31 }
 0x586   :  { %v6831_v61 = vmul.f32 0.3, %v6799_v11 }
 0x587   :  { %v6862_v19 = vmax.f32 %v6798_v3, %v6830_v53  ;;  %13260 = vmatmul.mubr.msk.f32.vlgmr.msra.gmra.mxu0 %vm592_vm1, %v6986_v18 }
 0x588   :  { %v6863_v2 = vmax.f32 %v6799_v11, %v6831_v61  ;;  %v13242_v38 = vpop.f32.mrf.mxu1 }
 0x589   :  { %6894 = vst.msk [vmem:[#allocation2 + $0x28] sm:$0xff] %vm592_vm1, %v6862_v19  ;;  %6511 = vrot.lane.b32.xlu1 %v13242_v38, %s13817_s17  ;;  %v6286_v16 = vrot.slane %v13242_v38, 7  ;;  %v6382_v14 = vrot.slane %v13242_v38, 1 }
 0x58a   :  { %6895 = vst.msk [vmem:[#allocation2 + $0x30] sm:$0xff] %vm592_vm1, %v6863_v2  ;;  %v6160_v49 = vpop.f32.mrf.mxu1  ;;  %v6484_v9 = vpop.permute.xlu1 %6483 }
 0x58b   :  { %v6284_v52 = vrot.slane %v6160_v49, 7  ;;  %v6380_v55 = vrot.slane %v6160_v49, 1  ;;  %6509 = vrot.lane.b32.xlu0 %v6160_v49, %s13817_s17  ;;  %v6570_v51 = vadd.f32 %v6484_v9, %v16488_v15 }
 0x58c   :  { %v6482_v57 = vpop.permute.xlu0 %6481 }
 0x58d   :  { %v6381_v63 = vsel %vm1431_vm2, %v6378_v41, %v6380_v55  ;;  %v6383_v39 = vsel %vm1431_vm2, %v6380_v55, %v6382_v14  ;;  %v16606_v6 = vsel %vm1238_vm3, %v6284_v52, %v6286_v16  ;;  %v16609_v59 = vsel %vm1238_vm3, %v6282_v26, %v6284_v52 }
 0x58e   :  { %6699 = vrot.lane.b32.xlu1 %v6381_v63, %s13818_s29  ;;  %v6569_v40 = vadd.f32 %v6482_v57, %v16491_v42 }
 0x58f   :  { %6701 = vrot.lane.b32.xlu0 %v6383_v39, %s13818_s29  ;;  %v6672_v20 = vpop.permute.xlu1 %6671 }
 0x590   :  { %v6923_v54 = vld [vmem:[#allocation2 + $0x20] ss:$2 sm:$0xff]  ;;  %v6939_v35 = vld [vmem:[#allocation2 + $0x21] ss:$2 sm:$0xff]  ;;  %v6760_v48 = vadd.f32 %v6672_v20, %v6568_v4  ;;  %v6674_v60 = vpop.permute.xlu0 %6673 }
 0x591   :  { %v6955_v41 = vmax.f32 %v6923_v54, %v6939_v35  ;;  %v6761_v30 = vadd.f32 %v6674_v60, %v6569_v40 }
 0x592   :  { %v6800_v28 = vadd.f32 %v16539_v44, %v6760_v48 }
 0x593   :  { %v6971_v34 = vmul.f32 0.3, %v6955_v41  ;;  %v6801_v26 = vadd.f32 %v16539_v44, %v6761_v30 }
 0x594   :  { %v6832_v29 = vmul.f32 0.3, %v6800_v28 }
 0x595   :  { %v6987_v5 = vmax.f32 %v6955_v41, %v6971_v34  ;;  %v6833_v13 = vmul.f32 0.3, %v6801_v26 }
 0x596   :  { %v6864_v23 = vmax.f32 %v6800_v28, %v6832_v29 }
 0x597   :  { %13262 = vmatprep.mubr.msk.f32.mxu0 %vm592_vm1, %v6987_v5  ;;  %v6488_v50 = vpop.permute.xlu1 %6487  ;;  %v6865_v42 = vmax.f32 %v6801_v26, %v6833_v13 }
 0x598   :  { %v13245_v10 = vpop.f32.mrf.mxu1  ;;  %6896 = vst.msk [vmem:[#allocation2 + $0x38] sm:$0xff] %vm592_vm1, %v6864_v23  ;;  %v6572_v23 = vadd.f32 %v6488_v50, %v16500_v45 }
 0x599   :  { %v6486_v58 = vpop.permute.xlu0 %6485  ;;  %6515 = vrot.lane.b32.xlu1 %v13245_v10, %s13817_s17  ;;  %6897 = vst.msk [vmem:[#allocation2 + $0x40] sm:$0xff] %vm592_vm1, %v6865_v42  ;;  %v6290_v37 = vrot.slane %v13245_v10, 7  ;;  %v6386_v46 = vrot.slane %v13245_v10, 1 }
 0x59a   :  { %v6170_v12 = vpop.f32.mrf.mxu1  ;;  %v6571_v3 = vadd.f32 %v6486_v58, %v16503_v25 }
 0x59b   :  { %v6288_v24 = vrot.slane %v6170_v12, 7  ;;  %v6384_v22 = vrot.slane %v6170_v12, 1  ;;  %6513 = vrot.lane.b32.xlu0 %v6170_v12, %s13817_s17 }
 0x59c   :  { %v6676_v31 = vpop.permute.xlu1 %6675 }
 0x59d   :  { %v6762_v11 = vadd.f32 %v6676_v31, %v6570_v51  ;;  %v6678_v53 = vpop.permute.xlu0 %6677  ;;  %v6385_v18 = vsel %vm1431_vm2, %v6382_v14, %v6384_v22  ;;  %v6387_v61 = vsel %vm1431_vm2, %v6384_v22, %v6386_v46  ;;  %v16627_v15 = vsel %vm1238_vm3, %v6288_v24, %v6290_v37 }
 0x59e   :  { %v6763_v19 = vadd.f32 %v6678_v53, %v6571_v3  ;;  %6703 = vrot.lane.b32.xlu1 %v6385_v18, %s13818_s29  ;;  %v16631_v2 = vsel %vm1238_vm3, %v6286_v16, %v6288_v24 }
 0x59f   :  { %v6802_v38 = vadd.f32 %v16539_v44, %v6762_v11  ;;  %6705 = vrot.lane.b32.xlu0 %v6387_v61, %s13818_s29  ;;  %v6924_v49 = vld [vmem:[#allocation2 + $0x30] ss:$2 sm:$0xff]  ;;  %v6940_v52 = vld [vmem:[#allocation2 + $0x31] ss:$2 sm:$0xff] }
 0x5a0   :  { %v6803_v25 = vadd.f32 %v16539_v44, %v6763_v19  ;;  %v6956_v55 = vmax.f32 %v6924_v49, %v6940_v52 }
 0x5a1   :  { %v6834_v14 = vmul.f32 0.3, %v6802_v38 }
 0x5a2   :  { %v6835_v9 = vmul.f32 0.3, %v6803_v25  ;;  %v6972_v63 = vmul.f32 0.3, %v6956_v55 }
 0x5a3   :  { %v6866_v57 = vmax.f32 %v6802_v38, %v6834_v14 }
 0x5a4   :  { %v6867_v39 = vmax.f32 %v6803_v25, %v6835_v9  ;;  %v6988_v4 = vmax.f32 %v6956_v55, %v6972_v63 }
 0x5a5   :  { %6898 = vst.msk [vmem:[#allocation2 + $0x48] sm:$0xff] %vm592_vm1, %v6866_v57 }
 0x5a6   :  { %6899 = vst.msk [vmem:[#allocation2 + $0x50] sm:$0xff] %vm592_vm1, %v6867_v39  ;;  %13263 = vmatmul.mubr.msk.f32.gmra.mxu0 %vm592_vm1, %v6988_v4 }
 0x5a8   :  { %v13248_v16 = vpop.f32.mrf.mxu1 }
 0x5a9   :  { %6519 = vrot.lane.b32.xlu1 %v13248_v16, %s13817_s17  ;;  %v6294_v20 = vrot.slane %v13248_v16, 7  ;;  %v6390_v54 = vrot.slane %v13248_v16, 1 }
 0x5aa   :  { %v6180_v40 = vpop.f32.mrf.mxu1 }
 0x5ab   :  { %v6292_v35 = vrot.slane %v6180_v40, 7  ;;  %v6388_v48 = vrot.slane %v6180_v40, 1  ;;  %6517 = vrot.lane.b32.xlu0 %v6180_v40, %s13817_s17  ;;  %v6492_v60 = vpop.permute.xlu1 %6491 }
 0x5ac   :  { %v6925_v41 = vld [vmem:[#allocation2 + $0x40] ss:$2 sm:$0xff]  ;;  %v6941_v30 = vld [vmem:[#allocation2 + $0x41] ss:$2 sm:$0xff] }
 0x5ad   :  { %v6490_v28 = vpop.permute.xlu0 %6489  ;;  %v6389_v34 = vsel %vm1431_vm2, %v6386_v46, %v6388_v48  ;;  %v6391_v26 = vsel %vm1431_vm2, %v6388_v48, %v6390_v54  ;;  %v6957_v29 = vmax.f32 %v6925_v41, %v6941_v30  ;;  %v16644_v5 = vsel %vm1238_vm3, %v6292_v35, %v6294_v20 }
 0x5ae   :  { %6707 = vrot.lane.b32.xlu1 %v6389_v34, %s13818_s29  ;;  %v16648_v13 = vsel %vm1238_vm3, %v6290_v37, %v6292_v35  ;;  %v6573_v10 = vadd.f32 %v6490_v28, %v16515_v8 }
 0x5af   :  { %6709 = vrot.lane.b32.xlu0 %v6391_v26, %s13818_s29  ;;  %v6973_v42 = vmul.f32 0.3, %v6957_v29 }
 0x5b0   :  { %v16653_v58 = vpop.f32.mrf.mxu1  ;;  %v6680_v51 = vpop.permute.xlu1 %6679 }
 0x5b1   :  { %v6764_v12 = vadd.f32 %v6680_v51, %v6572_v23  ;;  %v6682_v46 = vpop.permute.xlu0 %6681  ;;  %v6989_v24 = vmax.f32 %v6957_v29, %v6973_v42  ;;  %v6394_v37 = vrot.slane %v16653_v58, 1  ;;  %v6298_v8 = vrot.slane %v16653_v58, 7 }
 0x5b2   :  { %v6765_v22 = vadd.f32 %v6682_v46, %v6573_v10  ;;  %6523 = vrot.lane.b32.xlu1 %v16653_v58, %s13817_s17  ;;  %v6190_v3 = vpop.f32.mrf.mxu1 }
 0x5b3   :  { %v6804_v45 = vadd.f32 %v16539_v44, %v6764_v12  ;;  %v6296_v50 = vrot.slane %v6190_v3, 7  ;;  %v6392_v31 = vrot.slane %v6190_v3, 1  ;;  %6521 = vrot.lane.b32.xlu0 %v6190_v3, %s13817_s17  ;;  %13265 = vmatprep.mubr.msk.f32.mxu0 %vm592_vm1, %v6989_v24  ;;  %v6449_v24 = vsel %vm4795_vm9, 0.0, %v16551_v21 }
 0x5b4   :  { %v6805_v11 = vadd.f32 %v16539_v44, %v6765_v22  ;;  %v16663_v53 = vpop.f32.mrf.mxu1 }
 0x5b5   :  { %v6836_v18 = vmul.f32 0.3, %v6804_v45  ;;  %v6395_v61 = vsel %vm1431_vm2, %v6392_v31, %v6394_v37  ;;  %v16673_v25 = vsel %vm1238_vm3, %v6296_v50, %v6298_v8  ;;  %v16676_v49 = vsel %vm1238_vm3, %v6294_v20, %v6296_v50 }
 0x5b6   :  { %v6837_v19 = vmul.f32 0.3, %v6805_v11  ;;  %6527 = vrot.lane.b32.xlu1 %v16663_v53, %s13817_s17  ;;  %v16668_v38 = vpop.f32.mrf.mxu1  ;;  %v6393_v9 = vsel %vm1431_vm2, %v6390_v54, %v6392_v31  ;;  %v6398_v57 = vrot.slane %v16663_v53, 1  ;;  %v6574_v20 = vadd.f32 %v6492_v60, %v16512_v0 }
 0x5b7   :  { %v6868_v52 = vmax.f32 %v6804_v45, %v6836_v18  ;;  %6713 = vrot.lane.b32.xlu0 %v6395_v61, %s13818_s29  ;;  %v6396_v55 = vrot.slane %v16668_v38, 1 }
 0x5b8   :  { %v6869_v14 = vmax.f32 %v6805_v11, %v6837_v19  ;;  %v6432_v40 = vsel %vm1431_vm2, %v6398_v57, 0.0 }
 0x5b9   :  { %6900 = vst.msk [vmem:[#allocation2 + $0x58] sm:$0xff] %vm592_vm1, %v6868_v52  ;;  %v6397_v39 = vsel %vm1431_vm2, %v6394_v37, %v6396_v55  ;;  %v6399_v16 = vsel %vm1431_vm2, %v6396_v55, %v6398_v57  ;;  %v6624_v30 = vsel %vm301_vm5, 0.0, %v6432_v40  ;;  %vm11448_vm5 = vcmask 80896  }
 0x5ba   :  { %6901 = vst.msk [vmem:[#allocation2 + $0x60] sm:$0xff] %vm592_vm1, %v6869_v14  ;;  %6711 = vrot.lane.b32.xlu1 %v6393_v9, %s13818_s29 }
 0x5bb   :  { %6525 = vrot.lane.b32.xlu0 %v16668_v38, %s13817_s17 }
 0x5bc   :  { %v6496_v63 = vpop.permute.xlu1 %6495 }
 0x5bd   :  { %v6576_v22 = vadd.f32 %v6496_v63, %v16527_v36 }
 0x5be   :  { %v6494_v4 = vpop.permute.xlu0 %6493  ;;  %6715 = vrot.lane.b32.xlu1 %v6397_v39, %s13818_s29 }
 0x5bf   :  { %6717 = vrot.lane.b32.xlu0 %v6399_v16, %s13818_s29  ;;  %v6575_v48 = vadd.f32 %v6494_v4, %v16533_v7 }
 0x5c0   :  { %v6926_v54 = vld [vmem:[#allocation2 + $0x50] ss:$2 sm:$0xff]  ;;  %v6942_v35 = vld [vmem:[#allocation2 + $0x51] ss:$2 sm:$0xff] }
 0x5c1   :  { %v6684_v41 = vpop.permute.xlu1 %6683  ;;  %v6958_v28 = vmax.f32 %v6926_v54, %v6942_v35 }
 0x5c2   :  { %v6766_v34 = vadd.f32 %v6684_v41, %v6574_v20  ;;  %v6686_v26 = vpop.permute.xlu0 %6685  ;;  %6719 = vrot.lane.b32.xlu1 %v6624_v30, %s13818_s29 }
 0x5c3   :  { %v6767_v29 = vadd.f32 %v6686_v26, %v6575_v48  ;;  %v6974_v23 = vmul.f32 0.3, %v6958_v28 }
 0x5c4   :  { %v6806_v42 = vadd.f32 %v16539_v44, %v6766_v34 }
 0x5c5   :  { %v6807_v10 = vadd.f32 %v16539_v44, %v6767_v29  ;;  %v6990_v0 = vmax.f32 %v6958_v28, %v6974_v23 }
 0x5c6   :  { %v6838_v60 = vmul.f32 0.3, %v6806_v42 }
 0x5c7   :  { %v6839_v51 = vmul.f32 0.3, %v6807_v10  ;;  %13266 = vmatmul.mubr.msk.f32.gmra.mxu0 %vm592_vm1, %v6990_v0 }
 0x5c8   :  { %v6870_v7 = vmax.f32 %v6806_v42, %v6838_v60 }
 0x5c9   :  { %v6871_v12 = vmax.f32 %v6807_v10, %v6839_v51 }
 0x5ca   :  { %6902 = vst.msk [vmem:[#allocation2 + $0x68] sm:$0xff] %vm592_vm1, %v6870_v7 }
 0x5cb   :  { %6903 = vst.msk [vmem:[#allocation2 + $0x70] sm:$0xff] %vm592_vm1, %v6871_v12  ;;  %v6500_v43 = vpop.permute.xlu1 %6499 }
 0x5cc   :  { %v6578_v39 = vadd.f32 %v6500_v43, %v16548_v56 }
 0x5cd   :  { %v6498_v46 = vpop.permute.xlu0 %6497 }
 0x5ce   :  { %v6577_v3 = vadd.f32 %v6498_v46, %v6449_v24 }
 0x5d1   :  { %v6690_v37 = vpop.permute.xlu0 %6689  ;;  %v6688_v45 = vpop.permute.xlu1 %6687  ;;  %v6927_v50 = vld [vmem:[#allocation2 + $0x60] ss:$2 sm:$0xff]  ;;  %v6943_v31 = vld [vmem:[#allocation2 + $0x61] ss:$2 sm:$0xff] }
 0x5d2   :  { %v6769_v11 = vadd.f32 %v6690_v37, %v6577_v3  ;;  %v6768_v18 = vadd.f32 %v6688_v45, %v6576_v22  ;;  %v6959_v61 = vmax.f32 %v6927_v50, %v6943_v31 }
 0x5d4   :  { %v6809_v19 = vadd.f32 %v16539_v44, %v6769_v11  ;;  %v6808_v52 = vadd.f32 %v16539_v44, %v6768_v18  ;;  %v6975_v14 = vmul.f32 0.3, %v6959_v61 }
 0x5d6   :  { %v6841_v55 = vmul.f32 0.3, %v6809_v19  ;;  %v6840_v9 = vmul.f32 0.3, %v6808_v52  ;;  %v6991_v57 = vmax.f32 %v6959_v61, %v6975_v14 }
 0x5d8   :  { %v6873_v32 = vmax.f32 %v6809_v19, %v6841_v55  ;;  %v6872_v21 = vmax.f32 %v6808_v52, %v6840_v9  ;;  %13268 = vmatprep.mubr.msk.f32.mxu0 %vm592_vm1, %v6991_v57 }
 0x5da   :  { %6905 = vst.msk [vmem:[#allocation2 + $0x80] sm:$0xff] %vm592_vm1, %v6873_v32  ;;  %6904 = vst.msk [vmem:[#allocation2 + $0x78] sm:$0xff] %vm592_vm1, %v6872_v21 }
 0x5db   :  { %v6504_v36 = vpop.permute.xlu1 %6503 }
 0x5dc   :  { %v6580_v0 = vadd.f32 %v6504_v36, %v16568_v17 }
 0x5dd   :  { %v6502_v63 = vpop.permute.xlu0 %6501 }
 0x5de   :  { %v6579_v4 = vadd.f32 %v6502_v63, %v16571_v33 }
 0x5e0   :  { %v6692_v16 = vpop.permute.xlu1 %6691 }
 0x5e1   :  { %v6770_v40 = vadd.f32 %v6692_v16, %v6578_v39  ;;  %v6694_v20 = vpop.permute.xlu0 %6693  ;;  %v6928_v54 = vld [vmem:[#allocation2 + $0x70] ss:$2 sm:$0xff]  ;;  %v6944_v35 = vld [vmem:[#allocation2 + $0x71] ss:$2 sm:$0xff] }
 0x5e2   :  { %v6771_v48 = vadd.f32 %v6694_v20, %v6579_v4  ;;  %v6960_v41 = vmax.f32 %v6928_v54, %v6944_v35 }
 0x5e3   :  { %v6810_v30 = vadd.f32 %v16539_v44, %v6770_v40 }
 0x5e4   :  { %v6811_v28 = vadd.f32 %v16539_v44, %v6771_v48  ;;  %v6976_v34 = vmul.f32 0.3, %v6960_v41 }
 0x5e5   :  { %v6842_v26 = vmul.f32 0.3, %v6810_v30 }
 0x5e6   :  { %v6843_v29 = vmul.f32 0.3, %v6811_v28  ;;  %v6992_v23 = vmax.f32 %v6960_v41, %v6976_v34 }
 0x5e7   :  { %v6874_v42 = vmax.f32 %v6810_v30, %v6842_v26 }
 0x5e8   :  { %v6875_v10 = vmax.f32 %v6811_v28, %v6843_v29  ;;  %13269 = vmatmul.mubr.msk.f32.gmra.mxu0 %vm592_vm1, %v6992_v23 }
 0x5e9   :  { %6906 = vst.msk [vmem:[#allocation2 + $0x88] sm:$0xff] %vm592_vm1, %v6874_v42 }
 0x5ea   :  { %6907 = vst.msk [vmem:[#allocation2 + $0x90] sm:$0xff] %vm592_vm1, %v6875_v10 }
 0x5eb   :  { %v6508_v56 = vpop.permute.xlu1 %6507 }
 0x5ec   :  { %v6582_v19 = vadd.f32 %v6508_v56, %v16587_v62 }
 0x5ed   :  { %v6506_v33 = vpop.permute.xlu0 %6505 }
 0x5ee   :  { %v6581_v60 = vadd.f32 %v6506_v33, %v16590_v27 }
 0x5f0   :  { %v6696_v51 = vpop.permute.xlu1 %6695  ;;  %v6929_v7 = vld [vmem:[#allocation2 + $0x80] ss:$2 sm:$0xff]  ;;  %v6945_v12 = vld [vmem:[#allocation2 + $0x81] ss:$2 sm:$0xff] }
 0x5f1   :  { %v6772_v43 = vadd.f32 %v6696_v51, %v6580_v0  ;;  %v6698_v46 = vpop.permute.xlu0 %6697  ;;  %v6961_v24 = vmax.f32 %v6929_v7, %v6945_v12 }
 0x5f2   :  { %v6773_v22 = vadd.f32 %v6698_v46, %v6581_v60 }
 0x5f3   :  { %v6812_v3 = vadd.f32 %v16539_v44, %v6772_v43  ;;  %v6977_v37 = vmul.f32 0.3, %v6961_v24 }
 0x5f4   :  { %v6813_v45 = vadd.f32 %v16539_v44, %v6773_v22 }
 0x5f5   :  { %v6844_v50 = vmul.f32 0.3, %v6812_v3  ;;  %v6993_v31 = vmax.f32 %v6961_v24, %v6977_v37 }
 0x5f6   :  { %v6845_v11 = vmul.f32 0.3, %v6813_v45 }
 0x5f7   :  { %v6876_v18 = vmax.f32 %v6812_v3, %v6844_v50  ;;  %13271 = vmatprep.mubr.msk.f32.mxu0 %vm592_vm1, %v6993_v31 }
 0x5f8   :  { %v6877_v17 = vmax.f32 %v6813_v45, %v6845_v11 }
 0x5f9   :  { %6908 = vst.msk [vmem:[#allocation2 + $0x98] sm:$0xff] %vm592_vm1, %v6876_v18 }
 0x5fa   :  { %6909 = vst.msk [vmem:[#allocation2 + $0xa0] sm:$0xff] %vm592_vm1, %v6877_v17 }
 0x5fb   :  { %v6512_v27 = vpop.permute.xlu1 %6511 }
 0x5fc   :  { %v6584_v48 = vadd.f32 %v6512_v27, %v16606_v6 }
 0x5fd   :  { %v6510_v61 = vpop.permute.xlu0 %6509 }
 0x5fe   :  { %v6583_v52 = vadd.f32 %v6510_v61, %v16609_v59 }
 0x600   :  { %v6700_v14 = vpop.permute.xlu1 %6699  ;;  %v6930_v55 = vld [vmem:[#allocation2 + $0x90] ss:$2 sm:$0xff]  ;;  %v6946_v9 = vld [vmem:[#allocation2 + $0x91] ss:$2 sm:$0xff] }
 0x601   :  { %v6774_v57 = vadd.f32 %v6700_v14, %v6582_v19  ;;  %v6702_v32 = vpop.permute.xlu0 %6701  ;;  %v6962_v21 = vmax.f32 %v6930_v55, %v6946_v9 }
 0x602   :  { %v6775_v36 = vadd.f32 %v6702_v32, %v6583_v52 }
 0x603   :  { %v6814_v63 = vadd.f32 %v16539_v44, %v6774_v57  ;;  %v6978_v39 = vmul.f32 0.3, %v6962_v21 }
 0x604   :  { %v6815_v4 = vadd.f32 %v16539_v44, %v6775_v36 }
 0x605   :  { %v6846_v16 = vmul.f32 0.3, %v6814_v63  ;;  %v6994_v40 = vmax.f32 %v6962_v21, %v6978_v39  ;;  %v6300_v21 = vrot.slane %v16668_v38, 7 }
 0x606   :  { %v6847_v20 = vmul.f32 0.3, %v6815_v4 }
 0x607   :  { %v6878_v54 = vmax.f32 %v6814_v63, %v6846_v16  ;;  %13272 = vmatmul.mubr.msk.f32.gmra.mxu0 %vm592_vm1, %v6994_v40 }
 0x608   :  { %v6879_v62 = vmax.f32 %v6815_v4, %v6847_v20 }
 0x609   :  { %6910 = vst.msk [vmem:[#allocation2 + $0xa8] sm:$0xff] %vm592_vm1, %v6878_v54  ;;  %v6301_v54 = vsel %vm1238_vm3, %v6298_v8, %v6300_v21 }
 0x60a   :  { %6911 = vst.msk [vmem:[#allocation2 + $0xb0] sm:$0xff] %vm592_vm1, %v6879_v62  ;;  %v6302_v62 = vrot.slane %v16663_v53, 7 }
 0x60b   :  { %v6516_v59 = vpop.permute.xlu1 %6515 }
 0x60c   :  { %v6586_v43 = vadd.f32 %v6516_v59, %v16627_v15 }
 0x60d   :  { %v6514_v35 = vpop.permute.xlu0 %6513 }
 0x60e   :  { %v6585_v41 = vadd.f32 %v6514_v35, %v16631_v2 }
 0x610   :  { %v6704_v30 = vpop.permute.xlu1 %6703  ;;  %v6931_v28 = vld [vmem:[#allocation2 + $0xa0] ss:$2 sm:$0xff]  ;;  %v6947_v34 = vld [vmem:[#allocation2 + $0xa1] ss:$2 sm:$0xff] }
 0x611   :  { %v6776_v26 = vadd.f32 %v6704_v30, %v6584_v48  ;;  %v6706_v29 = vpop.permute.xlu0 %6705  ;;  %v6963_v23 = vmax.f32 %v6931_v28, %v6947_v34 }
 0x612   :  { %v6777_v42 = vadd.f32 %v6706_v29, %v6585_v41 }
 0x613   :  { %v6816_v10 = vadd.f32 %v16539_v44, %v6776_v26  ;;  %v6979_v56 = vmul.f32 0.3, %v6963_v23  ;;  %v6303_v26 = vsel %vm1238_vm3, %v6300_v21, %v6302_v62  ;;  %v12399_v21 = vld [vmem:[%s18196_s28 + $0x20] sm:$0xff] }
 0x614   :  { %v6817_v33 = vadd.f32 %v16539_v44, %v6777_v42 }
 0x615   :  { %v6848_v0 = vmul.f32 0.3, %v6816_v10  ;;  %v6995_v60 = vmax.f32 %v6963_v23, %v6979_v56 }
 0x616   :  { %v6849_v51 = vmul.f32 0.3, %v6817_v33 }
 0x617   :  { %v6880_v7 = vmax.f32 %v6816_v10, %v6848_v0  ;;  %13274 = vmatprep.mubr.msk.f32.mxu0 %vm592_vm1, %v6995_v60 }
 0x618   :  { %v6881_v6 = vmax.f32 %v6817_v33, %v6849_v51 }
 0x619   :  { %6912 = vst.msk [vmem:[#allocation2 + $0xb8] sm:$0xff] %vm592_vm1, %v6880_v7 }
 0x61a   :  { %6913 = vst.msk [vmem:[#allocation2 + $0xc0] sm:$0xff] %vm592_vm1, %v6881_v6 }
 0x61b   :  { %v6520_v2 = vpop.permute.xlu1 %6519 }
 0x61c   :  { %v6588_v36 = vadd.f32 %v6520_v2, %v16644_v5 }
 0x61d   :  { %v6518_v12 = vpop.permute.xlu0 %6517 }
 0x61e   :  { %v6587_v46 = vadd.f32 %v6518_v12, %v16648_v13 }
 0x620   :  { %v6708_v24 = vpop.permute.xlu1 %6707  ;;  %v6932_v22 = vld [vmem:[#allocation2 + $0xb0] ss:$2 sm:$0xff]  ;;  %v6948_v3 = vld [vmem:[#allocation2 + $0xb1] ss:$2 sm:$0xff] }
 0x621   :  { %v6778_v37 = vadd.f32 %v6708_v24, %v6586_v43  ;;  %v6710_v45 = vpop.permute.xlu0 %6709  ;;  %v6964_v50 = vmax.f32 %v6932_v22, %v6948_v3 }
 0x622   :  { %v6779_v31 = vadd.f32 %v6710_v45, %v6587_v46 }
 0x623   :  { %v6818_v11 = vadd.f32 %v16539_v44, %v6778_v37  ;;  %v6980_v18 = vmul.f32 0.3, %v6964_v50 }
 0x624   :  { %v6819_v17 = vadd.f32 %v16539_v44, %v6779_v31  ;;  %v6524_v27 = vpop.permute.xlu1 %6523 }
 0x625   :  { %v6850_v61 = vmul.f32 0.3, %v6818_v11  ;;  %v6522_v19 = vpop.permute.xlu0 %6521  ;;  %v6996_v52 = vmax.f32 %v6964_v50, %v6980_v18  ;;  %v6590_v20 = vadd.f32 %v6524_v27, %v16673_v25 }
 0x626   :  { %v6851_v14 = vmul.f32 0.3, %v6819_v17  ;;  %v6589_v55 = vadd.f32 %v6522_v19, %v16676_v49 }
 0x627   :  { %v6882_v15 = vmax.f32 %v6818_v11, %v6850_v61  ;;  %13275 = vmatmul.mubr.msk.f32.gmra.mxu0 %vm592_vm1, %v6996_v52 }
 0x628   :  { %v6883_v13 = vmax.f32 %v6819_v17, %v6851_v14  ;;  %v6528_v9 = vpop.permute.xlu1 %6527 }
 0x629   :  { %6914 = vst.msk [vmem:[#allocation2 + $0xc8] sm:$0xff] %vm592_vm1, %v6882_v15  ;;  %v6714_v57 = vpop.permute.xlu0 %6713  ;;  %v6592_v29 = vadd.f32 %v6528_v9, %v6303_v26 }
 0x62a   :  { %6915 = vst.msk [vmem:[#allocation2 + $0xd0] sm:$0xff] %vm592_vm1, %v6883_v13  ;;  %v6781_v32 = vadd.f32 %v6714_v57, %v6589_v55  ;;  %v12400_v57 = vld [vmem:[%s18196_s28 + $0x28] sm:$0xf] }
 0x62b   :  { %13283 = vmatprep.subr.msk.mxu1 %vm785_vm0, %v12400_v57 }
 0x62c   :  { %v6821_v63 = vadd.f32 %v16539_v44, %v6781_v32  ;;  %v6712_v39 = vpop.permute.xlu1 %6711  ;;  %13284 = vmatpush3.msk.msra.mxu1 %vm785_vm0, %v12400_v57 }
 0x62d   :  { %v6780_v4 = vadd.f32 %v6712_v39, %v6588_v36  ;;  %v6526_v16 = vpop.permute.xlu0 %6525  ;;  %13285 = vmatprep.subr.mxu1 %v12399_v21 }
 0x62e   :  { %v6853_v40 = vmul.f32 0.3, %v6821_v63  ;;  %v6591_v38 = vadd.f32 %v6526_v16, %v6301_v54  ;;  %13286 = vmatpush3.msra.mxu1 %v12399_v21 }
 0x62f   :  { %v6820_v49 = vadd.f32 %v16539_v44, %v6780_v4 }
 0x630   :  { %v6885_v59 = vmax.f32 %v6821_v63, %v6853_v40  ;;  %v6716_v35 = vpop.permute.xlu1 %6715  ;;  %v6933_v5 = vld [vmem:[#allocation2 + $0xc0] ss:$2 sm:$0xff]  ;;  %v6949_v48 = vld [vmem:[#allocation2 + $0xc1] ss:$2 sm:$0xff] }
 0x631   :  { %v6852_v41 = vmul.f32 0.3, %v6820_v49  ;;  %v6782_v30 = vadd.f32 %v6716_v35, %v6590_v20  ;;  %v6718_v28 = vpop.permute.xlu0 %6717  ;;  %v6965_v34 = vmax.f32 %v6933_v5, %v6949_v48 }
 0x632   :  { %6917 = vst.msk [vmem:[#allocation2 + $0xe0] sm:$0xff] %vm592_vm1, %v6885_v59  ;;  %v6783_v25 = vadd.f32 %v6718_v28, %v6591_v38 }
 0x633   :  { %v6884_v58 = vmax.f32 %v6820_v49, %v6852_v41  ;;  %v6822_v8 = vadd.f32 %v16539_v44, %v6782_v30  ;;  %v6981_v23 = vmul.f32 0.3, %v6965_v34 }
 0x634   :  { %v6823_v53 = vadd.f32 %v16539_v44, %v6783_v25  ;;  %v6720_v42 = vpop.permute.xlu1 %6719 }
 0x635   :  { %6916 = vst.msk [vmem:[#allocation2 + $0xd8] sm:$0xff] %vm592_vm1, %v6884_v58  ;;  %v6854_v10 = vmul.f32 0.3, %v6822_v8  ;;  %v6784_v56 = vadd.f32 %v6720_v42, %v6592_v29  ;;  %v6997_v33 = vmax.f32 %v6965_v34, %v6981_v23 }
 0x636   :  { %v6855_v0 = vmul.f32 0.3, %v6823_v53 }
 0x637   :  { %v6886_v60 = vmax.f32 %v6822_v8, %v6854_v10  ;;  %v6824_v51 = vadd.f32 %v16539_v44, %v6784_v56  ;;  %13277 = vmatprep.mubr.msk.f32.mxu0 %vm592_vm1, %v6997_v33 }
 0x638   :  { %v6887_v7 = vmax.f32 %v6823_v53, %v6855_v0 }
 0x639   :  { %6918 = vst.msk [vmem:[#allocation2 + $0xe8] sm:$0xff] %vm592_vm1, %v6886_v60  ;;  %v6856_v6 = vmul.f32 0.3, %v6824_v51 }
 0x63a   :  { %6919 = vst.msk [vmem:[#allocation2 + $0xf0] sm:$0xff] %vm592_vm1, %v6887_v7  ;;  %v16826_v7 = vld [vmem:[%s18197_s24 + $0x2] ss:$0 sm:$0xff] }
 0x63b   :  { %v6888_v2 = vmax.f32 %v6824_v51, %v6856_v6 }
 0x63c   :  { %v6934_v12 = vld [vmem:[#allocation2 + $0xd0] ss:$2 sm:$0xff]  ;;  %v6950_v43 = vld [vmem:[#allocation2 + $0xd1] ss:$2 sm:$0xff] }
 0x63d   :  { %6920 = vst.msk [vmem:[#allocation2 + $0xf8] sm:$0xff] %vm592_vm1, %v6888_v2  ;;  %v6966_v46 = vmax.f32 %v6934_v12, %v6950_v43 }
 0x63f   :  { %v6982_v24 = vmul.f32 0.3, %v6966_v46 }
 0x640   :  { %v6935_v22 = vld [vmem:[#allocation2 + $0xe0] ss:$2 sm:$0xff]  ;;  %v6951_v3 = vld [vmem:[#allocation2 + $0xe1] ss:$2 sm:$0xff] }
 0x641   :  { %v6998_v37 = vmax.f32 %v6966_v46, %v6982_v24  ;;  %v6967_v45 = vmax.f32 %v6935_v22, %v6951_v3  ;;  %v16830_v46 = vadd.s32 56, %v14429_v47 }
 0x643   :  { %13278 = vmatmul.mubr.msk.f32.gmra.mxu0 %vm592_vm1, %v6998_v37  ;;  %v6983_v44 = vmul.f32 0.3, %v6967_v45  ;;  %vm7008_vm10 = vcmp.eq.s32.totalorder %v16830_v46, 63 }
 0x644   :  { %v6936_v50 = vld [vmem:[#allocation2 + $0xf0] ss:$2 sm:$0xff]  ;;  %v6952_v31 = vld [vmem:[#allocation2 + $0xf1] ss:$2 sm:$0xff] }
 0x645   :  { %v6999_v11 = vmax.f32 %v6967_v45, %v6983_v44  ;;  %v6968_v18 = vmax.f32 %v6936_v50, %v6952_v31 }
 0x647   :  { %v13261_v17 = vpop.f32.mrf.mxu0  ;;  %13280 = vmatprep.mubr.msk.f32.mxu0 %vm592_vm1, %v6999_v11  ;;  %v6984_v27 = vmul.f32 0.3, %v6968_v18 }
 0x648   :  { %7394 = vrot.lane.b32.xlu1 %v13261_v17, %s13817_s17  ;;  %v7281_v52 = vrot.slane %v13261_v17, 7  ;;  %v7329_v14 = vrot.slane %v13261_v17, 1 }
 0x649   :  { %v7185_v61 = vpop.f32.mrf.mxu0  ;;  %v7000_v19 = vmax.f32 %v6968_v18, %v6984_v27 }
 0x64a   :  { %v7280_v15 = vrot.slane %v7185_v61, 7  ;;  %v7328_v13 = vrot.slane %v7185_v61, 1  ;;  %7392 = vrot.lane.b32.xlu0 %v7185_v61, %s13817_s17 }
 0x64b   :  { %13281 = vmatmul.mubr.msk.f32.gmra.mxu0 %vm592_vm1, %v7000_v19 }
 0x64c   :  { %v7330_v55 = vsel %vm1431_vm2, %v7328_v13, %v7329_v14  ;;  %v16773_v9 = vsel %vm1238_vm3, %v7280_v15, %v7281_v52  ;;  %v7327_v33 = vsel %vm1238_vm3, 0.0, %v7280_v15 }
 0x64d   :  { %v7376_v60 = vsel %vm206_vm4, 0.0, %v7327_v33 }
 0x64e   :  { %7488 = vrot.lane.b32.xlu0 %v7330_v55, %s13818_s29 }
 0x666   :  { %v13264_v32 = vpop.f32.mrf.mxu0 }
 0x667   :  { %7398 = vrot.lane.b32.xlu1 %v13264_v32, %s13817_s17  ;;  %v7285_v63 = vrot.slane %v13264_v32, 7  ;;  %v7333_v39 = vrot.slane %v13264_v32, 1 }
 0x668   :  { %v7195_v36 = vpop.f32.mrf.mxu0 }
 0x669   :  { %v7283_v4 = vrot.slane %v7195_v36, 7  ;;  %v7331_v16 = vrot.slane %v7195_v36, 1  ;;  %7396 = vrot.lane.b32.xlu0 %v7195_v36, %s13817_s17 }
 0x66b   :  { %v7332_v40 = vsel %vm1431_vm2, %v7329_v14, %v7331_v16  ;;  %v7334_v20 = vsel %vm1431_vm2, %v7331_v16, %v7333_v39  ;;  %v16789_v49 = vsel %vm1238_vm3, %v7283_v4, %v7285_v63  ;;  %v16792_v54 = vsel %vm1238_vm3, %v7281_v52, %v7283_v4 }
 0x66c   :  { %7490 = vrot.lane.b32.xlu1 %v7332_v40, %s13818_s29 }
 0x66d   :  { %7492 = vrot.lane.b32.xlu0 %v7334_v20, %s13818_s29 }
 0x687   :  { %v13267_v62 = vpop.f32.mrf.mxu0 }
 0x688   :  { %7402 = vrot.lane.b32.xlu1 %v13267_v62, %s13817_s17  ;;  %v7289_v38 = vrot.slane %v13267_v62, 7  ;;  %v7337_v35 = vrot.slane %v13267_v62, 1 }
 0x689   :  { %v7205_v59 = vpop.f32.mrf.mxu0 }
 0x68a   :  { %v7287_v5 = vrot.slane %v7205_v59, 7  ;;  %v7335_v48 = vrot.slane %v7205_v59, 1  ;;  %7400 = vrot.lane.b32.xlu0 %v7205_v59, %s13817_s17 }
 0x68c   :  { %v7336_v41 = vsel %vm1431_vm2, %v7333_v39, %v7335_v48  ;;  %v7338_v30 = vsel %vm1431_vm2, %v7335_v48, %v7337_v35  ;;  %v16801_v28 = vsel %vm1238_vm3, %v7287_v5, %v7289_v38  ;;  %v16804_v34 = vsel %vm1238_vm3, %v7285_v63, %v7287_v5 }
 0x68d   :  { %7494 = vrot.lane.b32.xlu1 %v7336_v41, %s13818_s29 }
 0x68e   :  { %7496 = vrot.lane.b32.xlu0 %v7338_v30, %s13818_s29 }
 0x6a8   :  { %v13270_v26 = vpop.f32.mrf.mxu0 }
 0x6a9   :  { %7406 = vrot.lane.b32.xlu1 %v13270_v26, %s13817_s17  ;;  %v7293_v29 = vrot.slane %v13270_v26, 7  ;;  %v7341_v58 = vrot.slane %v13270_v26, 1 }
 0x6aa   :  { %v7215_v25 = vpop.f32.mrf.mxu0 }
 0x6ab   :  { %v7291_v8 = vrot.slane %v7215_v25, 7  ;;  %v7339_v23 = vrot.slane %v7215_v25, 1  ;;  %7404 = vrot.lane.b32.xlu0 %v7215_v25, %s13817_s17 }
 0x6ad   :  { %v7340_v53 = vsel %vm1431_vm2, %v7337_v35, %v7339_v23  ;;  %v7342_v42 = vsel %vm1431_vm2, %v7339_v23, %v7341_v58  ;;  %v16813_v10 = vsel %vm1238_vm3, %v7291_v8, %v7293_v29  ;;  %v16816_v56 = vsel %vm1238_vm3, %v7289_v38, %v7291_v8 }
 0x6ae   :  { %7498 = vrot.lane.b32.xlu1 %v7340_v53, %s13818_s29 }
 0x6af   :  { %7500 = vrot.lane.b32.xlu0 %v7342_v42, %s13818_s29 }
 0x6ba   :  { %v7395_v61 = vpop.permute.xlu1 %7394 }
 0x6bb   :  { %v7441_v14 = vadd.f32 %v7395_v61, %v16773_v9 }
 0x6bc   :  { %v7393_v0 = vpop.permute.xlu0 %7392 }
 0x6bd   :  { %v7440_v51 = vadd.f32 %v7393_v0, %v7376_v60 }
 0x6c0   :  { %v7489_v6 = vpop.permute.xlu0 %7488 }
 0x6c1   :  { %v7536_v2 = vadd.f32 %v7489_v6, %v7440_v51 }
 0x6c3   :  { %v7560_v12 = vadd.f32 %v16826_v7, %v7536_v2 }
 0x6c5   :  { %v7576_v43 = vmul.f32 0.3, %v7560_v12 }
 0x6c7   :  { %v7592_v24 = vmax.f32 %v7560_v12, %v7576_v43  ;;  %v13273_v22 = vpop.f32.mrf.mxu0 }
 0x6c8   :  { %7410 = vrot.lane.b32.xlu1 %v13273_v22, %s13817_s17  ;;  %v7297_v37 = vrot.slane %v13273_v22, 7  ;;  %v7345_v45 = vrot.slane %v13273_v22, 1 }
 0x6c9   :  { %v7225_v3 = vpop.f32.mrf.mxu0  ;;  %13287 = vmatprep.mubr.msk.f32.mxu1 %vm592_vm1, %v7592_v24 }
 0x6ca   :  { %v7295_v44 = vrot.slane %v7225_v3, 7  ;;  %v7343_v50 = vrot.slane %v7225_v3, 1  ;;  %7408 = vrot.lane.b32.xlu0 %v7225_v3, %s13817_s17 }
 0x6cc   :  { %v7346_v31 = vsel %vm1431_vm2, %v7343_v50, %v7345_v45  ;;  %v7344_v11 = vsel %vm1431_vm2, %v7341_v58, %v7343_v50  ;;  %v16839_v18 = vsel %vm1238_vm3, %v7295_v44, %v7297_v37  ;;  %v16842_v17 = vsel %vm1238_vm3, %v7293_v29, %v7295_v44 }
 0x6cd   :  { %v7463_v27 = vsel %vm7008_vm10, 0.0, %v7344_v11 }
 0x6ce   :  { %7504 = vrot.lane.b32.xlu0 %v7346_v31, %s13818_s29  ;;  %7502 = vrot.lane.b32.xlu1 %v7463_v27, %s13818_s29 }
 0x6d9   :  { %v7399_v19 = vpop.permute.xlu1 %7398 }
 0x6da   :  { %v7443_v26 = vadd.f32 %v7399_v19, %v16789_v49 }
 0x6db   :  { %v7397_v52 = vpop.permute.xlu0 %7396 }
 0x6dc   :  { %v7442_v15 = vadd.f32 %v7397_v52, %v16792_v54 }
 0x6de   :  { %v7491_v13 = vpop.permute.xlu1 %7490 }
 0x6df   :  { %v7537_v55 = vadd.f32 %v7491_v13, %v7441_v14  ;;  %v7493_v57 = vpop.permute.xlu0 %7492 }
 0x6e0   :  { %v7538_v32 = vadd.f32 %v7493_v57, %v7442_v15 }
 0x6e1   :  { %v7561_v21 = vadd.f32 %v16826_v7, %v7537_v55 }
 0x6e2   :  { %v7562_v36 = vadd.f32 %v16826_v7, %v7538_v32 }
 0x6e3   :  { %v7577_v63 = vmul.f32 0.3, %v7561_v21 }
 0x6e4   :  { %v7578_v39 = vmul.f32 0.3, %v7562_v36 }
 0x6e5   :  { %v7593_v4 = vmax.f32 %v7561_v21, %v7577_v63 }
 0x6e6   :  { %v7594_v16 = vmax.f32 %v7562_v36, %v7578_v39 }
 0x6e7   :  { %v13276_v40 = vpop.f32.mrf.mxu0  ;;  %13288 = vmatmul.mubr.msk.f32.vlgmr.msra.gmra.mxu1 %vm592_vm1, %v7593_v4 }
 0x6e8   :  { %7414 = vrot.lane.b32.xlu1 %v13276_v40, %s13817_s17  ;;  %13290 = vmatprep.mubr.msk.f32.mxu1 %vm592_vm1, %v7594_v16  ;;  %v7301_v20 = vrot.slane %v13276_v40, 7  ;;  %v7349_v54 = vrot.slane %v13276_v40, 1 }
 0x6e9   :  { %v7235_v9 = vpop.f32.mrf.mxu0 }
 0x6ea   :  { %v7299_v62 = vrot.slane %v7235_v9, 7  ;;  %v7347_v59 = vrot.slane %v7235_v9, 1  ;;  %7412 = vrot.lane.b32.xlu0 %v7235_v9, %s13817_s17 }
 0x6ec   :  { %v7348_v38 = vsel %vm1431_vm2, %v7345_v45, %v7347_v59  ;;  %v7350_v35 = vsel %vm1431_vm2, %v7347_v59, %v7349_v54  ;;  %v16859_v5 = vsel %vm1238_vm3, %v7299_v62, %v7301_v20  ;;  %v16862_v48 = vsel %vm1238_vm3, %v7297_v37, %v7299_v62 }
 0x6ed   :  { %7506 = vrot.lane.b32.xlu1 %v7348_v38, %s13818_s29 }
 0x6ee   :  { %7508 = vrot.lane.b32.xlu0 %v7350_v35, %s13818_s29 }
 0x6fa   :  { %v7403_v41 = vpop.permute.xlu1 %7402 }
 0x6fb   :  { %v7445_v15 = vadd.f32 %v7403_v41, %v16801_v28  ;;  %v16916_v28 = vadd.s32 64, %v14429_v47 }
 0x6fc   :  { %v7401_v30 = vpop.permute.xlu0 %7400 }
 0x6fd   :  { %v7444_v25 = vadd.f32 %v7401_v30, %v16804_v34  ;;  %vm7025_vm11 = vcmp.eq.s32.totalorder %v16916_v28, 64 }
 0x6ff   :  { %v7495_v29 = vpop.permute.xlu1 %7494 }
 0x700   :  { %v7539_v58 = vadd.f32 %v7495_v29, %v7443_v26  ;;  %v7497_v8 = vpop.permute.xlu0 %7496 }
 0x701   :  { %v7540_v23 = vadd.f32 %v7497_v8, %v7444_v25 }
 0x702   :  { %v7563_v53 = vadd.f32 %v16826_v7, %v7539_v58 }
 0x703   :  { %v7564_v42 = vadd.f32 %v16826_v7, %v7540_v23  ;;  %v16870_v33 = vpop.f32.mrf.mxu0 }
 0x704   :  { %v7579_v0 = vmul.f32 0.3, %v7563_v53  ;;  %7418 = vrot.lane.b32.xlu1 %v16870_v33, %s13817_s17  ;;  %v7305_v51 = vrot.slane %v16870_v33, 7  ;;  %v7353_v34 = vrot.slane %v16870_v33, 1 }
 0x705   :  { %v7580_v60 = vmul.f32 0.3, %v7564_v42  ;;  %v7245_v49 = vpop.f32.mrf.mxu0 }
 0x706   :  { %v7595_v6 = vmax.f32 %v7563_v53, %v7579_v0  ;;  %v7303_v2 = vrot.slane %v7245_v49, 7  ;;  %v7351_v12 = vrot.slane %v7245_v49, 1  ;;  %7416 = vrot.lane.b32.xlu0 %v7245_v49, %s13817_s17 }
 0x707   :  { %v7596_v43 = vmax.f32 %v7564_v42, %v7580_v60 }
 0x708   :  { %13291 = vmatmul.mubr.msk.f32.gmra.mxu1 %vm592_vm1, %v7595_v6  ;;  %v7352_v24 = vsel %vm1431_vm2, %v7349_v54, %v7351_v12  ;;  %v7354_v22 = vsel %vm1431_vm2, %v7351_v12, %v7353_v34  ;;  %v16883_v3 = vsel %vm1238_vm3, %v7303_v2, %v7305_v51  ;;  %v16886_v37 = vsel %vm1238_vm3, %v7301_v20, %v7303_v2 }
 0x709   :  { %7510 = vrot.lane.b32.xlu1 %v7352_v24, %s13818_s29  ;;  %13293 = vmatprep.mubr.msk.f32.mxu1 %vm592_vm1, %v7596_v43  ;;  %v7384_v20 = vsel %vm7025_vm11, 0.0, %v16842_v17 }
 0x70a   :  { %7512 = vrot.lane.b32.xlu0 %v7354_v22, %s13818_s29 }
 0x70b   :  { %v16891_v45 = vpop.f32.mrf.mxu0 }
 0x70c   :  { %v7357_v44 = vrot.slane %v16891_v45, 1 }
 0x70d   :  { %7422 = vrot.lane.b32.xlu1 %v16891_v45, %s13817_s17  ;;  %v16896_v50 = vpop.f32.mrf.mxu0 }
 0x70e   :  { %v7355_v31 = vrot.slane %v16896_v50, 1  ;;  %7420 = vrot.lane.b32.xlu0 %v16896_v50, %s13817_s17  ;;  %v7375_v61 = vsel %vm1431_vm2, %v7357_v44, 0.0 }
 0x70f   :  { %v7471_v19 = vsel %vm4762_vm8, 0.0, %v7375_v61 }
 0x710   :  { %v7356_v11 = vsel %vm1431_vm2, %v7353_v34, %v7355_v31  ;;  %v7358_v27 = vsel %vm1431_vm2, %v7355_v31, %v7357_v44 }
 0x711   :  { %7514 = vrot.lane.b32.xlu1 %v7356_v11, %s13818_s29 }
 0x712   :  { %7516 = vrot.lane.b32.xlu0 %v7358_v27, %s13818_s29 }
 0x715   :  { %7518 = vrot.lane.b32.xlu1 %v7471_v19, %s13818_s29  ;;  %v7307_v19 = vrot.slane %v16896_v50, 7 }
 0x71b   :  { %v7407_v52 = vpop.permute.xlu1 %7406 }
 0x71c   :  { %v7447_v54 = vadd.f32 %v7407_v52, %v16813_v10 }
 0x71d   :  { %v7405_v14 = vpop.permute.xlu0 %7404 }
 0x71e   :  { %v7446_v13 = vadd.f32 %v7405_v14, %v16816_v56 }
 0x720   :  { %v7499_v55 = vpop.permute.xlu1 %7498 }
 0x721   :  { %v7541_v57 = vadd.f32 %v7499_v55, %v7445_v15  ;;  %v7501_v32 = vpop.permute.xlu0 %7500 }
 0x722   :  { %v7542_v21 = vadd.f32 %v7501_v32, %v7446_v13 }
 0x723   :  { %v7565_v36 = vadd.f32 %v16826_v7, %v7541_v57 }
 0x724   :  { %v7566_v63 = vadd.f32 %v16826_v7, %v7542_v21 }
 0x725   :  { %v7581_v39 = vmul.f32 0.3, %v7565_v36 }
 0x726   :  { %v7582_v4 = vmul.f32 0.3, %v7566_v63 }
 0x727   :  { %v7597_v16 = vmax.f32 %v7565_v36, %v7581_v39 }
 0x728   :  { %v7598_v40 = vmax.f32 %v7566_v63, %v7582_v4 }
 0x729   :  { %13294 = vmatmul.mubr.msk.f32.gmra.mxu1 %vm592_vm1, %v7597_v16 }
 0x72a   :  { %13296 = vmatprep.mubr.msk.f32.mxu1 %vm592_vm1, %v7598_v40 }
 0x73a   :  { %v7411_v56 = vpop.permute.xlu1 %7410 }
 0x73b   :  { %v7449_v10 = vadd.f32 %v7411_v56, %v16839_v18 }
 0x73c   :  { %v7409_v9 = vpop.permute.xlu0 %7408 }
 0x73d   :  { %v7448_v62 = vadd.f32 %v7409_v9, %v7384_v20 }
 0x740   :  { %v7505_v59 = vpop.permute.xlu0 %7504  ;;  %v7503_v38 = vpop.permute.xlu1 %7502 }
 0x741   :  { %v7544_v35 = vadd.f32 %v7505_v59, %v7448_v62  ;;  %v7543_v41 = vadd.f32 %v7503_v38, %v7447_v54 }
 0x743   :  { %v7568_v30 = vadd.f32 %v16826_v7, %v7544_v35  ;;  %v7567_v26 = vadd.f32 %v16826_v7, %v7543_v41 }
 0x745   :  { %v7584_v25 = vmul.f32 0.3, %v7568_v30  ;;  %v7583_v29 = vmul.f32 0.3, %v7567_v26 }
 0x747   :  { %v7600_v58 = vmax.f32 %v7568_v30, %v7584_v25  ;;  %v7599_v8 = vmax.f32 %v7567_v26, %v7583_v29 }
 0x749   :  { %13297 = vmatmul.mubr.msk.f32.gmra.mxu1 %vm592_vm1, %v7599_v8 }
 0x74a   :  { %13299 = vmatprep.mubr.msk.f32.mxu1 %vm592_vm1, %v7600_v58 }
 0x75a   :  { %v7415_v17 = vpop.permute.xlu1 %7414 }
 0x75c   :  { %v7413_v23 = vpop.permute.xlu0 %7412 }
 0x75d   :  { %v7450_v53 = vadd.f32 %v7413_v23, %v16862_v48  ;;  %v7451_v48 = vadd.f32 %v7415_v17, %v16859_v5  ;;  %v7308_v5 = vsel %vm1238_vm3, %v7305_v51, %v7307_v19 }
 0x75f   :  { %v7507_v42 = vpop.permute.xlu1 %7506 }
 0x760   :  { %v7545_v0 = vadd.f32 %v7507_v42, %v7449_v10  ;;  %v7509_v60 = vpop.permute.xlu0 %7508 }
 0x761   :  { %v7546_v49 = vadd.f32 %v7509_v60, %v7450_v53 }
 0x762   :  { %v7569_v6 = vadd.f32 %v16826_v7, %v7545_v0 }
 0x763   :  { %v7570_v34 = vadd.f32 %v16826_v7, %v7546_v49 }
 0x764   :  { %v7585_v2 = vmul.f32 0.3, %v7569_v6 }
 0x765   :  { %v7586_v12 = vmul.f32 0.3, %v7570_v34 }
 0x766   :  { %v7601_v43 = vmax.f32 %v7569_v6, %v7585_v2 }
 0x767   :  { %v7602_v24 = vmax.f32 %v7570_v34, %v7586_v12 }
 0x768   :  { %13300 = vmatmul.mubr.msk.f32.gmra.mxu1 %vm592_vm1, %v7601_v43  ;;  %v12421_v43 = vld [vmem:[%s18194_s5 + $0x38] sm:$0xf] }
 0x769   :  { %13302 = vmatprep.mubr.msk.f32.mxu1 %vm592_vm1, %v7602_v24  ;;  %v12420_v24 = vld [vmem:[%s18194_s5 + $0x30] sm:$0xff]  ;;  %13311 = vmatprep.subr.msk.mxu0 %vm785_vm0, %v12421_v43 }
 0x76a   :  { %13312 = vmatpush3.msk.msra.mxu0 %vm785_vm0, %v12421_v43 }
 0x76b   :  { %13313 = vmatprep.subr.mxu0 %v12420_v24 }
 0x76c   :  { %13314 = vmatpush3.msra.mxu0 %v12420_v24 }
 0x776   :  { %v7419_v22 = vpop.permute.xlu1 %7418 }
 0x777   :  { %v7453_v32 = vadd.f32 %v7419_v22, %v16883_v3 }
 0x778   :  { %v7417_v18 = vpop.permute.xlu0 %7416 }
 0x779   :  { %v7452_v44 = vadd.f32 %v7417_v18, %v16886_v37  ;;  %v7309_v37 = vrot.slane %v16891_v45, 7 }
 0x77b   :  { %v7511_v31 = vpop.permute.xlu1 %7510  ;;  %v7310_v16 = vsel %vm1238_vm3, %v7307_v19, %v7309_v37 }
 0x77c   :  { %v7547_v11 = vadd.f32 %v7511_v31, %v7451_v48  ;;  %v7513_v27 = vpop.permute.xlu0 %7512 }
 0x77d   :  { %v7548_v61 = vadd.f32 %v7513_v27, %v7452_v44 }
 0x77e   :  { %v7571_v52 = vadd.f32 %v16826_v7, %v7547_v11 }
 0x77f   :  { %v7572_v14 = vadd.f32 %v16826_v7, %v7548_v61  ;;  %v7423_v15 = vpop.permute.xlu1 %7422 }
 0x780   :  { %v7587_v13 = vmul.f32 0.3, %v7571_v52  ;;  %v7421_v55 = vpop.permute.xlu0 %7420  ;;  %v7455_v3 = vadd.f32 %v7423_v15, %v7310_v16 }
 0x781   :  { %v7588_v57 = vmul.f32 0.3, %v7572_v14  ;;  %v7454_v63 = vadd.f32 %v7421_v55, %v7308_v5 }
 0x782   :  { %v7603_v21 = vmax.f32 %v7571_v52, %v7587_v13 }
 0x783   :  { %v7604_v36 = vmax.f32 %v7572_v14, %v7588_v57  ;;  %v7515_v50 = vpop.permute.xlu1 %7514 }
 0x784   :  { %v7549_v39 = vadd.f32 %v7515_v50, %v7453_v32  ;;  %13303 = vmatmul.mubr.msk.f32.gmra.mxu1 %vm592_vm1, %v7603_v21  ;;  %v7517_v4 = vpop.permute.xlu0 %7516 }
 0x785   :  { %v7550_v40 = vadd.f32 %v7517_v4, %v7454_v63  ;;  %13305 = vmatprep.mubr.msk.f32.mxu1 %vm592_vm1, %v7604_v36 }
 0x786   :  { %v7573_v56 = vadd.f32 %v16826_v7, %v7549_v39  ;;  %v17009_v39 = vld [vmem:[%s18198_s0 + $0x2] ss:$0 sm:$0xff] }
 0x787   :  { %v7574_v33 = vadd.f32 %v16826_v7, %v7550_v40  ;;  %v7519_v51 = vpop.permute.xlu1 %7518 }
 0x788   :  { %v7589_v9 = vmul.f32 0.3, %v7573_v56  ;;  %v7551_v45 = vadd.f32 %v7519_v51, %v7455_v3 }
 0x789   :  { %v7590_v20 = vmul.f32 0.3, %v7574_v33 }
 0x78a   :  { %v7605_v54 = vmax.f32 %v7573_v56, %v7589_v9  ;;  %v7575_v62 = vadd.f32 %v16826_v7, %v7551_v45 }
 0x78b   :  { %v7606_v59 = vmax.f32 %v7574_v33, %v7590_v20 }
 0x78c   :  { %v7591_v38 = vmul.f32 0.3, %v7575_v62  ;;  %13306 = vmatmul.mubr.msk.f32.gmra.mxu1 %vm592_vm1, %v7605_v54 }
 0x78d   :  { %13308 = vmatprep.mubr.msk.f32.mxu1 %vm592_vm1, %v7606_v59 }
 0x78e   :  { %v7607_v35 = vmax.f32 %v7575_v62, %v7591_v38 }
 0x790   :  { %13309 = vmatmul.mubr.msk.f32.gmra.mxu1 %vm592_vm1, %v7607_v35 }
 0x7a7   :  { %v13289_v41 = vpop.f32.mrf.mxu1 }
 0x7a8   :  { %7937 = vrot.lane.b32.xlu1 %v13289_v41, %s13817_s17  ;;  %v7824_v26 = vrot.slane %v13289_v41, 7  ;;  %v7872_v25 = vrot.slane %v13289_v41, 1 }
 0x7a9   :  { %v7728_v30 = vpop.f32.mrf.mxu1 }
 0x7aa   :  { %v7823_v29 = vrot.slane %v7728_v30, 7  ;;  %v7871_v58 = vrot.slane %v7728_v30, 1  ;;  %7935 = vrot.lane.b32.xlu0 %v7728_v30, %s13817_s17 }
 0x7ac   :  { %v7873_v7 = vsel %vm1431_vm2, %v7871_v58, %v7872_v25  ;;  %v16956_v8 = vsel %vm1238_vm3, %v7823_v29, %v7824_v26  ;;  %v7870_v37 = vsel %vm1238_vm3, 0.0, %v7823_v29 }
 0x7ad   :  { %v7919_v63 = vsel %vm206_vm4, 0.0, %v7870_v37 }
 0x7ae   :  { %8031 = vrot.lane.b32.xlu0 %v7873_v7, %s13818_s29 }
 0x7c8   :  { %v13292_v17 = vpop.f32.mrf.mxu1 }
 0x7c9   :  { %7941 = vrot.lane.b32.xlu1 %v13292_v17, %s13817_s17  ;;  %v7828_v10 = vrot.slane %v13292_v17, 7  ;;  %v7876_v53 = vrot.slane %v13292_v17, 1 }
 0x7ca   :  { %v7738_v23 = vpop.f32.mrf.mxu1 }
 0x7cb   :  { %v7826_v42 = vrot.slane %v7738_v23, 7  ;;  %v7874_v0 = vrot.slane %v7738_v23, 1  ;;  %7939 = vrot.lane.b32.xlu0 %v7738_v23, %s13817_s17 }
 0x7cd   :  { %v7875_v60 = vsel %vm1431_vm2, %v7872_v25, %v7874_v0  ;;  %v7877_v49 = vsel %vm1431_vm2, %v7874_v0, %v7876_v53  ;;  %v16964_v6 = vsel %vm1238_vm3, %v7826_v42, %v7828_v10  ;;  %v16967_v34 = vsel %vm1238_vm3, %v7824_v26, %v7826_v42 }
 0x7ce   :  { %8033 = vrot.lane.b32.xlu1 %v7875_v60, %s13818_s29 }
 0x7cf   :  { %8035 = vrot.lane.b32.xlu0 %v7877_v49, %s13818_s29 }
 0x7e9   :  { %v13295_v2 = vpop.f32.mrf.mxu1 }
 0x7ea   :  { %7945 = vrot.lane.b32.xlu1 %v13295_v2, %s13817_s17  ;;  %v7832_v22 = vrot.slane %v13295_v2, 7  ;;  %v7880_v18 = vrot.slane %v13295_v2, 1 }
 0x7eb   :  { %v7748_v12 = vpop.f32.mrf.mxu1 }
 0x7ec   :  { %v7830_v48 = vrot.slane %v7748_v12, 7  ;;  %v7878_v44 = vrot.slane %v7748_v12, 1  ;;  %7943 = vrot.lane.b32.xlu0 %v7748_v12, %s13817_s17 }
 0x7ee   :  { %v7879_v31 = vsel %vm1431_vm2, %v7876_v53, %v7878_v44  ;;  %v7881_v11 = vsel %vm1431_vm2, %v7878_v44, %v7880_v18  ;;  %v16984_v27 = vsel %vm1238_vm3, %v7830_v48, %v7832_v22  ;;  %v16987_v61 = vsel %vm1238_vm3, %v7828_v10, %v7830_v48 }
 0x7ef   :  { %8037 = vrot.lane.b32.xlu1 %v7879_v31, %s13818_s29 }
 0x7f0   :  { %8039 = vrot.lane.b32.xlu0 %v7881_v11, %s13818_s29 }
 0x809   :  { %v13298_v19 = vpop.f32.mrf.mxu1 }
 0x80a   :  { %7949 = vrot.lane.b32.xlu1 %v13298_v19, %s13817_s17  ;;  %v7836_v14 = vrot.slane %v13298_v19, 7  ;;  %v7884_v15 = vrot.slane %v13298_v19, 1 }
 0x80b   :  { %v7758_v52 = vpop.f32.mrf.mxu1 }
 0x80c   :  { %v7834_v13 = vrot.slane %v7758_v52, 7  ;;  %v7882_v55 = vrot.slane %v7758_v52, 1  ;;  %7947 = vrot.lane.b32.xlu0 %v7758_v52, %s13817_s17 }
 0x80e   :  { %v7883_v57 = vsel %vm1431_vm2, %v7880_v18, %v7882_v55  ;;  %v7885_v32 = vsel %vm1431_vm2, %v7882_v55, %v7884_v15  ;;  %v16996_v21 = vsel %vm1238_vm3, %v7834_v13, %v7836_v14  ;;  %v16999_v5 = vsel %vm1238_vm3, %v7832_v22, %v7834_v13 }
 0x80f   :  { %8041 = vrot.lane.b32.xlu1 %v7883_v57, %s13818_s29 }
 0x810   :  { %8043 = vrot.lane.b32.xlu0 %v7885_v32, %s13818_s29 }
 0x81a   :  { %v7938_v30 = vpop.permute.xlu1 %7937 }
 0x81b   :  { %v7984_v29 = vadd.f32 %v7938_v30, %v16956_v8 }
 0x81c   :  { %v7936_v36 = vpop.permute.xlu0 %7935 }
 0x81d   :  { %v7983_v50 = vadd.f32 %v7936_v36, %v7919_v63 }
 0x820   :  { %v8032_v4 = vpop.permute.xlu0 %8031 }
 0x821   :  { %v8079_v16 = vadd.f32 %v8032_v4, %v7983_v50 }
 0x823   :  { %v8103_v40 = vadd.f32 %v17009_v39, %v8079_v16 }
 0x825   :  { %v8119_v3 = vmul.f32 0.3, %v8103_v40 }
 0x827   :  { %v8135_v56 = vmax.f32 %v8103_v40, %v8119_v3 }
 0x828   :  { %v13301_v33 = vpop.f32.mrf.mxu1 }
 0x829   :  { %7953 = vrot.lane.b32.xlu1 %v13301_v33, %s13817_s17  ;;  %8151 = vst.msk [vmem:[#allocation2] sm:$0xff] %vm592_vm1, %v8135_v56  ;;  %v7840_v9 = vrot.slane %v13301_v33, 7  ;;  %v7888_v45 = vrot.slane %v13301_v33, 1 }
 0x82a   :  { %v7768_v51 = vpop.f32.mrf.mxu1 }
 0x82b   :  { %v7838_v20 = vrot.slane %v7768_v51, 7  ;;  %v7886_v54 = vrot.slane %v7768_v51, 1  ;;  %7951 = vrot.lane.b32.xlu0 %v7768_v51, %s13817_s17 }
 0x82d   :  { %v7889_v62 = vsel %vm1431_vm2, %v7886_v54, %v7888_v45  ;;  %v7887_v59 = vsel %vm1431_vm2, %v7884_v15, %v7886_v54  ;;  %v17018_v38 = vsel %vm1238_vm3, %v7838_v20, %v7840_v9  ;;  %v17021_v35 = vsel %vm1238_vm3, %v7836_v14, %v7838_v20 }
 0x82e   :  { %v8006_v41 = vsel %vm7008_vm10, 0.0, %v7887_v59 }
 0x82f   :  { %8047 = vrot.lane.b32.xlu0 %v7889_v62, %s13818_s29  ;;  %8045 = vrot.lane.b32.xlu1 %v8006_v41, %s13818_s29 }
 0x83b   :  { %v17027_v26 = vpop.permute.xlu1 %7941 }
 0x83c   :  { %v7986_v59 = vadd.f32 %v17027_v26, %v16964_v6 }
 0x83d   :  { %v7940_v25 = vpop.permute.xlu0 %7939 }
 0x83e   :  { %v7985_v58 = vadd.f32 %v7940_v25, %v16967_v34 }
 0x840   :  { %v8034_v7 = vpop.permute.xlu1 %8033 }
 0x841   :  { %v8080_v17 = vadd.f32 %v8034_v7, %v7984_v29  ;;  %v8036_v23 = vpop.permute.xlu0 %8035 }
 0x842   :  { %v8081_v10 = vadd.f32 %v8036_v23, %v7985_v58 }
 0x843   :  { %v8104_v53 = vadd.f32 %v17009_v39, %v8080_v17 }
 0x844   :  { %v8105_v42 = vadd.f32 %v17009_v39, %v8081_v10  ;;  %v13304_v0 = vpop.f32.mrf.mxu1 }
 0x845   :  { %v8120_v60 = vmul.f32 0.3, %v8104_v53  ;;  %7957 = vrot.lane.b32.xlu1 %v13304_v0, %s13817_s17  ;;  %v7844_v2 = vrot.slane %v13304_v0, 7  ;;  %v7892_v24 = vrot.slane %v13304_v0, 1 }
 0x846   :  { %v8121_v49 = vmul.f32 0.3, %v8105_v42  ;;  %v7778_v12 = vpop.f32.mrf.mxu1 }
 0x847   :  { %v8136_v43 = vmax.f32 %v8104_v53, %v8120_v60  ;;  %v7842_v8 = vrot.slane %v7778_v12, 7  ;;  %v7890_v22 = vrot.slane %v7778_v12, 1  ;;  %7955 = vrot.lane.b32.xlu0 %v7778_v12, %s13817_s17 }
 0x848   :  { %v8137_v34 = vmax.f32 %v8105_v42, %v8121_v49 }
 0x849   :  { %8152 = vst.msk [vmem:[#allocation2 + $0x8] sm:$0xff] %vm592_vm1, %v8136_v43  ;;  %v7891_v18 = vsel %vm1431_vm2, %v7888_v45, %v7890_v22  ;;  %v7893_v48 = vsel %vm1431_vm2, %v7890_v22, %v7892_v24  ;;  %v17039_v44 = vsel %vm1238_vm3, %v7842_v8, %v7844_v2  ;;  %v17042_v31 = vsel %vm1238_vm3, %v7840_v9, %v7842_v8 }
 0x84a   :  { %8153 = vst.msk [vmem:[#allocation2 + $0x10] sm:$0xff] %vm592_vm1, %v8137_v34  ;;  %8049 = vrot.lane.b32.xlu1 %v7891_v18, %s13818_s29 }
 0x84b   :  { %8051 = vrot.lane.b32.xlu0 %v7893_v48, %s13818_s29 }
 0x84c   :  { %v17047_v11 = vpop.f32.mrf.mxu1 }
 0x84d   :  { %v7896_v52 = vrot.slane %v17047_v11, 1  ;;  %v7848_v13 = vrot.slane %v17047_v11, 7 }
 0x84e   :  { %7961 = vrot.lane.b32.xlu1 %v17047_v11, %s13817_s17  ;;  %v7788_v19 = vpop.f32.mrf.mxu1 }
 0x84f   :  { %v7846_v14 = vrot.slane %v7788_v19, 7  ;;  %v7894_v15 = vrot.slane %v7788_v19, 1  ;;  %7959 = vrot.lane.b32.xlu0 %v7788_v19, %s13817_s17 }
 0x850   :  { %v17054_v55 = vpop.f32.mrf.mxu1  ;;  %v8167_v57 = vld [vmem:[#allocation2] ss:$2 sm:$0xff]  ;;  %v8175_v32 = vld [vmem:[#allocation2 + $0x1] ss:$2 sm:$0xff] }
 0x851   :  { %v7897_v37 = vsel %vm1431_vm2, %v7894_v15, %v7896_v52  ;;  %v8183_v63 = vmax.f32 %v8167_v57, %v8175_v32  ;;  %v17064_v50 = vsel %vm1238_vm3, %v7846_v14, %v7848_v13  ;;  %v17067_v4 = vsel %vm1238_vm3, %v7844_v2, %v7846_v14 }
 0x852   :  { %7965 = vrot.lane.b32.xlu1 %v17054_v55, %s13817_s17  ;;  %v17059_v36 = vpop.f32.mrf.mxu1  ;;  %v7895_v3 = vsel %vm1431_vm2, %v7892_v24, %v7894_v15  ;;  %v7900_v56 = vrot.slane %v17054_v55, 1 }
 0x853   :  { %8055 = vrot.lane.b32.xlu0 %v7897_v37, %s13818_s29  ;;  %v8191_v16 = vmul.f32 0.3, %v8183_v63  ;;  %v7898_v40 = vrot.slane %v17059_v36, 1 }
 0x854   :  { %v7918_v45 = vsel %vm1431_vm2, %v7900_v56, 0.0 }
 0x855   :  { %v8199_v33 = vmax.f32 %v8183_v63, %v8191_v16  ;;  %v7899_v51 = vsel %vm1431_vm2, %v7896_v52, %v7898_v40  ;;  %v7901_v9 = vsel %vm1431_vm2, %v7898_v40, %v7900_v56  ;;  %v8014_v54 = vsel %vm4762_vm8, 0.0, %v7918_v45 }
 0x856   :  { %8053 = vrot.lane.b32.xlu1 %v7895_v3, %s13818_s29  ;;  %v7927_v16 = vsel %vm7025_vm11, 0.0, %v17021_v35 }
 0x857   :  { %7963 = vrot.lane.b32.xlu0 %v17059_v36, %s13817_s17  ;;  %13315 = vmatprep.mubr.msk.f32.mxu0 %vm592_vm1, %v8199_v33 }
 0x85a   :  { %8057 = vrot.lane.b32.xlu1 %v7899_v51, %s13818_s29 }
 0x85b   :  { %8059 = vrot.lane.b32.xlu0 %v7901_v9, %s13818_s29 }
 0x85c   :  { %v7946_v20 = vpop.permute.xlu1 %7945 }
 0x85d   :  { %v7988_v2 = vadd.f32 %v7946_v20, %v16984_v27 }
 0x85e   :  { %v7944_v62 = vpop.permute.xlu0 %7943  ;;  %8061 = vrot.lane.b32.xlu1 %v8014_v54, %s13818_s29 }
 0x85f   :  { %v7987_v41 = vadd.f32 %v7944_v62, %v16987_v61 }
 0x861   :  { %v8038_v30 = vpop.permute.xlu1 %8037 }
 0x862   :  { %v8082_v25 = vadd.f32 %v8038_v30, %v7986_v59  ;;  %v8040_v29 = vpop.permute.xlu0 %8039 }
 0x863   :  { %v8083_v58 = vadd.f32 %v8040_v29, %v7987_v41 }
 0x864   :  { %v8106_v7 = vadd.f32 %v17009_v39, %v8082_v25 }
 0x865   :  { %v8107_v17 = vadd.f32 %v17009_v39, %v8083_v58 }
 0x866   :  { %v8122_v23 = vmul.f32 0.3, %v8106_v7 }
 0x867   :  { %v8123_v10 = vmul.f32 0.3, %v8107_v17 }
 0x868   :  { %v8138_v1 = vmax.f32 %v8106_v7, %v8122_v23 }
 0x869   :  { %v8139_v53 = vmax.f32 %v8107_v17, %v8123_v10 }
 0x86a   :  { %8154 = vst.msk [vmem:[#allocation2 + $0x18] sm:$0xff] %vm592_vm1, %v8138_v1 }
 0x86b   :  { %8155 = vst.msk [vmem:[#allocation2 + $0x20] sm:$0xff] %vm592_vm1, %v8139_v53 }
 0x871   :  { %v8168_v42 = vld [vmem:[#allocation2 + $0x10] ss:$2 sm:$0xff]  ;;  %v8176_v6 = vld [vmem:[#allocation2 + $0x11] ss:$2 sm:$0xff] }
 0x872   :  { %v8184_v26 = vmax.f32 %v8168_v42, %v8176_v6 }
 0x874   :  { %v8192_v61 = vmul.f32 0.3, %v8184_v26 }
 0x876   :  { %v8200_v0 = vmax.f32 %v8184_v26, %v8192_v61 }
 0x878   :  { %13316 = vmatmul.mubr.msk.f32.vlgmr.msra.gmra.mxu0 %vm592_vm1, %v8200_v0 }
 0x87c   :  { %v7950_v60 = vpop.permute.xlu1 %7949 }
 0x87d   :  { %v7990_v40 = vadd.f32 %v7950_v60, %v16996_v21 }
 0x87e   :  { %v7948_v49 = vpop.permute.xlu0 %7947 }
 0x87f   :  { %v7989_v12 = vadd.f32 %v7948_v49, %v16999_v5 }
 0x881   :  { %v8042_v43 = vpop.permute.xlu1 %8041 }
 0x882   :  { %v8084_v24 = vadd.f32 %v8042_v43, %v7988_v2  ;;  %v8044_v8 = vpop.permute.xlu0 %8043 }
 0x883   :  { %v8085_v22 = vadd.f32 %v8044_v8, %v7989_v12 }
 0x884   :  { %v8108_v34 = vadd.f32 %v17009_v39, %v8084_v24  ;;  %v7850_v24 = vrot.slane %v17059_v36, 7 }
 0x885   :  { %v8109_v18 = vadd.f32 %v17009_v39, %v8085_v22 }
 0x886   :  { %v8124_v48 = vmul.f32 0.3, %v8108_v34 }
 0x887   :  { %v8125_v19 = vmul.f32 0.3, %v8109_v18 }
 0x888   :  { %v8140_v52 = vmax.f32 %v8108_v34, %v8124_v48 }
 0x889   :  { %v8141_v14 = vmax.f32 %v8109_v18, %v8125_v19 }
 0x88a   :  { %8156 = vst.msk [vmem:[#allocation2 + $0x28] sm:$0xff] %vm592_vm1, %v8140_v52 }
 0x88b   :  { %8157 = vst.msk [vmem:[#allocation2 + $0x30] sm:$0xff] %vm592_vm1, %v8141_v14  ;;  %v7851_v14 = vsel %vm1238_vm3, %v7848_v13, %v7850_v24 }
 0x891   :  { %v8169_v15 = vld [vmem:[#allocation2 + $0x20] ss:$2 sm:$0xff]  ;;  %v8177_v27 = vld [vmem:[#allocation2 + $0x21] ss:$2 sm:$0xff] }
 0x892   :  { %v8185_v57 = vmax.f32 %v8169_v15, %v8177_v27  ;;  %v7852_v15 = vrot.slane %v17054_v55, 7 }
 0x894   :  { %v8193_v5 = vmul.f32 0.3, %v8185_v57 }
 0x896   :  { %v8201_v32 = vmax.f32 %v8185_v57, %v8193_v5 }
 0x898   :  { %13318 = vmatprep.mubr.msk.f32.mxu0 %vm592_vm1, %v8201_v32 }
 0x89b   :  { %v7954_v37 = vpop.permute.xlu1 %7953 }
 0x89c   :  { %v7992_v7 = vadd.f32 %v7954_v37, %v17018_v38 }
 0x89d   :  { %v7952_v63 = vpop.permute.xlu0 %7951 }
 0x89e   :  { %v7991_v3 = vadd.f32 %v7952_v63, %v7927_v16 }
 0x8a1   :  { %v8048_v56 = vpop.permute.xlu0 %8047  ;;  %v8046_v33 = vpop.permute.xlu1 %8045 }
 0x8a2   :  { %v8087_v51 = vadd.f32 %v8048_v56, %v7991_v3  ;;  %v8086_v9 = vadd.f32 %v8046_v33, %v7990_v40  ;;  %v7853_v40 = vsel %vm1238_vm3, %v7850_v24, %v7852_v15  ;;  %v12433_v24 = vld [vmem:[%s18196_s28 + $0x30] sm:$0xff] }
 0x8a4   :  { %v8111_v45 = vadd.f32 %v17009_v39, %v8087_v51  ;;  %v8110_v20 = vadd.f32 %v17009_v39, %v8086_v9 }
 0x8a6   :  { %v8127_v54 = vmul.f32 0.3, %v8111_v45  ;;  %v8126_v62 = vmul.f32 0.3, %v8110_v20 }
 0x8a8   :  { %v8143_v59 = vmax.f32 %v8111_v45, %v8127_v54  ;;  %v8142_v41 = vmax.f32 %v8110_v20, %v8126_v62 }
 0x8aa   :  { %8159 = vst.msk [vmem:[#allocation2 + $0x40] sm:$0xff] %vm592_vm1, %v8143_v59  ;;  %8158 = vst.msk [vmem:[#allocation2 + $0x38] sm:$0xff] %vm592_vm1, %v8142_v41 }
 0x8b1   :  { %v8170_v28 = vld [vmem:[#allocation2 + $0x30] ss:$2 sm:$0xff]  ;;  %v8178_v35 = vld [vmem:[#allocation2 + $0x31] ss:$2 sm:$0xff] }
 0x8b2   :  { %v8186_v21 = vmax.f32 %v8170_v28, %v8178_v35 }
 0x8b4   :  { %v8194_v30 = vmul.f32 0.3, %v8186_v21 }
 0x8b6   :  { %v8202_v25 = vmax.f32 %v8186_v21, %v8194_v30 }
 0x8b7   :  { %v7958_v29 = vpop.permute.xlu1 %7957 }
 0x8b8   :  { %13319 = vmatmul.mubr.msk.f32.gmra.mxu0 %vm592_vm1, %v8202_v25  ;;  %v7994_v8 = vadd.f32 %v7958_v29, %v17039_v44 }
 0x8b9   :  { %v7956_v58 = vpop.permute.xlu0 %7955 }
 0x8ba   :  { %v7993_v17 = vadd.f32 %v7956_v58, %v17042_v31 }
 0x8bc   :  { %v8050_v23 = vpop.permute.xlu1 %8049 }
 0x8bd   :  { %v8088_v10 = vadd.f32 %v8050_v23, %v7992_v7  ;;  %v8052_v1 = vpop.permute.xlu0 %8051 }
 0x8be   :  { %v8089_v53 = vadd.f32 %v8052_v1, %v7993_v17 }
 0x8bf   :  { %v8112_v42 = vadd.f32 %v17009_v39, %v8088_v10 }
 0x8c0   :  { %v8113_v6 = vadd.f32 %v17009_v39, %v8089_v53  ;;  %v7962_v26 = vpop.permute.xlu1 %7961 }
 0x8c1   :  { %v8128_v61 = vmul.f32 0.3, %v8112_v42  ;;  %v7960_v0 = vpop.permute.xlu0 %7959  ;;  %v7996_v52 = vadd.f32 %v7962_v26, %v17064_v50 }
 0x8c2   :  { %v8129_v60 = vmul.f32 0.3, %v8113_v6  ;;  %v7995_v12 = vadd.f32 %v7960_v0, %v17067_v4 }
 0x8c3   :  { %v8144_v49 = vmax.f32 %v8112_v42, %v8128_v61 }
 0x8c4   :  { %v8145_v2 = vmax.f32 %v8113_v6, %v8129_v60  ;;  %v7966_v43 = vpop.permute.xlu1 %7965 }
 0x8c5   :  { %8160 = vst.msk [vmem:[#allocation2 + $0x48] sm:$0xff] %vm592_vm1, %v8144_v49  ;;  %v8056_v38 = vpop.permute.xlu0 %8055  ;;  %v7998_v3 = vadd.f32 %v7966_v43, %v7853_v40 }
 0x8c6   :  { %8161 = vst.msk [vmem:[#allocation2 + $0x50] sm:$0xff] %vm592_vm1, %v8145_v2  ;;  %v8091_v31 = vadd.f32 %v8056_v38, %v7995_v12  ;;  %v12434_v38 = vld [vmem:[%s18196_s28 + $0x38] sm:$0xf] }
 0x8c7   :  { %13327 = vmatprep.subr.msk.mxu1 %vm785_vm0, %v12434_v38 }
 0x8c8   :  { %v8115_v22 = vadd.f32 %v17009_v39, %v8091_v31  ;;  %v8054_v34 = vpop.permute.xlu1 %8053  ;;  %13328 = vmatpush3.msk.msra.mxu1 %vm785_vm0, %v12434_v38 }
 0x8c9   :  { %v8090_v18 = vadd.f32 %v8054_v34, %v7994_v8  ;;  %v7964_v48 = vpop.permute.xlu0 %7963  ;;  %13329 = vmatprep.subr.mxu1 %v12433_v24 }
 0x8ca   :  { %v8131_v19 = vmul.f32 0.3, %v8115_v22  ;;  %v7997_v36 = vadd.f32 %v7964_v48, %v7851_v14  ;;  %13330 = vmatpush3.msra.mxu1 %v12433_v24 }
 0x8cb   :  { %v8114_v4 = vadd.f32 %v17009_v39, %v8090_v18 }
 0x8cc   :  { %v8147_v27 = vmax.f32 %v8115_v22, %v8131_v19  ;;  %v8058_v57 = vpop.permute.xlu1 %8057  ;;  %v8171_v44 = vld [vmem:[#allocation2 + $0x40] ss:$2 sm:$0xff]  ;;  %v8179_v5 = vld [vmem:[#allocation2 + $0x41] ss:$2 sm:$0xff] }
 0x8cd   :  { %v8130_v32 = vmul.f32 0.3, %v8114_v4  ;;  %v8092_v37 = vadd.f32 %v8058_v57, %v7996_v52  ;;  %v8060_v63 = vpop.permute.xlu0 %8059  ;;  %v8187_v16 = vmax.f32 %v8171_v44, %v8179_v5 }
 0x8ce   :  { %8163 = vst.msk [vmem:[#allocation2 + $0x60] sm:$0xff] %vm592_vm1, %v8147_v27  ;;  %v8093_v50 = vadd.f32 %v8060_v63, %v7997_v36 }
 0x8cf   :  { %v8146_v11 = vmax.f32 %v8114_v4, %v8130_v32  ;;  %v8116_v13 = vadd.f32 %v17009_v39, %v8092_v37  ;;  %v8195_v56 = vmul.f32 0.3, %v8187_v16  ;;  %v17172_v37 = vadd.s32 24, %v14429_v47 }
 0x8d0   :  { %v8117_v55 = vadd.f32 %v17009_v39, %v8093_v50  ;;  %v8062_v33 = vpop.permute.xlu1 %8061 }
 0x8d1   :  { %8162 = vst.msk [vmem:[#allocation2 + $0x58] sm:$0xff] %vm592_vm1, %v8146_v11  ;;  %v8132_v51 = vmul.f32 0.3, %v8116_v13  ;;  %v8094_v9 = vadd.f32 %v8062_v33, %v7998_v3  ;;  %v8203_v45 = vmax.f32 %v8187_v16, %v8195_v56  ;;  %vm8210_vm12 = vcmp.eq.s32.totalorder %v17172_v37, 31 }
 0x8d2   :  { %v8133_v20 = vmul.f32 0.3, %v8117_v55 }
 0x8d3   :  { %v8148_v54 = vmax.f32 %v8116_v13, %v8132_v51  ;;  %v8118_v62 = vadd.f32 %v17009_v39, %v8094_v9  ;;  %13321 = vmatprep.mubr.msk.f32.mxu0 %vm592_vm1, %v8203_v45 }
 0x8d4   :  { %v8149_v59 = vmax.f32 %v8117_v55, %v8133_v20 }
 0x8d5   :  { %8164 = vst.msk [vmem:[#allocation2 + $0x68] sm:$0xff] %vm592_vm1, %v8148_v54  ;;  %v8134_v41 = vmul.f32 0.3, %v8118_v62 }
 0x8d6   :  { %8165 = vst.msk [vmem:[#allocation2 + $0x70] sm:$0xff] %vm592_vm1, %v8149_v59 }
 0x8d7   :  { %v8150_v28 = vmax.f32 %v8118_v62, %v8134_v41  ;;  %v17207_v62 = vld [vmem:[%s18197_s24 + $0x3] ss:$0 sm:$0xff] }
 0x8d8   :  { %v8172_v35 = vld [vmem:[#allocation2 + $0x50] ss:$2 sm:$0xff]  ;;  %v8180_v21 = vld [vmem:[#allocation2 + $0x51] ss:$2 sm:$0xff] }
 0x8d9   :  { %8166 = vst.msk [vmem:[#allocation2 + $0x78] sm:$0xff] %vm592_vm1, %v8150_v28  ;;  %v8188_v30 = vmax.f32 %v8172_v35, %v8180_v21 }
 0x8db   :  { %v8196_v25 = vmul.f32 0.3, %v8188_v30 }
 0x8dc   :  { %v8173_v29 = vld [vmem:[#allocation2 + $0x60] ss:$2 sm:$0xff]  ;;  %v8181_v58 = vld [vmem:[#allocation2 + $0x61] ss:$2 sm:$0xff] }
 0x8dd   :  { %v8204_v7 = vmax.f32 %v8188_v30, %v8196_v25  ;;  %v8189_v17 = vmax.f32 %v8173_v29, %v8181_v58 }
 0x8df   :  { %13322 = vmatmul.mubr.msk.f32.gmra.mxu0 %vm592_vm1, %v8204_v7  ;;  %v8197_v39 = vmul.f32 0.3, %v8189_v17 }
 0x8e0   :  { %v8174_v23 = vld [vmem:[#allocation2 + $0x70] ss:$2 sm:$0xff]  ;;  %v8182_v10 = vld [vmem:[#allocation2 + $0x71] ss:$2 sm:$0xff] }
 0x8e1   :  { %v8205_v1 = vmax.f32 %v8189_v17, %v8197_v39  ;;  %v8190_v53 = vmax.f32 %v8174_v23, %v8182_v10 }
 0x8e3   :  { %13324 = vmatprep.mubr.msk.f32.mxu0 %vm592_vm1, %v8205_v1  ;;  %v8198_v42 = vmul.f32 0.3, %v8190_v53 }
 0x8e5   :  { %v8206_v6 = vmax.f32 %v8190_v53, %v8198_v42 }
 0x8e7   :  { %13325 = vmatmul.mubr.msk.f32.gmra.mxu0 %vm592_vm1, %v8206_v6 }
 0x938   :  { %v13317_v26 = vpop.f32.mrf.mxu0 }
 0x939   :  { %8440 = vrot.lane.b32.xlu1 %v13317_v26, %s13817_s17  ;;  %v8383_v0 = vrot.slane %v13317_v26, 7  ;;  %v8407_v60 = vrot.slane %v13317_v26, 1 }
 0x93a   :  { %v8335_v61 = vpop.f32.mrf.mxu0 }
 0x93b   :  { %v8382_v49 = vrot.slane %v8335_v61, 7  ;;  %v8406_v2 = vrot.slane %v8335_v61, 1  ;;  %8438 = vrot.lane.b32.xlu0 %v8335_v61, %s13817_s17 }
 0x93d   :  { %v8408_v12 = vsel %vm1431_vm2, %v8406_v2, %v8407_v60  ;;  %v17142_v43 = vsel %vm1238_vm3, %v8382_v49, %v8383_v0  ;;  %v8405_v55 = vsel %vm1238_vm3, 0.0, %v8382_v49 }
 0x93e   :  { %v8430_v9 = vsel %vm206_vm4, 0.0, %v8405_v55 }
 0x93f   :  { %8486 = vrot.lane.b32.xlu0 %v8408_v12, %s13818_s29 }
 0x978   :  { %v13320_v31 = vpop.f32.mrf.mxu0 }
 0x979   :  { %8444 = vrot.lane.b32.xlu1 %v13320_v31, %s13817_s17  ;;  %v8387_v22 = vrot.slane %v13320_v31, 7  ;;  %v8411_v34 = vrot.slane %v13320_v31, 1 }
 0x97a   :  { %v8345_v8 = vpop.f32.mrf.mxu0 }
 0x97b   :  { %v8385_v18 = vrot.slane %v8345_v8, 7  ;;  %v8409_v48 = vrot.slane %v8345_v8, 1  ;;  %8442 = vrot.lane.b32.xlu0 %v8345_v8, %s13817_s17 }
 0x97d   :  { %v8410_v19 = vsel %vm1431_vm2, %v8407_v60, %v8409_v48  ;;  %v8412_v52 = vsel %vm1431_vm2, %v8409_v48, %v8411_v34  ;;  %v17158_v4 = vsel %vm1238_vm3, %v8385_v18, %v8387_v22  ;;  %v8386_v14 = vsel %vm1238_vm3, %v8383_v0, %v8385_v18 }
 0x97e   :  { %8488 = vrot.lane.b32.xlu1 %v8410_v19, %s13818_s29  ;;  %v17220_v60 = vadd.s32 32, %v14429_v47 }
 0x97f   :  { %8490 = vrot.lane.b32.xlu0 %v8412_v52, %s13818_s29 }
 0x980   :  { %vm8219_vm13 = vcmp.eq.s32.totalorder %v17220_v60, 32 }
 0x99f   :  { %v17163_v15 = vpop.f32.mrf.mxu0 }
 0x9a0   :  { %8448 = vrot.lane.b32.xlu1 %v17163_v15, %s13817_s17  ;;  %v8391_v36 = vrot.slane %v17163_v15, 7  ;;  %v8415_v57 = vrot.slane %v17163_v15, 1 }
 0x9a1   :  { %v8355_v27 = vpop.f32.mrf.mxu0 }
 0x9a2   :  { %v8389_v44 = vrot.slane %v8355_v27, 7  ;;  %v8413_v5 = vrot.slane %v8355_v27, 1  ;;  %8446 = vrot.lane.b32.xlu0 %v8355_v27, %s13817_s17 }
 0x9a4   :  { %v8416_v32 = vsel %vm1431_vm2, %v8413_v5, %v8415_v57  ;;  %v17177_v63 = vsel %vm1238_vm3, %v8389_v44, %v8391_v36  ;;  %v8390_v16 = vsel %vm1238_vm3, %v8387_v22, %v8389_v44  ;;  %v8414_v50 = vsel %vm1431_vm2, %v8411_v34, %v8413_v5 }
 0x9a5   :  { %v8473_v56 = vsel %vm8210_vm12, 0.0, %v8414_v50  ;;  %v8434_v12 = vsel %vm8219_vm13, 0.0, %v8390_v16 }
 0x9a6   :  { %8494 = vrot.lane.b32.xlu0 %v8416_v32, %s13818_s29 }
 0x9a7   :  { %v17181_v40 = vpop.f32.mrf.mxu0 }
 0x9a8   :  { %8452 = vrot.lane.b32.xlu1 %v17181_v40, %s13817_s17  ;;  %v8419_v11 = vrot.slane %v17181_v40, 1  ;;  %v8395_v32 = vrot.slane %v17181_v40, 7 }
 0x9a9   :  { %v17187_v3 = vpop.f32.mrf.mxu0 }
 0x9aa   :  { %v8417_v13 = vrot.slane %v17187_v3, 1  ;;  %8450 = vrot.lane.b32.xlu0 %v17187_v3, %s13817_s17  ;;  %v8429_v54 = vsel %vm1431_vm2, %v8419_v11, 0.0  ;;  %v8393_v31 = vrot.slane %v17187_v3, 7 }
 0x9ab   :  { %v8477_v28 = vsel %vm7008_vm10, 0.0, %v8429_v54  ;;  %v8441_v25 = vpop.permute.xlu1 %8440 }
 0x9ac   :  { %8492 = vrot.lane.b32.xlu1 %v8473_v56, %s13818_s29  ;;  %v8420_v33 = vsel %vm1431_vm2, %v8417_v13, %v8419_v11  ;;  %v8418_v45 = vsel %vm1431_vm2, %v8415_v57, %v8417_v13  ;;  %v8463_v7 = vadd.f32 %v8441_v25, %v17142_v43  ;;  %v8394_v48 = vsel %vm1238_vm3, %v8391_v36, %v8393_v31 }
 0x9ad   :  { %v8439_v51 = vpop.permute.xlu0 %8438  ;;  %v8396_v15 = vsel %vm1238_vm3, %v8393_v31, %v8395_v32 }
 0x9ae   :  { %8498 = vrot.lane.b32.xlu0 %v8420_v33, %s13818_s29  ;;  %v8462_v20 = vadd.f32 %v8439_v51, %v8430_v9 }
 0x9b0   :  { %8496 = vrot.lane.b32.xlu1 %v8418_v45, %s13818_s29 }
 0x9b1   :  { %v8487_v59 = vpop.permute.xlu0 %8486 }
 0x9b2   :  { %v8510_v41 = vadd.f32 %v8487_v59, %v8462_v20 }
 0x9b4   :  { %v8526_v35 = vadd.f32 %v17207_v62, %v8510_v41  ;;  %8500 = vrot.lane.b32.xlu1 %v8477_v28, %s13818_s29 }
 0x9b6   :  { %v8534_v21 = vmul.f32 0.3, %v8526_v35 }
 0x9b8   :  { %v8542_v30 = vmax.f32 %v8526_v35, %v8534_v21 }
 0x9ba   :  { %13331 = vmatprep.mubr.msk.f32.mxu1 %vm592_vm1, %v8542_v30 }
 0x9eb   :  { %v8445_v29 = vpop.permute.xlu1 %8444 }
 0x9ec   :  { %v8465_v34 = vadd.f32 %v8445_v29, %v17158_v4 }
 0x9ed   :  { %v8443_v58 = vpop.permute.xlu0 %8442 }
 0x9ee   :  { %v8464_v17 = vadd.f32 %v8443_v58, %v8386_v14 }
 0x9f0   :  { %v8489_v39 = vpop.permute.xlu1 %8488 }
 0x9f1   :  { %v8511_v23 = vadd.f32 %v8489_v39, %v8463_v7  ;;  %v8491_v10 = vpop.permute.xlu0 %8490 }
 0x9f2   :  { %v8512_v1 = vadd.f32 %v8491_v10, %v8464_v17 }
 0x9f3   :  { %v8527_v53 = vadd.f32 %v17207_v62, %v8511_v23 }
 0x9f4   :  { %v8528_v42 = vadd.f32 %v17207_v62, %v8512_v1 }
 0x9f5   :  { %v8535_v6 = vmul.f32 0.3, %v8527_v53 }
 0x9f6   :  { %v8536_v26 = vmul.f32 0.3, %v8528_v42 }
 0x9f7   :  { %v8543_v61 = vmax.f32 %v8527_v53, %v8535_v6 }
 0x9f8   :  { %v8544_v0 = vmax.f32 %v8528_v42, %v8536_v26 }
 0x9f9   :  { %13332 = vmatmul.mubr.msk.f32.vlgmr.msra.gmra.mxu1 %vm592_vm1, %v8543_v61 }
 0x9fa   :  { %13334 = vmatprep.mubr.msk.f32.mxu1 %vm592_vm1, %v8544_v0 }
 0xa12   :  { %v8449_v2 = vpop.permute.xlu1 %8448 }
 0xa13   :  { %v8467_v57 = vadd.f32 %v8449_v2, %v17177_v63 }
 0xa14   :  { %v8447_v49 = vpop.permute.xlu0 %8446 }
 0xa15   :  { %v8466_v43 = vadd.f32 %v8447_v49, %v8434_v12 }
 0xa18   :  { %v8495_v38 = vpop.permute.xlu0 %8494 }
 0xa19   :  { %v8514_v24 = vadd.f32 %v8495_v38, %v8466_v43 }
 0xa1a   :  { %v8453_v8 = vpop.permute.xlu1 %8452 }
 0xa1b   :  { %v8530_v18 = vadd.f32 %v17207_v62, %v8514_v24  ;;  %v8469_v36 = vadd.f32 %v8453_v8, %v8396_v15 }
 0xa1c   :  { %v8451_v22 = vpop.permute.xlu0 %8450 }
 0xa1d   :  { %v8468_v52 = vadd.f32 %v8451_v22, %v8394_v48  ;;  %v8538_v16 = vmul.f32 0.3, %v8530_v18 }
 0xa1e   :  { %v8493_v19 = vpop.permute.xlu1 %8492 }
 0xa1f   :  { %v8513_v14 = vadd.f32 %v8493_v19, %v8465_v34  ;;  %v8546_v55 = vmax.f32 %v8530_v18, %v8538_v16 }
 0xa20   :  { %v8499_v27 = vpop.permute.xlu0 %8498 }
 0xa21   :  { %v8529_v44 = vadd.f32 %v17207_v62, %v8513_v14  ;;  %v8516_v5 = vadd.f32 %v8499_v27, %v8468_v52  ;;  %v12447_v52 = vld [vmem:[%s18194_s5 + $0x48] sm:$0xf]  ;;  %v12446_v14 = vld [vmem:[%s18194_s5 + $0x40] sm:$0xff]  ;;  %s13823_s5 = smov 103  }
 0xa22   :  { %v8497_v50 = vpop.permute.xlu1 %8496  ;;  %13343 = vmatprep.subr.msk.mxu0 %vm785_vm0, %v12447_v52 }
 0xa23   :  { %v8537_v4 = vmul.f32 0.3, %v8529_v44  ;;  %v8532_v3 = vadd.f32 %v17207_v62, %v8516_v5  ;;  %v8515_v11 = vadd.f32 %v8497_v50, %v8467_v57  ;;  %13344 = vmatpush3.msk.msra.mxu0 %vm785_vm0, %v12447_v52 }
 0xa24   :  { %13345 = vmatprep.subr.mxu0 %v12446_v14 }
 0xa25   :  { %v8545_v13 = vmax.f32 %v8529_v44, %v8537_v4  ;;  %v8531_v56 = vadd.f32 %v17207_v62, %v8515_v11  ;;  %v8540_v33 = vmul.f32 0.3, %v8532_v3  ;;  %13346 = vmatpush3.msra.mxu0 %v12446_v14  ;;  %v17311_v4 = vld [vmem:[%s18198_s0 + $0x3] ss:$0 sm:$0xff] }
 0xa26   :  { %v8501_v63 = vpop.permute.xlu1 %8500 }
 0xa27   :  { %v8539_v51 = vmul.f32 0.3, %v8531_v56  ;;  %v8517_v9 = vadd.f32 %v8501_v63, %v8469_v36  ;;  %13335 = vmatmul.mubr.msk.f32.gmra.mxu1 %vm592_vm1, %v8545_v13  ;;  %v8548_v20 = vmax.f32 %v8532_v3, %v8540_v33 }
 0xa28   :  { %13337 = vmatprep.mubr.msk.f32.mxu1 %vm592_vm1, %v8546_v55 }
 0xa29   :  { %v8547_v40 = vmax.f32 %v8531_v56, %v8539_v51  ;;  %v8533_v45 = vadd.f32 %v17207_v62, %v8517_v9 }
 0xa2b   :  { %v8541_v54 = vmul.f32 0.3, %v8533_v45  ;;  %13338 = vmatmul.mubr.msk.f32.gmra.mxu1 %vm592_vm1, %v8547_v40 }
 0xa2c   :  { %13340 = vmatprep.mubr.msk.f32.mxu1 %vm592_vm1, %v8548_v20 }
 0xa2d   :  { %v8549_v59 = vmax.f32 %v8533_v45, %v8541_v54 }
 0xa2f   :  { %13341 = vmatmul.mubr.msk.f32.gmra.mxu1 %vm592_vm1, %v8549_v59 }
 0xab9   :  { %v13333_v41 = vpop.f32.mrf.mxu1 }
 0xaba   :  { %8751 = vrot.lane.b32.xlu1 %v13333_v41, %s13817_s17  ;;  %v8694_v35 = vrot.slane %v13333_v41, 7  ;;  %v8718_v21 = vrot.slane %v13333_v41, 1 }
 0xabb   :  { %v8646_v28 = vpop.f32.mrf.mxu1 }
 0xabc   :  { %v8693_v30 = vrot.slane %v8646_v28, 7  ;;  %v8717_v25 = vrot.slane %v8646_v28, 1  ;;  %8749 = vrot.lane.b32.xlu0 %v8646_v28, %s13817_s17 }
 0xabe   :  { %v8719_v62 = vsel %vm1431_vm2, %v8717_v25, %v8718_v21  ;;  %v17247_v29 = vsel %vm1238_vm3, %v8693_v30, %v8694_v35  ;;  %v8716_v5 = vsel %vm1238_vm3, 0.0, %v8693_v30 }
 0xabf   :  { %v8741_v16 = vsel %vm206_vm4, 0.0, %v8716_v5 }
 0xac0   :  { %8797 = vrot.lane.b32.xlu0 %v8719_v62, %s13818_s29 }
 0xae7   :  { %v13336_v58 = vpop.f32.mrf.mxu1 }
 0xae8   :  { %8755 = vrot.lane.b32.xlu1 %v13336_v58, %s13817_s17  ;;  %v8722_v17 = vrot.slane %v13336_v58, 1  ;;  %v8698_v10 = vrot.slane %v13336_v58, 7 }
 0xae9   :  { %v8656_v7 = vpop.f32.mrf.mxu1 }
 0xaea   :  { %v8696_v39 = vrot.slane %v8656_v7, 7  ;;  %v8720_v23 = vrot.slane %v8656_v7, 1  ;;  %8753 = vrot.lane.b32.xlu0 %v8656_v7, %s13817_s17 }
 0xaeb   :  { %v17252_v1 = vpop.f32.mrf.mxu1 }
 0xaec   :  { %8759 = vrot.lane.b32.xlu1 %v17252_v1, %s13817_s17  ;;  %v8723_v53 = vsel %vm1431_vm2, %v8720_v23, %v8722_v17  ;;  %v17258_v6 = vsel %vm1238_vm3, %v8696_v39, %v8698_v10  ;;  %v8697_v26 = vsel %vm1238_vm3, %v8694_v35, %v8696_v39  ;;  %v8702_v0 = vrot.slane %v17252_v1, 7 }
 0xaed   :  { %v8666_v42 = vpop.f32.mrf.mxu1  ;;  %v8721_v49 = vsel %vm1431_vm2, %v8718_v21, %v8720_v23  ;;  %v8726_v31 = vrot.slane %v17252_v1, 1 }
 0xaee   :  { %v8700_v61 = vrot.slane %v8666_v42, 7  ;;  %8801 = vrot.lane.b32.xlu0 %v8723_v53, %s13818_s29  ;;  %v8724_v2 = vrot.slane %v8666_v42, 1 }
 0xaef   :  { %v17264_v12 = vpop.f32.mrf.mxu1 }
 0xaf0   :  { %8799 = vrot.lane.b32.xlu1 %v8721_v49, %s13818_s29  ;;  %v17270_v43 = vsel %vm1238_vm3, %v8700_v61, %v8702_v0  ;;  %v8701_v38 = vsel %vm1238_vm3, %v8698_v10, %v8700_v61  ;;  %v8725_v8 = vsel %vm1431_vm2, %v8722_v17, %v8724_v2  ;;  %v8727_v22 = vsel %vm1431_vm2, %v8724_v2, %v8726_v31 }
 0xaf1   :  { %v17275_v24 = vpop.f32.mrf.mxu1  ;;  %v8784_v18 = vsel %vm8210_vm12, 0.0, %v8725_v8  ;;  %v8730_v48 = vrot.slane %v17264_v12, 1  ;;  %v8745_v35 = vsel %vm8219_vm13, 0.0, %v8701_v38 }
 0xaf2   :  { %8757 = vrot.lane.b32.xlu0 %v8666_v42, %s13817_s17  ;;  %v8728_v34 = vrot.slane %v17275_v24, 1  ;;  %v8704_v39 = vrot.slane %v17275_v24, 7 }
 0xaf3   :  { %v8740_v27 = vsel %vm1431_vm2, %v8730_v48, 0.0 }
 0xaf4   :  { %8763 = vrot.lane.b32.xlu1 %v17264_v12, %s13817_s17  ;;  %v8729_v19 = vsel %vm1431_vm2, %v8726_v31, %v8728_v34  ;;  %v8731_v57 = vsel %vm1431_vm2, %v8728_v34, %v8730_v48  ;;  %v8788_v44 = vsel %vm7008_vm10, 0.0, %v8740_v27  ;;  %v8705_v49 = vsel %vm1238_vm3, %v8702_v0, %v8704_v39 }
 0xaf6   :  { %8805 = vrot.lane.b32.xlu0 %v8727_v22, %s13818_s29 }
 0xaf8   :  { %8803 = vrot.lane.b32.xlu1 %v8784_v18, %s13818_s29 }
 0xafa   :  { %8761 = vrot.lane.b32.xlu0 %v17275_v24, %s13817_s17 }
 0xafc   :  { %8807 = vrot.lane.b32.xlu1 %v8729_v19, %s13818_s29 }
 0xafe   :  { %8809 = vrot.lane.b32.xlu0 %v8731_v57, %s13818_s29 }
 0xb00   :  { %8811 = vrot.lane.b32.xlu1 %v8788_v44, %s13818_s29 }
 0xb2c   :  { %v8752_v13 = vpop.permute.xlu1 %8751 }
 0xb2d   :  { %v8774_v9 = vadd.f32 %v8752_v13, %v17247_v29 }
 0xb2e   :  { %v8750_v32 = vpop.permute.xlu0 %8749 }
 0xb2f   :  { %v8773_v50 = vadd.f32 %v8750_v32, %v8741_v16 }
 0xb32   :  { %v8798_v3 = vpop.permute.xlu0 %8797 }
 0xb33   :  { %v8821_v11 = vadd.f32 %v8798_v3, %v8773_v50 }
 0xb35   :  { %v8837_v46 = vadd.f32 %v17311_v4, %v8821_v11 }
 0xb37   :  { %v8845_v15 = vmul.f32 0.3, %v8837_v46 }
 0xb39   :  { %v8853_v36 = vmax.f32 %v8837_v46, %v8845_v15 }
 0xb3b   :  { %8861 = vst.msk [vmem:[#allocation2] sm:$0xff] %vm592_vm1, %v8853_v36 }
 0xb5a   :  { %v8756_v56 = vpop.permute.xlu1 %8755 }
 0xb5b   :  { %v8776_v7 = vadd.f32 %v8756_v56, %v17258_v6  ;;  %v8706_v6 = vrot.slane %v17264_v12, 7 }
 0xb5c   :  { %v8754_v55 = vpop.permute.xlu0 %8753 }
 0xb5d   :  { %v8775_v63 = vadd.f32 %v8754_v55, %v8697_v26  ;;  %v8707_v22 = vsel %vm1238_vm3, %v8704_v39, %v8706_v6 }
 0xb5e   :  { %v8760_v33 = vpop.permute.xlu1 %8759 }
 0xb5f   :  { %v8778_v42 = vadd.f32 %v8760_v33, %v17270_v43 }
 0xb60   :  { %v8802_v51 = vpop.permute.xlu0 %8801 }
 0xb61   :  { %v8823_v40 = vadd.f32 %v8802_v51, %v8775_v63 }
 0xb62   :  { %v8800_v45 = vpop.permute.xlu1 %8799 }
 0xb63   :  { %v8839_v20 = vadd.f32 %v17311_v4, %v8823_v40  ;;  %v8822_v54 = vadd.f32 %v8800_v45, %v8774_v9 }
 0xb64   :  { %v8758_v59 = vpop.permute.xlu0 %8757 }
 0xb65   :  { %v8847_v41 = vmul.f32 0.3, %v8839_v20  ;;  %v8838_v28 = vadd.f32 %v17311_v4, %v8822_v54  ;;  %v8777_v62 = vadd.f32 %v8758_v59, %v8745_v35  ;;  %v12455_v35 = vld [vmem:[%s18196_s28 + $0x40] sm:$0xff] }
 0xb66   :  { %v8764_v21 = vpop.permute.xlu1 %8763 }
 0xb67   :  { %v8855_v30 = vmax.f32 %v8839_v20, %v8847_v41  ;;  %v8846_v25 = vmul.f32 0.3, %v8838_v28  ;;  %v8780_v18 = vadd.f32 %v8764_v21, %v8707_v22  ;;  %v12456_v41 = vld [vmem:[%s18196_s28 + $0x48] sm:$0xf] }
 0xb68   :  { %v8806_v58 = vpop.permute.xlu0 %8805  ;;  %13353 = vmatprep.subr.msk.mxu1 %vm785_vm0, %v12456_v41 }
 0xb69   :  { %8863 = vst.msk [vmem:[#allocation2 + $0x10] sm:$0xff] %vm592_vm1, %v8855_v30  ;;  %v8854_v29 = vmax.f32 %v8838_v28, %v8846_v25  ;;  %v8825_v17 = vadd.f32 %v8806_v58, %v8777_v62  ;;  %13354 = vmatpush3.msk.msra.mxu1 %vm785_vm0, %v12456_v41 }
 0xb6a   :  { %v8804_v23 = vpop.permute.xlu1 %8803  ;;  %13355 = vmatprep.subr.mxu1 %v12455_v35 }
 0xb6b   :  { %8862 = vst.msk [vmem:[#allocation2 + $0x8] sm:$0xff] %vm592_vm1, %v8854_v29  ;;  %v8841_v10 = vadd.f32 %v17311_v4, %v8825_v17  ;;  %v8824_v60 = vadd.f32 %v8804_v23, %v8776_v7  ;;  %13356 = vmatpush3.msra.mxu1 %v12455_v35  ;;  %v17358_v17 = vadd.s32 8, %v14429_v47 }
 0xb6c   :  { %v8762_v53 = vpop.permute.xlu0 %8761 }
 0xb6d   :  { %v8849_v26 = vmul.f32 0.3, %v8841_v10  ;;  %v8840_v61 = vadd.f32 %v17311_v4, %v8824_v60  ;;  %v8779_v24 = vadd.f32 %v8762_v53, %v8705_v49  ;;  %vm8890_vm14 = vcmp.eq.s32.totalorder %v17358_v17, 15  ;;  %v9405_v17 = vld [vmem:[%s18140_s9] sm:$0xff] }
 0xb6e   :  { %v8808_v2 = vpop.permute.xlu1 %8807 }
 0xb6f   :  { %v8857_v38 = vmax.f32 %v8841_v10, %v8849_v26  ;;  %v8848_v31 = vmul.f32 0.3, %v8840_v61  ;;  %v8826_v8 = vadd.f32 %v8808_v2, %v8778_v42 }
 0xb70   :  { %v8810_v34 = vpop.permute.xlu0 %8809 }
 0xb71   :  { %8865 = vst.msk [vmem:[#allocation2 + $0x20] sm:$0xff] %vm592_vm1, %v8857_v38  ;;  %v8856_v43 = vmax.f32 %v8840_v61, %v8848_v31  ;;  %v8842_v48 = vadd.f32 %v17311_v4, %v8826_v8  ;;  %v8827_v19 = vadd.f32 %v8810_v34, %v8779_v24  ;;  %v17377_v8 = vadd.s32 16, %v14429_v47  ;;  %v12454_v34 = vld [vmem:[%s18197_s24 + $0x4] ss:$0 sm:$0xff] }
 0xb72   :  { %v8812_v12 = vpop.permute.xlu1 %8811  ;;  %v8869_v52 = vld [vmem:[#allocation2] ss:$2 sm:$0xff]  ;;  %v8873_v1 = vld [vmem:[#allocation2 + $0x1] ss:$2 sm:$0xff] }
 0xb73   :  { %8864 = vst.msk [vmem:[#allocation2 + $0x18] sm:$0xff] %vm592_vm1, %v8856_v43  ;;  %v8850_v0 = vmul.f32 0.3, %v8842_v48  ;;  %v8843_v14 = vadd.f32 %v17311_v4, %v8827_v19  ;;  %v8828_v27 = vadd.f32 %v8812_v12, %v8780_v18  ;;  %v8877_v57 = vmax.f32 %v8869_v52, %v8873_v1 }
 0xb74   :  { %vm8895_vm15 = vcmp.eq.s32.totalorder %v17377_v8, 16 }
 0xb75   :  { %v8858_v44 = vmax.f32 %v8842_v48, %v8850_v0  ;;  %v8851_v5 = vmul.f32 0.3, %v8843_v14  ;;  %v8844_v32 = vadd.f32 %v17311_v4, %v8828_v27  ;;  %v8881_v16 = vmul.f32 0.3, %v8877_v57 }
 0xb77   :  { %8866 = vst.msk [vmem:[#allocation2 + $0x28] sm:$0xff] %vm592_vm1, %v8858_v44  ;;  %v8859_v50 = vmax.f32 %v8843_v14, %v8851_v5  ;;  %v8852_v3 = vmul.f32 0.3, %v8844_v32  ;;  %v8885_v11 = vmax.f32 %v8877_v57, %v8881_v16 }
 0xb79   :  { %8867 = vst.msk [vmem:[#allocation2 + $0x30] sm:$0xff] %vm592_vm1, %v8859_v50  ;;  %v8860_v46 = vmax.f32 %v8844_v32, %v8852_v3  ;;  %13347 = vmatprep.mubr.msk.f32.mxu0 %vm592_vm1, %v8885_v11 }
 0xb7a   :  { %v8870_v15 = vld [vmem:[#allocation2 + $0x10] ss:$2 sm:$0xff]  ;;  %v8874_v36 = vld [vmem:[#allocation2 + $0x11] ss:$2 sm:$0xff] }
 0xb7b   :  { %8868 = vst.msk [vmem:[#allocation2 + $0x38] sm:$0xff] %vm592_vm1, %v8860_v46  ;;  %v8878_v13 = vmax.f32 %v8870_v15, %v8874_v36 }
 0xb7d   :  { %v8882_v56 = vmul.f32 0.3, %v8878_v13 }
 0xb7e   :  { %v8871_v55 = vld [vmem:[#allocation2 + $0x20] ss:$2 sm:$0xff]  ;;  %v8875_v33 = vld [vmem:[#allocation2 + $0x21] ss:$2 sm:$0xff] }
 0xb7f   :  { %v8886_v4 = vmax.f32 %v8878_v13, %v8882_v56  ;;  %v8879_v63 = vmax.f32 %v8871_v55, %v8875_v33 }
 0xb81   :  { %13348 = vmatmul.mubr.msk.f32.vlgmr.msra.gmra.mxu0 %vm592_vm1, %v8886_v4  ;;  %v8883_v51 = vmul.f32 0.3, %v8879_v63 }
 0xb82   :  { %v8872_v9 = vld [vmem:[#allocation2 + $0x30] ss:$2 sm:$0xff]  ;;  %v8876_v40 = vld [vmem:[#allocation2 + $0x31] ss:$2 sm:$0xff] }
 0xb83   :  { %v8887_v45 = vmax.f32 %v8879_v63, %v8883_v51  ;;  %v8880_v20 = vmax.f32 %v8872_v9, %v8876_v40 }
 0xb85   :  { %13350 = vmatprep.mubr.msk.f32.mxu0 %vm592_vm1, %v8887_v45  ;;  %v8884_v54 = vmul.f32 0.3, %v8880_v20 }
 0xb87   :  { %v8888_v59 = vmax.f32 %v8880_v20, %v8884_v54 }
 0xb89   :  { %13351 = vmatmul.mubr.msk.f32.gmra.mxu0 %vm592_vm1, %v8888_v59 }
 0xc41   :  { %v13349_v28 = vpop.f32.mrf.mxu0 }
 0xc42   :  { %9042 = vrot.lane.b32.xlu1 %v13349_v28, %s13817_s17  ;;  %v9013_v30 = vrot.slane %v13349_v28, 7  ;;  %v9025_v25 = vrot.slane %v13349_v28, 1 }
 0xc43   :  { %v8989_v21 = vpop.f32.mrf.mxu0 }
 0xc44   :  { %v9012_v62 = vrot.slane %v8989_v21, 7  ;;  %v9024_v58 = vrot.slane %v8989_v21, 1  ;;  %9040 = vrot.lane.b32.xlu0 %v8989_v21, %s13817_s17 }
 0xc46   :  { %v9026_v7 = vsel %vm1431_vm2, %v9024_v58, %v9025_v25  ;;  %v9014_v29 = vsel %vm1238_vm3, %v9012_v62, %v9013_v30  ;;  %v9023_v49 = vsel %vm1238_vm3, 0.0, %v9012_v62 }
 0xc47   :  { %v9036_v38 = vsel %vm206_vm4, 0.0, %v9023_v49 }
 0xc48   :  { %9064 = vrot.lane.b32.xlu0 %v9026_v7, %s13818_s29 }
 0xc49   :  { %v13352_v39 = vpop.f32.mrf.mxu0 }
 0xc4a   :  { %9046 = vrot.lane.b32.xlu1 %v13352_v39, %s13817_s17  ;;  %v9029_v10 = vrot.slane %v13352_v39, 1  ;;  %v9017_v44 = vrot.slane %v13352_v39, 7  ;;  %v9406_v39 = vld [vmem:[%s18140_s9 + $0x8] sm:$0xf] }
 0xc4b   :  { %v8999_v23 = vpop.f32.mrf.mxu0  ;;  %13370 = vmatprep.subr.msk.mxu1 %vm785_vm0, %v9406_v39 }
 0xc4c   :  { %v9027_v60 = vrot.slane %v8999_v23, 1  ;;  %9044 = vrot.lane.b32.xlu0 %v8999_v23, %s13817_s17  ;;  %v9035_v61 = vsel %vm1431_vm2, %v9029_v10, 0.0  ;;  %v9015_v31 = vrot.slane %v8999_v23, 7 }
 0xc4d   :  { %v9059_v6 = vsel %vm8210_vm12, 0.0, %v9035_v61 }
 0xc4e   :  { %v9030_v53 = vsel %vm1431_vm2, %v9027_v60, %v9029_v10  ;;  %v9028_v42 = vsel %vm1431_vm2, %v9025_v25, %v9027_v60  ;;  %v9016_v19 = vsel %vm1238_vm3, %v9013_v30, %v9015_v31  ;;  %v9018_v3 = vsel %vm1238_vm3, %v9015_v31, %v9017_v44  ;;  %v9309_v10 = vld [vmem:[%s18223_s1] sm:$0xff] }
 0xc4f   :  { %v9057_v26 = vsel %vm8890_vm14, 0.0, %v9028_v42  ;;  %v9038_v0 = vsel %vm8895_vm15, 0.0, %v9016_v19  ;;  %v13819_v42 = vmov 0.0   ;;  %v12463_v31 = vld [vmem:[%s18198_s0 + $0x4] ss:$0 sm:$0xff] }
 0xc50   :  { %9068 = vrot.lane.b32.xlu0 %v9030_v53, %s13818_s29  ;;  %9066 = vrot.lane.b32.xlu1 %v9057_v26, %s13818_s29 }
 0xc54   :  { %9070 = vrot.lane.b32.xlu1 %v9059_v6, %s13818_s29 }
 0xcb4   :  { %v9043_v22 = vpop.permute.xlu1 %9042 }
 0xcb5   :  { %v9053_v14 = vadd.f32 %v9043_v22, %v9014_v29  ;;  %v9310_v29 = vld [vmem:[%s18223_s1 + $0x8] sm:$0xf] }
 0xcb6   :  { %v9041_v2 = vpop.permute.xlu0 %9040  ;;  %13363 = vmatprep.subr.msk.mxu0 %vm785_vm0, %v9310_v29 }
 0xcb7   :  { %v9052_v24 = vadd.f32 %v9041_v2, %v9036_v38  ;;  %13364 = vmatpush3.msk.msra.mxu0 %vm785_vm0, %v9310_v29 }
 0xcb8   :  { %13365 = vmatprep.subr.mxu0 %v9309_v10 }
 0xcb9   :  { %13366 = vmatpush3.msra.mxu0 %v9309_v10 }
 0xcba   :  { %v9065_v18 = vpop.permute.xlu0 %9064  ;;  %13377 = vmatprep.subr.mxu0 %v13819_v42 }
 0xcbb   :  { %v9076_v43 = vadd.f32 %v9065_v18, %v9052_v24 }
 0xcbc   :  { %v9047_v12 = vpop.permute.xlu1 %9046 }
 0xcbd   :  { %v9088_v48 = vadd.f32 %v12454_v34, %v9076_v43  ;;  %v9055_v11 = vadd.f32 %v9047_v12, %v9018_v3 }
 0xcbe   :  { %v9045_v52 = vpop.permute.xlu0 %9044 }
 0xcbf   :  { %v9092_v1 = vmul.f32 0.3, %v9088_v48  ;;  %v9054_v57 = vadd.f32 %v9045_v52, %v9038_v0 }
 0xcc1   :  { %v9096_v27 = vmax.f32 %v9088_v48, %v9092_v1 }
 0xcc2   :  { %v9069_v5 = vpop.permute.xlu0 %9068  ;;  %v9067_v32 = vpop.permute.xlu1 %9066 }
 0xcc3   :  { %v9078_v16 = vadd.f32 %v9069_v5, %v9054_v57  ;;  %v9077_v50 = vadd.f32 %v9067_v32, %v9053_v14  ;;  %13357 = vmatprep.mubr.msk.f32.mxu1 %vm592_vm1, %v9096_v27 }
 0xcc5   :  { %v9090_v46 = vadd.f32 %v12454_v34, %v9078_v16  ;;  %v9089_v15 = vadd.f32 %v12454_v34, %v9077_v50 }
 0xcc6   :  { %v9071_v36 = vpop.permute.xlu1 %9070 }
 0xcc7   :  { %v9094_v13 = vmul.f32 0.3, %v9090_v46  ;;  %v9093_v56 = vmul.f32 0.3, %v9089_v15  ;;  %v9079_v55 = vadd.f32 %v9071_v36, %v9055_v11 }
 0xcc9   :  { %v9098_v33 = vmax.f32 %v9090_v46, %v9094_v13  ;;  %v9097_v4 = vmax.f32 %v9089_v15, %v9093_v56  ;;  %v9091_v63 = vadd.f32 %v12454_v34, %v9079_v55 }
 0xccb   :  { %v9095_v51 = vmul.f32 0.3, %v9091_v63  ;;  %13358 = vmatmul.mubr.msk.f32.vlgmr.msra.gmra.mxu1 %vm592_vm1, %v9097_v4 }
 0xccc   :  { %13360 = vmatprep.mubr.msk.f32.mxu1 %vm592_vm1, %v9098_v33  ;;  %13371 = vmatpush3.msk.msra.mxu1 %vm785_vm0, %v9406_v39  ;;  %vm13820_vm0 = vmmov 0  }
 0xccd   :  { %v9099_v9 = vmax.f32 %v9091_v63, %v9095_v51  ;;  %13372 = vmatprep.subr.mxu1 %v9405_v17 }
 0xcce   :  { %13373 = vmatpush3.msra.mxu1 %v9405_v17 }
 0xccf   :  { %13361 = vmatmul.mubr.msk.f32.gmra.mxu1 %vm592_vm1, %v9099_v9  ;;  %13388 = vmatprep.subr.mxu1 %v13819_v42 }
 0xd8b   :  { %v13359_v40 = vpop.f32.mrf.mxu1 }
 0xd8c   :  { %9237 = vrot.lane.b32.xlu1 %v13359_v40, %s13817_s17  ;;  %v9208_v20 = vrot.slane %v13359_v40, 7  ;;  %v9220_v54 = vrot.slane %v13359_v40, 1 }
 0xd8d   :  { %v9184_v45 = vpop.f32.mrf.mxu1 }
 0xd8e   :  { %v9207_v59 = vrot.slane %v9184_v45, 7  ;;  %v9219_v41 = vrot.slane %v9184_v45, 1  ;;  %9235 = vrot.lane.b32.xlu0 %v9184_v45, %s13817_s17 }
 0xd8f   :  { %v13362_v28 = vpop.f32.mrf.mxu1 }
 0xd90   :  { %9241 = vrot.lane.b32.xlu1 %v13362_v28, %s13817_s17  ;;  %v9221_v35 = vsel %vm1431_vm2, %v9219_v41, %v9220_v54  ;;  %v9209_v21 = vsel %vm1238_vm3, %v9207_v59, %v9208_v20  ;;  %v9224_v25 = vrot.slane %v13362_v28, 1  ;;  %v9218_v61 = vsel %vm1238_vm3, 0.0, %v9207_v59  ;;  %v17445_v59 = vld [vmem:[%s18224_s3 + $0x18] sm:$0x1] }
 0xd91   :  { %v9194_v30 = vpop.f32.mrf.mxu1  ;;  %v9231_v37 = vsel %vm206_vm4, 0.0, %v9218_v61  ;;  %v9212_v48 = vrot.slane %v13362_v28, 7  ;;  %v17450_v41 = vld [vmem:[%s18141_s10 + $0x18] sm:$0x1]  ;;  %v17457_v28 = vld [vmem:[%s18224_s3 + $0x10] sm:$0xff]  ;;  %vm9513_vm4 = vcmask 203776  }
 0xd92   :  { %v9222_v62 = vrot.slane %v9194_v30, 1  ;;  %9259 = vrot.lane.b32.xlu0 %v9221_v35, %s13818_s29  ;;  %v9230_v23 = vsel %vm1431_vm2, %v9224_v25, 0.0  ;;  %v9210_v49 = vrot.slane %v9194_v30, 7  ;;  %v17462_v35 = vld [vmem:[%s18141_s10 + $0x10] sm:$0xff]  ;;  %v17539_v61 = vld [vmem:[%s18139_s8] ss:$0 sm:$0xff] }
 0xd93   :  { %v9254_v53 = vsel %vm8210_vm12, 0.0, %v9230_v23 }
 0xd94   :  { %v9223_v58 = vsel %vm1431_vm2, %v9220_v54, %v9222_v62  ;;  %v9225_v60 = vsel %vm1431_vm2, %v9222_v62, %v9224_v25  ;;  %v9211_v43 = vsel %vm1238_vm3, %v9208_v20, %v9210_v49  ;;  %v9213_v47 = vsel %vm1238_vm3, %v9210_v49, %v9212_v48  ;;  %v17487_v25 = vld [vmem:[%s18224_s3] sm:$0xff] }
 0xd95   :  { %v9252_v7 = vsel %vm8890_vm14, 0.0, %v9223_v58  ;;  %v9233_v0 = vsel %vm8895_vm15, 0.0, %v9211_v43  ;;  %v17494_v62 = vld [vmem:[%s18141_s10] sm:$0xff]  ;;  %vm9731_vm2 = vcmask 197632  }
 0xd96   :  { %9239 = vrot.lane.b32.xlu0 %v9194_v30, %s13817_s17  ;;  %9261 = vrot.lane.b32.xlu1 %v9252_v7, %s13818_s29  ;;  %v17478_v30 = vld [vmem:[%s18141_s10 + $0x8] sm:$0xff]  ;;  %v12464_v58 = vld [vmem:[%s18225_s4] ss:$0 sm:$0xff] }
 0xd97   :  { %v12468_v7 = vld [vmem:[%s18142_s11] ss:$0 sm:$0xff] }
 0xd9a   :  { %9263 = vrot.lane.b32.xlu0 %v9225_v60, %s13818_s29  ;;  %9265 = vrot.lane.b32.xlu1 %v9254_v53, %s13818_s29 }
 0xdfe   :  { %v9238_v26 = vpop.permute.xlu1 %9237 }
 0xdff   :  { %v9248_v34 = vadd.f32 %v9238_v26, %v9209_v21  ;;  %v17473_v21 = vld [vmem:[%s18224_s3 + $0x8] sm:$0xff] }
 0xe00   :  { %v9236_v6 = vpop.permute.xlu0 %9235 }
 0xe01   :  { %v9247_v2 = vadd.f32 %v9236_v6, %v9231_v37  ;;  %v17544_v6 = vld [vmem:[%s18143_s12] ss:$0 sm:$0xff] }
 0xe02   :  { %v9242_v38 = vpop.permute.xlu1 %9241 }
 0xe03   :  { %v9250_v14 = vadd.f32 %v9242_v38, %v9213_v47 }
 0xe04   :  { %v9260_v24 = vpop.permute.xlu0 %9259 }
 0xe05   :  { %v9271_v22 = vadd.f32 %v9260_v24, %v9247_v2 }
 0xe07   :  { %v9283_v18 = vadd.f32 %v12463_v31, %v9271_v22 }
 0xe08   :  { %v9240_v19 = vpop.permute.xlu0 %9239  ;;  %v9262_v12 = vpop.permute.xlu1 %9261 }
 0xe09   :  { %v9287_v52 = vmul.f32 0.3, %v9283_v18  ;;  %v9272_v1 = vadd.f32 %v9262_v12, %v9248_v34  ;;  %v9249_v57 = vadd.f32 %v9240_v19, %v9233_v0 }
 0xe0b   :  { %v9291_v27 = vmax.f32 %v9283_v18, %v9287_v52  ;;  %v9284_v44 = vadd.f32 %v12463_v31, %v9272_v1 }
 0xe0c   :  { %v9264_v5 = vpop.permute.xlu0 %9263  ;;  %v9266_v32 = vpop.permute.xlu1 %9265 }
 0xe0d   :  { %9295 = vst.msk [vmem:[#allocation2] sm:$0xff] %vm592_vm1, %v9291_v27  ;;  %v9288_v16 = vmul.f32 0.3, %v9284_v44  ;;  %v9273_v50 = vadd.f32 %v9264_v5, %v9249_v57  ;;  %v9274_v3 = vadd.f32 %v9266_v32, %v9250_v14 }
 0xe0f   :  { %v9292_v11 = vmax.f32 %v9284_v44, %v9288_v16  ;;  %v9285_v46 = vadd.f32 %v12463_v31, %v9273_v50  ;;  %v9286_v15 = vadd.f32 %v12463_v31, %v9274_v3 }
 0xe11   :  { %9296 = vst.msk [vmem:[#allocation2 + $0x8] sm:$0xff] %vm592_vm1, %v9292_v11  ;;  %v9289_v36 = vmul.f32 0.3, %v9285_v46  ;;  %v9290_v13 = vmul.f32 0.3, %v9286_v15 }
 0xe13   :  { %v9293_v8 = vmax.f32 %v9285_v46, %v9289_v36  ;;  %v9294_v56 = vmax.f32 %v9286_v15, %v9290_v13 }
 0xe15   :  { %9297 = vst.msk [vmem:[#allocation2 + $0x10] sm:$0xff] %vm592_vm1, %v9293_v8  ;;  %9298 = vst.msk [vmem:[#allocation2 + $0x18] sm:$0xff] %vm592_vm1, %v9294_v56 }
 0xe18   :  { %v9299_v55 = vld [vmem:[#allocation2] ss:$2 sm:$0xff]  ;;  %v9301_v33 = vld [vmem:[#allocation2 + $0x1] ss:$2 sm:$0xff] }
 0xe19   :  { %v9303_v4 = vmax.f32 %v9299_v55, %v9301_v33 }
 0xe1b   :  { %v9305_v63 = vmul.f32 0.3, %v9303_v4 }
 0xe1c   :  { %v9300_v51 = vld [vmem:[#allocation2 + $0x10] ss:$2 sm:$0xff]  ;;  %v9302_v9 = vld [vmem:[#allocation2 + $0x11] ss:$2 sm:$0xff] }
 0xe1d   :  { %v9307_v40 = vmax.f32 %v9303_v4, %v9305_v63  ;;  %v9304_v45 = vmax.f32 %v9300_v51, %v9302_v9 }
 0xe1f   :  { %13367 = vmatprep.mubr.msk.f32.mxu0 %vm592_vm1, %v9307_v40  ;;  %13374 = vmatprep.mubr.msk.f32.mxu1 %vm592_vm1, %v9307_v40  ;;  %v9306_v20 = vmul.f32 0.3, %v9304_v45 }
 0xe21   :  { %v9308_v54 = vmax.f32 %v9304_v45, %v9306_v20 }
 0xe23   :  { %13368 = vmatmul.mubr.msk.f32.vlgmr.msra.gmra.mxu0 %vm592_vm1, %v9308_v54  ;;  %13375 = vmatmul.mubr.msk.f32.vlgmr.msra.gmra.mxu1 %vm592_vm1, %v9308_v54  ;;  %vm9402_vm1 = vcmask 613376  }
 0xe24   :  { %13378 = vmatpush3.msk.msra.mxu0 %vm1238_vm3, %v17445_v59  ;;  %13389 = vmatpush3.msk.msra.mxu1 %vm1238_vm3, %v17450_v41 }
 0xe25   :  { %13379 = vmatprep.subr.mxu0 %v13819_v42  ;;  %13390 = vmatprep.subr.mxu1 %v13819_v42 }
 0xe26   :  { %13380 = vmatpush3.msra.mxu0 %v17457_v28  ;;  %13391 = vmatpush3.msra.mxu1 %v17462_v35 }
 0xe27   :  { %13381 = vmatprep.subr.mxu0 %v13819_v42  ;;  %13392 = vmatprep.subr.mxu1 %v13819_v42 }
 0xe28   :  { %13382 = vmatpush3.msra.mxu0 %v17473_v21  ;;  %13393 = vmatpush3.msra.mxu1 %v17478_v30 }
 0xe29   :  { %13383 = vmatprep.subr.mxu0 %v13819_v42  ;;  %13394 = vmatprep.subr.mxu1 %v13819_v42 }
 0xe2a   :  { %13384 = vmatpush3.msra.mxu0 %v17487_v25  ;;  %13385 = vmatprep.mubr.msk.f32.mxu0 %vm13820_vm0, %v13819_v42 }
 0xe2b   :  { %13395 = vmatpush3.msra.mxu1 %v17494_v62  ;;  %13396 = vmatprep.mubr.msk.f32.mxu1 %vm13820_vm0, %v13819_v42 }
 0xe2c   :  { %13386 = vmatmul.mubr.f32.vlgmr.msra.gmra.mxu0 %v13819_v42  ;;  %13397 = vmatmul.mubr.f32.vlgmr.msra.gmra.mxu1 %v13819_v42 }
 0xe2d   :  { %13399 = vmatprep.subr.mxu0 %v13819_v42  ;;  %13410 = vmatprep.subr.mxu1 %v13819_v42 }
 0xe2e   :  { %13400 = vmatpush3.msk.msra.mxu0 %vm1238_vm3, %v17445_v59  ;;  %13411 = vmatpush3.msk.msra.mxu1 %vm1238_vm3, %v17450_v41 }
 0xe2f   :  { %13401 = vmatprep.subr.mxu0 %v13819_v42  ;;  %13412 = vmatprep.subr.mxu1 %v13819_v42 }
 0xe30   :  { %13402 = vmatpush3.msra.mxu0 %v17457_v28  ;;  %13413 = vmatpush3.msra.mxu1 %v17462_v35 }
 0xe31   :  { %13403 = vmatprep.subr.mxu0 %v13819_v42  ;;  %13414 = vmatprep.subr.mxu1 %v13819_v42 }
 0xe32   :  { %13404 = vmatpush3.msra.mxu0 %v17473_v21  ;;  %13415 = vmatpush3.msra.mxu1 %v17478_v30 }
 0xe33   :  { %13405 = vmatprep.subr.mxu0 %v13819_v42  ;;  %13416 = vmatprep.subr.mxu1 %v13819_v42 }
 0xe34   :  { %13417 = vmatpush3.msra.mxu1 %v17494_v62  ;;  %13418 = vmatprep.mubr.msk.f32.mxu1 %vm13820_vm0, %v13819_v42 }
 0xe35   :  { %13406 = vmatpush3.msra.mxu0 %v17487_v25  ;;  %13407 = vmatprep.mubr.msk.f32.mxu0 %vm13820_vm0, %v13819_v42 }
 0xe36   :  { %13421 = vmatprep.subr.mxu0 %v13819_v42  ;;  %13432 = vmatprep.subr.mxu1 %v13819_v42 }
 0xee3   :  { %v13369_v29 = vpop.f32.mrf.mxu0  ;;  %v13376_v39 = vpop.f32.mrf.mxu1 }
 0xee4   :  { %v9399_v23 = vadd.f32 %v13369_v29, %v12464_v58  ;;  %v9489_v10 = vadd.f32 %v13376_v39, %v12468_v7 }
 0xee5   :  { %v9393_v17 = vpop.f32.mrf.mxu0  ;;  %v9483_v60 = vpop.f32.mrf.mxu1 }
 0xee6   :  { %9404 = vst.msk [vmem:[#allocation3 + $0x8] sm:$0xff] %vm9402_vm1, %v9399_v23  ;;  %9493 = vst.msk [vmem:[#allocation4 + $0x8] sm:$0xff] %vm9402_vm1, %v9489_v10  ;;  %v9394_v53 = vadd.f32 %v12464_v58, %v9393_v17  ;;  %v9484_v26 = vadd.f32 %v12468_v7, %v9483_v60 }
 0xee8   :  { %9403 = vst.msk [vmem:[#allocation3] sm:$0xff] %vm9402_vm1, %v9394_v53  ;;  %9492 = vst.msk [vmem:[#allocation4] sm:$0xff] %vm9402_vm1, %v9484_v26 }
 0xeec   :  { %v9586_v37 = vpop.f32.mrf.mxu0  ;;  %v9665_v49 = vpop.f32.mrf.mxu1 }
 0xeed   :  { %v9587_v2 = vadd.f32 %v17539_v61, %v9586_v37  ;;  %v9666_v38 = vadd.f32 %v17544_v6, %v9665_v49 }
 0xeee   :  { %v13387_v31 = vpop.f32.mrf.mxu0  ;;  %v13398_v24 = vpop.f32.mrf.mxu1 }
 0xeef   :  { %9695 = vrot.lane.b32.xlu1 %v9666_v38, %s13821_s26  ;;  %9684 = vrot.lane.b32.xlu0 %v9587_v2, %s13821_s26  ;;  %v9504_v22 = vld [vmem:[#allocation3] ss:$8 sm:$0x3]  ;;  %v9506_v34 = vld [vmem:[#allocation4 + $0x7] ss:$8 sm:$0x3] }
 0xef0   :  { %v9669_v18 = vadd.f32 %v9587_v2, %v9504_v22  ;;  %v9670_v43 = vadd.f32 %v9666_v38, %v9506_v34  ;;  %v9741_v39 = vld [vmem:[#allocation4 + $0x6] ss:$8 sm:$0x3]  ;;  %v9739_v23 = vld [vmem:[#allocation3 + $0x1] ss:$8 sm:$0x3] }
 0xef2   :  { %v12476_v48 = vmul.f32 -1.442695, %v9669_v18  ;;  %v12477_v19 = vmul.f32 -1.442695, %v9670_v43 }
 0xef4   :  { %13675 = vpow2.f32 %v12476_v48 }
 0xef5   :  { %13677 = vpow2.f32 %v12477_v19 }
 0xf01   :  { %v13676_v12 = vpop.eup %13675 }
 0xf02   :  { %v13678_v52 = vpop.eup %13677  ;;  %v9674_v1 = vadd.f32 1.0, %v13676_v12 }
 0xf03   :  { %v9680_v47 = vadd.f32 1.0, %v13678_v52 }
 0xf04   :  { %13679 = vrcp.f32 %v9674_v1 }
 0xf05   :  { %13681 = vrcp.f32 %v9680_v47 }
 0xf11   :  { %v13680_v0 = vpop.eup %13679 }
 0xf12   :  { %v13682_v14 = vpop.eup %13681 }
 0xf61   :  { %v9696_v27 = vpop.permute.xlu1 %9695  ;;  %v9685_v57 = vpop.permute.xlu0 %9684 }
 0xf62   :  { %v9698_v44 = vmul.f32 %v13682_v14, %v9696_v27  ;;  %v9687_v5 = vmul.f32 %v13680_v0, %v9685_v57 }
 0xf64   :  { %9700 = vrot.lane.b32.xlu1 %v9698_v44, %s13822_s2  ;;  %9689 = vrot.lane.b32.xlu0 %v9687_v5, %s13822_s2 }
 0xfd6   :  { %v9701_v32 = vpop.permute.xlu1 %9700  ;;  %v9690_v16 = vpop.permute.xlu0 %9689 }
 0xfd7   :  { %v9703_v50 = vadd.f32 %v9701_v32, %v9506_v34  ;;  %v9692_v3 = vadd.f32 %v9690_v16, %v9504_v22 }
 0xfd9   :  { %13683 = vtanh.f32 %v9703_v50 }
 0xfda   :  { %13685 = vtanh.f32 %v9692_v3 }
 0xfe6   :  { %v13684_v11 = vpop.eup %13683 }
 0xfe7   :  { %v13686_v46 = vpop.eup %13685  ;;  %v9716_v15 = vsub.f32 0.0, %v13684_v11 }
 0xfe8   :  { %v9705_v36 = vsub.f32 0.0, %v13686_v46 }
 0xfe9   :  { %9718 = vrot.lane.b32.xlu1 %v9716_v15, %s13823_s5 }
 0xfea   :  { %9707 = vrot.lane.b32.xlu0 %v9705_v36, %s13823_s5 }
0x105b   :  { %v9719_v13 = vpop.permute.xlu1 %9718 }
0x105c   :  { %v9721_v8 = vmul.f32 %v13682_v14, %v9719_v13  ;;  %v9708_v56 = vpop.permute.xlu0 %9707 }
0x105d   :  { %v9710_v55 = vmul.f32 %v13680_v0, %v9708_v56 }
0x105e   :  { %9723 = vrot.lane.b32.xlu1 %v9721_v8, %s13824_s6 }
0x105f   :  { %9712 = vrot.lane.b32.xlu0 %v9710_v55, %s13824_s6  ;;  %v9957_v55 = vld [vmem:[#allocation4 + $0x5] ss:$8 sm:$0x3] }
0x10d0   :  { %v9724_v33 = vpop.permute.xlu1 %9723 }
0x10d1   :  { %v17556_v4 = vadd.f32 %v13684_v11, %v9724_v33  ;;  %v9713_v63 = vpop.permute.xlu0 %9712  ;;  %v9955_v33 = vld [vmem:[#allocation3 + $0x2] ss:$8 sm:$0x3] }
0x10d2   :  { %v17558_v51 = vadd.f32 %v13686_v46, %v9713_v63 }
0x10d3   :  { %9734 = vrot.lane.b32.xlu1 %v17556_v4, %s13821_s26 }
0x10d4   :  { %9728 = vrot.lane.b32.xlu0 %v17558_v51, %s13821_s26 }
0x1145   :  { %v9735_v9 = vpop.permute.xlu1 %9734 }
0x1146   :  { %9737 = vst.msk [vmem:[#allocation6 + $0xe] sm:$0x3] %vm9731_vm2, %v9735_v9  ;;  %v9729_v40 = vpop.permute.xlu0 %9728  ;;  %13419 = vmatmul.mubr.msk.f32.vlgmr.msra.gmra.mxu1 %vm9513_vm4, %v9735_v9 }
0x1147   :  { %9732 = vst.msk [vmem:[#allocation5] sm:$0x3] %vm9731_vm2, %v9729_v40  ;;  %13408 = vmatmul.mubr.msk.f32.vlgmr.msra.gmra.mxu0 %vm9513_vm4, %v9729_v40  ;;  %13433 = vmatpush3.msk.msra.mxu1 %vm1238_vm3, %v17450_v41 }
0x1148   :  { %13422 = vmatpush3.msk.msra.mxu0 %vm1238_vm3, %v17445_v59  ;;  %13434 = vmatprep.subr.mxu1 %v13819_v42 }
0x1149   :  { %13423 = vmatprep.subr.mxu0 %v13819_v42  ;;  %13435 = vmatpush3.msra.mxu1 %v17462_v35 }
0x114a   :  { %13424 = vmatpush3.msra.mxu0 %v17457_v28  ;;  %13436 = vmatprep.subr.mxu1 %v13819_v42 }
0x114b   :  { %13425 = vmatprep.subr.mxu0 %v13819_v42  ;;  %13437 = vmatpush3.msra.mxu1 %v17478_v30 }
0x114c   :  { %13426 = vmatpush3.msra.mxu0 %v17473_v21  ;;  %13438 = vmatprep.subr.mxu1 %v13819_v42 }
0x114d   :  { %13427 = vmatprep.subr.mxu0 %v13819_v42  ;;  %13439 = vmatpush3.msra.mxu1 %v17494_v62 }
0x114e   :  { %13440 = vmatprep.mubr.msk.f32.mxu1 %vm13820_vm0, %v13819_v42  ;;  %13428 = vmatpush3.msra.mxu0 %v17487_v25 }
0x114f   :  { %13429 = vmatprep.mubr.msk.f32.mxu0 %vm13820_vm0, %v13819_v42  ;;  %13443 = vmatprep.subr.mxu0 %v13819_v42 }
0x1150   :  { %13454 = vmatprep.subr.mxu1 %v13819_v42 }
0x1206   :  { %v9882_v45 = vpop.f32.mrf.mxu1 }
0x1207   :  { %v9810_v20 = vpop.f32.mrf.mxu0  ;;  %v9883_v54 = vadd.f32 %v17544_v6, %v9882_v45 }
0x1208   :  { %v9811_v58 = vadd.f32 %v17539_v61, %v9810_v20  ;;  %v13420_v7 = vpop.f32.mrf.mxu1 }
0x1209   :  { %v13409_v29 = vpop.f32.mrf.mxu0  ;;  %9912 = vrot.lane.b32.xlu1 %v9883_v54, %s13821_s26  ;;  %v9887_v10 = vadd.f32 %v9883_v54, %v9741_v39 }
0x120a   :  { %9901 = vrot.lane.b32.xlu0 %v9811_v58, %s13821_s26  ;;  %v9886_v17 = vadd.f32 %v9811_v58, %v9739_v23 }
0x120b   :  { %v12483_v60 = vmul.f32 -1.442695, %v9887_v10 }
0x120c   :  { %v12482_v53 = vmul.f32 -1.442695, %v9886_v17 }
0x120d   :  { %13687 = vpow2.f32 %v12483_v60 }
0x120e   :  { %13689 = vpow2.f32 %v12482_v53 }
0x121a   :  { %v13688_v26 = vpop.eup %13687 }
0x121b   :  { %v13690_v37 = vpop.eup %13689  ;;  %v9897_v49 = vadd.f32 1.0, %v13688_v26 }
0x121c   :  { %v9891_v2 = vadd.f32 1.0, %v13690_v37 }
0x121d   :  { %13691 = vrcp.f32 %v9897_v49 }
0x121e   :  { %13693 = vrcp.f32 %v9891_v2 }
0x122a   :  { %v13692_v38 = vpop.eup %13691 }
0x122b   :  { %v13694_v24 = vpop.eup %13693 }
0x127b   :  { %v9913_v31 = vpop.permute.xlu1 %9912 }
0x127c   :  { %v9915_v22 = vmul.f32 %v13692_v38, %v9913_v31  ;;  %v9902_v34 = vpop.permute.xlu0 %9901 }
0x127d   :  { %v9904_v18 = vmul.f32 %v13694_v24, %v9902_v34 }
0x127e   :  { %9917 = vrot.lane.b32.xlu1 %v9915_v22, %s13822_s2 }
0x127f   :  { %9906 = vrot.lane.b32.xlu0 %v9904_v18, %s13822_s2 }
0x12f0   :  { %v9918_v43 = vpop.permute.xlu1 %9917 }
0x12f1   :  { %v9920_v48 = vadd.f32 %v9918_v43, %v9741_v39  ;;  %v9907_v19 = vpop.permute.xlu0 %9906 }
0x12f2   :  { %v9909_v12 = vadd.f32 %v9907_v19, %v9739_v23 }
0x12f3   :  { %13695 = vtanh.f32 %v9920_v48 }
0x12f4   :  { %13697 = vtanh.f32 %v9909_v12 }
0x1300   :  { %v13696_v52 = vpop.eup %13695 }
0x1301   :  { %v13698_v1 = vpop.eup %13697  ;;  %v9933_v47 = vsub.f32 %v17556_v4, %v13696_v52 }
0x1302   :  { %v9922_v0 = vsub.f32 %v17558_v51, %v13698_v1 }
0x1303   :  { %9935 = vrot.lane.b32.xlu1 %v9933_v47, %s13823_s5 }
0x1304   :  { %9924 = vrot.lane.b32.xlu0 %v9922_v0, %s13823_s5 }
0x1375   :  { %v9936_v14 = vpop.permute.xlu1 %9935 }
0x1376   :  { %v9938_v27 = vmul.f32 %v13692_v38, %v9936_v14  ;;  %v9925_v57 = vpop.permute.xlu0 %9924 }
0x1377   :  { %v9927_v44 = vmul.f32 %v13694_v24, %v9925_v57 }
0x1378   :  { %9940 = vrot.lane.b32.xlu1 %v9938_v27, %s13824_s6 }
0x1379   :  { %9929 = vrot.lane.b32.xlu0 %v9927_v44, %s13824_s6  ;;  %v10173_v44 = vld [vmem:[#allocation4 + $0x4] ss:$8 sm:$0x3] }
0x13ea   :  { %v9941_v5 = vpop.permute.xlu1 %9940 }
0x13eb   :  { %v17602_v32 = vadd.f32 %v13696_v52, %v9941_v5  ;;  %v9930_v16 = vpop.permute.xlu0 %9929  ;;  %v10171_v5 = vld [vmem:[#allocation3 + $0x3] ss:$8 sm:$0x3] }
0x13ec   :  { %v17604_v50 = vadd.f32 %v13698_v1, %v9930_v16 }
0x13ed   :  { %9950 = vrot.lane.b32.xlu1 %v17602_v32, %s13821_s26 }
0x13ee   :  { %9945 = vrot.lane.b32.xlu0 %v17604_v50, %s13821_s26 }
0x145f   :  { %v9951_v3 = vpop.permute.xlu1 %9950 }
0x1460   :  { %9953 = vst.msk [vmem:[#allocation6 + $0xc] sm:$0x3] %vm9731_vm2, %v9951_v3  ;;  %v9946_v11 = vpop.permute.xlu0 %9945  ;;  %13441 = vmatmul.mubr.msk.f32.vlgmr.msra.gmra.mxu1 %vm9513_vm4, %v9951_v3 }
0x1461   :  { %9948 = vst.msk [vmem:[#allocation5 + $0x2] sm:$0x3] %vm9731_vm2, %v9946_v11  ;;  %13430 = vmatmul.mubr.msk.f32.vlgmr.msra.gmra.mxu0 %vm9513_vm4, %v9946_v11  ;;  %13455 = vmatpush3.msk.msra.mxu1 %vm1238_vm3, %v17450_v41 }
0x1462   :  { %13444 = vmatpush3.msk.msra.mxu0 %vm1238_vm3, %v17445_v59  ;;  %13456 = vmatprep.subr.mxu1 %v13819_v42 }
0x1463   :  { %13445 = vmatprep.subr.mxu0 %v13819_v42  ;;  %13457 = vmatpush3.msra.mxu1 %v17462_v35 }
0x1464   :  { %13446 = vmatpush3.msra.mxu0 %v17457_v28  ;;  %13458 = vmatprep.subr.mxu1 %v13819_v42 }
0x1465   :  { %13447 = vmatprep.subr.mxu0 %v13819_v42  ;;  %13459 = vmatpush3.msra.mxu1 %v17478_v30 }
0x1466   :  { %13448 = vmatpush3.msra.mxu0 %v17473_v21  ;;  %13460 = vmatprep.subr.mxu1 %v13819_v42 }
0x1467   :  { %13449 = vmatprep.subr.mxu0 %v13819_v42  ;;  %13461 = vmatpush3.msra.mxu1 %v17494_v62 }
0x1468   :  { %13462 = vmatprep.mubr.msk.f32.mxu1 %vm13820_vm0, %v13819_v42  ;;  %13450 = vmatpush3.msra.mxu0 %v17487_v25 }
0x1469   :  { %13451 = vmatprep.mubr.msk.f32.mxu0 %vm13820_vm0, %v13819_v42  ;;  %13465 = vmatprep.subr.mxu0 %v13819_v42 }
0x146a   :  { %13476 = vmatprep.subr.mxu1 %v13819_v42 }
0x1520   :  { %v10098_v46 = vpop.f32.mrf.mxu1 }
0x1521   :  { %v10026_v15 = vpop.f32.mrf.mxu0  ;;  %v10099_v36 = vadd.f32 %v17544_v6, %v10098_v46 }
0x1522   :  { %v10027_v13 = vadd.f32 %v17539_v61, %v10026_v15  ;;  %v13442_v8 = vpop.f32.mrf.mxu1 }
0x1523   :  { %v13431_v56 = vpop.f32.mrf.mxu0  ;;  %10128 = vrot.lane.b32.xlu1 %v10099_v36, %s13821_s26  ;;  %v10103_v4 = vadd.f32 %v10099_v36, %v9957_v55 }
0x1524   :  { %10117 = vrot.lane.b32.xlu0 %v10027_v13, %s13821_s26  ;;  %v10102_v63 = vadd.f32 %v10027_v13, %v9955_v33 }
0x1525   :  { %v12489_v51 = vmul.f32 -1.442695, %v10103_v4 }
0x1526   :  { %v12488_v9 = vmul.f32 -1.442695, %v10102_v63 }
0x1527   :  { %13699 = vpow2.f32 %v12489_v51 }
0x1528   :  { %13701 = vpow2.f32 %v12488_v9 }
0x1534   :  { %v13700_v40 = vpop.eup %13699 }
0x1535   :  { %v13702_v45 = vpop.eup %13701  ;;  %v10113_v20 = vadd.f32 1.0, %v13700_v40 }
0x1536   :  { %v10107_v54 = vadd.f32 1.0, %v13702_v45 }
0x1537   :  { %13703 = vrcp.f32 %v10113_v20 }
0x1538   :  { %13705 = vrcp.f32 %v10107_v54 }
0x1544   :  { %v13704_v58 = vpop.eup %13703 }
0x1545   :  { %v13706_v29 = vpop.eup %13705 }
0x1595   :  { %v10129_v7 = vpop.permute.xlu1 %10128 }
0x1596   :  { %v10131_v39 = vmul.f32 %v13704_v58, %v10129_v7  ;;  %v10118_v23 = vpop.permute.xlu0 %10117 }
0x1597   :  { %v10120_v10 = vmul.f32 %v13706_v29, %v10118_v23 }
0x1598   :  { %10133 = vrot.lane.b32.xlu1 %v10131_v39, %s13822_s2 }
0x1599   :  { %10122 = vrot.lane.b32.xlu0 %v10120_v10, %s13822_s2 }
0x160a   :  { %v10134_v17 = vpop.permute.xlu1 %10133 }
0x160b   :  { %v10136_v60 = vadd.f32 %v10134_v17, %v9957_v55  ;;  %v10123_v53 = vpop.permute.xlu0 %10122 }
0x160c   :  { %v10125_v26 = vadd.f32 %v10123_v53, %v9955_v33 }
0x160d   :  { %13707 = vtanh.f32 %v10136_v60 }
0x160e   :  { %13709 = vtanh.f32 %v10125_v26 }
0x161a   :  { %v13708_v37 = vpop.eup %13707 }
0x161b   :  { %v13710_v49 = vpop.eup %13709  ;;  %v10149_v2 = vsub.f32 %v17602_v32, %v13708_v37 }
0x161c   :  { %v10138_v38 = vsub.f32 %v17604_v50, %v13710_v49 }
0x161d   :  { %10151 = vrot.lane.b32.xlu1 %v10149_v2, %s13823_s5 }
0x161e   :  { %10140 = vrot.lane.b32.xlu0 %v10138_v38, %s13823_s5 }
0x168f   :  { %v10152_v31 = vpop.permute.xlu1 %10151 }
0x1690   :  { %v10154_v24 = vmul.f32 %v13704_v58, %v10152_v31  ;;  %v10141_v22 = vpop.permute.xlu0 %10140 }
0x1691   :  { %v10143_v34 = vmul.f32 %v13706_v29, %v10141_v22 }
0x1692   :  { %10156 = vrot.lane.b32.xlu1 %v10154_v24, %s13824_s6 }
0x1693   :  { %10145 = vrot.lane.b32.xlu0 %v10143_v34, %s13824_s6  ;;  %v10389_v34 = vld [vmem:[#allocation4 + $0x3] ss:$8 sm:$0x3] }
0x1704   :  { %v10157_v18 = vpop.permute.xlu1 %10156 }
0x1705   :  { %v17648_v43 = vadd.f32 %v13708_v37, %v10157_v18  ;;  %v10146_v48 = vpop.permute.xlu0 %10145  ;;  %v10387_v18 = vld [vmem:[#allocation3 + $0x4] ss:$8 sm:$0x3] }
0x1706   :  { %v17650_v19 = vadd.f32 %v13710_v49, %v10146_v48 }
0x1707   :  { %10166 = vrot.lane.b32.xlu1 %v17648_v43, %s13821_s26 }
0x1708   :  { %10161 = vrot.lane.b32.xlu0 %v17650_v19, %s13821_s26 }
0x1779   :  { %v10167_v12 = vpop.permute.xlu1 %10166 }
0x177a   :  { %10169 = vst.msk [vmem:[#allocation6 + $0xa] sm:$0x3] %vm9731_vm2, %v10167_v12  ;;  %v10162_v52 = vpop.permute.xlu0 %10161  ;;  %13463 = vmatmul.mubr.msk.f32.vlgmr.msra.gmra.mxu1 %vm9513_vm4, %v10167_v12 }
0x177b   :  { %10164 = vst.msk [vmem:[#allocation5 + $0x4] sm:$0x3] %vm9731_vm2, %v10162_v52  ;;  %13452 = vmatmul.mubr.msk.f32.vlgmr.msra.gmra.mxu0 %vm9513_vm4, %v10162_v52  ;;  %13477 = vmatpush3.msk.msra.mxu1 %vm1238_vm3, %v17450_v41 }
0x177c   :  { %13466 = vmatpush3.msk.msra.mxu0 %vm1238_vm3, %v17445_v59  ;;  %13478 = vmatprep.subr.mxu1 %v13819_v42 }
0x177d   :  { %13467 = vmatprep.subr.mxu0 %v13819_v42  ;;  %13479 = vmatpush3.msra.mxu1 %v17462_v35 }
0x177e   :  { %13468 = vmatpush3.msra.mxu0 %v17457_v28  ;;  %13480 = vmatprep.subr.mxu1 %v13819_v42 }
0x177f   :  { %13469 = vmatprep.subr.mxu0 %v13819_v42  ;;  %13481 = vmatpush3.msra.mxu1 %v17478_v30 }
0x1780   :  { %13470 = vmatpush3.msra.mxu0 %v17473_v21  ;;  %13482 = vmatprep.subr.mxu1 %v13819_v42 }
0x1781   :  { %13471 = vmatprep.subr.mxu0 %v13819_v42  ;;  %13483 = vmatpush3.msra.mxu1 %v17494_v62 }
0x1782   :  { %13484 = vmatprep.mubr.msk.f32.mxu1 %vm13820_vm0, %v13819_v42  ;;  %13472 = vmatpush3.msra.mxu0 %v17487_v25 }
0x1783   :  { %13473 = vmatprep.mubr.msk.f32.mxu0 %vm13820_vm0, %v13819_v42  ;;  %13487 = vmatprep.subr.mxu0 %v13819_v42 }
0x1784   :  { %13498 = vmatprep.subr.mxu1 %v13819_v42 }
0x183a   :  { %v10314_v1 = vpop.f32.mrf.mxu1 }
0x183b   :  { %v10242_v47 = vpop.f32.mrf.mxu0  ;;  %v10315_v0 = vadd.f32 %v17544_v6, %v10314_v1 }
0x183c   :  { %v10243_v14 = vadd.f32 %v17539_v61, %v10242_v47  ;;  %v13464_v27 = vpop.f32.mrf.mxu1 }
0x183d   :  { %v13453_v57 = vpop.f32.mrf.mxu0  ;;  %10344 = vrot.lane.b32.xlu1 %v10315_v0, %s13821_s26  ;;  %v10319_v32 = vadd.f32 %v10315_v0, %v10173_v44 }
0x183e   :  { %10333 = vrot.lane.b32.xlu0 %v10243_v14, %s13821_s26  ;;  %v10318_v16 = vadd.f32 %v10243_v14, %v10171_v5 }
0x183f   :  { %v12495_v50 = vmul.f32 -1.442695, %v10319_v32 }
0x1840   :  { %v12494_v3 = vmul.f32 -1.442695, %v10318_v16 }
0x1841   :  { %13711 = vpow2.f32 %v12495_v50 }
0x1842   :  { %13713 = vpow2.f32 %v12494_v3 }
0x184e   :  { %v13712_v11 = vpop.eup %13711 }
0x184f   :  { %v13714_v46 = vpop.eup %13713  ;;  %v10329_v15 = vadd.f32 1.0, %v13712_v11 }
0x1850   :  { %v10323_v36 = vadd.f32 1.0, %v13714_v46 }
0x1851   :  { %13715 = vrcp.f32 %v10329_v15 }
0x1852   :  { %13717 = vrcp.f32 %v10323_v36 }
0x185e   :  { %v13716_v13 = vpop.eup %13715 }
0x185f   :  { %v13718_v56 = vpop.eup %13717 }
0x18af   :  { %v10345_v8 = vpop.permute.xlu1 %10344 }
0x18b0   :  { %v10347_v55 = vmul.f32 %v13716_v13, %v10345_v8  ;;  %v10334_v33 = vpop.permute.xlu0 %10333 }
0x18b1   :  { %v10336_v4 = vmul.f32 %v13718_v56, %v10334_v33 }
0x18b2   :  { %10349 = vrot.lane.b32.xlu1 %v10347_v55, %s13822_s2 }
0x18b3   :  { %10338 = vrot.lane.b32.xlu0 %v10336_v4, %s13822_s2 }
0x1924   :  { %v10350_v63 = vpop.permute.xlu1 %10349 }
0x1925   :  { %v10352_v51 = vadd.f32 %v10350_v63, %v10173_v44  ;;  %v10339_v9 = vpop.permute.xlu0 %10338 }
0x1926   :  { %v10341_v40 = vadd.f32 %v10339_v9, %v10171_v5 }
0x1927   :  { %13719 = vtanh.f32 %v10352_v51 }
0x1928   :  { %13721 = vtanh.f32 %v10341_v40 }
0x1934   :  { %v13720_v45 = vpop.eup %13719 }
0x1935   :  { %v13722_v20 = vpop.eup %13721  ;;  %v10365_v54 = vsub.f32 %v17648_v43, %v13720_v45 }
0x1936   :  { %v10354_v58 = vsub.f32 %v17650_v19, %v13722_v20 }
0x1937   :  { %10367 = vrot.lane.b32.xlu1 %v10365_v54, %s13823_s5 }
0x1938   :  { %10356 = vrot.lane.b32.xlu0 %v10354_v58, %s13823_s5 }
0x19a9   :  { %v10368_v7 = vpop.permute.xlu1 %10367 }
0x19aa   :  { %v10370_v29 = vmul.f32 %v13716_v13, %v10368_v7  ;;  %v10357_v39 = vpop.permute.xlu0 %10356 }
0x19ab   :  { %v10359_v23 = vmul.f32 %v13718_v56, %v10357_v39 }
0x19ac   :  { %10372 = vrot.lane.b32.xlu1 %v10370_v29, %s13824_s6 }
0x19ad   :  { %10361 = vrot.lane.b32.xlu0 %v10359_v23, %s13824_s6 }
0x1a1e   :  { %v10373_v10 = vpop.permute.xlu1 %10372 }
0x1a1f   :  { %v17694_v17 = vadd.f32 %v13720_v45, %v10373_v10  ;;  %v10362_v60 = vpop.permute.xlu0 %10361 }
0x1a20   :  { %v17696_v53 = vadd.f32 %v13722_v20, %v10362_v60 }
0x1a21   :  { %10382 = vrot.lane.b32.xlu1 %v17694_v17, %s13821_s26 }
0x1a22   :  { %10377 = vrot.lane.b32.xlu0 %v17696_v53, %s13821_s26 }
0x1a93   :  { %v10383_v26 = vpop.permute.xlu1 %10382 }
0x1a94   :  { %10385 = vst.msk [vmem:[#allocation6 + $0x8] sm:$0x3] %vm9731_vm2, %v10383_v26  ;;  %v10378_v37 = vpop.permute.xlu0 %10377  ;;  %13485 = vmatmul.mubr.msk.f32.vlgmr.msra.gmra.mxu1 %vm9513_vm4, %v10383_v26 }
0x1a95   :  { %10380 = vst.msk [vmem:[#allocation5 + $0x6] sm:$0x3] %vm9731_vm2, %v10378_v37  ;;  %13474 = vmatmul.mubr.msk.f32.vlgmr.msra.gmra.mxu0 %vm9513_vm4, %v10378_v37  ;;  %13499 = vmatpush3.msk.msra.mxu1 %vm1238_vm3, %v17450_v41 }
0x1a96   :  { %13488 = vmatpush3.msk.msra.mxu0 %vm1238_vm3, %v17445_v59  ;;  %13500 = vmatprep.subr.mxu1 %v13819_v42 }
0x1a97   :  { %13489 = vmatprep.subr.mxu0 %v13819_v42  ;;  %13501 = vmatpush3.msra.mxu1 %v17462_v35 }
0x1a98   :  { %13490 = vmatpush3.msra.mxu0 %v17457_v28  ;;  %13502 = vmatprep.subr.mxu1 %v13819_v42 }
0x1a99   :  { %13491 = vmatprep.subr.mxu0 %v13819_v42  ;;  %13503 = vmatpush3.msra.mxu1 %v17478_v30 }
0x1a9a   :  { %13492 = vmatpush3.msra.mxu0 %v17473_v21  ;;  %13504 = vmatprep.subr.mxu1 %v13819_v42 }
0x1a9b   :  { %13493 = vmatprep.subr.mxu0 %v13819_v42  ;;  %13505 = vmatpush3.msra.mxu1 %v17494_v62 }
0x1a9c   :  { %13506 = vmatprep.mubr.msk.f32.mxu1 %vm13820_vm0, %v13819_v42  ;;  %13494 = vmatpush3.msra.mxu0 %v17487_v25 }
0x1a9d   :  { %13495 = vmatprep.mubr.msk.f32.mxu0 %vm13820_vm0, %v13819_v42  ;;  %13509 = vmatprep.subr.mxu0 %v13819_v42 }
0x1a9e   :  { %13520 = vmatprep.subr.mxu1 %v13819_v42 }
0x1b54   :  { %v10530_v49 = vpop.f32.mrf.mxu1 }
0x1b55   :  { %v10458_v2 = vpop.f32.mrf.mxu0  ;;  %v10531_v38 = vadd.f32 %v17544_v6, %v10530_v49 }
0x1b56   :  { %v10459_v31 = vadd.f32 %v17539_v61, %v10458_v2  ;;  %v13486_v24 = vpop.f32.mrf.mxu1 }
0x1b57   :  { %v13475_v22 = vpop.f32.mrf.mxu0  ;;  %10560 = vrot.lane.b32.xlu1 %v10531_v38, %s13821_s26  ;;  %v10535_v43 = vadd.f32 %v10531_v38, %v10389_v34 }
0x1b58   :  { %10549 = vrot.lane.b32.xlu0 %v10459_v31, %s13821_s26  ;;  %v10534_v48 = vadd.f32 %v10459_v31, %v10387_v18 }
0x1b59   :  { %v12501_v19 = vmul.f32 -1.442695, %v10535_v43 }
0x1b5a   :  { %v12500_v12 = vmul.f32 -1.442695, %v10534_v48 }
0x1b5b   :  { %13723 = vpow2.f32 %v12501_v19 }
0x1b5c   :  { %13725 = vpow2.f32 %v12500_v12 }
0x1b68   :  { %v13724_v52 = vpop.eup %13723 }
0x1b69   :  { %v13726_v1 = vpop.eup %13725  ;;  %v10545_v47 = vadd.f32 1.0, %v13724_v52 }
0x1b6a   :  { %v10539_v0 = vadd.f32 1.0, %v13726_v1 }
0x1b6b   :  { %13727 = vrcp.f32 %v10545_v47 }
0x1b6c   :  { %13729 = vrcp.f32 %v10539_v0 }
0x1b78   :  { %v13728_v14 = vpop.eup %13727 }
0x1b79   :  { %v13730_v57 = vpop.eup %13729 }
0x1bc9   :  { %v10561_v27 = vpop.permute.xlu1 %10560 }
0x1bca   :  { %v10563_v44 = vmul.f32 %v13728_v14, %v10561_v27  ;;  %v10550_v5 = vpop.permute.xlu0 %10549 }
0x1bcb   :  { %v10552_v32 = vmul.f32 %v13730_v57, %v10550_v5  ;;  %v13786_v5 = vld [vmem:[%s18224_s3 + $0x18] sm:$0x1] }
0x1bcc   :  { %10565 = vrot.lane.b32.xlu1 %v10563_v44, %s13822_s2  ;;  %v13785_v44 = vld [vmem:[%s18141_s10 + $0x18] sm:$0x1] }
0x1bcd   :  { %10554 = vrot.lane.b32.xlu0 %v10552_v32, %s13822_s2  ;;  %v13787_v32 = vld [vmem:[%s18141_s10 + $0x10] sm:$0xff] }
0x1c3e   :  { %v10566_v16 = vpop.permute.xlu1 %10565 }
0x1c3f   :  { %v10568_v50 = vadd.f32 %v10566_v16, %v10389_v34  ;;  %v10555_v3 = vpop.permute.xlu0 %10554  ;;  %v13788_v16 = vld [vmem:[%s18224_s3 + $0x10] sm:$0xff] }
0x1c40   :  { %v10557_v11 = vadd.f32 %v10555_v3, %v10387_v18  ;;  %v13790_v3 = vld [vmem:[%s18224_s3 + $0x8] sm:$0xff] }
0x1c41   :  { %13731 = vtanh.f32 %v10568_v50  ;;  %v13789_v50 = vld [vmem:[%s18141_s10 + $0x8] sm:$0xff] }
0x1c42   :  { %13733 = vtanh.f32 %v10557_v11  ;;  %v13791_v11 = vld [vmem:[%s18141_s10] sm:$0xff] }
0x1c4e   :  { %v13732_v46 = vpop.eup %13731 }
0x1c4f   :  { %v13734_v15 = vpop.eup %13733  ;;  %v10581_v36 = vsub.f32 %v17694_v17, %v13732_v46 }
0x1c50   :  { %v10570_v13 = vsub.f32 %v17696_v53, %v13734_v15 }
0x1c51   :  { %10583 = vrot.lane.b32.xlu1 %v10581_v36, %s13823_s5 }
0x1c52   :  { %10572 = vrot.lane.b32.xlu0 %v10570_v13, %s13823_s5 }
0x1cc3   :  { %v10584_v8 = vpop.permute.xlu1 %10583 }
0x1cc4   :  { %v10586_v56 = vmul.f32 %v13728_v14, %v10584_v8  ;;  %v10573_v55 = vpop.permute.xlu0 %10572 }
0x1cc5   :  { %v10575_v33 = vmul.f32 %v13730_v57, %v10573_v55 }
0x1cc6   :  { %10588 = vrot.lane.b32.xlu1 %v10586_v56, %s13824_s6 }
0x1cc7   :  { %10577 = vrot.lane.b32.xlu0 %v10575_v33, %s13824_s6  ;;  %v10821_v33 = vld [vmem:[#allocation4 + $0x1] ss:$8 sm:$0x3] }
0x1d38   :  { %v10589_v4 = vpop.permute.xlu1 %10588 }
0x1d39   :  { %v17740_v63 = vadd.f32 %v13732_v46, %v10589_v4  ;;  %v10578_v51 = vpop.permute.xlu0 %10577  ;;  %v13792_v46 = vld [vmem:[%s18224_s3] sm:$0xff] }
0x1d3a   :  { %v17742_v9 = vadd.f32 %v13734_v15, %v10578_v51  ;;  %v10819_v4 = vld [vmem:[#allocation3 + $0x6] ss:$8 sm:$0x3] }
0x1d3b   :  { %10598 = vrot.lane.b32.xlu1 %v17740_v63, %s13821_s26 }
0x1d3c   :  { %10593 = vrot.lane.b32.xlu0 %v17742_v9, %s13821_s26 }
0x1dad   :  { %v10599_v40 = vpop.permute.xlu1 %10598 }
0x1dae   :  { %10601 = vst.msk [vmem:[#allocation6 + $0x6] sm:$0x3] %vm9731_vm2, %v10599_v40  ;;  %v10594_v45 = vpop.permute.xlu0 %10593  ;;  %13507 = vmatmul.mubr.msk.f32.vlgmr.msra.gmra.mxu1 %vm9513_vm4, %v10599_v40 }
0x1daf   :  { %10596 = vst.msk [vmem:[#allocation5 + $0x8] sm:$0x3] %vm9731_vm2, %v10594_v45  ;;  %13496 = vmatmul.mubr.msk.f32.vlgmr.msra.gmra.mxu0 %vm9513_vm4, %v10594_v45  ;;  %13521 = vmatpush3.msk.msra.mxu1 %vm1238_vm3, %v17450_v41 }
0x1db0   :  { %13510 = vmatpush3.msk.msra.mxu0 %vm1238_vm3, %v17445_v59  ;;  %13522 = vmatprep.subr.mxu1 %v13819_v42 }
0x1db1   :  { %13511 = vmatprep.subr.mxu0 %v13819_v42  ;;  %13523 = vmatpush3.msra.mxu1 %v17462_v35 }
0x1db2   :  { %13512 = vmatpush3.msra.mxu0 %v17457_v28  ;;  %13524 = vmatprep.subr.mxu1 %v13819_v42 }
0x1db3   :  { %13513 = vmatprep.subr.mxu0 %v13819_v42  ;;  %13525 = vmatpush3.msra.mxu1 %v17478_v30 }
0x1db4   :  { %13514 = vmatpush3.msra.mxu0 %v17473_v21  ;;  %13526 = vmatprep.subr.mxu1 %v13819_v42 }
0x1db5   :  { %13515 = vmatprep.subr.mxu0 %v13819_v42  ;;  %13527 = vmatpush3.msra.mxu1 %v17494_v62  ;;  %v10603_v62 = vld [vmem:[#allocation3 + $0x5] ss:$8 sm:$0x3] }
0x1db6   :  { %13528 = vmatprep.mubr.msk.f32.mxu1 %vm13820_vm0, %v13819_v42  ;;  %13516 = vmatpush3.msra.mxu0 %v17487_v25  ;;  %v10605_v25 = vld [vmem:[#allocation4 + $0x2] ss:$8 sm:$0x3] }
0x1db7   :  { %13517 = vmatprep.mubr.msk.f32.mxu0 %vm13820_vm0, %v13819_v42  ;;  %13531 = vmatprep.subr.mxu0 %v13819_v42 }
0x1db8   :  { %13542 = vmatprep.subr.mxu1 %v13819_v42 }
0x1e6e   :  { %v10746_v59 = vpop.f32.mrf.mxu1 }
0x1e6f   :  { %v10674_v41 = vpop.f32.mrf.mxu0  ;;  %v10747_v28 = vadd.f32 %v17544_v6, %v10746_v59 }
0x1e70   :  { %v10675_v35 = vadd.f32 %v17539_v61, %v10674_v41  ;;  %v13508_v21 = vpop.f32.mrf.mxu1 }
0x1e71   :  { %v13497_v30 = vpop.f32.mrf.mxu0  ;;  %10776 = vrot.lane.b32.xlu1 %v10747_v28, %s13821_s26  ;;  %v10751_v20 = vadd.f32 %v10747_v28, %v10605_v25 }
0x1e72   :  { %10765 = vrot.lane.b32.xlu0 %v10675_v35, %s13821_s26  ;;  %v10750_v54 = vadd.f32 %v10675_v35, %v10603_v62 }
0x1e73   :  { %v12507_v58 = vmul.f32 -1.442695, %v10751_v20 }
0x1e74   :  { %v12506_v7 = vmul.f32 -1.442695, %v10750_v54 }
0x1e75   :  { %13735 = vpow2.f32 %v12507_v58 }
0x1e76   :  { %13737 = vpow2.f32 %v12506_v7 }
0x1e82   :  { %v13736_v29 = vpop.eup %13735 }
0x1e83   :  { %v13738_v39 = vpop.eup %13737  ;;  %v10761_v23 = vadd.f32 1.0, %v13736_v29 }
0x1e84   :  { %v10755_v10 = vadd.f32 1.0, %v13738_v39 }
0x1e85   :  { %13739 = vrcp.f32 %v10761_v23 }
0x1e86   :  { %13741 = vrcp.f32 %v10755_v10 }
0x1e92   :  { %v13740_v17 = vpop.eup %13739 }
0x1e93   :  { %v13742_v53 = vpop.eup %13741 }
0x1ee3   :  { %v10777_v60 = vpop.permute.xlu1 %10776 }
0x1ee4   :  { %v10779_v26 = vmul.f32 %v13740_v17, %v10777_v60  ;;  %v10766_v37 = vpop.permute.xlu0 %10765 }
0x1ee5   :  { %v10768_v49 = vmul.f32 %v13742_v53, %v10766_v37 }
0x1ee6   :  { %10781 = vrot.lane.b32.xlu1 %v10779_v26, %s13822_s2 }
0x1ee7   :  { %10770 = vrot.lane.b32.xlu0 %v10768_v49, %s13822_s2 }
0x1f58   :  { %v10782_v2 = vpop.permute.xlu1 %10781 }
0x1f59   :  { %v10784_v38 = vadd.f32 %v10782_v2, %v10605_v25  ;;  %v10771_v31 = vpop.permute.xlu0 %10770 }
0x1f5a   :  { %v10773_v24 = vadd.f32 %v10771_v31, %v10603_v62 }
0x1f5b   :  { %13743 = vtanh.f32 %v10784_v38 }
0x1f5c   :  { %13745 = vtanh.f32 %v10773_v24 }
0x1f68   :  { %v13744_v22 = vpop.eup %13743 }
0x1f69   :  { %v13746_v34 = vpop.eup %13745  ;;  %v10797_v18 = vsub.f32 %v17740_v63, %v13744_v22 }
0x1f6a   :  { %v10786_v43 = vsub.f32 %v17742_v9, %v13746_v34 }
0x1f6b   :  { %10799 = vrot.lane.b32.xlu1 %v10797_v18, %s13823_s5 }
0x1f6c   :  { %10788 = vrot.lane.b32.xlu0 %v10786_v43, %s13823_s5  ;;  %v13794_v43 = vld [vmem:[%s18139_s8] ss:$0 sm:$0xff] }
0x1fdd   :  { %v10800_v48 = vpop.permute.xlu1 %10799 }
0x1fde   :  { %v10802_v19 = vmul.f32 %v13740_v17, %v10800_v48  ;;  %v10789_v12 = vpop.permute.xlu0 %10788 }
0x1fdf   :  { %v10791_v52 = vmul.f32 %v13742_v53, %v10789_v12 }
0x1fe0   :  { %10804 = vrot.lane.b32.xlu1 %v10802_v19, %s13824_s6 }
0x1fe1   :  { %10793 = vrot.lane.b32.xlu0 %v10791_v52, %s13824_s6  ;;  %v11036_v52 = vld [vmem:[#allocation4] ss:$8 sm:$0x3] }
0x2052   :  { %v10805_v1 = vpop.permute.xlu1 %10804 }
0x2053   :  { %v17786_v47 = vadd.f32 %v13744_v22, %v10805_v1  ;;  %v10794_v0 = vpop.permute.xlu0 %10793  ;;  %v11035_v1 = vld [vmem:[#allocation3 + $0x7] ss:$8 sm:$0x3] }
0x2054   :  { %v17788_v14 = vadd.f32 %v13746_v34, %v10794_v0  ;;  %v13793_v34 = vld [vmem:[%s18143_s12] ss:$0 sm:$0xff] }
0x2055   :  { %10814 = vrot.lane.b32.xlu1 %v17786_v47, %s13821_s26 }
0x2056   :  { %10809 = vrot.lane.b32.xlu0 %v17788_v14, %s13821_s26 }
0x20c7   :  { %v10815_v27 = vpop.permute.xlu1 %10814 }
0x20c8   :  { %10817 = vst.msk [vmem:[#allocation6 + $0x4] sm:$0x3] %vm9731_vm2, %v10815_v27  ;;  %v10810_v57 = vpop.permute.xlu0 %10809  ;;  %13529 = vmatmul.mubr.msk.f32.vlgmr.msra.gmra.mxu1 %vm9513_vm4, %v10815_v27 }
0x20c9   :  { %10812 = vst.msk [vmem:[#allocation5 + $0xa] sm:$0x3] %vm9731_vm2, %v10810_v57  ;;  %13518 = vmatmul.mubr.msk.f32.vlgmr.msra.gmra.mxu0 %vm9513_vm4, %v10810_v57  ;;  %13543 = vmatpush3.msk.msra.mxu1 %vm1238_vm3, %v13785_v44 }
0x20ca   :  { %13532 = vmatpush3.msk.msra.mxu0 %vm1238_vm3, %v13786_v5  ;;  %13544 = vmatprep.subr.mxu1 %v13819_v42 }
0x20cb   :  { %13533 = vmatprep.subr.mxu0 %v13819_v42  ;;  %13545 = vmatpush3.msra.mxu1 %v13787_v32 }
0x20cc   :  { %13534 = vmatpush3.msra.mxu0 %v13788_v16  ;;  %13546 = vmatprep.subr.mxu1 %v13819_v42 }
0x20cd   :  { %13535 = vmatprep.subr.mxu0 %v13819_v42  ;;  %13547 = vmatpush3.msra.mxu1 %v13789_v50 }
0x20ce   :  { %13536 = vmatpush3.msra.mxu0 %v13790_v3  ;;  %13548 = vmatprep.subr.mxu1 %v13819_v42 }
0x20cf   :  { %13537 = vmatprep.subr.mxu0 %v13819_v42  ;;  %13549 = vmatpush3.msra.mxu1 %v13791_v11 }
0x20d0   :  { %13550 = vmatprep.mubr.msk.f32.mxu1 %vm13820_vm0, %v13819_v42  ;;  %13538 = vmatpush3.msra.mxu0 %v13792_v46 }
0x20d1   :  { %13539 = vmatprep.mubr.msk.f32.mxu0 %vm13820_vm0, %v13819_v42  ;;  %13553 = vmatprep.subr.mxu0 %v13819_v42 }
0x20d2   :  { %13564 = vmatprep.subr.mxu1 %v13819_v42 }
0x2188   :  { %v10962_v15 = vpop.f32.mrf.mxu1 }
0x2189   :  { %v10890_v36 = vpop.f32.mrf.mxu0  ;;  %v10963_v13 = vadd.f32 %v17544_v6, %v10962_v15 }
0x218a   :  { %v10891_v8 = vadd.f32 %v17539_v61, %v10890_v36  ;;  %v13530_v56 = vpop.f32.mrf.mxu1 }
0x218b   :  { %v13519_v55 = vpop.f32.mrf.mxu0  ;;  %10992 = vrot.lane.b32.xlu1 %v10963_v13, %s13821_s26  ;;  %v10967_v63 = vadd.f32 %v10963_v13, %v10821_v33 }
0x218c   :  { %10981 = vrot.lane.b32.xlu0 %v10891_v8, %s13821_s26  ;;  %v10966_v51 = vadd.f32 %v10891_v8, %v10819_v4 }
0x218d   :  { %v12513_v9 = vmul.f32 -1.442695, %v10967_v63 }
0x218e   :  { %v12512_v40 = vmul.f32 -1.442695, %v10966_v51 }
0x218f   :  { %13747 = vpow2.f32 %v12513_v9 }
0x2190   :  { %13749 = vpow2.f32 %v12512_v40 }
0x219c   :  { %v13748_v45 = vpop.eup %13747 }
0x219d   :  { %v13750_v59 = vpop.eup %13749  ;;  %v10977_v41 = vadd.f32 1.0, %v13748_v45 }
0x219e   :  { %v10971_v6 = vadd.f32 1.0, %v13750_v59  ;;  %v17875_v59 = vld [vmem:[%s18145_s14 + $0x18] sm:$0x1] }
0x219f   :  { %13751 = vrcp.f32 %v10977_v41  ;;  %v17880_v41 = vld [vmem:[%s18144_s13 + $0x18] sm:$0x1] }
0x21a0   :  { %13753 = vrcp.f32 %v10971_v6  ;;  %v17885_v6 = vld [vmem:[%s18145_s14 + $0x10] sm:$0xff] }
0x21ac   :  { %v13752_v61 = vpop.eup %13751 }
0x21ad   :  { %v13754_v35 = vpop.eup %13753 }
0x21fd   :  { %v10993_v28 = vpop.permute.xlu1 %10992 }
0x21fe   :  { %v10995_v21 = vmul.f32 %v13752_v61, %v10993_v28  ;;  %v10982_v30 = vpop.permute.xlu0 %10981  ;;  %v17901_v28 = vld [vmem:[%s18145_s14 + $0x8] sm:$0xff] }
0x21ff   :  { %v10984_v25 = vmul.f32 %v13754_v35, %v10982_v30  ;;  %v17920_v30 = vld [vmem:[%s18144_s13] sm:$0xff] }
0x2200   :  { %10997 = vrot.lane.b32.xlu1 %v10995_v21, %s13822_s2  ;;  %v17915_v21 = vld [vmem:[%s18145_s14] sm:$0xff] }
0x2201   :  { %10986 = vrot.lane.b32.xlu0 %v10984_v25, %s13822_s2 }
0x2272   :  { %v10998_v62 = vpop.permute.xlu1 %10997 }
0x2273   :  { %v11000_v20 = vadd.f32 %v10998_v62, %v10821_v33  ;;  %v10987_v54 = vpop.permute.xlu0 %10986 }
0x2274   :  { %v10989_v58 = vadd.f32 %v10987_v54, %v10819_v4 }
0x2275   :  { %13755 = vtanh.f32 %v11000_v20 }
0x2276   :  { %13757 = vtanh.f32 %v10989_v58 }
0x2282   :  { %v13756_v7 = vpop.eup %13755 }
0x2283   :  { %v13758_v29 = vpop.eup %13757  ;;  %v11013_v39 = vsub.f32 %v17786_v47, %v13756_v7 }
0x2284   :  { %v11002_v23 = vsub.f32 %v17788_v14, %v13758_v29 }
0x2285   :  { %11015 = vrot.lane.b32.xlu1 %v11013_v39, %s13823_s5 }
0x2286   :  { %11004 = vrot.lane.b32.xlu0 %v11002_v23, %s13823_s5 }
0x22f7   :  { %v11016_v10 = vpop.permute.xlu1 %11015 }
0x22f8   :  { %v11018_v17 = vmul.f32 %v13752_v61, %v11016_v10  ;;  %v11005_v60 = vpop.permute.xlu0 %11004  ;;  %v17894_v61 = vld [vmem:[%s18144_s13 + $0x10] sm:$0xff] }
0x22f9   :  { %v11007_v53 = vmul.f32 %v13754_v35, %v11005_v60  ;;  %v17906_v35 = vld [vmem:[%s18144_s13 + $0x8] sm:$0xff] }
0x22fa   :  { %11020 = vrot.lane.b32.xlu1 %v11018_v17, %s13824_s6 }
0x22fb   :  { %11009 = vrot.lane.b32.xlu0 %v11007_v53, %s13824_s6 }
0x236c   :  { %v11021_v26 = vpop.permute.xlu1 %11020 }
0x236d   :  { %v11023_v37 = vadd.f32 %v13756_v7, %v11021_v26  ;;  %v11010_v49 = vpop.permute.xlu0 %11009  ;;  %v17949_v26 = vld [vmem:[%s18146_s15] ss:$0 sm:$0xff] }
0x236e   :  { %v11012_v2 = vadd.f32 %v13758_v29, %v11010_v49 }
0x236f   :  { %11030 = vrot.lane.b32.xlu1 %v11023_v37, %s13821_s26 }
0x2370   :  { %11025 = vrot.lane.b32.xlu0 %v11012_v2, %s13821_s26 }
0x23e1   :  { %v11031_v38 = vpop.permute.xlu1 %11030 }
0x23e2   :  { %11033 = vst.msk [vmem:[#allocation6 + $0x2] sm:$0x3] %vm9731_vm2, %v11031_v38  ;;  %v11026_v31 = vpop.permute.xlu0 %11025  ;;  %13551 = vmatmul.mubr.msk.f32.vlgmr.msra.gmra.mxu1 %vm9513_vm4, %v11031_v38 }
0x23e3   :  { %11028 = vst.msk [vmem:[#allocation5 + $0xc] sm:$0x3] %vm9731_vm2, %v11026_v31  ;;  %13540 = vmatmul.mubr.msk.f32.vlgmr.msra.gmra.mxu0 %vm9513_vm4, %v11026_v31  ;;  %13572 = vmatprep.mubr.msk.f32.mxu1 %vm13820_vm0, %v13819_v42 }
0x23e4   :  { %13561 = vmatprep.mubr.msk.f32.mxu0 %vm13820_vm0, %v13819_v42  ;;  %13554 = vmatpush3.msk.msra.mxu0 %vm1238_vm3, %v17875_v59 }
0x23e5   :  { %13565 = vmatpush3.msk.msra.mxu1 %vm1238_vm3, %v17880_v41  ;;  %13555 = vmatprep.subr.mxu0 %v13819_v42 }
0x23e6   :  { %13566 = vmatprep.subr.mxu1 %v13819_v42  ;;  %13556 = vmatpush3.msra.mxu0 %v17885_v6 }
0x23e7   :  { %13567 = vmatpush3.msra.mxu1 %v17894_v61  ;;  %13557 = vmatprep.subr.mxu0 %v13819_v42 }
0x23e8   :  { %13568 = vmatprep.subr.mxu1 %v13819_v42  ;;  %13558 = vmatpush3.msra.mxu0 %v17901_v28 }
0x23e9   :  { %13569 = vmatpush3.msra.mxu1 %v17906_v35  ;;  %13559 = vmatprep.subr.mxu0 %v13819_v42 }
0x23ea   :  { %13570 = vmatprep.subr.mxu1 %v13819_v42  ;;  %13560 = vmatpush3.msra.mxu0 %v17915_v21 }
0x23eb   :  { %13571 = vmatpush3.msra.mxu1 %v17920_v30  ;;  %13575 = vmatprep.subr.mxu0 %v13819_v42 }
0x23ec   :  { %13586 = vmatprep.subr.mxu1 %v13819_v42 }
0x24a2   :  { %v11177_v24 = vpop.f32.mrf.mxu1 }
0x24a3   :  { %v11105_v22 = vpop.f32.mrf.mxu0  ;;  %v11178_v18 = vadd.f32 %v13793_v34, %v11177_v24 }
0x24a4   :  { %v11106_v48 = vadd.f32 %v13794_v43, %v11105_v22  ;;  %v13552_v19 = vpop.f32.mrf.mxu1  ;;  %v17955_v22 = vld [vmem:[%s18147_s16] ss:$0 sm:$0xff] }
0x24a5   :  { %v13541_v12 = vpop.f32.mrf.mxu0  ;;  %11207 = vrot.lane.b32.xlu1 %v11178_v18, %s13821_s26  ;;  %v11182_v47 = vadd.f32 %v11178_v18, %v11036_v52  ;;  %v17959_v19 = vld [vmem:[#allocation7] ss:$0 sm:$0xff] }
0x24a6   :  { %11196 = vrot.lane.b32.xlu0 %v11106_v48, %s13821_s26  ;;  %v11181_v0 = vadd.f32 %v11106_v48, %v11035_v1  ;;  %v13825_v48 = vmov 0  }
0x24a7   :  { %v12519_v14 = vmul.f32 -1.442695, %v11182_v47  ;;  %13673 = vset.pattern.permute.xlu1 %v13825_v48  ;;  %13674 = vset.pattern.permute.xlu0 %v13825_v48 }
0x24a8   :  { %v12518_v27 = vmul.f32 -1.442695, %v11181_v0 }
0x24a9   :  { %13759 = vpow2.f32 %v12519_v14 }
0x24aa   :  { %13761 = vpow2.f32 %v12518_v27 }
0x24b6   :  { %v13760_v57 = vpop.eup %13759 }
0x24b7   :  { %v13762_v44 = vpop.eup %13761  ;;  %v11192_v5 = vadd.f32 1.0, %v13760_v57 }
0x24b8   :  { %v11186_v32 = vadd.f32 1.0, %v13762_v44 }
0x24b9   :  { %13763 = vrcp.f32 %v11192_v5 }
0x24ba   :  { %13765 = vrcp.f32 %v11186_v32 }
0x24c6   :  { %v13764_v16 = vpop.eup %13763 }
0x24c7   :  { %v13766_v3 = vpop.eup %13765 }
0x2517   :  { %v11208_v50 = vpop.permute.xlu1 %11207 }
0x2518   :  { %v11210_v11 = vmul.f32 %v13764_v16, %v11208_v50  ;;  %v11197_v46 = vpop.permute.xlu0 %11196 }
0x2519   :  { %v11199_v15 = vmul.f32 %v13766_v3, %v11197_v46  ;;  %v17966_v46 = vld [vmem:[%s18149_s18 + $0x18] sm:$0x1] }
0x251a   :  { %11212 = vrot.lane.b32.xlu1 %v11210_v11, %s13822_s2 }
0x251b   :  { %11201 = vrot.lane.b32.xlu0 %v11199_v15, %s13822_s2  ;;  %v11267_v15 = vld [vmem:[%s18150_s19 + $0x18] sm:$0x1] }
0x258c   :  { %v11213_v36 = vpop.permute.xlu1 %11212 }
0x258d   :  { %v11215_v13 = vadd.f32 %v11213_v36, %v11036_v52  ;;  %v11202_v8 = vpop.permute.xlu0 %11201  ;;  %v17978_v36 = vld [vmem:[%s18149_s18 + $0x10] sm:$0xff] }
0x258e   :  { %v11204_v56 = vadd.f32 %v11202_v8, %v11035_v1  ;;  %v17986_v8 = vld [vmem:[%s18149_s18 + $0x8] sm:$0xff] }
0x258f   :  { %13767 = vtanh.f32 %v11215_v13  ;;  %v11266_v13 = vld [vmem:[%s18150_s19 + $0x10] sm:$0xff] }
0x2590   :  { %13769 = vtanh.f32 %v11204_v56  ;;  %v11265_v56 = vld [vmem:[%s18150_s19 + $0x8] sm:$0xff] }
0x259c   :  { %v13768_v55 = vpop.eup %13767 }
0x259d   :  { %v13770_v33 = vpop.eup %13769  ;;  %v11228_v4 = vsub.f32 %v11023_v37, %v13768_v55 }
0x259e   :  { %v11217_v63 = vsub.f32 %v11012_v2, %v13770_v33 }
0x259f   :  { %11230 = vrot.lane.b32.xlu1 %v11228_v4, %s13823_s5 }
0x25a0   :  { %11219 = vrot.lane.b32.xlu0 %v11217_v63, %s13823_s5 }
0x2611   :  { %v11231_v51 = vpop.permute.xlu1 %11230 }
0x2612   :  { %v11233_v9 = vmul.f32 %v13764_v16, %v11231_v51  ;;  %v11220_v40 = vpop.permute.xlu0 %11219 }
0x2613   :  { %v11222_v45 = vmul.f32 %v13766_v3, %v11220_v40 }
0x2614   :  { %11235 = vrot.lane.b32.xlu1 %v11233_v9, %s13824_s6 }
0x2615   :  { %11224 = vrot.lane.b32.xlu0 %v11222_v45, %s13824_s6 }
0x2686   :  { %v11236_v25 = vpop.permute.xlu1 %11235 }
0x2687   :  { %v11238_v62 = vadd.f32 %v13768_v55, %v11236_v25  ;;  %v11225_v20 = vpop.permute.xlu0 %11224  ;;  %v17997_v55 = vld [vmem:[%s18149_s18] sm:$0xff] }
0x2688   :  { %v11227_v54 = vadd.f32 %v13770_v33, %v11225_v20  ;;  %v11264_v33 = vld [vmem:[%s18150_s19] sm:$0xff] }
0x2689   :  { %11245 = vrot.lane.b32.xlu1 %v11238_v62, %s13821_s26 }
0x268a   :  { %11240 = vrot.lane.b32.xlu0 %v11227_v54, %s13821_s26 }
0x26fb   :  { %v11246_v58 = vpop.permute.xlu1 %11245 }
0x26fc   :  { %11248 = vst.msk [vmem:[#allocation6] sm:$0x3] %vm9731_vm2, %v11246_v58  ;;  %v11241_v7 = vpop.permute.xlu0 %11240 }
0x26fd   :  { %11243 = vst.msk [vmem:[#allocation5 + $0xe] sm:$0x3] %vm9731_vm2, %v11241_v7 }
0x2703   :  { %v11277_v29 = vld [vmem:[#allocation6] ss:$2 sm:$0xff] }
0x2704   :  { %v11278_v39 = vmul.f32 0.3, %v11277_v29  ;;  %v11274_v23 = vld [vmem:[#allocation5] ss:$2 sm:$0xff] }
0x2705   :  { %v11275_v10 = vmul.f32 0.3, %v11274_v23 }
0x2706   :  { %v17934_v17 = vmax.f32 %v11277_v29, %v11278_v39 }
0x2707   :  { %v17936_v60 = vmax.f32 %v11274_v23, %v11275_v10 }
0x2708   :  { %13562 = vmatmul.mubr.msk.f32.vlgmr.msra.gmra.mxu0 %vm9513_vm4, %v17934_v17 }
0x2709   :  { %13573 = vmatmul.mubr.msk.f32.vlgmr.msra.gmra.mxu1 %vm9513_vm4, %v17936_v60  ;;  %13583 = vmatprep.mubr.msk.f32.mxu0 %vm13820_vm0, %v13819_v42 }
0x270a   :  { %13594 = vmatprep.mubr.msk.f32.mxu1 %vm13820_vm0, %v13819_v42  ;;  %13587 = vmatpush3.msk.msra.mxu1 %vm1238_vm3, %v17966_v46 }
0x270b   :  { %13576 = vmatpush3.msk.msra.mxu0 %vm1238_vm3, %v11267_v15  ;;  %13588 = vmatprep.subr.mxu1 %v13819_v42 }
0x270c   :  { %13577 = vmatprep.subr.mxu0 %v13819_v42  ;;  %13589 = vmatpush3.msra.mxu1 %v17978_v36 }
0x270d   :  { %13578 = vmatpush3.msra.mxu0 %v11266_v13  ;;  %13590 = vmatprep.subr.mxu1 %v13819_v42 }
0x270e   :  { %13579 = vmatprep.subr.mxu0 %v13819_v42  ;;  %13591 = vmatpush3.msra.mxu1 %v17986_v8 }
0x270f   :  { %13580 = vmatpush3.msra.mxu0 %v11265_v56  ;;  %13592 = vmatprep.subr.mxu1 %v13819_v42 }
0x2710   :  { %13581 = vmatprep.subr.mxu0 %v13819_v42  ;;  %13593 = vmatpush3.msra.mxu1 %v17997_v55 }
0x2711   :  { %13582 = vmatpush3.msra.mxu0 %v11264_v33  ;;  %13608 = vmatprep.subr.mxu1 %v13819_v42 }
0x2712   :  { %13597 = vmatprep.subr.mxu0 %v13819_v42 }
0x27c8   :  { %v11352_v53 = vpop.f32.mrf.mxu0 }
0x27c9   :  { %v11428_v37 = vpop.f32.mrf.mxu1 }
0x27ca   :  { %v11429_v49 = vadd.f32 %v11428_v37, %v11352_v53  ;;  %v13563_v2 = vpop.f32.mrf.mxu0 }
0x27cb   :  { %v13574_v38 = vpop.f32.mrf.mxu1  ;;  %v11738_v2 = vld [vmem:[#allocation6 + $0x1] ss:$2 sm:$0xff] }
0x27cc   :  { %v11438_v31 = vadd.f32 %v17949_v26, %v11429_v49  ;;  %v11739_v38 = vmul.f32 0.3, %v11738_v2 }
0x27ce   :  { %v11439_v24 = vmul.f32 0.3, %v11438_v31 }
0x27d0   :  { %v11440_v34 = vmax.f32 %v11438_v31, %v11439_v24  ;;  %v18026_v31 = vmax.f32 %v11738_v2, %v11739_v38 }
0x27d2   :  { %v11447_v18 = vmul.f32 %v17955_v22, %v11440_v34  ;;  %v18071_v34 = vld [vmem:[%s18151_s20] sm:$0x1] }
0x27d4   :  { %v11449_v43 = vsel %vm11448_vm5, %v11447_v18, 0.0 }
0x27d5   :  { %11450 = vadd.xlane.f32.xlu0 %v11449_v43 }
0x285e   :  { %v11451_v12 = vpop.xlane.xlu0 %11450 }
0x285f   :  { %v11458_v52 = vadd.f32 %v17959_v19, %v11451_v12 }
0x2861   :  { %v12527_v1 = vmul.f32 -1.442695, %v11458_v52 }
0x2863   :  { %13771 = vpow2.f32 %v12527_v1 }
0x2870   :  { %v13772_v47 = vpop.eup %13771 }
0x2871   :  { %v11462_v0 = vadd.f32 1.0, %v13772_v47 }
0x2873   :  { %13773 = vrcp.f32 %v11462_v0 }
0x2880   :  { %v13774_v14 = vpop.eup %13773 }
0x2881   :  { %v11466_v27 = vsel %vm11465_vm6, %v13774_v14, 0.0 }
0x2882   :  { %v11467_v57 = vrot.slane %v11466_v27, 4 }
0x2884   :  { %v11468_v44 = vadd.f32 %v11467_v57, %v11466_v27 }
0x2886   :  { %v11469_v5 = vrot.slane %v11468_v44, 2 }
0x2888   :  { %v11470_v32 = vadd.f32 %v11469_v5, %v11468_v44 }
0x288a   :  { %v11471_v16 = vrot.slane %v11470_v32, 1 }
0x288c   :  { %v11472_v50 = vadd.f32 %v11471_v16, %v11470_v32 }
0x288e   :  { %13775 = vrcp.f32 %v11472_v50 }
0x289b   :  { %v13776_v3 = vpop.eup %13775 }
0x289c   :  { %v11474_v11 = vmul.f32 %v13776_v3, %v13774_v14  ;;  %v11734_v14 = vld [vmem:[#allocation5 + $0x1] ss:$2 sm:$0xff] }
0x289d   :  { %v11735_v57 = vmul.f32 0.3, %v11734_v14 }
0x289e   :  { %11477 = vperm.xlu1 %13673, %v11474_v11  }
0x289f   :  { %v11736_v44 = vmax.f32 %v11734_v14, %v11735_v57 }
0x2919   :  { %v11478_v4 = vpop.permute.xlu1 %11477 }
0x291a   :  { %v11480_v63 = vmul.f32 %v11478_v4, %v17936_v60  ;;  %v11490_v51 = vmul.f32 %v11478_v4, %v17934_v17 }
0x291c   :  { %v11481_v9 = vsel %vm9513_vm4, %v11480_v63, 0.0  ;;  %v11491_v40 = vsel %vm9513_vm4, %v11490_v51, 0.0 }
0x291d   :  { %v11482_v45 = vrot.slane %v11481_v9, 4  ;;  %v11492_v25 = vrot.slane %v11491_v40, 4 }
0x291f   :  { %v11483_v62 = vadd.f32 %v11482_v45, %v11481_v9  ;;  %v11493_v20 = vadd.f32 %v11492_v25, %v11491_v40 }
0x2921   :  { %v11484_v54 = vrot.slane %v11483_v62, 2  ;;  %v11494_v58 = vrot.slane %v11493_v20, 2 }
0x2923   :  { %v11485_v7 = vadd.f32 %v11484_v54, %v11483_v62  ;;  %v11495_v29 = vadd.f32 %v11494_v58, %v11493_v20 }
0x2925   :  { %v11486_v39 = vrot.slane %v11485_v7, 1  ;;  %v11496_v23 = vrot.slane %v11495_v29, 1 }
0x2927   :  { %v11487_v10 = vadd.f32 %v11486_v39, %v11485_v7  ;;  %v11497_v53 = vadd.f32 %v11496_v23, %v11495_v29 }
0x2929   :  { %v11488_v37 = vmul.f32 0.3, %v11487_v10  ;;  %v11498_v60 = vmul.f32 0.3, %v11497_v53 }
0x292b   :  { %v11489_v49 = vmax.f32 %v11487_v10, %v11488_v37  ;;  %v11499_v17 = vmax.f32 %v11497_v53, %v11498_v60 }
0x292d   :  { %13584 = vmatmul.mubr.msk.f32.vlgmr.msra.gmra.mxu0 %vm9513_vm4, %v11499_v17  ;;  %13595 = vmatmul.mubr.msk.f32.vlgmr.msra.gmra.mxu1 %vm9513_vm4, %v11489_v49 }
0x292e   :  { %13609 = vmatpush3.msk.msra.mxu1 %vm1238_vm3, %v17875_v59  ;;  %13616 = vmatprep.mubr.msk.f32.mxu1 %vm13820_vm0, %v13819_v42  ;;  %v18042_v59 = vld [vmem:[%s18152_s21 + $0x18] sm:$0x1] }
0x292f   :  { %13610 = vmatprep.subr.mxu1 %v13819_v42  ;;  %13605 = vmatprep.mubr.msk.f32.mxu0 %vm13820_vm0, %v13819_v42 }
0x2930   :  { %13611 = vmatpush3.msra.mxu1 %v17885_v6  ;;  %13598 = vmatpush3.msk.msra.mxu0 %vm1238_vm3, %v18042_v59  ;;  %v18050_v6 = vld [vmem:[%s18152_s21 + $0x10] sm:$0xff] }
0x2931   :  { %13612 = vmatprep.subr.mxu1 %v13819_v42  ;;  %13599 = vmatprep.subr.mxu0 %v13819_v42 }
0x2932   :  { %13613 = vmatpush3.msra.mxu1 %v17901_v28  ;;  %v18055_v28 = vld [vmem:[%s18152_s21 + $0x8] sm:$0xff]  ;;  %13600 = vmatpush3.msra.mxu0 %v18050_v6 }
0x2933   :  { %13614 = vmatprep.subr.mxu1 %v13819_v42  ;;  %13601 = vmatprep.subr.mxu0 %v13819_v42 }
0x2934   :  { %13615 = vmatpush3.msra.mxu1 %v17915_v21  ;;  %v18062_v21 = vld [vmem:[%s18152_s21] sm:$0xff]  ;;  %13602 = vmatpush3.msra.mxu0 %v18055_v28 }
0x2935   :  { %13617 = vmatmul.mubr.msk.f32.vlgmr.msra.gmra.mxu1 %vm9513_vm4, %v18026_v31  ;;  %13630 = vmatprep.subr.mxu1 %v13819_v42 }
0x2936   :  { %13631 = vmatpush3.msk.msra.mxu1 %vm1238_vm3, %v11267_v15  ;;  %13638 = vmatprep.mubr.msk.f32.mxu1 %vm13820_vm0, %v13819_v42 }
0x2937   :  { %13632 = vmatprep.subr.mxu1 %v13819_v42  ;;  %13603 = vmatprep.subr.mxu0 %v13819_v42 }
0x2938   :  { %13633 = vmatpush3.msra.mxu1 %v11266_v13  ;;  %13604 = vmatpush3.msra.mxu0 %v18062_v21 }
0x2939   :  { %13634 = vmatprep.subr.mxu1 %v13819_v42  ;;  %13619 = vmatprep.subr.mxu0 %v13819_v42 }
0x293a   :  { %13635 = vmatpush3.msra.mxu1 %v11265_v56 }
0x293b   :  { %13636 = vmatprep.subr.mxu1 %v13819_v42 }
0x293c   :  { %13637 = vmatpush3.msra.mxu1 %v11264_v33 }
0x293d   :  { %13652 = vmatprep.subr.mxu1 %v13819_v42 }
0x29ed   :  { %v11572_v24 = vpop.f32.mrf.mxu0  ;;  %v11648_v18 = vpop.f32.mrf.mxu1 }
0x29ee   :  { %v11649_v43 = vadd.f32 %v11648_v18, %v11572_v24 }
0x29ef   :  { %v13585_v48 = vpop.f32.mrf.mxu0  ;;  %v13596_v12 = vpop.f32.mrf.mxu1 }
0x29f0   :  { %v11652_v52 = vadd.f32 %v11649_v43, %v18071_v34 }
0x29f2   :  { %v11653_v1 = vmul.f32 0.3, %v11652_v52 }
0x29f4   :  { %v11654_v47 = vmax.f32 %v11652_v52, %v11653_v1 }
0x29f5   :  { %v11810_v0 = vpop.f32.mrf.mxu1 }
0x29f6   :  { %13606 = vmatmul.mubr.msk.f32.vlgmr.msra.gmra.mxu0 %vm9513_vm4, %v11654_v47 }
0x29f7   :  { %v13618_v27 = vpop.f32.mrf.mxu1  ;;  %13620 = vmatpush3.msk.msra.mxu0 %vm1238_vm3, %v17880_v41  ;;  %13627 = vmatprep.mubr.msk.f32.mxu0 %vm13820_vm0, %v13819_v42  ;;  %v18100_v41 = vld [vmem:[%s18153_s22] sm:$0x1]  ;;  %s13826_s22 = smov [#allocation8]  }
0x29f8   :  { %13621 = vmatprep.subr.mxu0 %v13819_v42  ;;  %s12164_s10 = sshll.u32 %s13826_s22, 4  ;;  %s12165_s10 = int_to_ptr.vmem [resolvable:$true] %s12164_s10 }
0x29f9   :  { %13622 = vmatpush3.msra.mxu0 %v17894_v61  ;;  %s13795_s15 = scalar_lea.vmem %s12165_s10, 32  ;;  %p13800_p1 = scmp.lt.s32.totalorder %s12165_s10, %s12165_s10 }
0x29fa   :  { %13623 = vmatprep.subr.mxu0 %v13819_v42  ;;  %p13796_p0 = scmp.ne.s32.totalorder %s12165_s10, %s13795_s15  ;;  %p13801_p2 = scmp.lt.s32.totalorder %s13795_s15, %s13795_s15 }
0x29fb   :  { %13624 = vmatpush3.msra.mxu0 %v17906_v35 }
0x29fc   :  { %13625 = vmatprep.subr.mxu0 %v13819_v42  ;;  %p13802_p3 = por %p13801_p2, %p13800_p1 }
0x29fd   :  { %13626 = vmatpush3.msra.mxu0 %v17920_v30 }
0x29fe   :  { %13628 = vmatmul.mubr.msk.f32.vlgmr.msra.gmra.mxu0 %vm9513_vm4, %v11736_v44  ;;  %13641 = vmatprep.subr.mxu0 %v13819_v42  ;;  %p13803_p4 = pnand %p13802_p3, %p13796_p0 }
0x29ff   :  { %13642 = vmatpush3.msk.msra.mxu0 %vm1238_vm3, %v17966_v46  ;;  %13649 = vmatprep.mubr.msk.f32.mxu0 %vm13820_vm0, %v13819_v42 }
0x2a00   :  { %13643 = vmatprep.subr.mxu0 %v13819_v42 }
0x2a01   :  { %13644 = vmatpush3.msra.mxu0 %v17978_v36 }
0x2a02   :  { %13645 = vmatprep.subr.mxu0 %v13819_v42 }
0x2a03   :  { %13646 = vmatpush3.msra.mxu0 %v17986_v8 }
0x2a04   :  { %13647 = vmatprep.subr.mxu0 %v13819_v42 }
0x2a05   :  { %13648 = vmatpush3.msra.mxu0 %v17997_v55 }
0x2ab6   :  { %v11727_v61 = vpop.f32.mrf.mxu0 }
0x2ab7   :  { %v11728_v35 = vadd.f32 %v11727_v61, %v18100_v41 }
0x2ab8   :  { %v13607_v30 = vpop.f32.mrf.mxu0 }
0x2ab9   :  { %11732 = vst.msk [vmem:[#allocation8] sm:$0x1] %vm11731_vm7, %v11728_v35 }
0x2abe   :  { %v11883_v5 = vpop.f32.mrf.mxu0 }
0x2abf   :  { %v11884_v32 = vadd.f32 %v11883_v5, %v11810_v0 }
0x2ac0   :  { %v13629_v16 = vpop.f32.mrf.mxu0 }
0x2ac1   :  { %v11887_v50 = vadd.f32 %v17949_v26, %v11884_v32 }
0x2ac3   :  { %v11888_v3 = vmul.f32 0.3, %v11887_v50 }
0x2ac5   :  { %v11889_v11 = vmax.f32 %v11887_v50, %v11888_v3 }
0x2ac7   :  { %v11890_v46 = vmul.f32 %v17955_v22, %v11889_v11 }
0x2ac9   :  { %v11891_v15 = vsel %vm11448_vm5, %v11890_v46, 0.0 }
0x2aca   :  { %11892 = vadd.xlane.f32.xlu1 %v11891_v15 }
0x2b53   :  { %v11893_v36 = vpop.xlane.xlu1 %11892 }
0x2b54   :  { %v11894_v13 = vadd.f32 %v17959_v19, %v11893_v36 }
0x2b56   :  { %v12538_v8 = vmul.f32 -1.442695, %v11894_v13 }
0x2b58   :  { %13777 = vpow2.f32 %v12538_v8 }
0x2b65   :  { %v13778_v56 = vpop.eup %13777 }
0x2b66   :  { %v11898_v55 = vadd.f32 1.0, %v13778_v56 }
0x2b68   :  { %13779 = vrcp.f32 %v11898_v55 }
0x2b75   :  { %v13780_v33 = vpop.eup %13779 }
0x2b76   :  { %v11901_v4 = vsel %vm11465_vm6, %v13780_v33, 0.0 }
0x2b77   :  { %v11902_v63 = vrot.slane %v11901_v4, 4 }
0x2b79   :  { %v11903_v26 = vadd.f32 %v11902_v63, %v11901_v4 }
0x2b7b   :  { %v11904_v51 = vrot.slane %v11903_v26, 2 }
0x2b7d   :  { %v11905_v9 = vadd.f32 %v11904_v51, %v11903_v26 }
0x2b7f   :  { %v11906_v40 = vrot.slane %v11905_v9, 1 }
0x2b81   :  { %v11907_v22 = vadd.f32 %v11906_v40, %v11905_v9 }
0x2b83   :  { %13781 = vrcp.f32 %v11907_v22 }
0x2b90   :  { %v13782_v45 = vpop.eup %13781 }
0x2b91   :  { %v11909_v25 = vmul.f32 %v13782_v45, %v13780_v33 }
0x2b93   :  { %11912 = vperm.xlu0 %13674, %v11909_v25  }
0x2c0e   :  { %v11913_v62 = vpop.permute.xlu0 %11912 }
0x2c0f   :  { %v11915_v19 = vmul.f32 %v11913_v62, %v11736_v44  ;;  %v11925_v20 = vmul.f32 %v11913_v62, %v18026_v31 }
0x2c11   :  { %v11916_v54 = vsel %vm9513_vm4, %v11915_v19, 0.0  ;;  %v11926_v58 = vsel %vm9513_vm4, %v11925_v20, 0.0 }
0x2c12   :  { %v11917_v7 = vrot.slane %v11916_v54, 4  ;;  %v11927_v29 = vrot.slane %v11926_v58, 4 }
0x2c14   :  { %v11918_v39 = vadd.f32 %v11917_v7, %v11916_v54  ;;  %v11928_v23 = vadd.f32 %v11927_v29, %v11926_v58 }
0x2c16   :  { %v11919_v10 = vrot.slane %v11918_v39, 2  ;;  %v11929_v53 = vrot.slane %v11928_v23, 2 }
0x2c18   :  { %v11920_v37 = vadd.f32 %v11919_v10, %v11918_v39  ;;  %v11930_v60 = vadd.f32 %v11929_v53, %v11928_v23 }
0x2c1a   :  { %v11921_v49 = vrot.slane %v11920_v37, 1  ;;  %v11931_v17 = vrot.slane %v11930_v60, 1 }
0x2c1c   :  { %v11922_v2 = vadd.f32 %v11921_v49, %v11920_v37  ;;  %v11932_v38 = vadd.f32 %v11931_v17, %v11930_v60 }
0x2c1e   :  { %v11923_v24 = vmul.f32 0.3, %v11922_v2  ;;  %v11933_v18 = vmul.f32 0.3, %v11932_v38 }
0x2c20   :  { %v11924_v43 = vmax.f32 %v11922_v2, %v11923_v24  ;;  %v11934_v31 = vmax.f32 %v11932_v38, %v11933_v18 }
0x2c22   :  { %13639 = vmatmul.mubr.msk.f32.vlgmr.msra.gmra.mxu1 %vm9513_vm4, %v11934_v31  ;;  %13650 = vmatmul.mubr.msk.f32.vlgmr.msra.gmra.mxu0 %vm9513_vm4, %v11924_v43 }
0x2c23   :  { %13653 = vmatpush3.msk.msra.mxu1 %vm1238_vm3, %v18042_v59  ;;  %13660 = vmatprep.mubr.msk.f32.mxu1 %vm13820_vm0, %v13819_v42 }
0x2c24   :  { %13654 = vmatprep.subr.mxu1 %v13819_v42 }
0x2c25   :  { %13655 = vmatpush3.msra.mxu1 %v18050_v6 }
0x2c26   :  { %13656 = vmatprep.subr.mxu1 %v13819_v42 }
0x2c27   :  { %13657 = vmatpush3.msra.mxu1 %v18055_v28 }
0x2c28   :  { %13658 = vmatprep.subr.mxu1 %v13819_v42 }
0x2c29   :  { %13659 = vmatpush3.msra.mxu1 %v18062_v21 }
0x2ce2   :  { %v12004_v48 = vpop.f32.mrf.mxu1  ;;  %v12077_v12 = vpop.f32.mrf.mxu0 }
0x2ce3   :  { %v12078_v52 = vadd.f32 %v12077_v12, %v12004_v48 }
0x2ce4   :  { %v13640_v1 = vpop.f32.mrf.mxu1  ;;  %v13651_v59 = vpop.f32.mrf.mxu0 }
0x2ce5   :  { %v12081_v47 = vadd.f32 %v12078_v52, %v18071_v34 }
0x2ce7   :  { %v12082_v0 = vmul.f32 0.3, %v12081_v47 }
0x2ce9   :  { %v12083_v14 = vmax.f32 %v12081_v47, %v12082_v0 }
0x2ceb   :  { %13661 = vmatmul.mubr.msk.f32.vlgmr.msra.gmra.mxu1 %vm9513_vm4, %v12083_v14 }
0x2dab   :  { %v12153_v6 = vpop.f32.mrf.mxu1 }
0x2dac   :  { %v12154_v28 = vadd.f32 %v12153_v6, %v18100_v41 }
0x2dad   :  { %v13662_v42 = vpop.f32.mrf.mxu1 }
0x2dae   :  { %12157 = vst.msk [vmem:[#allocation8 + $0x1] sm:$0x1] %vm11731_vm7, %v12154_v28 }
0x2daf   :  { %13806 = shalt.err (!%p13803_p4)
}
0x2db0   :  { %12167 = dma.vmem_to_hbm [thread:$0]  %s12165_s10, 32, %s18154_s23, [#allocation9]  }
0x2db1   :  { %13815 = dma.done.wait [#allocation9], 32  }
0x2db2   :  { %13816 = vsyncadd [#allocation9], 4294967264 }
0x2db3   :  { %12171 = vsyncpa [#allocation9], 1 }

</bundles_post_ra>
